<compile_context>
chip_gen: v7x
topology: tpu7x:2x2x1
jax: 0.10.0
libtpu: 0.0.40
codegen_flags: <defaults>
</compile_context>

<pallas_src>
import functools
from collections import namedtuple

import jax
import jax.numpy as jnp
from jax.experimental import pallas as pl
from jax.experimental.pallas import tpu as pltpu

Genotype = namedtuple("Genotype", "normal normal_concat reduce reduce_concat")

GENOTYPE = Genotype(
    normal=[
        ("sep_conv_3x3", 0), ("skip_connect", 1),
        ("max_pool_3x3", 0), ("avg_pool_3x3", 1),
        ("dil_conv_3x3", 2), ("skip_connect", 0),
        ("sep_conv_3x3", 3), ("max_pool_3x3", 1),
    ],
    normal_concat=[2, 3, 4, 5],
    reduce=[],            # unused (reduction=False)
    reduce_concat=[2, 3, 4, 5],
)

_PAD_MAX = 2    # largest spatial halo used (dil_conv_3x3: pad = 2)
_COL_OFF = 8    # interior column offset in the pad scratch (sublane aligned)
_NEG = float(jnp.finfo(jnp.float32).min)


# --------------------------------------------------------------------------
# Fused single-kernel cell
# --------------------------------------------------------------------------

def _build_cell_kernel(genotype, H, W, C):
    op_names, indices = zip(*genotype.normal)
    concat = list(genotype.normal_concat)
    steps = len(op_names) // 2
    HW = H * W

    def kernel(s0_ref, s1_ref, *rest):
        *param_refs, o_ref, padbuf = rest
        pit = iter(param_refs)

        def conv1x1(x3, w_ref, b_ref):
            # ReLU -> 1x1 conv (BN scale pre-folded) -> + bias
            x = jnp.maximum(x3.reshape(HW, x3.shape[-1]), 0.0)
            y = jnp.dot(x, w_ref[...], preferred_element_type=jnp.float32)
            return (y + b_ref[...]).reshape(H, W, C)

        def padded(x, fill):
            # Place x (H, W, C) inside the VMEM pad scratch surrounded by
            # `fill`.  The interior sits at a sublane-aligned column offset
            # so both stores are clean; taps are sliced from the loaded
            # value afterwards (padding never touches HBM).
            padbuf[...] = jnp.full(padbuf.shape, fill, jnp.float32)
            padbuf[_PAD_MAX:_PAD_MAX + H, _COL_OFF:_COL_OFF + W, :] = x
            return padbuf[...]

        def tap(xp, ky, kx, dil, pad):
            r0 = _PAD_MAX - pad + ky * dil
            c0 = _COL_OFF - pad + kx * dil
            return xp[r0:r0 + H, c0:c0 + W, :]

        def dw_pw(x, dil, w_ref, b_ref):
            # ReLU -> depthwise 3x3 (dilation dil) -> pointwise 1x1 -> BN.
            # Per-tap (C, C) matrices pre-folded on the host: each shifted
            # tap is a direct MXU matmul; partials accumulate on the VPU.
            xp = padded(jnp.maximum(x, 0.0), 0.0)
            acc = None
            t = 0
            for ky in range(3):
                for kx in range(3):
                    col = tap(xp, ky, kx, dil, dil).reshape(HW, C)
                    y = jnp.dot(col, w_ref[t],
                                preferred_element_type=jnp.float32)
                    acc = y if acc is None else acc + y
                    t += 1
            return (acc + b_ref[...]).reshape(H, W, C)

        def pool3(x, is_max):
            xp = padded(x, _NEG if is_max else 0.0)
            acc = tap(xp, 0, 0, 1, 1)
            for ky in range(3):
                for kx in range(3):
                    if ky == 0 and kx == 0:
                        continue
                    t = tap(xp, ky, kx, 1, 1)
                    acc = jnp.maximum(acc, t) if is_max else acc + t
            if not is_max:
                # count_include_pad=False: multiply by reciprocal counts
                # built in-register (pure VPU, no divide).
                ry = jax.lax.broadcasted_iota(jnp.int32, (H, W, C), 0)
                rx = jax.lax.broadcasted_iota(jnp.int32, (H, W, C), 1)
                iy = jnp.where((ry == 0) | (ry == H - 1), 0.5, 1.0 / 3.0)
                ix = jnp.where((rx == 0) | (rx == W - 1), 0.5, 1.0 / 3.0)
                acc = acc * (iy * ix)
            return acc

        def apply(name, x):
            if name == "skip_connect":
                return x
            if name == "max_pool_3x3":
                return pool3(x, True)
            if name == "avg_pool_3x3":
                return pool3(x, False)
            if name == "sep_conv_3x3":
                y = dw_pw(x, 1, next(pit), next(pit))
                return dw_pw(y, 1, next(pit), next(pit))
            if name == "dil_conv_3x3":
                return dw_pw(x, 2, next(pit), next(pit))
            raise NotImplementedError(name)

        # Preprocess (ReLUConvBN 1x1), then the DARTS DAG, all VMEM-resident.
        s0 = conv1x1(s0_ref[0].astype(jnp.float32), next(pit), next(pit))
        s1 = conv1x1(s1_ref[0].astype(jnp.float32), next(pit), next(pit))

        states = [s0, s1]
        for i in range(steps):
            h1 = apply(op_names[2 * i], states[indices[2 * i]])
            h2 = apply(op_names[2 * i + 1], states[indices[2 * i + 1]])
            states.append(h1 + h2)          # fused add, no extra launch

        out = jnp.concatenate([states[i] for i in concat], axis=-1)
        o_ref[0] = out.astype(o_ref.dtype)

    return kernel


def cell_forward_pallas(flat_params, genotype, s0, s1, C):
    N, H, W, C_pp = s0.shape
    C_p = s1.shape[-1]
    n_out = len(genotype.normal_concat) * C

    kernel = _build_cell_kernel(genotype, H, W, C)

    in_specs = [
        pl.BlockSpec((1, H, W, C_pp), lambda n: (n, 0, 0, 0)),
        pl.BlockSpec((1, H, W, C_p), lambda n: (n, 0, 0, 0)),
    ]
    for p in flat_params:
        zeros = (0,) * p.ndim
        in_specs.append(pl.BlockSpec(p.shape, lambda n, _z=zeros: _z))

    return pl.pallas_call(
        kernel,
        out_shape=jax.ShapeDtypeStruct((N, H, W, n_out), s0.dtype),
        grid=(N,),
        in_specs=in_specs,
        out_specs=pl.BlockSpec((1, H, W, n_out), lambda n: (n, 0, 0, 0)),
        scratch_shapes=[
            pltpu.VMEM((H + 2 * _PAD_MAX, _COL_OFF + W + _PAD_MAX, C),
                       jnp.float32)],
        compiler_params=pltpu.CompilerParams(
            dimension_semantics=("parallel",)),
    )(s0, s1, *flat_params)


# --------------------------------------------------------------------------
# Parameter init (deterministic, eval-mode BN folded to scale/bias)
# --------------------------------------------------------------------------

def _fold_bn(key, C, affine, eps=1e-5):
    k1, k2, k3, k4 = jax.random.split(key, 4)
    running_mean = 0.1 * jax.random.normal(k1, (C,), jnp.float32)
    running_var = 1.0 + 0.1 * jax.random.uniform(k2, (C,), jnp.float32)
    if affine:
        gamma = 1.0 + 0.1 * jax.random.normal(k3, (C,), jnp.float32)
        beta = 0.1 * jax.random.normal(k4, (C,), jnp.float32)
    else:
        gamma = jnp.ones((C,), jnp.float32)
        beta = jnp.zeros((C,), jnp.float32)
    scale = gamma / jnp.sqrt(running_var + eps)
    bias = beta - running_mean * scale
    return scale, bias


def init_relu_conv_bn(key, Cin, Cout):
    kw, kb = jax.random.split(key)
    w = jax.random.normal(kw, (Cin, Cout), jnp.float32) / jnp.sqrt(float(Cin))
    scale, bias = _fold_bn(kb, Cout, affine=True)
    return {"w": w, "scale": scale, "bias": bias}


def init_sep_conv(key, C):
    k = jax.random.split(key, 6)
    return {
        "dw1": jax.random.normal(k[0], (9, C), jnp.float32) / 3.0,
        "pw1": jax.random.normal(k[1], (C, C), jnp.float32) / jnp.sqrt(float(C)),
        "bn1": _fold_bn(k[2], C, affine=True),
        "dw2": jax.random.normal(k[3], (9, C), jnp.float32) / 3.0,
        "pw2": jax.random.normal(k[4], (C, C), jnp.float32) / jnp.sqrt(float(C)),
        "bn2": _fold_bn(k[5], C, affine=True),
    }


def init_dil_conv(key, C):
    k = jax.random.split(key, 3)
    return {
        "dw": jax.random.normal(k[0], (9, C), jnp.float32) / 3.0,
        "pw": jax.random.normal(k[1], (C, C), jnp.float32) / jnp.sqrt(float(C)),
        "bn": _fold_bn(k[2], C, affine=True),
    }


def init_cell(key, genotype, C_prev_prev, C_prev, C):
    keys = jax.random.split(key, 2 + len(genotype.normal))
    params = {
        "pre0": init_relu_conv_bn(keys[0], C_prev_prev, C),
        "pre1": init_relu_conv_bn(keys[1], C_prev, C),
        "ops": [],
    }
    for i, (name, _) in enumerate(genotype.normal):
        k = keys[2 + i]
        if name == "sep_conv_3x3":
            params["ops"].append(init_sep_conv(k, C))
        elif name == "dil_conv_3x3":
            params["ops"].append(init_dil_conv(k, C))
        else:
            params["ops"].append(None)  # skip_connect / pools: no params
    return params


# --------------------------------------------------------------------------
# Host-side folding:  dw(3x3 depthwise) . pw(1x1) . BN  ->  nine (C, C) mats
# (legal: no nonlinearity between dw and pw in DARTS SepConv / DilConv)
# --------------------------------------------------------------------------

def _fuse_dw_pw_bn(dw, pw, bn):
    scale, bias = bn
    w = dw[:, :, None] * pw[None, :, :]               # (9, C, C)
    w = w * scale[None, None, :]
    return w.astype(jnp.float32), bias.reshape(1, -1).astype(jnp.float32)


def fuse_cell_params(params, genotype):
    flat = []
    for key in ("pre0", "pre1"):
        p = params[key]
        flat.append((p["w"] * p["scale"][None, :]).astype(jnp.float32))
        flat.append(p["bias"].reshape(1, -1).astype(jnp.float32))
    for (name, _), p in zip(genotype.normal, params["ops"]):
        if name == "sep_conv_3x3":
            flat += [*_fuse_dw_pw_bn(p["dw1"], p["pw1"], p["bn1"]),
                     *_fuse_dw_pw_bn(p["dw2"], p["pw2"], p["bn2"])]
        elif name == "dil_conv_3x3":
            flat += [*_fuse_dw_pw_bn(p["dw"], p["pw"], p["bn"])]
    return flat


# --------------------------------------------------------------------------
# Pure-JAX reference (unfused ops) for a numerical self-check
# --------------------------------------------------------------------------

def ref_cell_forward(params, genotype, s0, s1):
    def rcb(x, p):
        y = jnp.einsum("nhwc,cd->nhwd", jnp.maximum(x, 0.0), p["w"])
        return y * p["scale"] + p["bias"]

    def dwconv(x, dw, dil):
        H_, W_ = x.shape[1], x.shape[2]
        pad = dil
        xp = jnp.pad(x, ((0, 0), (pad, pad), (pad, pad), (0, 0)))
        acc = jnp.zeros_like(x)
        for ky in range(3):
            for kx in range(3):
                acc = acc + xp[:, ky * dil:ky * dil + H_,
                               kx * dil:kx * dil + W_, :] * dw[ky * 3 + kx]
        return acc

    def pw_bn(x, pw, bn):
        return jnp.einsum("nhwc,cd->nhwd", x, pw) * bn[0] + bn[1]

    def sep(x, p):
        y = pw_bn(dwconv(jnp.maximum(x, 0.0), p["dw1"], 1), p["pw1"], p["bn1"])
        y = pw_bn(dwconv(jnp.maximum(y, 0.0), p["dw2"], 1), p["pw2"], p["bn2"])
        return y

    def dil(x, p):
        return pw_bn(dwconv(jnp.maximum(x, 0.0), p["dw"], 2), p["pw"], p["bn"])

    def maxp(x):
        H_, W_ = x.shape[1], x.shape[2]
        neg = jnp.finfo(x.dtype).min
        xp = jnp.pad(x, ((0, 0), (1, 1), (1, 1), (0, 0)), constant_values=neg)
        taps = [xp[:, ky:ky + H_, kx:kx + W_, :]
                for ky in range(3) for kx in range(3)]
        return functools.reduce(jnp.maximum, taps)

    def avgp(x):
        H_, W_ = x.shape[1], x.shape[2]
        xp = jnp.pad(x, ((0, 0), (1, 1), (1, 1), (0, 0)))
        acc = sum(xp[:, ky:ky + H_, kx:kx + W_, :]
                  for ky in range(3) for kx in range(3))
        ones = jnp.pad(jnp.ones((H_, W_), jnp.float32), ((1, 1), (1, 1)))
        cnt = sum(ones[ky:ky + H_, kx:kx + W_]
                  for ky in range(3) for kx in range(3))
        return acc / cnt[None, :, :, None]

    def apply(name, p, x):
        if name == "skip_connect":
            return x
        if name == "max_pool_3x3":
            return maxp(x)
        if name == "avg_pool_3x3":
            return avgp(x)
        if name == "sep_conv_3x3":
            return sep(x, p)
        if name == "dil_conv_3x3":
            return dil(x, p)
        raise NotImplementedError(name)

    s0 = rcb(s0, params["pre0"])
    s1 = rcb(s1, params["pre1"])
    op_names, indices = zip(*genotype.normal)
    states = [s0, s1]
    for i in range(len(op_names) // 2):
        h1 = apply(op_names[2 * i], params["ops"][2 * i], states[indices[2 * i]])
        h2 = apply(op_names[2 * i + 1], params["ops"][2 * i + 1],
                   states[indices[2 * i + 1]])
        states.append(h1 + h2)
    return jnp.concatenate([states[i] for i in genotype.normal_concat], axis=-1)


# --------------------------------------------------------------------------

if __name__ == "__main__":
    key = jax.random.PRNGKey(0)
    k_s0, k_s1, k_param = jax.random.split(key, 3)

    N, H, W = 2, 8, 8
    C_prev_prev, C_prev, C = 16, 16, 16

    s0 = jax.random.normal(k_s0, (N, H, W, C_prev_prev), jnp.float32)
    s1 = jax.random.normal(k_s1, (N, H, W, C_prev), jnp.float32)

    params = init_cell(k_param, GENOTYPE, C_prev_prev, C_prev, C)
    flat_params = fuse_cell_params(params, GENOTYPE)

    out = cell_forward_pallas(flat_params, GENOTYPE, s0, s1, C)
    out = jax.block_until_ready(out)

    expected = (N, H, W, len(GENOTYPE.normal_concat) * C)  # NHWC of NCHW (N,64,8,8)
    assert out.shape == expected, (out.shape, expected)
    assert bool(jnp.all(jnp.isfinite(out)))

    ref = ref_cell_forward(params, GENOTYPE, s0, s1)
    err = float(jnp.max(jnp.abs(out - ref)))
    tol = 3e-2 * (1.0 + float(jnp.max(jnp.abs(ref))))
    assert err <= tol, (err, tol)

    print("KERNEL_OK")
</pallas_src>

<mosaic_0001>
module attributes {stable_mosaic.version = 11 : i64} {
  func.func @kernel(%arg0: i32, %arg1: memref<1x8x8x16xf32, #tpu.memory_space<vmem>>, %arg2: memref<1x8x8x16xf32, #tpu.memory_space<vmem>>, %arg3: memref<16x16xf32, #tpu.memory_space<vmem>>, %arg4: memref<1x16xf32, #tpu.memory_space<vmem>>, %arg5: memref<16x16xf32, #tpu.memory_space<vmem>>, %arg6: memref<1x16xf32, #tpu.memory_space<vmem>>, %arg7: memref<9x16x16xf32, #tpu.memory_space<vmem>>, %arg8: memref<1x16xf32, #tpu.memory_space<vmem>>, %arg9: memref<9x16x16xf32, #tpu.memory_space<vmem>>, %arg10: memref<1x16xf32, #tpu.memory_space<vmem>>, %arg11: memref<9x16x16xf32, #tpu.memory_space<vmem>>, %arg12: memref<1x16xf32, #tpu.memory_space<vmem>>, %arg13: memref<9x16x16xf32, #tpu.memory_space<vmem>>, %arg14: memref<1x16xf32, #tpu.memory_space<vmem>>, %arg15: memref<9x16x16xf32, #tpu.memory_space<vmem>>, %arg16: memref<1x16xf32, #tpu.memory_space<vmem>>, %arg17: memref<1x8x8x64xf32, #tpu.memory_space<vmem>>, %arg18: memref<12x18x16xf32, #tpu.memory_space<vmem>>) attributes {dimension_semantics = [#tpu.dimension_semantics<parallel>], iteration_bounds = array<i64: 2>, scalar_prefetch = 0 : i64, scratch_operands = 1 : i64, tpu.core_type = #tpu.core_type<tc>, window_params = [{transform_indices = @transform_0, window_bounds = array<i64: 1, 8, 8, 16>}, {transform_indices = @transform_1, window_bounds = array<i64: 1, 8, 8, 16>}, {pipeline_mode = #tpu.pipeline_mode<synchronous>, transform_indices = @transform_2, window_bounds = array<i64: 16, 16>}, {pipeline_mode = #tpu.pipeline_mode<synchronous>, transform_indices = @transform_3, window_bounds = array<i64: 1, 16>}, {pipeline_mode = #tpu.pipeline_mode<synchronous>, transform_indices = @transform_4, window_bounds = array<i64: 16, 16>}, {pipeline_mode = #tpu.pipeline_mode<synchronous>, transform_indices = @transform_5, window_bounds = array<i64: 1, 16>}, {pipeline_mode = #tpu.pipeline_mode<synchronous>, transform_indices = @transform_6, window_bounds = array<i64: 9, 16, 16>}, {pipeline_mode = #tpu.pipeline_mode<synchronous>, transform_indices = @transform_7, window_bounds = array<i64: 1, 16>}, {pipeline_mode = #tpu.pipeline_mode<synchronous>, transform_indices = @transform_8, window_bounds = array<i64: 9, 16, 16>}, {pipeline_mode = #tpu.pipeline_mode<synchronous>, transform_indices = @transform_9, window_bounds = array<i64: 1, 16>}, {pipeline_mode = #tpu.pipeline_mode<synchronous>, transform_indices = @transform_10, window_bounds = array<i64: 9, 16, 16>}, {pipeline_mode = #tpu.pipeline_mode<synchronous>, transform_indices = @transform_11, window_bounds = array<i64: 1, 16>}, {pipeline_mode = #tpu.pipeline_mode<synchronous>, transform_indices = @transform_12, window_bounds = array<i64: 9, 16, 16>}, {pipeline_mode = #tpu.pipeline_mode<synchronous>, transform_indices = @transform_13, window_bounds = array<i64: 1, 16>}, {pipeline_mode = #tpu.pipeline_mode<synchronous>, transform_indices = @transform_14, window_bounds = array<i64: 9, 16, 16>}, {pipeline_mode = #tpu.pipeline_mode<synchronous>, transform_indices = @transform_15, window_bounds = array<i64: 1, 16>}, {transform_indices = @transform_16, window_bounds = array<i64: 1, 8, 8, 64>}]} {
    %c0 = arith.constant 0 : index
    %c0_0 = arith.constant 0 : index
    %c0_1 = arith.constant 0 : index
    %c0_2 = arith.constant 0 : index
    %0 = vector.load %arg1[%c0, %c0_0, %c0_1, %c0_2] : memref<1x8x8x16xf32, #tpu.memory_space<vmem>>, vector<1x8x8x16xf32>
    %1 = vector.shape_cast %0 : vector<1x8x8x16xf32> to vector<8x8x16xf32>
    %2 = vector.shape_cast %1 : vector<8x8x16xf32> to vector<64x16xf32>
    %cst = arith.constant 0.000000e+00 : f32
    %3 = vector.broadcast %cst : f32 to vector<64x16xf32>
    %4 = arith.maximumf %2, %3 : vector<64x16xf32>
    %c0_3 = arith.constant 0 : index
    %c0_4 = arith.constant 0 : index
    %5 = vector.load %arg3[%c0_3, %c0_4] : memref<16x16xf32, #tpu.memory_space<vmem>>, vector<16x16xf32>
    %cst_5 = arith.constant dense<0.000000e+00> : vector<64x16xf32>
    %6 = tpu.matmul %4, %5, %cst_5 {dimension_numbers = #tpu.dot_dimension_numbers<[1], [0], [0], [1], [0, 0, 1, 1], [], []>} : vector<64x16xf32>, vector<16x16xf32>, vector<64x16xf32> -> vector<64x16xf32>
    %c0_6 = arith.constant 0 : index
    %c0_7 = arith.constant 0 : index
    %7 = vector.load %arg4[%c0_6, %c0_7] : memref<1x16xf32, #tpu.memory_space<vmem>>, vector<1x16xf32>
    %8 = vector.broadcast %7 : vector<1x16xf32> to vector<64x16xf32>
    %9 = arith.addf %6, %8 : vector<64x16xf32>
    %10 = vector.shape_cast %9 : vector<64x16xf32> to vector<8x8x16xf32>
    %c0_8 = arith.constant 0 : index
    %c0_9 = arith.constant 0 : index
    %c0_10 = arith.constant 0 : index
    %c0_11 = arith.constant 0 : index
    %11 = vector.load %arg2[%c0_8, %c0_9, %c0_10, %c0_11] : memref<1x8x8x16xf32, #tpu.memory_space<vmem>>, vector<1x8x8x16xf32>
    %12 = vector.shape_cast %11 : vector<1x8x8x16xf32> to vector<8x8x16xf32>
    %13 = vector.shape_cast %12 : vector<8x8x16xf32> to vector<64x16xf32>
    %cst_12 = arith.constant 0.000000e+00 : f32
    %14 = vector.broadcast %cst_12 : f32 to vector<64x16xf32>
    %15 = arith.maximumf %13, %14 : vector<64x16xf32>
    %c0_13 = arith.constant 0 : index
    %c0_14 = arith.constant 0 : index
    %16 = vector.load %arg5[%c0_13, %c0_14] : memref<16x16xf32, #tpu.memory_space<vmem>>, vector<16x16xf32>
    %cst_15 = arith.constant dense<0.000000e+00> : vector<64x16xf32>
    %17 = tpu.matmul %15, %16, %cst_15 {dimension_numbers = #tpu.dot_dimension_numbers<[1], [0], [0], [1], [0, 0, 1, 1], [], []>} : vector<64x16xf32>, vector<16x16xf32>, vector<64x16xf32> -> vector<64x16xf32>
    %c0_16 = arith.constant 0 : index
    %c0_17 = arith.constant 0 : index
    %18 = vector.load %arg6[%c0_16, %c0_17] : memref<1x16xf32, #tpu.memory_space<vmem>>, vector<1x16xf32>
    %19 = vector.broadcast %18 : vector<1x16xf32> to vector<64x16xf32>
    %20 = arith.addf %17, %19 : vector<64x16xf32>
    %21 = vector.shape_cast %20 : vector<64x16xf32> to vector<8x8x16xf32>
    %cst_18 = arith.constant 0.000000e+00 : f32
    %22 = vector.broadcast %cst_18 : f32 to vector<8x8x16xf32>
    %23 = arith.maximumf %10, %22 : vector<8x8x16xf32>
    %cst_19 = arith.constant 0.000000e+00 : f32
    %24 = vector.broadcast %cst_19 : f32 to vector<12x18x16xf32>
    %c0_20 = arith.constant 0 : index
    %c0_21 = arith.constant 0 : index
    %c0_22 = arith.constant 0 : index
    %25 = vector.load %arg18[%c0_20, %c0_21, %c0_22] : memref<12x18x16xf32, #tpu.memory_space<vmem>>, vector<12x18x16xf32>
    tpu.vector_store %arg18[%c0_20, %c0_21, %c0_22], %24 {strides = array<i32>} : memref<12x18x16xf32, #tpu.memory_space<vmem>>, vector<12x18x16xf32>,
    %c2 = arith.constant 2 : index
    %c8 = arith.constant 8 : index
    %c0_23 = arith.constant 0 : index
    %26 = vector.load %arg18[%c2, %c8, %c0_23] : memref<12x18x16xf32, #tpu.memory_space<vmem>>, vector<8x8x16xf32>
    tpu.vector_store %arg18[%c2, %c8, %c0_23], %23 {strides = array<i32>} : memref<12x18x16xf32, #tpu.memory_space<vmem>>, vector<8x8x16xf32>,
    %c0_24 = arith.constant 0 : index
    %c0_25 = arith.constant 0 : index
    %c0_26 = arith.constant 0 : index
    %27 = vector.load %arg18[%c0_24, %c0_25, %c0_26] : memref<12x18x16xf32, #tpu.memory_space<vmem>>, vector<12x18x16xf32>
    %28 = vector.extract_strided_slice %27 {offsets = [1, 7, 0], sizes = [8, 8, 16], strides = [1, 1, 1]} : vector<12x18x16xf32> to vector<8x8x16xf32>
    %29 = vector.shape_cast %28 : vector<8x8x16xf32> to vector<64x16xf32>
    %c0_27 = arith.constant 0 : index
    %c0_28 = arith.constant 0 : index
    %c0_29 = arith.constant 0 : index
    %30 = vector.load %arg7[%c0_27, %c0_28, %c0_29] : memref<9x16x16xf32, #tpu.memory_space<vmem>>, vector<1x16x16xf32>
    %31 = vector.shape_cast %30 : vector<1x16x16xf32> to vector<16x16xf32>
    %cst_30 = arith.constant dense<0.000000e+00> : vector<64x16xf32>
    %32 = tpu.matmul %29, %31, %cst_30 {dimension_numbers = #tpu.dot_dimension_numbers<[1], [0], [0], [1], [0, 0, 1, 1], [], []>} : vector<64x16xf32>, vector<16x16xf32>, vector<64x16xf32> -> vector<64x16xf32>
    %33 = vector.extract_strided_slice %27 {offsets = [1, 8, 0], sizes = [8, 8, 16], strides = [1, 1, 1]} : vector<12x18x16xf32> to vector<8x8x16xf32>
    %34 = vector.shape_cast %33 : vector<8x8x16xf32> to vector<64x16xf32>
    %c1 = arith.constant 1 : index
    %c0_31 = arith.constant 0 : index
    %c0_32 = arith.constant 0 : index
    %35 = vector.load %arg7[%c1, %c0_31, %c0_32] : memref<9x16x16xf32, #tpu.memory_space<vmem>>, vector<1x16x16xf32>
    %36 = vector.shape_cast %35 : vector<1x16x16xf32> to vector<16x16xf32>
    %cst_33 = arith.constant dense<0.000000e+00> : vector<64x16xf32>
    %37 = tpu.matmul %34, %36, %cst_33 {dimension_numbers = #tpu.dot_dimension_numbers<[1], [0], [0], [1], [0, 0, 1, 1], [], []>} : vector<64x16xf32>, vector<16x16xf32>, vector<64x16xf32> -> vector<64x16xf32>
    %38 = arith.addf %32, %37 : vector<64x16xf32>
    %39 = vector.extract_strided_slice %27 {offsets = [1, 9, 0], sizes = [8, 8, 16], strides = [1, 1, 1]} : vector<12x18x16xf32> to vector<8x8x16xf32>
    %40 = vector.shape_cast %39 : vector<8x8x16xf32> to vector<64x16xf32>
    %c2_34 = arith.constant 2 : index
    %c0_35 = arith.constant 0 : index
    %c0_36 = arith.constant 0 : index
    %41 = vector.load %arg7[%c2_34, %c0_35, %c0_36] : memref<9x16x16xf32, #tpu.memory_space<vmem>>, vector<1x16x16xf32>
    %42 = vector.shape_cast %41 : vector<1x16x16xf32> to vector<16x16xf32>
    %cst_37 = arith.constant dense<0.000000e+00> : vector<64x16xf32>
    %43 = tpu.matmul %40, %42, %cst_37 {dimension_numbers = #tpu.dot_dimension_numbers<[1], [0], [0], [1], [0, 0, 1, 1], [], []>} : vector<64x16xf32>, vector<16x16xf32>, vector<64x16xf32> -> vector<64x16xf32>
    %44 = arith.addf %38, %43 : vector<64x16xf32>
    %45 = vector.extract_strided_slice %27 {offsets = [2, 7, 0], sizes = [8, 8, 16], strides = [1, 1, 1]} : vector<12x18x16xf32> to vector<8x8x16xf32>
    %46 = vector.shape_cast %45 : vector<8x8x16xf32> to vector<64x16xf32>
    %c3 = arith.constant 3 : index
    %c0_38 = arith.constant 0 : index
    %c0_39 = arith.constant 0 : index
    %47 = vector.load %arg7[%c3, %c0_38, %c0_39] : memref<9x16x16xf32, #tpu.memory_space<vmem>>, vector<1x16x16xf32>
    %48 = vector.shape_cast %47 : vector<1x16x16xf32> to vector<16x16xf32>
    %cst_40 = arith.constant dense<0.000000e+00> : vector<64x16xf32>
    %49 = tpu.matmul %46, %48, %cst_40 {dimension_numbers = #tpu.dot_dimension_numbers<[1], [0], [0], [1], [0, 0, 1, 1], [], []>} : vector<64x16xf32>, vector<16x16xf32>, vector<64x16xf32> -> vector<64x16xf32>
    %50 = arith.addf %44, %49 : vector<64x16xf32>
    %51 = vector.extract_strided_slice %27 {offsets = [2, 8, 0], sizes = [8, 8, 16], strides = [1, 1, 1]} : vector<12x18x16xf32> to vector<8x8x16xf32>
    %52 = vector.shape_cast %51 : vector<8x8x16xf32> to vector<64x16xf32>
    %c4 = arith.constant 4 : index
    %c0_41 = arith.constant 0 : index
    %c0_42 = arith.constant 0 : index
    %53 = vector.load %arg7[%c4, %c0_41, %c0_42] : memref<9x16x16xf32, #tpu.memory_space<vmem>>, vector<1x16x16xf32>
    %54 = vector.shape_cast %53 : vector<1x16x16xf32> to vector<16x16xf32>
    %cst_43 = arith.constant dense<0.000000e+00> : vector<64x16xf32>
    %55 = tpu.matmul %52, %54, %cst_43 {dimension_numbers = #tpu.dot_dimension_numbers<[1], [0], [0], [1], [0, 0, 1, 1], [], []>} : vector<64x16xf32>, vector<16x16xf32>, vector<64x16xf32> -> vector<64x16xf32>
    %56 = arith.addf %50, %55 : vector<64x16xf32>
    %57 = vector.extract_strided_slice %27 {offsets = [2, 9, 0], sizes = [8, 8, 16], strides = [1, 1, 1]} : vector<12x18x16xf32> to vector<8x8x16xf32>
    %58 = vector.shape_cast %57 : vector<8x8x16xf32> to vector<64x16xf32>
    %c5 = arith.constant 5 : index
    %c0_44 = arith.constant 0 : index
    %c0_45 = arith.constant 0 : index
    %59 = vector.load %arg7[%c5, %c0_44, %c0_45] : memref<9x16x16xf32, #tpu.memory_space<vmem>>, vector<1x16x16xf32>
    %60 = vector.shape_cast %59 : vector<1x16x16xf32> to vector<16x16xf32>
    %cst_46 = arith.constant dense<0.000000e+00> : vector<64x16xf32>
    %61 = tpu.matmul %58, %60, %cst_46 {dimension_numbers = #tpu.dot_dimension_numbers<[1], [0], [0], [1], [0, 0, 1, 1], [], []>} : vector<64x16xf32>, vector<16x16xf32>, vector<64x16xf32> -> vector<64x16xf32>
    %62 = arith.addf %56, %61 : vector<64x16xf32>
    %63 = vector.extract_strided_slice %27 {offsets = [3, 7, 0], sizes = [8, 8, 16], strides = [1, 1, 1]} : vector<12x18x16xf32> to vector<8x8x16xf32>
    %64 = vector.shape_cast %63 : vector<8x8x16xf32> to vector<64x16xf32>
    %c6 = arith.constant 6 : index
    %c0_47 = arith.constant 0 : index
    %c0_48 = arith.constant 0 : index
    %65 = vector.load %arg7[%c6, %c0_47, %c0_48] : memref<9x16x16xf32, #tpu.memory_space<vmem>>, vector<1x16x16xf32>
    %66 = vector.shape_cast %65 : vector<1x16x16xf32> to vector<16x16xf32>
    %cst_49 = arith.constant dense<0.000000e+00> : vector<64x16xf32>
    %67 = tpu.matmul %64, %66, %cst_49 {dimension_numbers = #tpu.dot_dimension_numbers<[1], [0], [0], [1], [0, 0, 1, 1], [], []>} : vector<64x16xf32>, vector<16x16xf32>, vector<64x16xf32> -> vector<64x16xf32>
    %68 = arith.addf %62, %67 : vector<64x16xf32>
    %69 = vector.extract_strided_slice %27 {offsets = [3, 8, 0], sizes = [8, 8, 16], strides = [1, 1, 1]} : vector<12x18x16xf32> to vector<8x8x16xf32>
    %70 = vector.shape_cast %69 : vector<8x8x16xf32> to vector<64x16xf32>
    %c7 = arith.constant 7 : index
    %c0_50 = arith.constant 0 : index
    %c0_51 = arith.constant 0 : index
    %71 = vector.load %arg7[%c7, %c0_50, %c0_51] : memref<9x16x16xf32, #tpu.memory_space<vmem>>, vector<1x16x16xf32>
    %72 = vector.shape_cast %71 : vector<1x16x16xf32> to vector<16x16xf32>
    %cst_52 = arith.constant dense<0.000000e+00> : vector<64x16xf32>
    %73 = tpu.matmul %70, %72, %cst_52 {dimension_numbers = #tpu.dot_dimension_numbers<[1], [0], [0], [1], [0, 0, 1, 1], [], []>} : vector<64x16xf32>, vector<16x16xf32>, vector<64x16xf32> -> vector<64x16xf32>
    %74 = arith.addf %68, %73 : vector<64x16xf32>
    %75 = vector.extract_strided_slice %27 {offsets = [3, 9, 0], sizes = [8, 8, 16], strides = [1, 1, 1]} : vector<12x18x16xf32> to vector<8x8x16xf32>
    %76 = vector.shape_cast %75 : vector<8x8x16xf32> to vector<64x16xf32>
    %c8_53 = arith.constant 8 : index
    %c0_54 = arith.constant 0 : index
    %c0_55 = arith.constant 0 : index
    %77 = vector.load %arg7[%c8_53, %c0_54, %c0_55] : memref<9x16x16xf32, #tpu.memory_space<vmem>>, vector<1x16x16xf32>
    %78 = vector.shape_cast %77 : vector<1x16x16xf32> to vector<16x16xf32>
    %cst_56 = arith.constant dense<0.000000e+00> : vector<64x16xf32>
    %79 = tpu.matmul %76, %78, %cst_56 {dimension_numbers = #tpu.dot_dimension_numbers<[1], [0], [0], [1], [0, 0, 1, 1], [], []>} : vector<64x16xf32>, vector<16x16xf32>, vector<64x16xf32> -> vector<64x16xf32>
    %80 = arith.addf %74, %79 : vector<64x16xf32>
    %c0_57 = arith.constant 0 : index
    %c0_58 = arith.constant 0 : index
    %81 = vector.load %arg8[%c0_57, %c0_58] : memref<1x16xf32, #tpu.memory_space<vmem>>, vector<1x16xf32>
    %82 = vector.broadcast %81 : vector<1x16xf32> to vector<64x16xf32>
    %83 = arith.addf %80, %82 : vector<64x16xf32>
    %84 = vector.shape_cast %83 : vector<64x16xf32> to vector<8x8x16xf32>
    %cst_59 = arith.constant 0.000000e+00 : f32
    %85 = vector.broadcast %cst_59 : f32 to vector<8x8x16xf32>
    %86 = arith.maximumf %84, %85 : vector<8x8x16xf32>
    %cst_60 = arith.constant 0.000000e+00 : f32
    %87 = vector.broadcast %cst_60 : f32 to vector<12x18x16xf32>
    %c0_61 = arith.constant 0 : index
    %c0_62 = arith.constant 0 : index
    %c0_63 = arith.constant 0 : index
    %88 = vector.load %arg18[%c0_61, %c0_62, %c0_63] : memref<12x18x16xf32, #tpu.memory_space<vmem>>, vector<12x18x16xf32>
    tpu.vector_store %arg18[%c0_61, %c0_62, %c0_63], %87 {strides = array<i32>} : memref<12x18x16xf32, #tpu.memory_space<vmem>>, vector<12x18x16xf32>,
    %c2_64 = arith.constant 2 : index
    %c8_65 = arith.constant 8 : index
    %c0_66 = arith.constant 0 : index
    %89 = vector.load %arg18[%c2_64, %c8_65, %c0_66] : memref<12x18x16xf32, #tpu.memory_space<vmem>>, vector<8x8x16xf32>
    tpu.vector_store %arg18[%c2_64, %c8_65, %c0_66], %86 {strides = array<i32>} : memref<12x18x16xf32, #tpu.memory_space<vmem>>, vector<8x8x16xf32>,
    %c0_67 = arith.constant 0 : index
    %c0_68 = arith.constant 0 : index
    %c0_69 = arith.constant 0 : index
    %90 = vector.load %arg18[%c0_67, %c0_68, %c0_69] : memref<12x18x16xf32, #tpu.memory_space<vmem>>, vector<12x18x16xf32>
    %91 = vector.extract_strided_slice %90 {offsets = [1, 7, 0], sizes = [8, 8, 16], strides = [1, 1, 1]} : vector<12x18x16xf32> to vector<8x8x16xf32>
    %92 = vector.shape_cast %91 : vector<8x8x16xf32> to vector<64x16xf32>
    %c0_70 = arith.constant 0 : index
    %c0_71 = arith.constant 0 : index
    %c0_72 = arith.constant 0 : index
    %93 = vector.load %arg9[%c0_70, %c0_71, %c0_72] : memref<9x16x16xf32, #tpu.memory_space<vmem>>, vector<1x16x16xf32>
    %94 = vector.shape_cast %93 : vector<1x16x16xf32> to vector<16x16xf32>
    %cst_73 = arith.constant dense<0.000000e+00> : vector<64x16xf32>
    %95 = tpu.matmul %92, %94, %cst_73 {dimension_numbers = #tpu.dot_dimension_numbers<[1], [0], [0], [1], [0, 0, 1, 1], [], []>} : vector<64x16xf32>, vector<16x16xf32>, vector<64x16xf32> -> vector<64x16xf32>
    %96 = vector.extract_strided_slice %90 {offsets = [1, 8, 0], sizes = [8, 8, 16], strides = [1, 1, 1]} : vector<12x18x16xf32> to vector<8x8x16xf32>
    %97 = vector.shape_cast %96 : vector<8x8x16xf32> to vector<64x16xf32>
    %c1_74 = arith.constant 1 : index
    %c0_75 = arith.constant 0 : index
    %c0_76 = arith.constant 0 : index
    %98 = vector.load %arg9[%c1_74, %c0_75, %c0_76] : memref<9x16x16xf32, #tpu.memory_space<vmem>>, vector<1x16x16xf32>
    %99 = vector.shape_cast %98 : vector<1x16x16xf32> to vector<16x16xf32>
    %cst_77 = arith.constant dense<0.000000e+00> : vector<64x16xf32>
    %100 = tpu.matmul %97, %99, %cst_77 {dimension_numbers = #tpu.dot_dimension_numbers<[1], [0], [0], [1], [0, 0, 1, 1], [], []>} : vector<64x16xf32>, vector<16x16xf32>, vector<64x16xf32> -> vector<64x16xf32>
    %101 = arith.addf %95, %100 : vector<64x16xf32>
    %102 = vector.extract_strided_slice %90 {offsets = [1, 9, 0], sizes = [8, 8, 16], strides = [1, 1, 1]} : vector<12x18x16xf32> to vector<8x8x16xf32>
    %103 = vector.shape_cast %102 : vector<8x8x16xf32> to vector<64x16xf32>
    %c2_78 = arith.constant 2 : index
    %c0_79 = arith.constant 0 : index
    %c0_80 = arith.constant 0 : index
    %104 = vector.load %arg9[%c2_78, %c0_79, %c0_80] : memref<9x16x16xf32, #tpu.memory_space<vmem>>, vector<1x16x16xf32>
    %105 = vector.shape_cast %104 : vector<1x16x16xf32> to vector<16x16xf32>
    %cst_81 = arith.constant dense<0.000000e+00> : vector<64x16xf32>
    %106 = tpu.matmul %103, %105, %cst_81 {dimension_numbers = #tpu.dot_dimension_numbers<[1], [0], [0], [1], [0, 0, 1, 1], [], []>} : vector<64x16xf32>, vector<16x16xf32>, vector<64x16xf32> -> vector<64x16xf32>
    %107 = arith.addf %101, %106 : vector<64x16xf32>
    %108 = vector.extract_strided_slice %90 {offsets = [2, 7, 0], sizes = [8, 8, 16], strides = [1, 1, 1]} : vector<12x18x16xf32> to vector<8x8x16xf32>
    %109 = vector.shape_cast %108 : vector<8x8x16xf32> to vector<64x16xf32>
    %c3_82 = arith.constant 3 : index
    %c0_83 = arith.constant 0 : index
    %c0_84 = arith.constant 0 : index
    %110 = vector.load %arg9[%c3_82, %c0_83, %c0_84] : memref<9x16x16xf32, #tpu.memory_space<vmem>>, vector<1x16x16xf32>
    %111 = vector.shape_cast %110 : vector<1x16x16xf32> to vector<16x16xf32>
    %cst_85 = arith.constant dense<0.000000e+00> : vector<64x16xf32>
    %112 = tpu.matmul %109, %111, %cst_85 {dimension_numbers = #tpu.dot_dimension_numbers<[1], [0], [0], [1], [0, 0, 1, 1], [], []>} : vector<64x16xf32>, vector<16x16xf32>, vector<64x16xf32> -> vector<64x16xf32>
    %113 = arith.addf %107, %112 : vector<64x16xf32>
    %114 = vector.extract_strided_slice %90 {offsets = [2, 8, 0], sizes = [8, 8, 16], strides = [1, 1, 1]} : vector<12x18x16xf32> to vector<8x8x16xf32>
    %115 = vector.shape_cast %114 : vector<8x8x16xf32> to vector<64x16xf32>
    %c4_86 = arith.constant 4 : index
    %c0_87 = arith.constant 0 : index
    %c0_88 = arith.constant 0 : index
    %116 = vector.load %arg9[%c4_86, %c0_87, %c0_88] : memref<9x16x16xf32, #tpu.memory_space<vmem>>, vector<1x16x16xf32>
    %117 = vector.shape_cast %116 : vector<1x16x16xf32> to vector<16x16xf32>
    %cst_89 = arith.constant dense<0.000000e+00> : vector<64x16xf32>
    %118 = tpu.matmul %115, %117, %cst_89 {dimension_numbers = #tpu.dot_dimension_numbers<[1], [0], [0], [1], [0, 0, 1, 1], [], []>} : vector<64x16xf32>, vector<16x16xf32>, vector<64x16xf32> -> vector<64x16xf32>
    %119 = arith.addf %113, %118 : vector<64x16xf32>
    %120 = vector.extract_strided_slice %90 {offsets = [2, 9, 0], sizes = [8, 8, 16], strides = [1, 1, 1]} : vector<12x18x16xf32> to vector<8x8x16xf32>
    %121 = vector.shape_cast %120 : vector<8x8x16xf32> to vector<64x16xf32>
    %c5_90 = arith.constant 5 : index
    %c0_91 = arith.constant 0 : index
    %c0_92 = arith.constant 0 : index
    %122 = vector.load %arg9[%c5_90, %c0_91, %c0_92] : memref<9x16x16xf32, #tpu.memory_space<vmem>>, vector<1x16x16xf32>
    %123 = vector.shape_cast %122 : vector<1x16x16xf32> to vector<16x16xf32>
    %cst_93 = arith.constant dense<0.000000e+00> : vector<64x16xf32>
    %124 = tpu.matmul %121, %123, %cst_93 {dimension_numbers = #tpu.dot_dimension_numbers<[1], [0], [0], [1], [0, 0, 1, 1], [], []>} : vector<64x16xf32>, vector<16x16xf32>, vector<64x16xf32> -> vector<64x16xf32>
    %125 = arith.addf %119, %124 : vector<64x16xf32>
    %126 = vector.extract_strided_slice %90 {offsets = [3, 7, 0], sizes = [8, 8, 16], strides = [1, 1, 1]} : vector<12x18x16xf32> to vector<8x8x16xf32>
    %127 = vector.shape_cast %126 : vector<8x8x16xf32> to vector<64x16xf32>
    %c6_94 = arith.constant 6 : index
    %c0_95 = arith.constant 0 : index
    %c0_96 = arith.constant 0 : index
    %128 = vector.load %arg9[%c6_94, %c0_95, %c0_96] : memref<9x16x16xf32, #tpu.memory_space<vmem>>, vector<1x16x16xf32>
    %129 = vector.shape_cast %128 : vector<1x16x16xf32> to vector<16x16xf32>
    %cst_97 = arith.constant dense<0.000000e+00> : vector<64x16xf32>
    %130 = tpu.matmul %127, %129, %cst_97 {dimension_numbers = #tpu.dot_dimension_numbers<[1], [0], [0], [1], [0, 0, 1, 1], [], []>} : vector<64x16xf32>, vector<16x16xf32>, vector<64x16xf32> -> vector<64x16xf32>
    %131 = arith.addf %125, %130 : vector<64x16xf32>
    %132 = vector.extract_strided_slice %90 {offsets = [3, 8, 0], sizes = [8, 8, 16], strides = [1, 1, 1]} : vector<12x18x16xf32> to vector<8x8x16xf32>
    %133 = vector.shape_cast %132 : vector<8x8x16xf32> to vector<64x16xf32>
    %c7_98 = arith.constant 7 : index
    %c0_99 = arith.constant 0 : index
    %c0_100 = arith.constant 0 : index
    %134 = vector.load %arg9[%c7_98, %c0_99, %c0_100] : memref<9x16x16xf32, #tpu.memory_space<vmem>>, vector<1x16x16xf32>
    %135 = vector.shape_cast %134 : vector<1x16x16xf32> to vector<16x16xf32>
    %cst_101 = arith.constant dense<0.000000e+00> : vector<64x16xf32>
    %136 = tpu.matmul %133, %135, %cst_101 {dimension_numbers = #tpu.dot_dimension_numbers<[1], [0], [0], [1], [0, 0, 1, 1], [], []>} : vector<64x16xf32>, vector<16x16xf32>, vector<64x16xf32> -> vector<64x16xf32>
    %137 = arith.addf %131, %136 : vector<64x16xf32>
    %138 = vector.extract_strided_slice %90 {offsets = [3, 9, 0], sizes = [8, 8, 16], strides = [1, 1, 1]} : vector<12x18x16xf32> to vector<8x8x16xf32>
    %139 = vector.shape_cast %138 : vector<8x8x16xf32> to vector<64x16xf32>
    %c8_102 = arith.constant 8 : index
    %c0_103 = arith.constant 0 : index
    %c0_104 = arith.constant 0 : index
    %140 = vector.load %arg9[%c8_102, %c0_103, %c0_104] : memref<9x16x16xf32, #tpu.memory_space<vmem>>, vector<1x16x16xf32>
    %141 = vector.shape_cast %140 : vector<1x16x16xf32> to vector<16x16xf32>
    %cst_105 = arith.constant dense<0.000000e+00> : vector<64x16xf32>
    %142 = tpu.matmul %139, %141, %cst_105 {dimension_numbers = #tpu.dot_dimension_numbers<[1], [0], [0], [1], [0, 0, 1, 1], [], []>} : vector<64x16xf32>, vector<16x16xf32>, vector<64x16xf32> -> vector<64x16xf32>
    %143 = arith.addf %137, %142 : vector<64x16xf32>
    %c0_106 = arith.constant 0 : index
    %c0_107 = arith.constant 0 : index
    %144 = vector.load %arg10[%c0_106, %c0_107] : memref<1x16xf32, #tpu.memory_space<vmem>>, vector<1x16xf32>
    %145 = vector.broadcast %144 : vector<1x16xf32> to vector<64x16xf32>
    %146 = arith.addf %143, %145 : vector<64x16xf32>
    %147 = vector.shape_cast %146 : vector<64x16xf32> to vector<8x8x16xf32>
    %148 = arith.addf %147, %21 : vector<8x8x16xf32>
    %cst_108 = arith.constant -3.40282347E+38 : f32
    %149 = vector.broadcast %cst_108 : f32 to vector<12x18x16xf32>
    %c0_109 = arith.constant 0 : index
    %c0_110 = arith.constant 0 : index
    %c0_111 = arith.constant 0 : index
    %150 = vector.load %arg18[%c0_109, %c0_110, %c0_111] : memref<12x18x16xf32, #tpu.memory_space<vmem>>, vector<12x18x16xf32>
    tpu.vector_store %arg18[%c0_109, %c0_110, %c0_111], %149 {strides = array<i32>} : memref<12x18x16xf32, #tpu.memory_space<vmem>>, vector<12x18x16xf32>,
    %c2_112 = arith.constant 2 : index
    %c8_113 = arith.constant 8 : index
    %c0_114 = arith.constant 0 : index
    %151 = vector.load %arg18[%c2_112, %c8_113, %c0_114] : memref<12x18x16xf32, #tpu.memory_space<vmem>>, vector<8x8x16xf32>
    tpu.vector_store %arg18[%c2_112, %c8_113, %c0_114], %10 {strides = array<i32>} : memref<12x18x16xf32, #tpu.memory_space<vmem>>, vector<8x8x16xf32>,
    %c0_115 = arith.constant 0 : index
    %c0_116 = arith.constant 0 : index
    %c0_117 = arith.constant 0 : index
    %152 = vector.load %arg18[%c0_115, %c0_116, %c0_117] : memref<12x18x16xf32, #tpu.memory_space<vmem>>, vector<12x18x16xf32>
    %153 = vector.extract_strided_slice %152 {offsets = [1, 7, 0], sizes = [8, 8, 16], strides = [1, 1, 1]} : vector<12x18x16xf32> to vector<8x8x16xf32>
    %154 = vector.extract_strided_slice %152 {offsets = [1, 8, 0], sizes = [8, 8, 16], strides = [1, 1, 1]} : vector<12x18x16xf32> to vector<8x8x16xf32>
    %155 = arith.maximumf %153, %154 : vector<8x8x16xf32>
    %156 = vector.extract_strided_slice %152 {offsets = [1, 9, 0], sizes = [8, 8, 16], strides = [1, 1, 1]} : vector<12x18x16xf32> to vector<8x8x16xf32>
    %157 = arith.maximumf %155, %156 : vector<8x8x16xf32>
    %158 = vector.extract_strided_slice %152 {offsets = [2, 7, 0], sizes = [8, 8, 16], strides = [1, 1, 1]} : vector<12x18x16xf32> to vector<8x8x16xf32>
    %159 = arith.maximumf %157, %158 : vector<8x8x16xf32>
    %160 = vector.extract_strided_slice %152 {offsets = [2, 8, 0], sizes = [8, 8, 16], strides = [1, 1, 1]} : vector<12x18x16xf32> to vector<8x8x16xf32>
    %161 = arith.maximumf %159, %160 : vector<8x8x16xf32>
    %162 = vector.extract_strided_slice %152 {offsets = [2, 9, 0], sizes = [8, 8, 16], strides = [1, 1, 1]} : vector<12x18x16xf32> to vector<8x8x16xf32>
    %163 = arith.maximumf %161, %162 : vector<8x8x16xf32>
    %164 = vector.extract_strided_slice %152 {offsets = [3, 7, 0], sizes = [8, 8, 16], strides = [1, 1, 1]} : vector<12x18x16xf32> to vector<8x8x16xf32>
    %165 = arith.maximumf %163, %164 : vector<8x8x16xf32>
    %166 = vector.extract_strided_slice %152 {offsets = [3, 8, 0], sizes = [8, 8, 16], strides = [1, 1, 1]} : vector<12x18x16xf32> to vector<8x8x16xf32>
    %167 = arith.maximumf %165, %166 : vector<8x8x16xf32>
    %168 = vector.extract_strided_slice %152 {offsets = [3, 9, 0], sizes = [8, 8, 16], strides = [1, 1, 1]} : vector<12x18x16xf32> to vector<8x8x16xf32>
    %169 = arith.maximumf %167, %168 : vector<8x8x16xf32>
    %cst_118 = arith.constant 0.000000e+00 : f32
    %170 = vector.broadcast %cst_118 : f32 to vector<12x18x16xf32>
    %c0_119 = arith.constant 0 : index
    %c0_120 = arith.constant 0 : index
    %c0_121 = arith.constant 0 : index
    %171 = vector.load %arg18[%c0_119, %c0_120, %c0_121] : memref<12x18x16xf32, #tpu.memory_space<vmem>>, vector<12x18x16xf32>
    tpu.vector_store %arg18[%c0_119, %c0_120, %c0_121], %170 {strides = array<i32>} : memref<12x18x16xf32, #tpu.memory_space<vmem>>, vector<12x18x16xf32>,
    %c2_122 = arith.constant 2 : index
    %c8_123 = arith.constant 8 : index
    %c0_124 = arith.constant 0 : index
    %172 = vector.load %arg18[%c2_122, %c8_123, %c0_124] : memref<12x18x16xf32, #tpu.memory_space<vmem>>, vector<8x8x16xf32>
    tpu.vector_store %arg18[%c2_122, %c8_123, %c0_124], %21 {strides = array<i32>} : memref<12x18x16xf32, #tpu.memory_space<vmem>>, vector<8x8x16xf32>,
    %c0_125 = arith.constant 0 : index
    %c0_126 = arith.constant 0 : index
    %c0_127 = arith.constant 0 : index
    %173 = vector.load %arg18[%c0_125, %c0_126, %c0_127] : memref<12x18x16xf32, #tpu.memory_space<vmem>>, vector<12x18x16xf32>
    %174 = vector.extract_strided_slice %173 {offsets = [1, 7, 0], sizes = [8, 8, 16], strides = [1, 1, 1]} : vector<12x18x16xf32> to vector<8x8x16xf32>
    %175 = vector.extract_strided_slice %173 {offsets = [1, 8, 0], sizes = [8, 8, 16], strides = [1, 1, 1]} : vector<12x18x16xf32> to vector<8x8x16xf32>
    %176 = arith.addf %174, %175 : vector<8x8x16xf32>
    %177 = vector.extract_strided_slice %173 {offsets = [1, 9, 0], sizes = [8, 8, 16], strides = [1, 1, 1]} : vector<12x18x16xf32> to vector<8x8x16xf32>
    %178 = arith.addf %176, %177 : vector<8x8x16xf32>
    %179 = vector.extract_strided_slice %173 {offsets = [2, 7, 0], sizes = [8, 8, 16], strides = [1, 1, 1]} : vector<12x18x16xf32> to vector<8x8x16xf32>
    %180 = arith.addf %178, %179 : vector<8x8x16xf32>
    %181 = vector.extract_strided_slice %173 {offsets = [2, 8, 0], sizes = [8, 8, 16], strides = [1, 1, 1]} : vector<12x18x16xf32> to vector<8x8x16xf32>
    %182 = arith.addf %180, %181 : vector<8x8x16xf32>
    %183 = vector.extract_strided_slice %173 {offsets = [2, 9, 0], sizes = [8, 8, 16], strides = [1, 1, 1]} : vector<12x18x16xf32> to vector<8x8x16xf32>
    %184 = arith.addf %182, %183 : vector<8x8x16xf32>
    %185 = vector.extract_strided_slice %173 {offsets = [3, 7, 0], sizes = [8, 8, 16], strides = [1, 1, 1]} : vector<12x18x16xf32> to vector<8x8x16xf32>
    %186 = arith.addf %184, %185 : vector<8x8x16xf32>
    %187 = vector.extract_strided_slice %173 {offsets = [3, 8, 0], sizes = [8, 8, 16], strides = [1, 1, 1]} : vector<12x18x16xf32> to vector<8x8x16xf32>
    %188 = arith.addf %186, %187 : vector<8x8x16xf32>
    %189 = vector.extract_strided_slice %173 {offsets = [3, 9, 0], sizes = [8, 8, 16], strides = [1, 1, 1]} : vector<12x18x16xf32> to vector<8x8x16xf32>
    %190 = arith.addf %188, %189 : vector<8x8x16xf32>
    %191 = tpu.iota {dimensions = array<i32: 0>} : vector<8x8x16xi32>
    %192 = tpu.iota {dimensions = array<i32: 1>} : vector<8x8x16xi32>
    %c0_i32 = arith.constant 0 : i32
    %193 = vector.broadcast %c0_i32 : i32 to vector<8x8x16xi32>
    %194 = arith.cmpi eq, %191, %193 : vector<8x8x16xi32>
    %c7_i32 = arith.constant 7 : i32
    %195 = vector.broadcast %c7_i32 : i32 to vector<8x8x16xi32>
    %196 = arith.cmpi eq, %191, %195 : vector<8x8x16xi32>
    %197 = arith.ori %194, %196 : vector<8x8x16xi1>
    %cst_128 = arith.constant 5.000000e-01 : f32
    %cst_129 = arith.constant 0.333333343 : f32
    %198 = vector.broadcast %cst_128 : f32 to vector<8x8x16xf32>
    %199 = vector.broadcast %cst_129 : f32 to vector<8x8x16xf32>
    %200 = arith.select %197, %198, %199 : vector<8x8x16xi1>, vector<8x8x16xf32>
    %c0_i32_130 = arith.constant 0 : i32
    %201 = vector.broadcast %c0_i32_130 : i32 to vector<8x8x16xi32>
    %202 = arith.cmpi eq, %192, %201 : vector<8x8x16xi32>
    %c7_i32_131 = arith.constant 7 : i32
    %203 = vector.broadcast %c7_i32_131 : i32 to vector<8x8x16xi32>
    %204 = arith.cmpi eq, %192, %203 : vector<8x8x16xi32>
    %205 = arith.ori %202, %204 : vector<8x8x16xi1>
    %cst_132 = arith.constant 5.000000e-01 : f32
    %cst_133 = arith.constant 0.333333343 : f32
    %206 = vector.broadcast %cst_132 : f32 to vector<8x8x16xf32>
    %207 = vector.broadcast %cst_133 : f32 to vector<8x8x16xf32>
    %208 = arith.select %205, %206, %207 : vector<8x8x16xi1>, vector<8x8x16xf32>
    %209 = arith.mulf %200, %208 : vector<8x8x16xf32>
    %210 = arith.mulf %190, %209 : vector<8x8x16xf32>
    %211 = arith.addf %169, %210 : vector<8x8x16xf32>
    %cst_134 = arith.constant 0.000000e+00 : f32
    %212 = vector.broadcast %cst_134 : f32 to vector<8x8x16xf32>
    %213 = arith.maximumf %148, %212 : vector<8x8x16xf32>
    %cst_135 = arith.constant 0.000000e+00 : f32
    %214 = vector.broadcast %cst_135 : f32 to vector<12x18x16xf32>
    %c0_136 = arith.constant 0 : index
    %c0_137 = arith.constant 0 : index
    %c0_138 = arith.constant 0 : index
    %215 = vector.load %arg18[%c0_136, %c0_137, %c0_138] : memref<12x18x16xf32, #tpu.memory_space<vmem>>, vector<12x18x16xf32>
    tpu.vector_store %arg18[%c0_136, %c0_137, %c0_138], %214 {strides = array<i32>} : memref<12x18x16xf32, #tpu.memory_space<vmem>>, vector<12x18x16xf32>,
    %c2_139 = arith.constant 2 : index
    %c8_140 = arith.constant 8 : index
    %c0_141 = arith.constant 0 : index
    %216 = vector.load %arg18[%c2_139, %c8_140, %c0_141] : memref<12x18x16xf32, #tpu.memory_space<vmem>>, vector<8x8x16xf32>
    tpu.vector_store %arg18[%c2_139, %c8_140, %c0_141], %213 {strides = array<i32>} : memref<12x18x16xf32, #tpu.memory_space<vmem>>, vector<8x8x16xf32>,
    %c0_142 = arith.constant 0 : index
    %c0_143 = arith.constant 0 : index
    %c0_144 = arith.constant 0 : index
    %217 = vector.load %arg18[%c0_142, %c0_143, %c0_144] : memref<12x18x16xf32, #tpu.memory_space<vmem>>, vector<12x18x16xf32>
    %218 = vector.extract_strided_slice %217 {offsets = [0, 6, 0], sizes = [8, 8, 16], strides = [1, 1, 1]} : vector<12x18x16xf32> to vector<8x8x16xf32>
    %219 = vector.shape_cast %218 : vector<8x8x16xf32> to vector<64x16xf32>
    %c0_145 = arith.constant 0 : index
    %c0_146 = arith.constant 0 : index
    %c0_147 = arith.constant 0 : index
    %220 = vector.load %arg11[%c0_145, %c0_146, %c0_147] : memref<9x16x16xf32, #tpu.memory_space<vmem>>, vector<1x16x16xf32>
    %221 = vector.shape_cast %220 : vector<1x16x16xf32> to vector<16x16xf32>
    %cst_148 = arith.constant dense<0.000000e+00> : vector<64x16xf32>
    %222 = tpu.matmul %219, %221, %cst_148 {dimension_numbers = #tpu.dot_dimension_numbers<[1], [0], [0], [1], [0, 0, 1, 1], [], []>} : vector<64x16xf32>, vector<16x16xf32>, vector<64x16xf32> -> vector<64x16xf32>
    %223 = vector.extract_strided_slice %217 {offsets = [0, 8, 0], sizes = [8, 8, 16], strides = [1, 1, 1]} : vector<12x18x16xf32> to vector<8x8x16xf32>
    %224 = vector.shape_cast %223 : vector<8x8x16xf32> to vector<64x16xf32>
    %c1_149 = arith.constant 1 : index
    %c0_150 = arith.constant 0 : index
    %c0_151 = arith.constant 0 : index
    %225 = vector.load %arg11[%c1_149, %c0_150, %c0_151] : memref<9x16x16xf32, #tpu.memory_space<vmem>>, vector<1x16x16xf32>
    %226 = vector.shape_cast %225 : vector<1x16x16xf32> to vector<16x16xf32>
    %cst_152 = arith.constant dense<0.000000e+00> : vector<64x16xf32>
    %227 = tpu.matmul %224, %226, %cst_152 {dimension_numbers = #tpu.dot_dimension_numbers<[1], [0], [0], [1], [0, 0, 1, 1], [], []>} : vector<64x16xf32>, vector<16x16xf32>, vector<64x16xf32> -> vector<64x16xf32>
    %228 = arith.addf %222, %227 : vector<64x16xf32>
    %229 = vector.extract_strided_slice %217 {offsets = [0, 10, 0], sizes = [8, 8, 16], strides = [1, 1, 1]} : vector<12x18x16xf32> to vector<8x8x16xf32>
    %230 = vector.shape_cast %229 : vector<8x8x16xf32> to vector<64x16xf32>
    %c2_153 = arith.constant 2 : index
    %c0_154 = arith.constant 0 : index
    %c0_155 = arith.constant 0 : index
    %231 = vector.load %arg11[%c2_153, %c0_154, %c0_155] : memref<9x16x16xf32, #tpu.memory_space<vmem>>, vector<1x16x16xf32>
    %232 = vector.shape_cast %231 : vector<1x16x16xf32> to vector<16x16xf32>
    %cst_156 = arith.constant dense<0.000000e+00> : vector<64x16xf32>
    %233 = tpu.matmul %230, %232, %cst_156 {dimension_numbers = #tpu.dot_dimension_numbers<[1], [0], [0], [1], [0, 0, 1, 1], [], []>} : vector<64x16xf32>, vector<16x16xf32>, vector<64x16xf32> -> vector<64x16xf32>
    %234 = arith.addf %228, %233 : vector<64x16xf32>
    %235 = vector.extract_strided_slice %217 {offsets = [2, 6, 0], sizes = [8, 8, 16], strides = [1, 1, 1]} : vector<12x18x16xf32> to vector<8x8x16xf32>
    %236 = vector.shape_cast %235 : vector<8x8x16xf32> to vector<64x16xf32>
    %c3_157 = arith.constant 3 : index
    %c0_158 = arith.constant 0 : index
    %c0_159 = arith.constant 0 : index
    %237 = vector.load %arg11[%c3_157, %c0_158, %c0_159] : memref<9x16x16xf32, #tpu.memory_space<vmem>>, vector<1x16x16xf32>
    %238 = vector.shape_cast %237 : vector<1x16x16xf32> to vector<16x16xf32>
    %cst_160 = arith.constant dense<0.000000e+00> : vector<64x16xf32>
    %239 = tpu.matmul %236, %238, %cst_160 {dimension_numbers = #tpu.dot_dimension_numbers<[1], [0], [0], [1], [0, 0, 1, 1], [], []>} : vector<64x16xf32>, vector<16x16xf32>, vector<64x16xf32> -> vector<64x16xf32>
    %240 = arith.addf %234, %239 : vector<64x16xf32>
    %241 = vector.extract_strided_slice %217 {offsets = [2, 8, 0], sizes = [8, 8, 16], strides = [1, 1, 1]} : vector<12x18x16xf32> to vector<8x8x16xf32>
    %242 = vector.shape_cast %241 : vector<8x8x16xf32> to vector<64x16xf32>
    %c4_161 = arith.constant 4 : index
    %c0_162 = arith.constant 0 : index
    %c0_163 = arith.constant 0 : index
    %243 = vector.load %arg11[%c4_161, %c0_162, %c0_163] : memref<9x16x16xf32, #tpu.memory_space<vmem>>, vector<1x16x16xf32>
    %244 = vector.shape_cast %243 : vector<1x16x16xf32> to vector<16x16xf32>
    %cst_164 = arith.constant dense<0.000000e+00> : vector<64x16xf32>
    %245 = tpu.matmul %242, %244, %cst_164 {dimension_numbers = #tpu.dot_dimension_numbers<[1], [0], [0], [1], [0, 0, 1, 1], [], []>} : vector<64x16xf32>, vector<16x16xf32>, vector<64x16xf32> -> vector<64x16xf32>
    %246 = arith.addf %240, %245 : vector<64x16xf32>
    %247 = vector.extract_strided_slice %217 {offsets = [2, 10, 0], sizes = [8, 8, 16], strides = [1, 1, 1]} : vector<12x18x16xf32> to vector<8x8x16xf32>
    %248 = vector.shape_cast %247 : vector<8x8x16xf32> to vector<64x16xf32>
    %c5_165 = arith.constant 5 : index
    %c0_166 = arith.constant 0 : index
    %c0_167 = arith.constant 0 : index
    %249 = vector.load %arg11[%c5_165, %c0_166, %c0_167] : memref<9x16x16xf32, #tpu.memory_space<vmem>>, vector<1x16x16xf32>
    %250 = vector.shape_cast %249 : vector<1x16x16xf32> to vector<16x16xf32>
    %cst_168 = arith.constant dense<0.000000e+00> : vector<64x16xf32>
    %251 = tpu.matmul %248, %250, %cst_168 {dimension_numbers = #tpu.dot_dimension_numbers<[1], [0], [0], [1], [0, 0, 1, 1], [], []>} : vector<64x16xf32>, vector<16x16xf32>, vector<64x16xf32> -> vector<64x16xf32>
    %252 = arith.addf %246, %251 : vector<64x16xf32>
    %253 = vector.extract_strided_slice %217 {offsets = [4, 6, 0], sizes = [8, 8, 16], strides = [1, 1, 1]} : vector<12x18x16xf32> to vector<8x8x16xf32>
    %254 = vector.shape_cast %253 : vector<8x8x16xf32> to vector<64x16xf32>
    %c6_169 = arith.constant 6 : index
    %c0_170 = arith.constant 0 : index
    %c0_171 = arith.constant 0 : index
    %255 = vector.load %arg11[%c6_169, %c0_170, %c0_171] : memref<9x16x16xf32, #tpu.memory_space<vmem>>, vector<1x16x16xf32>
    %256 = vector.shape_cast %255 : vector<1x16x16xf32> to vector<16x16xf32>
    %cst_172 = arith.constant dense<0.000000e+00> : vector<64x16xf32>
    %257 = tpu.matmul %254, %256, %cst_172 {dimension_numbers = #tpu.dot_dimension_numbers<[1], [0], [0], [1], [0, 0, 1, 1], [], []>} : vector<64x16xf32>, vector<16x16xf32>, vector<64x16xf32> -> vector<64x16xf32>
    %258 = arith.addf %252, %257 : vector<64x16xf32>
    %259 = vector.extract_strided_slice %217 {offsets = [4, 8, 0], sizes = [8, 8, 16], strides = [1, 1, 1]} : vector<12x18x16xf32> to vector<8x8x16xf32>
    %260 = vector.shape_cast %259 : vector<8x8x16xf32> to vector<64x16xf32>
    %c7_173 = arith.constant 7 : index
    %c0_174 = arith.constant 0 : index
    %c0_175 = arith.constant 0 : index
    %261 = vector.load %arg11[%c7_173, %c0_174, %c0_175] : memref<9x16x16xf32, #tpu.memory_space<vmem>>, vector<1x16x16xf32>
    %262 = vector.shape_cast %261 : vector<1x16x16xf32> to vector<16x16xf32>
    %cst_176 = arith.constant dense<0.000000e+00> : vector<64x16xf32>
    %263 = tpu.matmul %260, %262, %cst_176 {dimension_numbers = #tpu.dot_dimension_numbers<[1], [0], [0], [1], [0, 0, 1, 1], [], []>} : vector<64x16xf32>, vector<16x16xf32>, vector<64x16xf32> -> vector<64x16xf32>
    %264 = arith.addf %258, %263 : vector<64x16xf32>
    %265 = vector.extract_strided_slice %217 {offsets = [4, 10, 0], sizes = [8, 8, 16], strides = [1, 1, 1]} : vector<12x18x16xf32> to vector<8x8x16xf32>
    %266 = vector.shape_cast %265 : vector<8x8x16xf32> to vector<64x16xf32>
    %c8_177 = arith.constant 8 : index
    %c0_178 = arith.constant 0 : index
    %c0_179 = arith.constant 0 : index
    %267 = vector.load %arg11[%c8_177, %c0_178, %c0_179] : memref<9x16x16xf32, #tpu.memory_space<vmem>>, vector<1x16x16xf32>
    %268 = vector.shape_cast %267 : vector<1x16x16xf32> to vector<16x16xf32>
    %cst_180 = arith.constant dense<0.000000e+00> : vector<64x16xf32>
    %269 = tpu.matmul %266, %268, %cst_180 {dimension_numbers = #tpu.dot_dimension_numbers<[1], [0], [0], [1], [0, 0, 1, 1], [], []>} : vector<64x16xf32>, vector<16x16xf32>, vector<64x16xf32> -> vector<64x16xf32>
    %270 = arith.addf %264, %269 : vector<64x16xf32>
    %c0_181 = arith.constant 0 : index
    %c0_182 = arith.constant 0 : index
    %271 = vector.load %arg12[%c0_181, %c0_182] : memref<1x16xf32, #tpu.memory_space<vmem>>, vector<1x16xf32>
    %272 = vector.broadcast %271 : vector<1x16xf32> to vector<64x16xf32>
    %273 = arith.addf %270, %272 : vector<64x16xf32>
    %274 = vector.shape_cast %273 : vector<64x16xf32> to vector<8x8x16xf32>
    %275 = arith.addf %274, %10 : vector<8x8x16xf32>
    %cst_183 = arith.constant 0.000000e+00 : f32
    %276 = vector.broadcast %cst_183 : f32 to vector<8x8x16xf32>
    %277 = arith.maximumf %211, %276 : vector<8x8x16xf32>
    %cst_184 = arith.constant 0.000000e+00 : f32
    %278 = vector.broadcast %cst_184 : f32 to vector<12x18x16xf32>
    %c0_185 = arith.constant 0 : index
    %c0_186 = arith.constant 0 : index
    %c0_187 = arith.constant 0 : index
    %279 = vector.load %arg18[%c0_185, %c0_186, %c0_187] : memref<12x18x16xf32, #tpu.memory_space<vmem>>, vector<12x18x16xf32>
    tpu.vector_store %arg18[%c0_185, %c0_186, %c0_187], %278 {strides = array<i32>} : memref<12x18x16xf32, #tpu.memory_space<vmem>>, vector<12x18x16xf32>,
    %c2_188 = arith.constant 2 : index
    %c8_189 = arith.constant 8 : index
    %c0_190 = arith.constant 0 : index
    %280 = vector.load %arg18[%c2_188, %c8_189, %c0_190] : memref<12x18x16xf32, #tpu.memory_space<vmem>>, vector<8x8x16xf32>
    tpu.vector_store %arg18[%c2_188, %c8_189, %c0_190], %277 {strides = array<i32>} : memref<12x18x16xf32, #tpu.memory_space<vmem>>, vector<8x8x16xf32>,
    %c0_191 = arith.constant 0 : index
    %c0_192 = arith.constant 0 : index
    %c0_193 = arith.constant 0 : index
    %281 = vector.load %arg18[%c0_191, %c0_192, %c0_193] : memref<12x18x16xf32, #tpu.memory_space<vmem>>, vector<12x18x16xf32>
    %282 = vector.extract_strided_slice %281 {offsets = [1, 7, 0], sizes = [8, 8, 16], strides = [1, 1, 1]} : vector<12x18x16xf32> to vector<8x8x16xf32>
    %283 = vector.shape_cast %282 : vector<8x8x16xf32> to vector<64x16xf32>
    %c0_194 = arith.constant 0 : index
    %c0_195 = arith.constant 0 : index
    %c0_196 = arith.constant 0 : index
    %284 = vector.load %arg13[%c0_194, %c0_195, %c0_196] : memref<9x16x16xf32, #tpu.memory_space<vmem>>, vector<1x16x16xf32>
    %285 = vector.shape_cast %284 : vector<1x16x16xf32> to vector<16x16xf32>
    %cst_197 = arith.constant dense<0.000000e+00> : vector<64x16xf32>
    %286 = tpu.matmul %283, %285, %cst_197 {dimension_numbers = #tpu.dot_dimension_numbers<[1], [0], [0], [1], [0, 0, 1, 1], [], []>} : vector<64x16xf32>, vector<16x16xf32>, vector<64x16xf32> -> vector<64x16xf32>
    %287 = vector.extract_strided_slice %281 {offsets = [1, 8, 0], sizes = [8, 8, 16], strides = [1, 1, 1]} : vector<12x18x16xf32> to vector<8x8x16xf32>
    %288 = vector.shape_cast %287 : vector<8x8x16xf32> to vector<64x16xf32>
    %c1_198 = arith.constant 1 : index
    %c0_199 = arith.constant 0 : index
    %c0_200 = arith.constant 0 : index
    %289 = vector.load %arg13[%c1_198, %c0_199, %c0_200] : memref<9x16x16xf32, #tpu.memory_space<vmem>>, vector<1x16x16xf32>
    %290 = vector.shape_cast %289 : vector<1x16x16xf32> to vector<16x16xf32>
    %cst_201 = arith.constant dense<0.000000e+00> : vector<64x16xf32>
    %291 = tpu.matmul %288, %290, %cst_201 {dimension_numbers = #tpu.dot_dimension_numbers<[1], [0], [0], [1], [0, 0, 1, 1], [], []>} : vector<64x16xf32>, vector<16x16xf32>, vector<64x16xf32> -> vector<64x16xf32>
    %292 = arith.addf %286, %291 : vector<64x16xf32>
    %293 = vector.extract_strided_slice %281 {offsets = [1, 9, 0], sizes = [8, 8, 16], strides = [1, 1, 1]} : vector<12x18x16xf32> to vector<8x8x16xf32>
    %294 = vector.shape_cast %293 : vector<8x8x16xf32> to vector<64x16xf32>
    %c2_202 = arith.constant 2 : index
    %c0_203 = arith.constant 0 : index
    %c0_204 = arith.constant 0 : index
    %295 = vector.load %arg13[%c2_202, %c0_203, %c0_204] : memref<9x16x16xf32, #tpu.memory_space<vmem>>, vector<1x16x16xf32>
    %296 = vector.shape_cast %295 : vector<1x16x16xf32> to vector<16x16xf32>
    %cst_205 = arith.constant dense<0.000000e+00> : vector<64x16xf32>
    %297 = tpu.matmul %294, %296, %cst_205 {dimension_numbers = #tpu.dot_dimension_numbers<[1], [0], [0], [1], [0, 0, 1, 1], [], []>} : vector<64x16xf32>, vector<16x16xf32>, vector<64x16xf32> -> vector<64x16xf32>
    %298 = arith.addf %292, %297 : vector<64x16xf32>
    %299 = vector.extract_strided_slice %281 {offsets = [2, 7, 0], sizes = [8, 8, 16], strides = [1, 1, 1]} : vector<12x18x16xf32> to vector<8x8x16xf32>
    %300 = vector.shape_cast %299 : vector<8x8x16xf32> to vector<64x16xf32>
    %c3_206 = arith.constant 3 : index
    %c0_207 = arith.constant 0 : index
    %c0_208 = arith.constant 0 : index
    %301 = vector.load %arg13[%c3_206, %c0_207, %c0_208] : memref<9x16x16xf32, #tpu.memory_space<vmem>>, vector<1x16x16xf32>
    %302 = vector.shape_cast %301 : vector<1x16x16xf32> to vector<16x16xf32>
    %cst_209 = arith.constant dense<0.000000e+00> : vector<64x16xf32>
    %303 = tpu.matmul %300, %302, %cst_209 {dimension_numbers = #tpu.dot_dimension_numbers<[1], [0], [0], [1], [0, 0, 1, 1], [], []>} : vector<64x16xf32>, vector<16x16xf32>, vector<64x16xf32> -> vector<64x16xf32>
    %304 = arith.addf %298, %303 : vector<64x16xf32>
    %305 = vector.extract_strided_slice %281 {offsets = [2, 8, 0], sizes = [8, 8, 16], strides = [1, 1, 1]} : vector<12x18x16xf32> to vector<8x8x16xf32>
    %306 = vector.shape_cast %305 : vector<8x8x16xf32> to vector<64x16xf32>
    %c4_210 = arith.constant 4 : index
    %c0_211 = arith.constant 0 : index
    %c0_212 = arith.constant 0 : index
    %307 = vector.load %arg13[%c4_210, %c0_211, %c0_212] : memref<9x16x16xf32, #tpu.memory_space<vmem>>, vector<1x16x16xf32>
    %308 = vector.shape_cast %307 : vector<1x16x16xf32> to vector<16x16xf32>
    %cst_213 = arith.constant dense<0.000000e+00> : vector<64x16xf32>
    %309 = tpu.matmul %306, %308, %cst_213 {dimension_numbers = #tpu.dot_dimension_numbers<[1], [0], [0], [1], [0, 0, 1, 1], [], []>} : vector<64x16xf32>, vector<16x16xf32>, vector<64x16xf32> -> vector<64x16xf32>
    %310 = arith.addf %304, %309 : vector<64x16xf32>
    %311 = vector.extract_strided_slice %281 {offsets = [2, 9, 0], sizes = [8, 8, 16], strides = [1, 1, 1]} : vector<12x18x16xf32> to vector<8x8x16xf32>
    %312 = vector.shape_cast %311 : vector<8x8x16xf32> to vector<64x16xf32>
    %c5_214 = arith.constant 5 : index
    %c0_215 = arith.constant 0 : index
    %c0_216 = arith.constant 0 : index
    %313 = vector.load %arg13[%c5_214, %c0_215, %c0_216] : memref<9x16x16xf32, #tpu.memory_space<vmem>>, vector<1x16x16xf32>
    %314 = vector.shape_cast %313 : vector<1x16x16xf32> to vector<16x16xf32>
    %cst_217 = arith.constant dense<0.000000e+00> : vector<64x16xf32>
    %315 = tpu.matmul %312, %314, %cst_217 {dimension_numbers = #tpu.dot_dimension_numbers<[1], [0], [0], [1], [0, 0, 1, 1], [], []>} : vector<64x16xf32>, vector<16x16xf32>, vector<64x16xf32> -> vector<64x16xf32>
    %316 = arith.addf %310, %315 : vector<64x16xf32>
    %317 = vector.extract_strided_slice %281 {offsets = [3, 7, 0], sizes = [8, 8, 16], strides = [1, 1, 1]} : vector<12x18x16xf32> to vector<8x8x16xf32>
    %318 = vector.shape_cast %317 : vector<8x8x16xf32> to vector<64x16xf32>
    %c6_218 = arith.constant 6 : index
    %c0_219 = arith.constant 0 : index
    %c0_220 = arith.constant 0 : index
    %319 = vector.load %arg13[%c6_218, %c0_219, %c0_220] : memref<9x16x16xf32, #tpu.memory_space<vmem>>, vector<1x16x16xf32>
    %320 = vector.shape_cast %319 : vector<1x16x16xf32> to vector<16x16xf32>
    %cst_221 = arith.constant dense<0.000000e+00> : vector<64x16xf32>
    %321 = tpu.matmul %318, %320, %cst_221 {dimension_numbers = #tpu.dot_dimension_numbers<[1], [0], [0], [1], [0, 0, 1, 1], [], []>} : vector<64x16xf32>, vector<16x16xf32>, vector<64x16xf32> -> vector<64x16xf32>
    %322 = arith.addf %316, %321 : vector<64x16xf32>
    %323 = vector.extract_strided_slice %281 {offsets = [3, 8, 0], sizes = [8, 8, 16], strides = [1, 1, 1]} : vector<12x18x16xf32> to vector<8x8x16xf32>
    %324 = vector.shape_cast %323 : vector<8x8x16xf32> to vector<64x16xf32>
    %c7_222 = arith.constant 7 : index
    %c0_223 = arith.constant 0 : index
    %c0_224 = arith.constant 0 : index
    %325 = vector.load %arg13[%c7_222, %c0_223, %c0_224] : memref<9x16x16xf32, #tpu.memory_space<vmem>>, vector<1x16x16xf32>
    %326 = vector.shape_cast %325 : vector<1x16x16xf32> to vector<16x16xf32>
    %cst_225 = arith.constant dense<0.000000e+00> : vector<64x16xf32>
    %327 = tpu.matmul %324, %326, %cst_225 {dimension_numbers = #tpu.dot_dimension_numbers<[1], [0], [0], [1], [0, 0, 1, 1], [], []>} : vector<64x16xf32>, vector<16x16xf32>, vector<64x16xf32> -> vector<64x16xf32>
    %328 = arith.addf %322, %327 : vector<64x16xf32>
    %329 = vector.extract_strided_slice %281 {offsets = [3, 9, 0], sizes = [8, 8, 16], strides = [1, 1, 1]} : vector<12x18x16xf32> to vector<8x8x16xf32>
    %330 = vector.shape_cast %329 : vector<8x8x16xf32> to vector<64x16xf32>
    %c8_226 = arith.constant 8 : index
    %c0_227 = arith.constant 0 : index
    %c0_228 = arith.constant 0 : index
    %331 = vector.load %arg13[%c8_226, %c0_227, %c0_228] : memref<9x16x16xf32, #tpu.memory_space<vmem>>, vector<1x16x16xf32>
    %332 = vector.shape_cast %331 : vector<1x16x16xf32> to vector<16x16xf32>
    %cst_229 = arith.constant dense<0.000000e+00> : vector<64x16xf32>
    %333 = tpu.matmul %330, %332, %cst_229 {dimension_numbers = #tpu.dot_dimension_numbers<[1], [0], [0], [1], [0, 0, 1, 1], [], []>} : vector<64x16xf32>, vector<16x16xf32>, vector<64x16xf32> -> vector<64x16xf32>
    %334 = arith.addf %328, %333 : vector<64x16xf32>
    %c0_230 = arith.constant 0 : index
    %c0_231 = arith.constant 0 : index
    %335 = vector.load %arg14[%c0_230, %c0_231] : memref<1x16xf32, #tpu.memory_space<vmem>>, vector<1x16xf32>
    %336 = vector.broadcast %335 : vector<1x16xf32> to vector<64x16xf32>
    %337 = arith.addf %334, %336 : vector<64x16xf32>
    %338 = vector.shape_cast %337 : vector<64x16xf32> to vector<8x8x16xf32>
    %cst_232 = arith.constant 0.000000e+00 : f32
    %339 = vector.broadcast %cst_232 : f32 to vector<8x8x16xf32>
    %340 = arith.maximumf %338, %339 : vector<8x8x16xf32>
    %cst_233 = arith.constant 0.000000e+00 : f32
    %341 = vector.broadcast %cst_233 : f32 to vector<12x18x16xf32>
    %c0_234 = arith.constant 0 : index
    %c0_235 = arith.constant 0 : index
    %c0_236 = arith.constant 0 : index
    %342 = vector.load %arg18[%c0_234, %c0_235, %c0_236] : memref<12x18x16xf32, #tpu.memory_space<vmem>>, vector<12x18x16xf32>
    tpu.vector_store %arg18[%c0_234, %c0_235, %c0_236], %341 {strides = array<i32>} : memref<12x18x16xf32, #tpu.memory_space<vmem>>, vector<12x18x16xf32>,
    %c2_237 = arith.constant 2 : index
    %c8_238 = arith.constant 8 : index
    %c0_239 = arith.constant 0 : index
    %343 = vector.load %arg18[%c2_237, %c8_238, %c0_239] : memref<12x18x16xf32, #tpu.memory_space<vmem>>, vector<8x8x16xf32>
    tpu.vector_store %arg18[%c2_237, %c8_238, %c0_239], %340 {strides = array<i32>} : memref<12x18x16xf32, #tpu.memory_space<vmem>>, vector<8x8x16xf32>,
    %c0_240 = arith.constant 0 : index
    %c0_241 = arith.constant 0 : index
    %c0_242 = arith.constant 0 : index
    %344 = vector.load %arg18[%c0_240, %c0_241, %c0_242] : memref<12x18x16xf32, #tpu.memory_space<vmem>>, vector<12x18x16xf32>
    %345 = vector.extract_strided_slice %344 {offsets = [1, 7, 0], sizes = [8, 8, 16], strides = [1, 1, 1]} : vector<12x18x16xf32> to vector<8x8x16xf32>
    %346 = vector.shape_cast %345 : vector<8x8x16xf32> to vector<64x16xf32>
    %c0_243 = arith.constant 0 : index
    %c0_244 = arith.constant 0 : index
    %c0_245 = arith.constant 0 : index
    %347 = vector.load %arg15[%c0_243, %c0_244, %c0_245] : memref<9x16x16xf32, #tpu.memory_space<vmem>>, vector<1x16x16xf32>
    %348 = vector.shape_cast %347 : vector<1x16x16xf32> to vector<16x16xf32>
    %cst_246 = arith.constant dense<0.000000e+00> : vector<64x16xf32>
    %349 = tpu.matmul %346, %348, %cst_246 {dimension_numbers = #tpu.dot_dimension_numbers<[1], [0], [0], [1], [0, 0, 1, 1], [], []>} : vector<64x16xf32>, vector<16x16xf32>, vector<64x16xf32> -> vector<64x16xf32>
    %350 = vector.extract_strided_slice %344 {offsets = [1, 8, 0], sizes = [8, 8, 16], strides = [1, 1, 1]} : vector<12x18x16xf32> to vector<8x8x16xf32>
    %351 = vector.shape_cast %350 : vector<8x8x16xf32> to vector<64x16xf32>
    %c1_247 = arith.constant 1 : index
    %c0_248 = arith.constant 0 : index
    %c0_249 = arith.constant 0 : index
    %352 = vector.load %arg15[%c1_247, %c0_248, %c0_249] : memref<9x16x16xf32, #tpu.memory_space<vmem>>, vector<1x16x16xf32>
    %353 = vector.shape_cast %352 : vector<1x16x16xf32> to vector<16x16xf32>
    %cst_250 = arith.constant dense<0.000000e+00> : vector<64x16xf32>
    %354 = tpu.matmul %351, %353, %cst_250 {dimension_numbers = #tpu.dot_dimension_numbers<[1], [0], [0], [1], [0, 0, 1, 1], [], []>} : vector<64x16xf32>, vector<16x16xf32>, vector<64x16xf32> -> vector<64x16xf32>
    %355 = arith.addf %349, %354 : vector<64x16xf32>
    %356 = vector.extract_strided_slice %344 {offsets = [1, 9, 0], sizes = [8, 8, 16], strides = [1, 1, 1]} : vector<12x18x16xf32> to vector<8x8x16xf32>
    %357 = vector.shape_cast %356 : vector<8x8x16xf32> to vector<64x16xf32>
    %c2_251 = arith.constant 2 : index
    %c0_252 = arith.constant 0 : index
    %c0_253 = arith.constant 0 : index
    %358 = vector.load %arg15[%c2_251, %c0_252, %c0_253] : memref<9x16x16xf32, #tpu.memory_space<vmem>>, vector<1x16x16xf32>
    %359 = vector.shape_cast %358 : vector<1x16x16xf32> to vector<16x16xf32>
    %cst_254 = arith.constant dense<0.000000e+00> : vector<64x16xf32>
    %360 = tpu.matmul %357, %359, %cst_254 {dimension_numbers = #tpu.dot_dimension_numbers<[1], [0], [0], [1], [0, 0, 1, 1], [], []>} : vector<64x16xf32>, vector<16x16xf32>, vector<64x16xf32> -> vector<64x16xf32>
    %361 = arith.addf %355, %360 : vector<64x16xf32>
    %362 = vector.extract_strided_slice %344 {offsets = [2, 7, 0], sizes = [8, 8, 16], strides = [1, 1, 1]} : vector<12x18x16xf32> to vector<8x8x16xf32>
    %363 = vector.shape_cast %362 : vector<8x8x16xf32> to vector<64x16xf32>
    %c3_255 = arith.constant 3 : index
    %c0_256 = arith.constant 0 : index
    %c0_257 = arith.constant 0 : index
    %364 = vector.load %arg15[%c3_255, %c0_256, %c0_257] : memref<9x16x16xf32, #tpu.memory_space<vmem>>, vector<1x16x16xf32>
    %365 = vector.shape_cast %364 : vector<1x16x16xf32> to vector<16x16xf32>
    %cst_258 = arith.constant dense<0.000000e+00> : vector<64x16xf32>
    %366 = tpu.matmul %363, %365, %cst_258 {dimension_numbers = #tpu.dot_dimension_numbers<[1], [0], [0], [1], [0, 0, 1, 1], [], []>} : vector<64x16xf32>, vector<16x16xf32>, vector<64x16xf32> -> vector<64x16xf32>
    %367 = arith.addf %361, %366 : vector<64x16xf32>
    %368 = vector.extract_strided_slice %344 {offsets = [2, 8, 0], sizes = [8, 8, 16], strides = [1, 1, 1]} : vector<12x18x16xf32> to vector<8x8x16xf32>
    %369 = vector.shape_cast %368 : vector<8x8x16xf32> to vector<64x16xf32>
    %c4_259 = arith.constant 4 : index
    %c0_260 = arith.constant 0 : index
    %c0_261 = arith.constant 0 : index
    %370 = vector.load %arg15[%c4_259, %c0_260, %c0_261] : memref<9x16x16xf32, #tpu.memory_space<vmem>>, vector<1x16x16xf32>
    %371 = vector.shape_cast %370 : vector<1x16x16xf32> to vector<16x16xf32>
    %cst_262 = arith.constant dense<0.000000e+00> : vector<64x16xf32>
    %372 = tpu.matmul %369, %371, %cst_262 {dimension_numbers = #tpu.dot_dimension_numbers<[1], [0], [0], [1], [0, 0, 1, 1], [], []>} : vector<64x16xf32>, vector<16x16xf32>, vector<64x16xf32> -> vector<64x16xf32>
    %373 = arith.addf %367, %372 : vector<64x16xf32>
    %374 = vector.extract_strided_slice %344 {offsets = [2, 9, 0], sizes = [8, 8, 16], strides = [1, 1, 1]} : vector<12x18x16xf32> to vector<8x8x16xf32>
    %375 = vector.shape_cast %374 : vector<8x8x16xf32> to vector<64x16xf32>
    %c5_263 = arith.constant 5 : index
    %c0_264 = arith.constant 0 : index
    %c0_265 = arith.constant 0 : index
    %376 = vector.load %arg15[%c5_263, %c0_264, %c0_265] : memref<9x16x16xf32, #tpu.memory_space<vmem>>, vector<1x16x16xf32>
    %377 = vector.shape_cast %376 : vector<1x16x16xf32> to vector<16x16xf32>
    %cst_266 = arith.constant dense<0.000000e+00> : vector<64x16xf32>
    %378 = tpu.matmul %375, %377, %cst_266 {dimension_numbers = #tpu.dot_dimension_numbers<[1], [0], [0], [1], [0, 0, 1, 1], [], []>} : vector<64x16xf32>, vector<16x16xf32>, vector<64x16xf32> -> vector<64x16xf32>
    %379 = arith.addf %373, %378 : vector<64x16xf32>
    %380 = vector.extract_strided_slice %344 {offsets = [3, 7, 0], sizes = [8, 8, 16], strides = [1, 1, 1]} : vector<12x18x16xf32> to vector<8x8x16xf32>
    %381 = vector.shape_cast %380 : vector<8x8x16xf32> to vector<64x16xf32>
    %c6_267 = arith.constant 6 : index
    %c0_268 = arith.constant 0 : index
    %c0_269 = arith.constant 0 : index
    %382 = vector.load %arg15[%c6_267, %c0_268, %c0_269] : memref<9x16x16xf32, #tpu.memory_space<vmem>>, vector<1x16x16xf32>
    %383 = vector.shape_cast %382 : vector<1x16x16xf32> to vector<16x16xf32>
    %cst_270 = arith.constant dense<0.000000e+00> : vector<64x16xf32>
    %384 = tpu.matmul %381, %383, %cst_270 {dimension_numbers = #tpu.dot_dimension_numbers<[1], [0], [0], [1], [0, 0, 1, 1], [], []>} : vector<64x16xf32>, vector<16x16xf32>, vector<64x16xf32> -> vector<64x16xf32>
    %385 = arith.addf %379, %384 : vector<64x16xf32>
    %386 = vector.extract_strided_slice %344 {offsets = [3, 8, 0], sizes = [8, 8, 16], strides = [1, 1, 1]} : vector<12x18x16xf32> to vector<8x8x16xf32>
    %387 = vector.shape_cast %386 : vector<8x8x16xf32> to vector<64x16xf32>
    %c7_271 = arith.constant 7 : index
    %c0_272 = arith.constant 0 : index
    %c0_273 = arith.constant 0 : index
    %388 = vector.load %arg15[%c7_271, %c0_272, %c0_273] : memref<9x16x16xf32, #tpu.memory_space<vmem>>, vector<1x16x16xf32>
    %389 = vector.shape_cast %388 : vector<1x16x16xf32> to vector<16x16xf32>
    %cst_274 = arith.constant dense<0.000000e+00> : vector<64x16xf32>
    %390 = tpu.matmul %387, %389, %cst_274 {dimension_numbers = #tpu.dot_dimension_numbers<[1], [0], [0], [1], [0, 0, 1, 1], [], []>} : vector<64x16xf32>, vector<16x16xf32>, vector<64x16xf32> -> vector<64x16xf32>
    %391 = arith.addf %385, %390 : vector<64x16xf32>
    %392 = vector.extract_strided_slice %344 {offsets = [3, 9, 0], sizes = [8, 8, 16], strides = [1, 1, 1]} : vector<12x18x16xf32> to vector<8x8x16xf32>
    %393 = vector.shape_cast %392 : vector<8x8x16xf32> to vector<64x16xf32>
    %c8_275 = arith.constant 8 : index
    %c0_276 = arith.constant 0 : index
    %c0_277 = arith.constant 0 : index
    %394 = vector.load %arg15[%c8_275, %c0_276, %c0_277] : memref<9x16x16xf32, #tpu.memory_space<vmem>>, vector<1x16x16xf32>
    %395 = vector.shape_cast %394 : vector<1x16x16xf32> to vector<16x16xf32>
    %cst_278 = arith.constant dense<0.000000e+00> : vector<64x16xf32>
    %396 = tpu.matmul %393, %395, %cst_278 {dimension_numbers = #tpu.dot_dimension_numbers<[1], [0], [0], [1], [0, 0, 1, 1], [], []>} : vector<64x16xf32>, vector<16x16xf32>, vector<64x16xf32> -> vector<64x16xf32>
    %397 = arith.addf %391, %396 : vector<64x16xf32>
    %c0_279 = arith.constant 0 : index
    %c0_280 = arith.constant 0 : index
    %398 = vector.load %arg16[%c0_279, %c0_280] : memref<1x16xf32, #tpu.memory_space<vmem>>, vector<1x16xf32>
    %399 = vector.broadcast %398 : vector<1x16xf32> to vector<64x16xf32>
    %400 = arith.addf %397, %399 : vector<64x16xf32>
    %401 = vector.shape_cast %400 : vector<64x16xf32> to vector<8x8x16xf32>
    %cst_281 = arith.constant -3.40282347E+38 : f32
    %402 = vector.broadcast %cst_281 : f32 to vector<12x18x16xf32>
    %c0_282 = arith.constant 0 : index
    %c0_283 = arith.constant 0 : index
    %c0_284 = arith.constant 0 : index
    %403 = vector.load %arg18[%c0_282, %c0_283, %c0_284] : memref<12x18x16xf32, #tpu.memory_space<vmem>>, vector<12x18x16xf32>
    tpu.vector_store %arg18[%c0_282, %c0_283, %c0_284], %402 {strides = array<i32>} : memref<12x18x16xf32, #tpu.memory_space<vmem>>, vector<12x18x16xf32>,
    %c2_285 = arith.constant 2 : index
    %c8_286 = arith.constant 8 : index
    %c0_287 = arith.constant 0 : index
    %404 = vector.load %arg18[%c2_285, %c8_286, %c0_287] : memref<12x18x16xf32, #tpu.memory_space<vmem>>, vector<8x8x16xf32>
    tpu.vector_store %arg18[%c2_285, %c8_286, %c0_287], %21 {strides = array<i32>} : memref<12x18x16xf32, #tpu.memory_space<vmem>>, vector<8x8x16xf32>,
    %c0_288 = arith.constant 0 : index
    %c0_289 = arith.constant 0 : index
    %c0_290 = arith.constant 0 : index
    %405 = vector.load %arg18[%c0_288, %c0_289, %c0_290] : memref<12x18x16xf32, #tpu.memory_space<vmem>>, vector<12x18x16xf32>
    %406 = vector.extract_strided_slice %405 {offsets = [1, 7, 0], sizes = [8, 8, 16], strides = [1, 1, 1]} : vector<12x18x16xf32> to vector<8x8x16xf32>
    %407 = vector.extract_strided_slice %405 {offsets = [1, 8, 0], sizes = [8, 8, 16], strides = [1, 1, 1]} : vector<12x18x16xf32> to vector<8x8x16xf32>
    %408 = arith.maximumf %406, %407 : vector<8x8x16xf32>
    %409 = vector.extract_strided_slice %405 {offsets = [1, 9, 0], sizes = [8, 8, 16], strides = [1, 1, 1]} : vector<12x18x16xf32> to vector<8x8x16xf32>
    %410 = arith.maximumf %408, %409 : vector<8x8x16xf32>
    %411 = vector.extract_strided_slice %405 {offsets = [2, 7, 0], sizes = [8, 8, 16], strides = [1, 1, 1]} : vector<12x18x16xf32> to vector<8x8x16xf32>
    %412 = arith.maximumf %410, %411 : vector<8x8x16xf32>
    %413 = vector.extract_strided_slice %405 {offsets = [2, 8, 0], sizes = [8, 8, 16], strides = [1, 1, 1]} : vector<12x18x16xf32> to vector<8x8x16xf32>
    %414 = arith.maximumf %412, %413 : vector<8x8x16xf32>
    %415 = vector.extract_strided_slice %405 {offsets = [2, 9, 0], sizes = [8, 8, 16], strides = [1, 1, 1]} : vector<12x18x16xf32> to vector<8x8x16xf32>
    %416 = arith.maximumf %414, %415 : vector<8x8x16xf32>
    %417 = vector.extract_strided_slice %405 {offsets = [3, 7, 0], sizes = [8, 8, 16], strides = [1, 1, 1]} : vector<12x18x16xf32> to vector<8x8x16xf32>
    %418 = arith.maximumf %416, %417 : vector<8x8x16xf32>
    %419 = vector.extract_strided_slice %405 {offsets = [3, 8, 0], sizes = [8, 8, 16], strides = [1, 1, 1]} : vector<12x18x16xf32> to vector<8x8x16xf32>
    %420 = arith.maximumf %418, %419 : vector<8x8x16xf32>
    %421 = vector.extract_strided_slice %405 {offsets = [3, 9, 0], sizes = [8, 8, 16], strides = [1, 1, 1]} : vector<12x18x16xf32> to vector<8x8x16xf32>
    %422 = arith.maximumf %420, %421 : vector<8x8x16xf32>
    %423 = arith.addf %401, %422 : vector<8x8x16xf32>
    %424 = tpu.concatenate %148, %211, %275, %423 in 2 : vector<8x8x16xf32>, vector<8x8x16xf32>, vector<8x8x16xf32>, vector<8x8x16xf32> -> vector<8x8x64xf32>
    %c0_291 = arith.constant 0 : index
    %c0_292 = arith.constant 0 : index
    %c0_293 = arith.constant 0 : index
    %c0_294 = arith.constant 0 : index
    %425 = vector.load %arg17[%c0_291, %c0_292, %c0_293, %c0_294] : memref<1x8x8x64xf32, #tpu.memory_space<vmem>>, vector<1x8x8x64xf32>
    %426 = vector.shape_cast %425 : vector<1x8x8x64xf32> to vector<8x8x64xf32>
    %427 = vector.shape_cast %424 : vector<8x8x64xf32> to vector<1x8x8x64xf32>
    tpu.vector_store %arg17[%c0_291, %c0_292, %c0_293, %c0_294], %427 {strides = array<i32>} : memref<1x8x8x64xf32, #tpu.memory_space<vmem>>, vector<1x8x8x64xf32>,
    return
  }
  func.func @transform_0(%arg0: i32) -> (i32, i32, i32, i32) {
    %c0_i32 = arith.constant 0 : i32
    %c0_i32_0 = arith.constant 0 : i32
    %c0_i32_1 = arith.constant 0 : i32
    %c0_i32_2 = arith.constant 0 : i32
    return %arg0, %c0_i32, %c0_i32_0, %c0_i32_1 : i32, i32, i32, i32
  }
  func.func @transform_1(%arg0: i32) -> (i32, i32, i32, i32) {
    %c0_i32 = arith.constant 0 : i32
    %c0_i32_0 = arith.constant 0 : i32
    %c0_i32_1 = arith.constant 0 : i32
    %c0_i32_2 = arith.constant 0 : i32
    return %arg0, %c0_i32, %c0_i32_0, %c0_i32_1 : i32, i32, i32, i32
  }
  func.func @transform_2(%arg0: i32) -> (i32, i32) {
    %c0_i32 = arith.constant 0 : i32
    %c0_i32_0 = arith.constant 0 : i32
    %c0_i32_1 = arith.constant 0 : i32
    return %c0_i32, %c0_i32_0 : i32, i32
  }
  func.func @transform_3(%arg0: i32) -> (i32, i32) {
    %c0_i32 = arith.constant 0 : i32
    %c0_i32_0 = arith.constant 0 : i32
    %c0_i32_1 = arith.constant 0 : i32
    return %c0_i32, %c0_i32_0 : i32, i32
  }
  func.func @transform_4(%arg0: i32) -> (i32, i32) {
    %c0_i32 = arith.constant 0 : i32
    %c0_i32_0 = arith.constant 0 : i32
    %c0_i32_1 = arith.constant 0 : i32
    return %c0_i32, %c0_i32_0 : i32, i32
  }
  func.func @transform_5(%arg0: i32) -> (i32, i32) {
    %c0_i32 = arith.constant 0 : i32
    %c0_i32_0 = arith.constant 0 : i32
    %c0_i32_1 = arith.constant 0 : i32
    return %c0_i32, %c0_i32_0 : i32, i32
  }
  func.func @transform_6(%arg0: i32) -> (i32, i32, i32) {
    %c0_i32 = arith.constant 0 : i32
    %c0_i32_0 = arith.constant 0 : i32
    %c0_i32_1 = arith.constant 0 : i32
    %c0_i32_2 = arith.constant 0 : i32
    return %c0_i32, %c0_i32_0, %c0_i32_1 : i32, i32, i32
  }
  func.func @transform_7(%arg0: i32) -> (i32, i32) {
    %c0_i32 = arith.constant 0 : i32
    %c0_i32_0 = arith.constant 0 : i32
    %c0_i32_1 = arith.constant 0 : i32
    return %c0_i32, %c0_i32_0 : i32, i32
  }
  func.func @transform_8(%arg0: i32) -> (i32, i32, i32) {
    %c0_i32 = arith.constant 0 : i32
    %c0_i32_0 = arith.constant 0 : i32
    %c0_i32_1 = arith.constant 0 : i32
    %c0_i32_2 = arith.constant 0 : i32
    return %c0_i32, %c0_i32_0, %c0_i32_1 : i32, i32, i32
  }
  func.func @transform_9(%arg0: i32) -> (i32, i32) {
    %c0_i32 = arith.constant 0 : i32
    %c0_i32_0 = arith.constant 0 : i32
    %c0_i32_1 = arith.constant 0 : i32
    return %c0_i32, %c0_i32_0 : i32, i32
  }
  func.func @transform_10(%arg0: i32) -> (i32, i32, i32) {
    %c0_i32 = arith.constant 0 : i32
    %c0_i32_0 = arith.constant 0 : i32
    %c0_i32_1 = arith.constant 0 : i32
    %c0_i32_2 = arith.constant 0 : i32
    return %c0_i32, %c0_i32_0, %c0_i32_1 : i32, i32, i32
  }
  func.func @transform_11(%arg0: i32) -> (i32, i32) {
    %c0_i32 = arith.constant 0 : i32
    %c0_i32_0 = arith.constant 0 : i32
    %c0_i32_1 = arith.constant 0 : i32
    return %c0_i32, %c0_i32_0 : i32, i32
  }
  func.func @transform_12(%arg0: i32) -> (i32, i32, i32) {
    %c0_i32 = arith.constant 0 : i32
    %c0_i32_0 = arith.constant 0 : i32
    %c0_i32_1 = arith.constant 0 : i32
    %c0_i32_2 = arith.constant 0 : i32
    return %c0_i32, %c0_i32_0, %c0_i32_1 : i32, i32, i32
  }
  func.func @transform_13(%arg0: i32) -> (i32, i32) {
    %c0_i32 = arith.constant 0 : i32
    %c0_i32_0 = arith.constant 0 : i32
    %c0_i32_1 = arith.constant 0 : i32
    return %c0_i32, %c0_i32_0 : i32, i32
  }
  func.func @transform_14(%arg0: i32) -> (i32, i32, i32) {
    %c0_i32 = arith.constant 0 : i32
    %c0_i32_0 = arith.constant 0 : i32
    %c0_i32_1 = arith.constant 0 : i32
    %c0_i32_2 = arith.constant 0 : i32
    return %c0_i32, %c0_i32_0, %c0_i32_1 : i32, i32, i32
  }
  func.func @transform_15(%arg0: i32) -> (i32, i32) {
    %c0_i32 = arith.constant 0 : i32
    %c0_i32_0 = arith.constant 0 : i32
    %c0_i32_1 = arith.constant 0 : i32
    return %c0_i32, %c0_i32_0 : i32, i32
  }
  func.func @transform_16(%arg0: i32) -> (i32, i32, i32, i32) {
    %c0_i32 = arith.constant 0 : i32
    %c0_i32_0 = arith.constant 0 : i32
    %c0_i32_1 = arith.constant 0 : i32
    %c0_i32_2 = arith.constant 0 : i32
    return %arg0, %c0_i32, %c0_i32_0, %c0_i32_1 : i32, i32, i32, i32
  }
}

</mosaic_0001>

<bundles_post_ra>
// kernel: tpu_custom_call.1
= control target key start
LH: loop header
LB: loop body
LE: loop exit
PB: predicated region body
PF: predicated region fallthrough
CT: control target
= control target key end

     0   :  { %s15329_s0 = inlined_call_operand.hbm [shape: f32[2,8,8,16], index: 0, kind: input, shape index: {}]   ;;  %s15330_s1 = inlined_call_operand.hbm [shape: f32[2,8,8,16], index: 1, kind: input, shape index: {}]   ;;  %s15331_s2 = inlined_call_operand.hbm [shape: f32[16,16], index: 2, kind: input, shape index: {}]   ;;  %s15332_s3 = inlined_call_operand.vmem [shape: f32[1,16], index: 3, kind: input, shape index: {}]   ;;  %s15333_s4 = inlined_call_operand.hbm [shape: f32[16,16], index: 4, kind: input, shape index: {}]   ;;  %s15334_s5 = inlined_call_operand.vmem [shape: f32[1,16], index: 5, kind: input, shape index: {}]   ;;  %s15335_s6 = inlined_call_operand.hbm [shape: f32[9,16,16], index: 6, kind: input, shape index: {}]   ;;  %s15336_s7 = inlined_call_operand.vmem [shape: f32[1,16], index: 7, kind: input, shape index: {}]   ;;  %s15337_s8 = inlined_call_operand.hbm [shape: f32[9,16,16], index: 8, kind: input, shape index: {}]   ;;  %s15338_s9 = inlined_call_operand.vmem [shape: f32[1,16], index: 9, kind: input, shape index: {}]   ;;  %s15339_s10 = inlined_call_operand.hbm [shape: f32[9,16,16], index: 10, kind: input, shape index: {}]   ;;  %s15340_s11 = inlined_call_operand.vmem [shape: f32[1,16], index: 11, kind: input, shape index: {}]   ;;  %s15341_s12 = inlined_call_operand.hbm [shape: f32[9,16,16], index: 12, kind: input, shape index: {}]   ;;  %s15342_s13 = inlined_call_operand.vmem [shape: f32[1,16], index: 13, kind: input, shape index: {}]   ;;  %s15343_s14 = inlined_call_operand.hbm [shape: f32[9,16,16], index: 14, kind: input, shape index: {}]   ;;  %s15344_s15 = inlined_call_operand.vmem [shape: f32[1,16], index: 15, kind: input, shape index: {}]   ;;  %s15345_s16 = inlined_call_operand.hbm [shape: f32[2,8,8,64], index: 16, kind: output, shape index: {}]  }
   0x1   :  { %15464 = sst [smem:[#allocation93_spill]] %s15329_s0 }
   0x2   :  { %15465 = sst [smem:[#allocation94_spill]] %s15331_s2 }
   0x3   :  { %15466 = sst [smem:[#allocation95_spill]] %s15333_s4 }
   0x4   :  { %15467 = sst [smem:[#allocation96_spill]] %s15334_s5 }
   0x5   :  { %15468 = sst [smem:[#allocation97_spill]] %s15335_s6 }
   0x6   :  { %15469 = sst [smem:[#allocation98_spill]] %s15336_s7 }
   0x7   :  { %15470 = sst [smem:[#allocation99_spill]] %s15337_s8 }
   0x8   :  { %15471 = sst [smem:[#allocation100_spill]] %s15338_s9 }
   0x9   :  { %15472 = sst [smem:[#allocation101_spill]] %s15339_s10 }
   0xa   :  { %15473 = sst [smem:[#allocation102_spill]] %s15340_s11 }
   0xb   :  { %15474 = sst [smem:[#allocation103_spill]] %s15341_s12 }
   0xc   :  { %15475 = sst [smem:[#allocation104_spill]] %s15342_s13 }
   0xd   :  { %15476 = sst [smem:[#allocation105_spill]] %s15343_s14 }
   0xe   :  { %15477 = sst [smem:[#allocation106_spill]] %s15344_s15 }
   0xf   :  { %15478 = sst [smem:[#allocation107_spill]] %s15345_s16 }
  0x10   :  { %21 = vsyncpa [#allocation4], 0 }
  0x11   :  { %23 = vsyncpa [#allocation4 + $0x1], 0 }
  0x12   :  { %24 = vsyncpa [#allocation7], 0 }
  0x13   :  { %26 = vsyncpa [#allocation7 + $0x1], 0 }
  0x14   :  { %27 = vsyncpa [#allocation10], 0 }
  0x15   :  { %28 = vsyncpa [#allocation13], 0 }
  0x16   :  { %29 = vsyncpa [#allocation16], 0 }
  0x17   :  { %30 = vsyncpa [#allocation5], 0 }
  0x18   :  { %32 = vsyncpa [#allocation5 + $0x1], 0  ;;  %s11484_s21 = smov 0   ;;  %s11486_s22 = smov 0  }
  0x19   :  { %s11488_s23 = smov 0   ;;  %s11490_s24 = smov 0  }
  0x1a LB: > { %s11379_s25 = smov [#allocation8]   ;;  %s11505_s27 = sadd.s32 4294967295, %s11377_s24   ;;  %s11377_s24 = sphi %s11490_s24, %s15793_s24   ;;  %s11373_s23 = sphi %s11488_s23, %s15792_s23   ;;  %s11369_s22 = sphi %s11486_s22, %s15791_s22   ;;  %s11365_s21 = sphi %s11484_s21, %s15790_s21  }
  0x1b   : > { %s427_s26 = sshll.u32 %s11379_s25, 4  ;;  %p8754_p0 = scmp.ge.s32.totalorder %s11377_s24, 1  ;;  %s11510_s26 = int_to_ptr.vmem [resolvable:$true] %s427_s26 }
  0x1c   : > { %p15348_p1 = scmp.eq.s32.totalorder %s11505_s27, 0  ;;  %p415_p2 = scmp.lt.s32.totalorder %s11377_s24, 3 }
  0x1d   : > { %s11380_s29 = smov [#allocation9]   ;;  %s11381_s17 = smov [#allocation12]  }
  0x1e   : > { %p11512_p3 = pnand %p8754_p0, %p415_p2  ;;  %s443_s30 = sshll.u32 %s11380_s29, 4  ;;  %s11525_s30 = int_to_ptr.vmem [resolvable:$true] %s443_s30 }
  0x1f   : > { %s475_s18 = sshll.u32 %s11381_s17, 4  ;;  %s15481_s2 = sld [smem:[#allocation94_spill]]  ;;  %s11527_s18 = int_to_ptr.vmem [resolvable:$true] %s475_s18 }
  0x20   : > { %s15479_s28 = scalar_select %p11512_p3, 1, 0 }
  0x21   : > { %p10937_p5 = pneg %p11512_p3 }
  0x23   : > { %p11521_p6 = pnand %p10937_p5, %p15348_p1 }
  0x25   : > { %s11035_s25 = scalar_lea.hbm %s15481_s2, 256  ;;  %p11537_p8 = pneg %p11521_p6 }
  0x26   : > { %p11036_p7 = scmp.ne.s32.totalorder %s15481_s2, %s11035_s25  ;;  %p11042_p11 = scmp.lt.u32.totalorder %s11035_s25, %s15481_s2 }
  0x28   : > { %p11038_p9 = pnand %p11537_p8, %p11036_p7 }
  0x2a   : > { %p11039_p10 = pneg %p11038_p9 }
  0x2c   : > { %p11044_p12 = pnand %p11042_p11, %p11039_p10 }
  0x2e   : > { %11047 = shalt.err (!%p11044_p12)
}
  0x2f   : > { %s11048_s15 = scalar_lea.vmem %s11510_s26, 256  ;;  %p11056_p5 = scmp.lt.s32.totalorder %s11510_s26, %s11510_s26 }
  0x30   : > { %p11049_p13 = scmp.ne.s32.totalorder %s11510_s26, %s11048_s15  ;;  %p11057_p4 = scmp.lt.s32.totalorder %s11048_s15, %s11048_s15 }
  0x32   : > { %p11051_p0 = pnand %p11049_p13, %p11537_p8  ;;  %p11058_p7 = por %p11057_p4, %p11056_p5 }
  0x34   : > { %p11052_p2 = pneg %p11051_p0 }
  0x36   : > { %p11059_p9 = pnand %p11058_p7, %p11052_p2 }
  0x38   : > { %11062 = shalt.err (!%p11059_p9)
}
  0x39   : > { %s15350_s16 = smov 128   ;;  %s15352_s13 = smov 8  }
  0x3a   : > { %10940 = dma.hbm_to_vmem [thread:$0]  (!%p11521_p6), %s15481_s2, 256, %s11510_s26, [#allocation7], %s15350_s16, %s15350_s16, %s15352_s13  }
  0x3b   : > { %s15483_s4 = sld [smem:[#allocation95_spill]] }
  0x41   : > { %s11063_s15 = scalar_lea.hbm %s15483_s4, 256 }
  0x42   : > { %p11064_p4 = scmp.ne.s32.totalorder %s15483_s4, %s11063_s15  ;;  %p11070_p12 = scmp.lt.u32.totalorder %s11063_s15, %s15483_s4 }
  0x44   : > { %p11066_p10 = pnand %p11064_p4, %p11537_p8 }
  0x46   : > { %p11067_p11 = pneg %p11066_p10 }
  0x48   : > { %p11072_p13 = pnand %p11070_p12, %p11067_p11 }
  0x4a   : > { %11075 = shalt.err (!%p11072_p13)
}
  0x4b   : > { %s11076_s26 = scalar_lea.vmem %s11525_s30, 256  ;;  %p11084_p7 = scmp.lt.s32.totalorder %s11525_s30, %s11525_s30 }
  0x4c   : > { %p11077_p0 = scmp.ne.s32.totalorder %s11525_s30, %s11076_s26  ;;  %p11085_p9 = scmp.lt.s32.totalorder %s11076_s26, %s11076_s26 }
  0x4e   : > { %p11079_p2 = pnand %p11077_p0, %p11537_p8  ;;  %p11086_p4 = por %p11085_p9, %p11084_p7 }
  0x50   : > { %p11080_p5 = pneg %p11079_p2 }
  0x52   : > { %p11087_p10 = pnand %p11086_p4, %p11080_p5 }
  0x54   : > { %11090 = shalt.err (!%p11087_p10)
}
  0x55   : > { %10943 = dma.hbm_to_vmem [thread:$0]  (!%p11521_p6), %s15483_s4, 256, %s11525_s30, [#allocation10], %s15350_s16, %s15350_s16, %s15352_s13  }
  0x56   : > { %s15484_s8 = sld [smem:[#allocation99_spill]] }
  0x5c   : > { %s11091_s19 = scalar_lea.hbm %s15484_s8, 2304 }
  0x5d   : > { %p11092_p11 = scmp.ne.s32.totalorder %s15484_s8, %s11091_s19  ;;  %p11098_p0 = scmp.lt.u32.totalorder %s11091_s19, %s15484_s8 }
  0x5f   : > { %p11094_p12 = pnand %p11092_p11, %p11537_p8 }
  0x61   : > { %p11095_p13 = pneg %p11094_p12 }
  0x63   : > { %p11100_p2 = pnand %p11098_p0, %p11095_p13 }
  0x65   : > { %11103 = shalt.err (!%p11100_p2)
}
  0x66   : > { %s11104_s30 = scalar_lea.vmem %s11527_s18, 2304  ;;  %p11112_p4 = scmp.lt.s32.totalorder %s11527_s18, %s11527_s18 }
  0x67   : > { %p11105_p5 = scmp.ne.s32.totalorder %s11527_s18, %s11104_s30  ;;  %p11113_p10 = scmp.lt.s32.totalorder %s11104_s30, %s11104_s30 }
  0x69   : > { %p11107_p7 = pnand %p11105_p5, %p11537_p8  ;;  %p11114_p11 = por %p11113_p10, %p11112_p4 }
  0x6b   : > { %p11108_p9 = pneg %p11107_p7 }
  0x6d   : > { %p11115_p12 = pnand %p11114_p11, %p11108_p9 }
  0x6f   : > { %11118 = shalt.err (!%p11115_p12)
}
  0x70   : > { %10949 = dma.hbm_to_vmem [thread:$0]  (!%p11521_p6), %s15484_s8, 2304, %s11527_s18, [#allocation13], %s15350_s16, %s15350_s16, %s15352_s13  }
  0x71   : > { %s11384_s7 = smov [#allocation15]   ;;  %s11385_s11 = smov [#allocation11]  }
  0x72   : > { %s507_s9 = sshll.u32 %s11384_s7, 4  ;;  %s459_s19 = sshll.u32 %s11385_s11, 4  ;;  %s508_s9 = int_to_ptr.vmem [resolvable:$true] %s507_s9  ;;  %s460_s19 = int_to_ptr.vmem [resolvable:$true] %s459_s19 }
  0x73   : > { %s15485_s12 = sld [smem:[#allocation103_spill]] }
  0x79   : > { %s11119_s17 = scalar_lea.hbm %s15485_s12, 2304 }
  0x7a   : > { %p11120_p13 = scmp.ne.s32.totalorder %s15485_s12, %s11119_s17  ;;  %p11126_p5 = scmp.lt.u32.totalorder %s11119_s17, %s15485_s12 }
  0x7c   : > { %p11122_p0 = pnand %p11120_p13, %p11537_p8 }
  0x7e   : > { %p11123_p2 = pneg %p11122_p0 }
  0x80   : > { %p11128_p7 = pnand %p11126_p5, %p11123_p2 }
  0x82   : > { %11131 = shalt.err (!%p11128_p7)
}
  0x83   : > { %s11132_s18 = scalar_lea.vmem %s508_s9, 2304  ;;  %p11140_p11 = scmp.lt.s32.totalorder %s508_s9, %s508_s9 }
  0x84   : > { %p11133_p9 = scmp.ne.s32.totalorder %s508_s9, %s11132_s18  ;;  %p11141_p12 = scmp.lt.s32.totalorder %s11132_s18, %s11132_s18 }
  0x86   : > { %p11135_p4 = pnand %p11133_p9, %p11537_p8  ;;  %p11142_p1 = por %p11141_p12, %p11140_p11 }
  0x88   : > { %p11136_p10 = pneg %p11135_p4 }
  0x8a   : > { %p11143_p3 = pnand %p11142_p1, %p11136_p10 }
  0x8c   : > { %11146 = shalt.err (!%p11143_p3)
}
  0x8d   : > { %10955 = dma.hbm_to_vmem [thread:$0]  (!%p11521_p6), %s15485_s12, 2304, %s508_s9, [#allocation16], %s15350_s16, %s15350_s16, %s15352_s13  }
  0x8e   : > { %s15486_s6 = sld [smem:[#allocation97_spill]] }
  0x94   : > { %s11147_s20 = scalar_lea.hbm %s15486_s6, 2304 }
  0x95   : > { %p11148_p1 = scmp.ne.s32.totalorder %s15486_s6, %s11147_s20  ;;  %p11154_p0 = scmp.lt.u32.totalorder %s11147_s20, %s15486_s6 }
  0x97   : > { %p11150_p3 = pnand %p11148_p1, %p11537_p8 }
  0x99   : > { %p11151_p13 = pneg %p11150_p3 }
  0x9b   : > { %p11156_p2 = pnand %p11154_p0, %p11151_p13 }
  0x9d   : > { %11159 = shalt.err (!%p11156_p2)
}
  0x9e   : > { %s11160_s26 = scalar_lea.vmem %s460_s19, 2304  ;;  %p11168_p4 = scmp.lt.s32.totalorder %s460_s19, %s460_s19 }
  0x9f   : > { %p11161_p5 = scmp.ne.s32.totalorder %s460_s19, %s11160_s26  ;;  %p11169_p10 = scmp.lt.s32.totalorder %s11160_s26, %s11160_s26 }
  0xa1   : > { %p11163_p7 = pnand %p11161_p5, %p11537_p8  ;;  %p11170_p11 = por %p11169_p10, %p11168_p4 }
  0xa3   : > { %p11164_p9 = pneg %p11163_p7 }
  0xa5   : > { %p11171_p12 = pnand %p11170_p11, %p11164_p9 }
  0xa7   : > { %11174 = shalt.err (!%p11171_p12)
}
  0xa8   : > { %10946 = dma.hbm_to_vmem [thread:$0]  (!%p11521_p6), %s15486_s6, 2304, %s460_s19, [#allocation10], %s15350_s16, %s15350_s16, %s15352_s13  }
  0xa9   : > { %s11386_s2 = smov [#allocation14]   ;;  %s11387_s7 = smov [#allocation17]  }
  0xaa   : > { %s491_s5 = sshll.u32 %s11386_s2, 4  ;;  %s523_s11 = sshll.u32 %s11387_s7, 4  ;;  %s492_s5 = int_to_ptr.vmem [resolvable:$true] %s491_s5  ;;  %s524_s11 = int_to_ptr.vmem [resolvable:$true] %s523_s11 }
  0xab   : > { %s15487_s10 = sld [smem:[#allocation101_spill]] }
  0xb1   : > { %s11175_s17 = scalar_lea.hbm %s15487_s10, 2304 }
  0xb2   : > { %p11176_p1 = scmp.ne.s32.totalorder %s15487_s10, %s11175_s17  ;;  %p11182_p0 = scmp.lt.u32.totalorder %s11175_s17, %s15487_s10 }
  0xb4   : > { %p11178_p3 = pnand %p11176_p1, %p11537_p8 }
  0xb6   : > { %p11179_p13 = pneg %p11178_p3 }
  0xb8   : > { %p11184_p2 = pnand %p11182_p0, %p11179_p13 }
  0xba   : > { %11187 = shalt.err (!%p11184_p2)
}
  0xbb   : > { %s11188_s19 = scalar_lea.vmem %s492_s5, 2304  ;;  %p11196_p4 = scmp.lt.s32.totalorder %s492_s5, %s492_s5 }
  0xbc   : > { %p11189_p5 = scmp.ne.s32.totalorder %s492_s5, %s11188_s19  ;;  %p11197_p10 = scmp.lt.s32.totalorder %s11188_s19, %s11188_s19 }
  0xbe   : > { %p11191_p7 = pnand %p11189_p5, %p11537_p8  ;;  %p11198_p11 = por %p11197_p10, %p11196_p4 }
  0xc0   : > { %p11192_p9 = pneg %p11191_p7 }
  0xc2   : > { %p11199_p12 = pnand %p11198_p11, %p11192_p9 }
  0xc4   : > { %11202 = shalt.err (!%p11199_p12)
}
  0xc5   : > { %10952 = dma.hbm_to_vmem [thread:$0]  (!%p11521_p6), %s15487_s10, 2304, %s492_s5, [#allocation13], %s15350_s16, %s15350_s16, %s15352_s13  }
  0xc6   : > { %s15488_s14 = sld [smem:[#allocation105_spill]] }
  0xcc   : > { %s11203_s25 = scalar_lea.hbm %s15488_s14, 2304 }
  0xcd   : > { %p11204_p1 = scmp.ne.s32.totalorder %s15488_s14, %s11203_s25  ;;  %p11210_p0 = scmp.lt.u32.totalorder %s11203_s25, %s15488_s14 }
  0xcf   : > { %p11206_p3 = pnand %p11204_p1, %p11537_p8 }
  0xd1   : > { %p11207_p13 = pneg %p11206_p3 }
  0xd3   : > { %p11212_p2 = pnand %p11210_p0, %p11207_p13 }
  0xd5   : > { %11215 = shalt.err (!%p11212_p2)
}
  0xd6   : > { %s11216_s9 = scalar_lea.vmem %s524_s11, 2304  ;;  %p11224_p4 = scmp.lt.s32.totalorder %s524_s11, %s524_s11 }
  0xd7   : > { %p11217_p5 = scmp.ne.s32.totalorder %s524_s11, %s11216_s9  ;;  %p11225_p10 = scmp.lt.s32.totalorder %s11216_s9, %s11216_s9 }
  0xd9   : > { %p11219_p7 = pnand %p11217_p5, %p11537_p8  ;;  %p11226_p11 = por %p11225_p10, %p11224_p4 }
  0xdb   : > { %p11220_p9 = pneg %p11219_p7 }
  0xdd   : > { %p11227_p12 = pnand %p11226_p11, %p11220_p9 }
  0xdf   : > { %11230 = shalt.err (!%p11227_p12)
}
  0xe0   : > { %10958 = dma.hbm_to_vmem [thread:$0]  (!%p11521_p6), %s15488_s14, 2304, %s524_s11, [#allocation16], %s15350_s16, %s15350_s16, %s15352_s13  }
  0xe1   : > { %s8753_s0 = sadd.s32 4294967294, %s11377_s24   ;;  %s11699_s29 = sadd.s32 1, %s11377_s24  }
  0xe2   : > { %s45_s18 = sadd.s32 1, %s11373_s23  ;;  %s42_s2 = ssub.s32 %s11377_s24, %s11699_s29 }
  0xe3   : > { %p52_p8 = scmp.ne.s32.totalorder %s11373_s23, %s11369_s22  ;;  %p43_p1 = scmp.eq.s32.totalorder %s42_s2, 0 }
  0xe4   : > { %p53_p3 = scmp.eq.s32.totalorder %s11377_s24, 0  ;;  %p58_p13 = scmp.ne.s32.totalorder %s11369_s22, %s11365_s21 }
  0xe5   : > { %p402_p0 = scmp.eq.s32.totalorder %s11505_s27, 1  ;;  %p15489_p5 = scmp.eq.s32.totalorder %s11505_s27, 0 }
  0xe6   : > { %s11711_s7 = scalar_select %p43_p1, %s11373_s23, %s45_s18  }
  0xe7   : > { %p54_p2 = por %p53_p3, %p52_p8  ;;  %p11715_p7 = por %p15489_p5, %p58_p13 }
  0xe8   : > { %p11719_p6 = por %p402_p0, %p52_p8  ;;  %p408_p9 = scmp.eq.s32.totalorder %s8753_s0, 1 }
  0xe9   : > { %p10977_p4 = scmp.lt.s32.totalorder %s11377_s24, 2  ;;  %s540_s25 = sand.u32 1, %s11373_s23  }
  0xea   : > { %s15491_s11 = scalar_select %p11719_p6, 1, 0 }
  0xeb   : > { %p11725_p10 = por %p408_p9, %p58_p13  ;;  %s11729_s15 = sshll.u32 %s540_s25, 6 }
  0xec   : > { %s9168_s30 = sshll.u32 %s11377_s24, 10  ;;  %s15493_s5 = sld [smem:[#allocation93_spill]] }
  0xed   : > { %s15492_s17 = scalar_select %p11725_p10, 1, 0 }
  0xee   : > { %s544_s0 = scalar_lea.vmem [#allocation3], %s11729_s15  ;;  %p11738_p11 = pnand %p10977_p4, %p54_p2 }
  0xef   : > { %s551_s18 = sshll.u32 %s544_s0, 4  ;;  %s11747_s26 = scalar_lea.hbm %s15330_s1, %s9168_s30  ;;  %s11742_s18 = int_to_ptr.vmem [resolvable:$true] %s551_s18 }
  0xf0   : > { %s11749_s9 = scalar_lea.sflag [#allocation4], %s540_s25  ;;  %p11233_p8 = pneg %p11738_p11 }
  0xf2   : > { %s11735_s19 = scalar_lea.hbm %s15493_s5, %s9168_s30  ;;  %s11236_s8 = scalar_lea.hbm %s15493_s5, 2048 }
  0xf3   : > { %s11231_s4 = scalar_lea.hbm %s11735_s19, 1024  ;;  %p11237_p13 = scmp.lt.u32.totalorder %s11735_s19, %s15493_s5 }
  0xf4   : > { %p11232_p12 = scmp.ne.s32.totalorder %s11735_s19, %s11231_s4  ;;  %p11238_p0 = scmp.lt.u32.totalorder %s11236_s8, %s11231_s4 }
  0xf5   : > { %p11240_p5 = scmp.lt.u32.totalorder %s11231_s4, %s11735_s19 }
  0xf6   : > { %p11234_p1 = pnand %p11233_p8, %p11232_p12  ;;  %p11239_p2 = por %p11238_p0, %p11237_p13 }
  0xf8   : > { %p11235_p3 = pneg %p11234_p1  ;;  %p11241_p9 = por %p11240_p5, %p11239_p2 }
  0xfa   : > { %p11242_p4 = pnand %p11241_p9, %p11235_p3 }
  0xfc   : > { %11245 = shalt.err (!%p11242_p4)
}
  0xfd   : > { %s11246_s16 = scalar_lea.vmem %s11742_s18, 1024  ;;  %s11388_s6 = smov [#allocation3]  }
  0xfe   : > { %p11247_p12 = scmp.ne.s32.totalorder %s11742_s18, %s11246_s16  ;;  %s11251_s13 = sshll.u32 %s11388_s6, 4  ;;  %s11252_s13 = int_to_ptr.vmem [resolvable:$false] %s11251_s13 }
  0xff   : > { %s11253_s10 = scalar_lea.vmem %s11252_s13, 2048  ;;  %p11254_p6 = scmp.lt.s32.totalorder %s11742_s18, %s11252_s13 }
 0x100   : > { %p11249_p1 = pnand %p11247_p12, %p11233_p8  ;;  %p11255_p13 = scmp.lt.s32.totalorder %s11253_s10, %s11246_s16 }
 0x102   : > { %p11250_p10 = pneg %p11249_p1  ;;  %p11256_p0 = por %p11255_p13, %p11254_p6 }
 0x104   : > { %p11257_p2 = pnand %p11256_p0, %p11250_p10 }
 0x106   : > { %11260 = shalt.err (!%p11257_p2)
}
 0x107   : > { %s15495_s4 = smov 8   ;;  %s15496_s8 = smov 128  }
 0x108   : > { %10962 = dma.hbm_to_vmem [thread:$0]  (!%p11738_p11), %s11735_s19, 1024, %s11742_s18, %s11749_s9, %s15496_s8, %s15496_s8, %s15495_s4  }
 0x109   : > { %s565_s12 = scalar_lea.vmem [#allocation6], %s11729_s15  ;;  %s561_s30 = sand.u32 1, %s11377_s24  }
 0x10a   : > { %s572_s25 = sshll.u32 %s565_s12, 4  ;;  %s11784_s0 = scalar_lea.sflag [#allocation7], %s561_s30  ;;  %s11782_s25 = int_to_ptr.vmem [resolvable:$true] %s572_s25 }
 0x10b   : > { %s11261_s16 = scalar_lea.hbm %s11747_s26, 1024  ;;  %s11266_s10 = scalar_lea.hbm %s15330_s1, 2048 }
 0x10c   : > { %p11262_p6 = scmp.ne.s32.totalorder %s11747_s26, %s11261_s16  ;;  %p11267_p5 = scmp.lt.u32.totalorder %s11747_s26, %s15330_s1 }
 0x10d   : > { %p11268_p9 = scmp.lt.u32.totalorder %s11266_s10, %s11261_s16  ;;  %p11270_p12 = scmp.lt.u32.totalorder %s11261_s16, %s11747_s26 }
 0x10e   : > { %p11264_p10 = pnand %p11262_p6, %p11233_p8 }
 0x10f   : > { %p11269_p4 = por %p11268_p9, %p11267_p5 }
 0x110   : > { %p11265_p3 = pneg %p11264_p10 }
 0x111   : > { %p11271_p1 = por %p11270_p12, %p11269_p4 }
 0x113   : > { %p11272_p13 = pnand %p11271_p1, %p11265_p3 }
 0x115   : > { %11275 = shalt.err (!%p11272_p13)
}
 0x116   : > { %s11276_s15 = scalar_lea.vmem %s11782_s25, 1024  ;;  %s11389_s19 = smov [#allocation6]  }
 0x117   : > { %p11277_p0 = scmp.ne.s32.totalorder %s11782_s25, %s11276_s15  ;;  %s11281_s18 = sshll.u32 %s11389_s19, 4  ;;  %s11282_s18 = int_to_ptr.vmem [resolvable:$false] %s11281_s18 }
 0x118   : > { %s11283_s14 = scalar_lea.vmem %s11282_s18, 2048  ;;  %p11284_p10 = scmp.lt.s32.totalorder %s11782_s25, %s11282_s18 }
 0x119   : > { %p11279_p2 = pnand %p11277_p0, %p11233_p8  ;;  %p11285_p5 = scmp.lt.s32.totalorder %s11283_s14, %s11276_s15 }
 0x11b   : > { %p11280_p6 = pneg %p11279_p2  ;;  %p11286_p9 = por %p11285_p5, %p11284_p10 }
 0x11d   : > { %p11287_p4 = pnand %p11286_p9, %p11280_p6 }
 0x11f   : > { %11290 = shalt.err (!%p11287_p4)
}
 0x120   : > { %10965 = dma.hbm_to_vmem [thread:$0]  (!%p11738_p11), %s11747_s26, 1024, %s11782_s25, %s11784_s0, %s15496_s8, %s15496_s8, %s15495_s4  }
 0x121   : > { %p15497_p8 = scmp.ne.s32.totalorder %s15479_s28, 0 }
 0x123   : > { %584 = sbr.rel (%p15497_p8) target bundleno = 2112 (0x840), region = 84 }
 0x12a   : > { %s11816_s5 = sand.u32 1, %s11369_s22  }
 0x12b   : > { %s11819_s9 = sshll.u32 %s11816_s5, 6  ;;  %s587_s2 = scalar_lea.sflag [#allocation4], %s11816_s5 }
 0x12c   : > { %s11823_s12 = scalar_lea.vmem [#allocation3], %s11819_s9 }
 0x12d   : > { %11336 = dma.done.wait (%p11715_p7), %s587_s2, 1024  }
 0x12e   : > { %11338 = vsyncadd (%p11715_p7), %s587_s2, 4294966272  ;;  %s595_s28 = sand.u32 1, %s11505_s27   ;;  %s11831_s4 = scalar_lea.vmem [#allocation6], %s11819_s9 }
 0x12f   : > { %s596_s26 = scalar_lea.sflag [#allocation7], %s595_s28 }
 0x130   : > { %11340 = dma.done.wait (%p11715_p7), %s596_s26, 1024  }
 0x131   : > { %11342 = vsyncadd (%p11715_p7), %s596_s26, 4294966272  ;;  %p15498_p11 = scmp.eq.s32.totalorder %s11505_s27, 0 }
 0x133   : > { %11344 = dma.done.wait (%p15498_p11), [#allocation7], 256   ;;  %p15499_p3 = pmov %p15498_p11 }
 0x135   : > { %11346 = vsyncadd (%p15499_p3), [#allocation7], 4294967040  ;;  %p15500_p12 = pmov %p15499_p3 }
 0x136   : > { %p15501_p1 = pmov %p15499_p3 }
 0x137   : > { %11348 = dma.done.wait (%p15500_p12), [#allocation10], 2560  }
 0x138   : > { %11350 = vsyncadd (%p15501_p1), [#allocation10], 4294964736  ;;  %p15502_p13 = pmov %p15501_p1 }
 0x139   : > { %p15503_p0 = pmov %p15501_p1 }
 0x13a   : > { %11352 = dma.done.wait (%p15502_p13), [#allocation13], 4608  }
 0x13b   : > { %11354 = vsyncadd (%p15503_p0), [#allocation13], 4294962688  ;;  %p15504_p7 = pmov %p15503_p0 }
 0x13c   : > { %p15505_p2 = pmov %p15503_p0 }
 0x13d   : > { %11356 = dma.done.wait (%p15504_p7), [#allocation16], 4608  }
 0x13e   : > { %11358 = vsyncadd (%p15505_p2), [#allocation16], 4294962688  ;;  %v697_v0 = vld [vmem:[#allocation8] sm:$0xff]  ;;  %v698_v1 = vld [vmem:[#allocation8 + $0x8] sm:$0xff]  ;;  %vm706_vm0 = vcmask 130048   ;;  %v15398_v33 = vmov 0.0  }
 0x13f   : > { %v681_v2 = vld [vmem:[%s11823_s12] sm:$0xff]  ;;  %v10393_v3 = vpack.c.bf16 %v698_v1, %v697_v0  ;;  %v682_v5 = vld [vmem:[%s11823_s12 + $0x8] sm:$0xff]  ;;  %v683_v6 = vld [vmem:[%s11823_s12 + $0x10] sm:$0xff]  ;;  %1009 = vst.msk [vmem:[#allocation2 + $0x50] sm:$0xff] %vm706_vm0, %v15398_v33  ;;  %vm1000_vm1 = vcmask 123904   ;;  %vm1090_vm2 = vcmask 1040384  }
 0x140   : > { %v689_v4 = vmax.f32 %v681_v2, 0.0  ;;  %v690_v7 = vmax.f32 %v682_v5, 0.0  ;;  %v852_v8 = vld [vmem:[#allocation9] sm:$0xff]  ;;  %v853_v9 = vld [vmem:[#allocation9 + $0x8] sm:$0xff]  ;;  %v691_v10 = vmax.f32 %v683_v6, 0.0  ;;  %v685_v13 = vld [vmem:[%s11823_s12 + $0x20] sm:$0xff] }
 0x141   : > { %10394 = vmatprep.subr.bf16.mxu1 %v10393_v3  ;;  %v684_v11 = vld [vmem:[%s11823_s12 + $0x18] sm:$0xff]  ;;  %v10397_v12 = vpack.c.bf16 %v853_v9, %v852_v8  ;;  %v693_v15 = vmax.f32 %v685_v13, 0.0  ;;  %v686_v16 = vld [vmem:[%s11823_s12 + $0x28] sm:$0xff]  ;;  %v687_v17 = vld [vmem:[%s11823_s12 + $0x30] sm:$0xff]  ;;  %998 = vst.msk [vmem:[#allocation2] sm:$0xff] %vm706_vm0, %v15398_v33  ;;  %vm1370_vm3 = vcmask 1046528  }
 0x142   : > { %9645 = vmatprep.mubr.msk.f32.mxu1 %vm706_vm0, %v689_v4  ;;  %10396 = vmatpush3.bf16.msra.mxu1 %v10393_v3  ;;  %v692_v14 = vmax.f32 %v684_v11, 0.0  ;;  %v694_v18 = vmax.f32 %v686_v16, 0.0  ;;  %v695_v19 = vmax.f32 %v687_v17, 0.0  ;;  %v688_v20 = vld [vmem:[%s11823_s12 + $0x38] sm:$0xff]  ;;  %v836_v21 = vld [vmem:[%s11831_s4] sm:$0xff]  ;;  %v837_v24 = vld [vmem:[%s11831_s4 + $0x8] sm:$0xff] }
 0x143   : > { %10398 = vmatprep.subr.bf16.mxu1 %v10397_v12  ;;  %v696_v22 = vmax.f32 %v688_v20, 0.0  ;;  %v844_v23 = vmax.f32 %v836_v21, 0.0  ;;  %v845_v25 = vmax.f32 %v837_v24, 0.0  ;;  %v838_v26 = vld [vmem:[%s11831_s4 + $0x10] sm:$0xff]  ;;  %v839_v28 = vld [vmem:[%s11831_s4 + $0x18] sm:$0xff]  ;;  %v840_v30 = vld [vmem:[%s11831_s4 + $0x20] sm:$0xff] }
 0x144   : > { %v846_v27 = vmax.f32 %v838_v26, 0.0  ;;  %v847_v29 = vmax.f32 %v839_v28, 0.0  ;;  %v848_v31 = vmax.f32 %v840_v30, 0.0  ;;  %v841_v32 = vld [vmem:[%s11831_s4 + $0x28] sm:$0xff]  ;;  %999 = vst.msk [vmem:[#allocation2 + $0x8] sm:$0xff] %vm706_vm0, %v15398_v33  ;;  %1002 = vst.msk [vmem:[#allocation2 + $0x18] sm:$0xff] %vm706_vm0, %v15398_v33 }
 0x145   : > { %9646 = vmatmul.mubr.msk.f32.vlgmr.msra.gmra.mrb[0].mxu1 %vm706_vm0, %v690_v7  ;;  %1003 = vst.msk [vmem:[#allocation2 + $0x20] sm:$0xff] %vm706_vm0, %v15398_v33  ;;  %1005 = vst.msk [vmem:[#allocation2 + $0x30] sm:$0xff] %vm706_vm0, %v15398_v33  ;;  %v849_v34 = vmax.f32 %v841_v32, 0.0  ;;  %v842_v35 = vld [vmem:[%s11831_s4 + $0x30] sm:$0xff]  ;;  %v843_v37 = vld [vmem:[%s11831_s4 + $0x38] sm:$0xff]  ;;  %s15548_s0 = sld [smem:[#allocation96_spill]] }
 0x146   : > { %9648 = vmatprep.mubr.msk.f32.mxu1 %vm706_vm0, %v691_v10  ;;  %10400 = vmatpush3.bf16.msra.mxu1 %v10397_v12  ;;  %1006 = vst.msk [vmem:[#allocation2 + $0x38] sm:$0xff] %vm706_vm0, %v15398_v33  ;;  %1008 = vst.msk [vmem:[#allocation2 + $0x48] sm:$0xff] %vm706_vm0, %v15398_v33  ;;  %v850_v36 = vmax.f32 %v842_v35, 0.0  ;;  %v1118_v38 = vld [vmem:[#allocation11 + $0x10] sm:$0xff]  ;;  %v1119_v39 = vld [vmem:[#allocation11 + $0x18] sm:$0xff]  ;;  %v851_v40 = vmax.f32 %v843_v37, 0.0 }
 0x147   : > { %1011 = vst.msk [vmem:[#allocation2 + $0x60] sm:$0xff] %vm706_vm0, %v15398_v33  ;;  %1012 = vst.msk [vmem:[#allocation2 + $0x68] sm:$0xff] %vm706_vm0, %v15398_v33  ;;  %v10401_v41 = vpack.c.bf16 %v1119_v39, %v1118_v38  ;;  %v1533_v42 = vld [vmem:[#allocation11 + $0x30] sm:$0xff]  ;;  %v1534_v43 = vld [vmem:[#allocation11 + $0x38] sm:$0xff]  ;;  %v15361_v10 = vmov -3.4028235e+38  }
 0x148   : > { %1014 = vst.msk [vmem:[#allocation2 + $0x78] sm:$0xff] %vm706_vm0, %v15398_v33  ;;  %1015 = vst.msk [vmem:[#allocation2 + $0x80] sm:$0xff] %vm706_vm0, %v15398_v33  ;;  %v11971_v45 = vpack.c.bf16 %v1534_v43, %v1533_v42  ;;  %v1651_v54 = vld [vmem:[#allocation11 + $0x40] sm:$0xff]  ;;  %v1652_v55 = vld [vmem:[#allocation11 + $0x48] sm:$0xff]  ;;  %s15557_s13 = sld [smem:[#allocation98_spill]]  ;;  %vm3672_vm4 = vcmask 1045504  }
 0x149   : > { %9649 = vmatmul.mubr.msk.f32.gmra.mrb[2].mxu1 %vm706_vm0, %v692_v14  ;;  %1017 = vst.msk [vmem:[#allocation2 + $0x90] sm:$0xff] %vm706_vm0, %v15398_v33  ;;  %1018 = vst.msk [vmem:[#allocation2 + $0x98] sm:$0xff] %vm706_vm0, %v15398_v33  ;;  %10402 = vmatprep.subr.bf16.mxu1 %v10401_v41  ;;  %v12011_v56 = vpack.c.bf16 %v1652_v55, %v1651_v54  ;;  %v1115_v57 = vld [vmem:[#allocation11] sm:$0xff]  ;;  %v1116_v59 = vld [vmem:[#allocation11 + $0x8] sm:$0xff]  ;;  %s11393_s10 = smov 16   ;;  %vm4285_vm8 = vcmask 1041408  }
 0x14a   : > { %9651 = vmatprep.mubr.msk.f32.mxu1 %vm706_vm0, %v693_v15  ;;  %1020 = vst.msk [vmem:[#allocation2 + $0xa8] sm:$0xff] %vm706_vm0, %v15398_v33  ;;  %1021 = vst.msk [vmem:[#allocation2 + $0xb0] sm:$0xff] %vm706_vm0, %v15398_v33  ;;  %10414 = vmatprep.subr.bf16.mxu0 %v11971_v45  ;;  %v12015_v60 = vpack.c.bf16 %v1116_v59, %v1115_v57  ;;  %v1396_v35 = vld [vmem:[#allocation11 + $0x20] sm:$0xff]  ;;  %s15726_s18 = sld [smem:[#allocation100_spill]]  ;;  %vm5552_vm9 = vcmask 130055   ;;  %vm5554_vm10 = vcmask 129024  }
 0x14b   : > { %1023 = vst.msk [vmem:[#allocation2 + $0xc0] sm:$0xff] %vm706_vm0, %v15398_v33  ;;  %1024 = vst.msk [vmem:[#allocation2 + $0xc8] sm:$0xff] %vm706_vm0, %v15398_v33  ;;  %10416 = vmatpush3.bf16.msra.mxu0 %v11971_v45  ;;  %v1044_v61 = vld [vmem:[#allocation2 + $0x18] sm:$0xff]  ;;  %s15762_s12 = sld [smem:[#allocation102_spill]]  ;;  %s11394_s28 = smov 32   ;;  %vm8550_vm11 = vcmask 261120  }
 0x14c   : > { %1026 = vst.msk [vmem:[#allocation2 + $0xd8] sm:$0xff] %vm706_vm0, %v15398_v33  ;;  %1027 = vst.msk [vmem:[#allocation2 + $0xe0] sm:$0xff] %vm706_vm0, %v15398_v33  ;;  %v11969_v44 = vld [vmem:[#allocation2 + $0x20] sm:$0xff]  ;;  %v11981_v48 = vld [vmem:[#allocation2 + $0x30] sm:$0xff]  ;;  %10418 = vmatprep.subr.bf16.mxu0 %v12011_v56  ;;  %v1091_v62 = vrot.slane %v1044_v61, 7  ;;  %s15767_s20 = sld [smem:[#allocation104_spill]] }
 0x14d   : > { %9652 = vmatmul.mubr.msk.f32.gmra.mrb[4].mxu1 %vm706_vm0, %v694_v18  ;;  %1029 = vst.msk [vmem:[#allocation2 + $0xf0] sm:$0xff] %vm706_vm0, %v15398_v33  ;;  %1030 = vst.msk [vmem:[#allocation2 + $0xf8] sm:$0xff] %vm706_vm0, %v15398_v33  ;;  %v11973_v46 = vld [vmem:[#allocation2 + $0x48] sm:$0xff]  ;;  %v1092_v58 = vrot.slane %v11969_v44, 7  ;;  %v8780_v18 = vld [vmem:[%s15332_s3] ss:$0 sm:$0xff] }
 0x14e   : > { %9654 = vmatprep.mubr.msk.f32.mxu1 %vm706_vm0, %v695_v19  ;;  %1032 = vst.msk [vmem:[#allocation2 + $0x108] sm:$0xff] %vm706_vm0, %v15398_v33  ;;  %1033 = vst.msk [vmem:[#allocation2 + $0x110] sm:$0xff] %vm706_vm0, %v15398_v33  ;;  %v11999_v52 = vld [vmem:[#allocation2 + $0x60] sm:$0xff]  ;;  %v1094_v42 = vrot.slane %v11981_v48, 7  ;;  %v1773_v61 = vld [vmem:[#allocation11 + $0x50] sm:$0xff]  ;;  %s15778_s30 = sld [smem:[#allocation106_spill]] }
 0x14f   : > { %2276 = vst.msk [vmem:[#allocation2] sm:$0xff] %vm706_vm0, %v15398_v33  ;;  %2277 = vst.msk [vmem:[#allocation2 + $0x8] sm:$0xff] %vm706_vm0, %v15398_v33  ;;  %v11995_v50 = vld [vmem:[#allocation2 + $0x78] sm:$0xff]  ;;  %v12021_v63 = vsel %vm1090_vm2, %v1091_v62, %v1092_v58  ;;  %v1097_v58 = vrot.slane %v11973_v46, 7  ;;  %vm8559_vm12 = vcmask 392192   ;;  %vm8568_vm13 = vcmask 523264  }
 0x150   : > { %2309 = vst.msk [vmem:[#allocation2 + $0x108] sm:$0xff] %vm706_vm0, %v15398_v33  ;;  %2310 = vst.msk [vmem:[#allocation2 + $0x110] sm:$0xff] %vm706_vm0, %v15398_v33  ;;  %v12023_v0 = vld [vmem:[#allocation2 + $0x90] sm:$0xff]  ;;  %v1774_v62 = vld [vmem:[#allocation11 + $0x58] sm:$0xff]  ;;  %s15235_s16 = scalar_lea.vmem [#allocation18], %s11819_s9  ;;  %s9170_s6 = sshll.u32 %s11505_s27, 10 }
 0x151   : > { %9655 = vmatmul.mubr.msk.f32.gmra.mrb[6].mxu1 %vm706_vm0, %v696_v22  ;;  %1007 = vst.msk [vmem:[#allocation2 + $0x40] sm:$0x3] %vm1000_vm1, %v15398_v33  ;;  %1001 = vst.msk [vmem:[#allocation2 + $0x10] sm:$0x3] %vm1000_vm1, %v15398_v33  ;;  %v12025_v1 = vld [vmem:[#allocation2 + $0xa8] sm:$0xff]  ;;  %s8591_s9 = sshll.u32 %s15235_s16, 4  ;;  %s15268_s9 = int_to_ptr.vmem [resolvable:$true] %s8591_s9 }
 0x152   : > { %9661 = vmatprep.mubr.msk.f32.mxu1 %vm706_vm0, %v844_v23  ;;  %1004 = vst.msk [vmem:[#allocation2 + $0x28] sm:$0x3] %vm1000_vm1, %v15398_v33  ;;  %1010 = vst.msk [vmem:[#allocation2 + $0x58] sm:$0x3] %vm1000_vm1, %v15398_v33  ;;  %v12039_v4 = vld [vmem:[#allocation2 + $0xc0] sm:$0xff]  ;;  %s8578_s19 = scalar_lea.sflag [#allocation5], %s11816_s5 }
 0x153   : > { %1013 = vst.msk [vmem:[#allocation2 + $0x70] sm:$0x3] %vm1000_vm1, %v15398_v33  ;;  %1016 = vst.msk [vmem:[#allocation2 + $0x88] sm:$0x3] %vm1000_vm1, %v15398_v33  ;;  %v12051_v7 = vld [vmem:[#allocation2 + $0xd8] sm:$0xff]  ;;  %p15787_p10 = scmp.ne.s32.totalorder %s15491_s11, 0 }
 0x154   : > { %1019 = vst.msk [vmem:[#allocation2 + $0xa0] sm:$0x3] %vm1000_vm1, %v15398_v33  ;;  %1022 = vst.msk [vmem:[#allocation2 + $0xb8] sm:$0x3] %vm1000_vm1, %v15398_v33  ;;  %v12103_v12 = vld [vmem:[#allocation2 + $0xf0] sm:$0xff]  ;;  %v12105_v13 = vld [vmem:[#allocation2 + $0xf8] sm:$0xff] }
 0x155   : > { %9662 = vmatmul.mubr.msk.f32.vlgmr.msra.gmra.mrb[8].mxu1 %vm706_vm0, %v845_v25  ;;  %1025 = vst.msk [vmem:[#allocation2 + $0xd0] sm:$0x3] %vm1000_vm1, %v15398_v33  ;;  %1028 = vst.msk [vmem:[#allocation2 + $0xe8] sm:$0x3] %vm1000_vm1, %v15398_v33  ;;  %s11396_s14 = smov [#allocation18]  }
 0x156   : > { %9664 = vmatprep.mubr.msk.f32.mxu1 %vm706_vm0, %v846_v27  ;;  %1031 = vst.msk [vmem:[#allocation2 + $0x100] sm:$0x3] %vm1000_vm1, %v15398_v33  ;;  %1034 = vst.msk [vmem:[#allocation2 + $0x118] sm:$0x3] %vm1000_vm1, %v15398_v33  ;;  %10404 = vmatpush3.bf16.msra.mxu1 %v10401_v41  ;;  %s11295_s2 = sshll.u32 %s11396_s14, 4  ;;  %s11296_s2 = int_to_ptr.vmem [resolvable:$false] %s11295_s2 }
 0x157   : > { %2278 = vst.msk [vmem:[#allocation2 + $0x10] sm:$0x3] %vm1000_vm1, %v15398_v33  ;;  %2311 = vst.msk [vmem:[#allocation2 + $0x118] sm:$0x3] %vm1000_vm1, %v15398_v33  ;;  %10406 = vmatprep.subr.bf16.mxu1 %v12015_v60  ;;  %p11298_p4 = scmp.lt.s32.totalorder %s15268_s9, %s11296_s2 }
 0x158   : > { %2280 = vst.msk [vmem:[#allocation2 + $0x20] sm:$0xff] %vm706_vm0, %v15398_v33  ;;  %2285 = vst.msk [vmem:[#allocation2 + $0x48] sm:$0xff] %vm706_vm0, %v15398_v33  ;;  %v11985_v49 = vld [vmem:[#allocation2 + $0x40] sm:$0x3] }
 0x159   : > { %9665 = vmatmul.mubr.msk.f32.gmra.mrb[10].mxu1 %vm706_vm0, %v847_v29  ;;  %v11975_v47 = vld [vmem:[#allocation2 + $0x58] sm:$0x3]  ;;  %2282 = vst.msk [vmem:[#allocation2 + $0x30] sm:$0xff] %vm706_vm0, %v15398_v33  ;;  %2291 = vst.msk [vmem:[#allocation2 + $0x78] sm:$0xff] %vm706_vm0, %v15398_v33  ;;  %v12055_v8 = vld [vmem:[#allocation2 + $0x28] sm:$0x3] }
 0x15a   : > { %9667 = vmatprep.mubr.msk.f32.mxu1 %vm706_vm0, %v848_v31  ;;  %2287 = vst.msk [vmem:[#allocation2 + $0x58] sm:$0x3] %vm1000_vm1, %v15398_v33  ;;  %2284 = vst.msk [vmem:[#allocation2 + $0x40] sm:$0x3] %vm1000_vm1, %v15398_v33  ;;  %v11997_v51 = vld [vmem:[#allocation2 + $0x88] sm:$0x3] }
 0x15b   : > { %v12003_v53 = vld [vmem:[#allocation2 + $0x70] sm:$0x3]  ;;  %2293 = vst.msk [vmem:[#allocation2 + $0x88] sm:$0x3] %vm1000_vm1, %v15398_v33  ;;  %v12027_v2 = vld [vmem:[#allocation2 + $0xa0] sm:$0x3] }
 0x15c   : > { %2288 = vst.msk [vmem:[#allocation2 + $0x60] sm:$0xff] %vm706_vm0, %v15398_v33  ;;  %2279 = vst.msk [vmem:[#allocation2 + $0x18] sm:$0xff] %vm706_vm0, %v15398_v33  ;;  %v12035_v3 = vld [vmem:[#allocation2 + $0xb8] sm:$0x3]  ;;  %v12041_v5 = vld [vmem:[#allocation2 + $0xd0] sm:$0x3] }
 0x15d   : > { %9668 = vmatmul.mubr.msk.f32.gmra.mrb[12].mxu1 %vm706_vm0, %v849_v34  ;;  %2290 = vst.msk [vmem:[#allocation2 + $0x70] sm:$0x3] %vm1000_vm1, %v15398_v33  ;;  %2296 = vst.msk [vmem:[#allocation2 + $0xa0] sm:$0x3] %vm1000_vm1, %v15398_v33  ;;  %v12043_v6 = vld [vmem:[#allocation2 + $0xe8] sm:$0x3] }
 0x15e   : > { %9670 = vmatprep.mubr.msk.f32.mxu1 %vm706_vm0, %v850_v36  ;;  %2294 = vst.msk [vmem:[#allocation2 + $0x90] sm:$0xff] %vm706_vm0, %v15398_v33  ;;  %2297 = vst.msk [vmem:[#allocation2 + $0xa8] sm:$0xff] %vm706_vm0, %v15398_v33  ;;  %v12119_v16 = vld [vmem:[#allocation2 + $0x100] sm:$0x3]  ;;  %v1397_v36 = vld [vmem:[#allocation11 + $0x28] sm:$0xff] }
 0x15f   : > { %2299 = vst.msk [vmem:[#allocation2 + $0xb8] sm:$0x3] %vm1000_vm1, %v15398_v33  ;;  %2302 = vst.msk [vmem:[#allocation2 + $0xd0] sm:$0x3] %vm1000_vm1, %v15398_v33  ;;  %v12155_v43 = vpack.c.bf16 %v1397_v36, %v1396_v35 }
 0x160   : > { %2300 = vst.msk [vmem:[#allocation2 + $0xc0] sm:$0xff] %vm706_vm0, %v15398_v33  ;;  %2303 = vst.msk [vmem:[#allocation2 + $0xd8] sm:$0xff] %vm706_vm0, %v15398_v33 }
 0x161   : > { %9671 = vmatmul.mubr.msk.f32.gmra.mrb[14].mxu1 %vm706_vm0, %v851_v40  ;;  %2305 = vst.msk [vmem:[#allocation2 + $0xe8] sm:$0x3] %vm1000_vm1, %v15398_v33  ;;  %2281 = vst.msk [vmem:[#allocation2 + $0x28] sm:$0x3] %vm1000_vm1, %v15398_v33 }
 0x162   : > { %9677 = vmatprep.mubr.msk.f32.mxu1 %vm706_vm0, %v11969_v44  ;;  %3550 = vst.msk [vmem:[#allocation2] sm:$0xff] %vm706_vm0, %v15361_v10  ;;  %3551 = vst.msk [vmem:[#allocation2 + $0x8] sm:$0xff] %vm706_vm0, %v15361_v10 }
 0x163   : > { %3552 = vst.msk [vmem:[#allocation2 + $0x10] sm:$0x3] %vm1000_vm1, %v15361_v10  ;;  %3585 = vst.msk [vmem:[#allocation2 + $0x118] sm:$0x3] %vm1000_vm1, %v15361_v10 }
 0x164   : > { %3583 = vst.msk [vmem:[#allocation2 + $0x108] sm:$0xff] %vm706_vm0, %v15361_v10  ;;  %3584 = vst.msk [vmem:[#allocation2 + $0x110] sm:$0xff] %vm706_vm0, %v15361_v10 }
 0x165   : > { %3843 = vst.msk [vmem:[#allocation2] sm:$0xff] %vm706_vm0, %v15398_v33  ;;  %3844 = vst.msk [vmem:[#allocation2 + $0x8] sm:$0xff] %vm706_vm0, %v15398_v33 }
 0x166   : > { %3845 = vst.msk [vmem:[#allocation2 + $0x10] sm:$0x3] %vm1000_vm1, %v15398_v33  ;;  %3878 = vst.msk [vmem:[#allocation2 + $0x118] sm:$0x3] %vm1000_vm1, %v15398_v33 }
 0x167   : > { %3876 = vst.msk [vmem:[#allocation2 + $0x108] sm:$0xff] %vm706_vm0, %v15398_v33  ;;  %3877 = vst.msk [vmem:[#allocation2 + $0x110] sm:$0xff] %vm706_vm0, %v15398_v33  ;;  %v12099_v11 = vld [vmem:[#allocation2 + $0xd8] sm:$0xff] }
 0x168   : > { %v12059_v9 = vld [vmem:[#allocation2 + $0xe8] sm:$0x3]  ;;  %4189 = vst.msk [vmem:[#allocation2] sm:$0xff] %vm706_vm0, %v15398_v33  ;;  %4190 = vst.msk [vmem:[#allocation2 + $0x8] sm:$0xff] %vm706_vm0, %v15398_v33 }
 0x169   : > { %15506 = vst [vmem:[#allocation26_spill] sm:$0xff] %v12059_v9  ;;  %3579 = vst.msk [vmem:[#allocation2 + $0xe8] sm:$0x3] %vm1000_vm1, %v15361_v10 }
 0x16a   : > { %4191 = vst.msk [vmem:[#allocation2 + $0x10] sm:$0x3] %vm1000_vm1, %v15398_v33  ;;  %4224 = vst.msk [vmem:[#allocation2 + $0x118] sm:$0x3] %vm1000_vm1, %v15398_v33 }
 0x16b   : > { %4222 = vst.msk [vmem:[#allocation2 + $0x108] sm:$0xff] %vm706_vm0, %v15398_v33  ;;  %4223 = vst.msk [vmem:[#allocation2 + $0x110] sm:$0xff] %vm706_vm0, %v15398_v33 }
 0x16c   : > { %15507 = vst [vmem:[#allocation27_spill] sm:$0xff] %v12099_v11  ;;  %3577 = vst.msk [vmem:[#allocation2 + $0xd8] sm:$0xff] %vm706_vm0, %v15361_v10 }
 0x16d   : > { %2306 = vst.msk [vmem:[#allocation2 + $0xf0] sm:$0xff] %vm706_vm0, %v15398_v33  ;;  %2307 = vst.msk [vmem:[#allocation2 + $0xf8] sm:$0xff] %vm706_vm0, %v15398_v33 }
 0x16e   : > { %2308 = vst.msk [vmem:[#allocation2 + $0x100] sm:$0x3] %vm1000_vm1, %v15398_v33 }
 0x174   : > { %v12111_v14 = vld [vmem:[#allocation2 + $0xf0] sm:$0xff]  ;;  %v12113_v15 = vld [vmem:[#allocation2 + $0xf8] sm:$0xff] }
 0x175   : > { %15508 = vst [vmem:[#allocation28_spill] sm:$0xff] %v12111_v14  ;;  %15509 = vst [vmem:[#allocation29_spill] sm:$0xff] %v12113_v15  ;;  %v12123_v17 = vld [vmem:[#allocation2 + $0x100] sm:$0x3] }
 0x176   : > { %3580 = vst.msk [vmem:[#allocation2 + $0xf0] sm:$0xff] %vm706_vm0, %v15361_v10  ;;  %3581 = vst.msk [vmem:[#allocation2 + $0xf8] sm:$0xff] %vm706_vm0, %v15361_v10 }
 0x177   : > { %15510 = vst [vmem:[#allocation30_spill] sm:$0xff] %v12123_v17  ;;  %3582 = vst.msk [vmem:[#allocation2 + $0x100] sm:$0x3] %vm1000_vm1, %v15361_v10 }
 0x218   : > { %v9647_v19 = vpop.f32.mrb[0].mxu1 }
 0x219   : > { %v12130_v20 = vadd.f32 %v9647_v19, %v8780_v18  ;;  %v797_v21 = vpop.f32.mrb[1].mxu1 }
 0x21a   : > { %v12132_v22 = vadd.f32 %v8780_v18, %v797_v21 }
 0x21b   : > { %15511 = vst [vmem:[#allocation31_spill] sm:$0xff] %v12130_v20  ;;  %v991_v23 = vmax.f32 %v12130_v20, 0.0 }
 0x21c   : > { %15512 = vst [vmem:[#allocation32_spill] sm:$0xff] %v12132_v22  ;;  %v990_v24 = vmax.f32 %v12132_v22, 0.0  ;;  %v9650_v25 = vpop.f32.mrb[2].mxu1 }
 0x21d   : > { %1037 = vst.msk [vmem:[#allocation2 + $0x50] sm:$0xff] %vm706_vm0, %v991_v23  ;;  %v12137_v26 = vadd.f32 %v9650_v25, %v8780_v18  ;;  %v807_v27 = vpop.f32.mrb[3].mxu1  ;;  %v10421_v25 = vpack.c.bf16 %v1774_v62, %v1773_v61 }
 0x21e   : > { %1036 = vst.msk [vmem:[#allocation2 + $0x38] sm:$0xff] %vm706_vm0, %v990_v24  ;;  %v12140_v28 = vadd.f32 %v8780_v18, %v807_v27  ;;  %v1100_v24 = vrot.slane %v11999_v52, 7 }
 0x21f   : > { %15513 = vst [vmem:[#allocation33_spill] sm:$0xff] %v12137_v26  ;;  %v993_v29 = vmax.f32 %v12137_v26, 0.0 }
 0x220   : > { %15514 = vst [vmem:[#allocation34_spill] sm:$0xff] %v12140_v28  ;;  %v992_v30 = vmax.f32 %v12140_v28, 0.0  ;;  %v9653_v31 = vpop.f32.mrb[4].mxu1  ;;  %v12658_v28 = vld [vmem:[#allocation2 + $0x100] sm:$0x3] }
 0x221   : > { %1039 = vst.msk [vmem:[#allocation2 + $0x80] sm:$0xff] %vm706_vm0, %v993_v29  ;;  %v12145_v32 = vadd.f32 %v9653_v31, %v8780_v18  ;;  %v817_v34 = vpop.f32.mrb[5].mxu1 }
 0x222   : > { %1038 = vst.msk [vmem:[#allocation2 + $0x68] sm:$0xff] %vm706_vm0, %v992_v30  ;;  %v12148_v37 = vadd.f32 %v8780_v18, %v817_v34  ;;  %v1103_v30 = vrot.slane %v11995_v50, 7 }
 0x223   : > { %15515 = vst [vmem:[#allocation35_spill] sm:$0xff] %v12145_v32  ;;  %v995_v38 = vmax.f32 %v12145_v32, 0.0  ;;  %3875 = vst.msk [vmem:[#allocation2 + $0x100] sm:$0x3] %vm1000_vm1, %v15398_v33 }
 0x224   : > { %15516 = vst [vmem:[#allocation36_spill] sm:$0xff] %v12148_v37  ;;  %v994_v39 = vmax.f32 %v12148_v37, 0.0  ;;  %v9656_v40 = vpop.f32.mrb[6].mxu1  ;;  %v12152_v41 = vld [vmem:[#allocation2 + $0x50] sm:$0xff] }
 0x225   : > { %1041 = vst.msk [vmem:[#allocation2 + $0xb0] sm:$0xff] %vm706_vm0, %v995_v38  ;;  %v12158_v54 = vadd.f32 %v9656_v40, %v8780_v18  ;;  %v827_v55 = vpop.f32.mrb[7].mxu1  ;;  %v12160_v57 = vld [vmem:[#allocation2 + $0x38] sm:$0xff]  ;;  %2286 = vst.msk [vmem:[#allocation2 + $0x50] sm:$0xff] %vm706_vm0, %v15398_v33  ;;  %v1098_v59 = vrot.slane %v12152_v41, 7 }
 0x226   : > { %1040 = vst.msk [vmem:[#allocation2 + $0x98] sm:$0xff] %vm706_vm0, %v994_v39  ;;  %v12167_v48 = vadd.f32 %v8780_v18, %v827_v55  ;;  %9678 = vmatmul.mubr.msk.f32.vlgmr.msra.gmra.mrb[16].mxu1 %vm706_vm0, %v12160_v57  ;;  %2283 = vst.msk [vmem:[#allocation2 + $0x38] sm:$0xff] %vm706_vm0, %v15398_v33  ;;  %v1095_v19 = vrot.slane %v12160_v57, 7  ;;  %v1897_v39 = vld [vmem:[#allocation11 + $0x68] sm:$0xff]  ;;  %v1374_v62 = vrot.slane %v12160_v57, 1 }
 0x227   : > { %15517 = vst [vmem:[#allocation37_spill] sm:$0xff] %v12158_v54  ;;  %v997_v21 = vmax.f32 %v12158_v54, 0.0  ;;  %9680 = vmatprep.mubr.msk.f32.mxu1 %vm706_vm0, %v12152_v41  ;;  %10408 = vmatpush3.bf16.msra.mxu1 %v12015_v60  ;;  %v12191_v60 = vsel %vm1090_vm2, %v1097_v58, %v1098_v59  ;;  %v1106_v58 = vrot.slane %v12023_v0, 7  ;;  %v1371_v0 = vrot.slane %v11969_v44, 1 }
 0x228   : > { %15518 = vst [vmem:[#allocation38_spill] sm:$0xff] %v12167_v48  ;;  %v996_v46 = vmax.f32 %v12167_v48, 0.0  ;;  %v1096_v18 = vsel %vm1090_vm2, %v1094_v42, %v1095_v19  ;;  %v12180_v23 = vld [vmem:[#allocation2 + $0x80] sm:$0xff]  ;;  %10410 = vmatprep.subr.bf16.mxu1 %v12155_v43  ;;  %v12184_v27 = vpop.f32.mrb[8].mxu1  ;;  %v1112_v19 = vrot.slane %v12039_v4, 7 }
 0x229   : > { %1043 = vst.msk [vmem:[#allocation2 + $0xe0] sm:$0xff] %vm706_vm0, %v997_v21  ;;  %9725 = vmatprep.mubr.msk.f32.mxu0 %vm706_vm0, %v1096_v18  ;;  %v12188_v29 = vld [vmem:[#allocation2 + $0x68] sm:$0xff]  ;;  %2292 = vst.msk [vmem:[#allocation2 + $0x80] sm:$0xff] %vm706_vm0, %v15398_v33  ;;  %v1104_v52 = vrot.slane %v12180_v23, 7  ;;  %v12197_v31 = vpop.f32.mrb[9].mxu1  ;;  %v1378_v21 = vrot.slane %v11975_v47, 1 }
 0x22a   : > { %1042 = vst.msk [vmem:[#allocation2 + $0xc8] sm:$0xff] %vm706_vm0, %v996_v46  ;;  %9681 = vmatmul.mubr.msk.f32.gmra.mrb[18].mxu1 %vm706_vm0, %v12188_v29  ;;  %2289 = vst.msk [vmem:[#allocation2 + $0x68] sm:$0xff] %vm706_vm0, %v15398_v33  ;;  %9726 = vmatmul.mubr.msk.f32.vlgmr.msra.gmra.mrb[0].mxu0 %vm706_vm0, %v12191_v60  ;;  %v1101_v34 = vrot.slane %v12188_v29, 7  ;;  %v1372_v46 = vrot.slane %v12055_v8, 1  ;;  %v1380_v4 = vrot.slane %v12188_v29, 1  ;;  %v1384_v8 = vrot.slane %v11997_v51, 1 }
 0x22b   : > { %10420 = vmatpush3.bf16.msra.mxu0 %v12011_v56  ;;  %9683 = vmatprep.mubr.msk.f32.mxu1 %vm706_vm0, %v12180_v23  ;;  %v12220_v38 = vsel %vm1090_vm2, %v1103_v30, %v1104_v52  ;;  %v1896_v56 = vld [vmem:[#allocation11 + $0x60] sm:$0xff] }
 0x22c   : > { %v12211_v50 = vsel %vm1090_vm2, %v1100_v24, %v1101_v34  ;;  %v12213_v35 = vld [vmem:[#allocation2 + $0xb0] sm:$0xff]  ;;  %10422 = vmatprep.subr.bf16.mxu0 %v10421_v25  ;;  %v10425_v42 = vpack.c.bf16 %v1897_v39, %v1896_v56  ;;  %v2015_v24 = vld [vmem:[#allocation11 + $0x78] sm:$0xff]  ;;  %v1373_v56 = vsel %vm1370_vm3, %v1371_v0, %v1372_v46  ;;  %v1383_v39 = vrot.slane %v12180_v23, 1  ;;  %v2393_v46 = vld [vmem:[#allocation12 + $0x10] sm:$0xff] }
 0x22d   : > { %9728 = vmatprep.mubr.msk.f32.mxu0 %vm706_vm0, %v12211_v50  ;;  %v12217_v36 = vld [vmem:[#allocation2 + $0x98] sm:$0xff]  ;;  %2298 = vst.msk [vmem:[#allocation2 + $0xb0] sm:$0xff] %vm706_vm0, %v15398_v33  ;;  %v1110_v61 = vrot.slane %v12213_v35, 7  ;;  %v1770_v0 = vrot.slane %v12043_v6, 1  ;;  %v12670_v11 = vld [vmem:[#allocation2 + $0x100] sm:$0x3] }
 0x22e   : > { %9684 = vmatmul.mubr.msk.f32.gmra.mrb[20].mxu1 %vm706_vm0, %v12217_v36  ;;  %2295 = vst.msk [vmem:[#allocation2 + $0x98] sm:$0xff] %vm706_vm0, %v15398_v33  ;;  %9729 = vmatmul.mubr.msk.f32.gmra.mrb[2].mxu0 %vm706_vm0, %v12220_v38  ;;  %v1107_v59 = vrot.slane %v12217_v36, 7  ;;  %v1386_v51 = vrot.slane %v12217_v36, 1  ;;  %15547 = vst [vmem:[#allocation67_spill] sm:$0xff] %v12670_v11 }
 0x22f   : > { %9741 = vmatprep.mubr.msk.f32.mxu0 %vm706_vm0, %v12160_v57  ;;  %9686 = vmatprep.mubr.msk.f32.mxu1 %vm706_vm0, %v12213_v35  ;;  %4221 = vst.msk [vmem:[#allocation2 + $0x100] sm:$0x3] %vm1000_vm1, %v15398_v33 }
 0x230   : > { %v12234_v40 = vld [vmem:[#allocation2 + $0xe0] sm:$0xff] }
 0x231   : > { %v12236_v55 = vld [vmem:[#allocation2 + $0xc8] sm:$0xff]  ;;  %2304 = vst.msk [vmem:[#allocation2 + $0xe0] sm:$0xff] %vm706_vm0, %v15398_v33 }
 0x232   : > { %9687 = vmatmul.mubr.msk.f32.gmra.mrb[22].mxu1 %vm706_vm0, %v12236_v55  ;;  %2301 = vst.msk [vmem:[#allocation2 + $0xc8] sm:$0xff] %vm706_vm0, %v15398_v33  ;;  %9742 = vmatmul.mubr.msk.f32.vlgmr.msra.gmra.mrb[0].mxu0 %vm706_vm0, %v12152_v41  ;;  %v1113_v57 = vrot.slane %v12236_v55, 7 }
 0x233   : > { %10424 = vmatpush3.bf16.msra.mxu0 %v10421_v25  ;;  %9744 = vmatprep.mubr.msk.f32.mxu0 %vm706_vm0, %v12188_v29  ;;  %v1381_v25 = vrot.slane %v12003_v53, 1 }
 0x234   : > { %9693 = vmatprep.mubr.msk.f32.mxu1 %vm706_vm0, %v12021_v63  ;;  %10426 = vmatprep.subr.bf16.mxu0 %v10425_v42  ;;  %v1109_v63 = vrot.slane %v12025_v1, 7  ;;  %v12277_v1 = vsel %vm1090_vm2, %v1106_v58, %v1107_v59  ;;  %v1114_v52 = vsel %vm1090_vm2, %v1112_v19, %v1113_v57  ;;  %v1387_v58 = vrot.slane %v12027_v2, 1 }
 0x235   : > { %v12303_v53 = vsel %vm1370_vm3, %v1380_v4, %v1381_v25  ;;  %v1385_v59 = vsel %vm1370_vm3, %v1383_v39, %v1384_v8  ;;  %v1392_v2 = vrot.slane %v12236_v55, 1  ;;  %v1529_v57 = vrot.slane %v12051_v7, 7  ;;  %v12416_v4 = vld [vmem:[#allocation2 + $0x58] sm:$0x3]  ;;  %v12418_v25 = vld [vmem:[#allocation2 + $0x30] sm:$0xff] }
 0x236   : > { %9694 = vmatmul.mubr.msk.f32.vlgmr.msra.gmra.mrb[16].mxu1 %vm706_vm0, %v1096_v18  ;;  %9745 = vmatmul.mubr.msk.f32.gmra.mrb[2].mxu0 %vm706_vm0, %v12180_v23  ;;  %v2014_v18 = vld [vmem:[#allocation11 + $0x70] sm:$0xff]  ;;  %v1111_v44 = vsel %vm1090_vm2, %v1109_v63, %v1110_v61  ;;  %v1389_v63 = vrot.slane %v12213_v35, 1  ;;  %v1390_v61 = vrot.slane %v12035_v3, 1  ;;  %v1769_v3 = vrot.slane %v12234_v40, 1  ;;  %v12422_v8 = vld [vmem:[#allocation2 + $0x40] sm:$0x3] }
 0x237   : > { %9696 = vmatprep.mubr.msk.f32.mxu1 %vm706_vm0, %v12191_v60  ;;  %9747 = vmatprep.mubr.msk.f32.mxu0 %vm706_vm0, %v12217_v36  ;;  %v10429_v30 = vpack.c.bf16 %v2015_v24, %v2014_v18  ;;  %v2394_v18 = vld [vmem:[#allocation12 + $0x18] sm:$0xff]  ;;  %3561 = vst.msk [vmem:[#allocation2 + $0x58] sm:$0x3] %vm1000_vm1, %v15361_v10  ;;  %3558 = vst.msk [vmem:[#allocation2 + $0x40] sm:$0x3] %vm1000_vm1, %v15361_v10 }
 0x238   : > { %10412 = vmatpush3.bf16.msra.mxu1 %v12155_v43  ;;  %v1375_v43 = vrot.slane %v11985_v49, 1  ;;  %v1377_v49 = vrot.slane %v12152_v41, 1  ;;  %v1771_v19 = vsel %vm1370_vm3, %v1769_v3, %v1770_v0  ;;  %v10437_v24 = vpack.c.bf16 %v2394_v18, %v2393_v46  ;;  %3556 = vst.msk [vmem:[#allocation2 + $0x30] sm:$0xff] %vm706_vm0, %v15361_v10  ;;  %v12442_v39 = vld [vmem:[#allocation2 + $0x70] sm:$0x3] }
 0x239   : > { %10581 = vmatprep.subr.bf16.mxu1 %v11971_v45  ;;  %3564 = vst.msk [vmem:[#allocation2 + $0x70] sm:$0x3] %vm1000_vm1, %v15361_v10 }
 0x23a   : > { %9697 = vmatmul.mubr.msk.f32.gmra.mrb[18].mxu1 %vm706_vm0, %v12211_v50  ;;  %9748 = vmatmul.mubr.msk.f32.gmra.mrb[4].mxu0 %vm706_vm0, %v12213_v35  ;;  %v1376_v47 = vsel %vm1370_vm3, %v1374_v62, %v1375_v43  ;;  %v12295_v34 = vsel %vm1370_vm3, %v1377_v49, %v1378_v21  ;;  %v1388_v62 = vsel %vm1370_vm3, %v1386_v51, %v1387_v58  ;;  %v2137_v21 = vld [vmem:[#allocation11 + $0x88] sm:$0xff]  ;;  %v1530_v49 = vrot.slane %v12234_v40, 7 }
 0x23b   : > { %9699 = vmatprep.mubr.msk.f32.mxu1 %vm706_vm0, %v12220_v38  ;;  %9750 = vmatprep.mubr.msk.f32.mxu0 %vm706_vm0, %v12236_v55  ;;  %v1391_v43 = vsel %vm1370_vm3, %v1389_v63, %v1390_v61  ;;  %v12456_v63 = vld [vmem:[#allocation2 + $0xa8] sm:$0xff] }
 0x23c   : > { %3571 = vst.msk [vmem:[#allocation2 + $0xa8] sm:$0xff] %vm706_vm0, %v15361_v10 }
 0x23e   : > { %9700 = vmatmul.mubr.msk.f32.gmra.mrb[20].mxu1 %vm706_vm0, %v12277_v1  ;;  %9751 = vmatmul.mubr.msk.f32.gmra.mrb[6].mxu0 %vm706_vm0, %v12234_v40  ;;  %v12474_v3 = vld [vmem:[#allocation2 + $0x40] sm:$0x3] }
 0x23f   : > { %9702 = vmatprep.mubr.msk.f32.mxu1 %vm706_vm0, %v1111_v44  ;;  %9757 = vmatprep.mubr.msk.f32.mxu0 %vm706_vm0, %v1376_v47  ;;  %3851 = vst.msk [vmem:[#allocation2 + $0x40] sm:$0x3] %vm1000_vm1, %v15398_v33 }
 0x242   : > { %9703 = vmatmul.mubr.msk.f32.gmra.mrb[22].mxu1 %vm706_vm0, %v1114_v52  ;;  %9758 = vmatmul.mubr.msk.f32.vlgmr.msra.gmra.mrb[0].mxu0 %vm706_vm0, %v12295_v34 }
 0x243   : > { %10428 = vmatpush3.bf16.msra.mxu0 %v10425_v42  ;;  %9760 = vmatprep.mubr.msk.f32.mxu0 %vm706_vm0, %v12303_v53  ;;  %v1393_v42 = vrot.slane %v12041_v5, 1  ;;  %v12590_v14 = vld [vmem:[#allocation2 + $0xa8] sm:$0xff] }
 0x244   : > { %9709 = vmatprep.mubr.msk.f32.mxu1 %vm706_vm0, %v1373_v56  ;;  %10430 = vmatprep.subr.bf16.mxu0 %v10429_v30  ;;  %15530 = vst [vmem:[#allocation50_spill] sm:$0xff] %v12590_v14  ;;  %3864 = vst.msk [vmem:[#allocation2 + $0xa8] sm:$0xff] %vm706_vm0, %v15398_v33 }
 0x245   : > { %v1394_v5 = vsel %vm1370_vm3, %v1392_v2, %v1393_v42  ;;  %v12466_v2 = vld [vmem:[#allocation2 + $0x58] sm:$0x3] }
 0x246   : > { %9710 = vmatmul.mubr.msk.f32.vlgmr.msra.gmra.mrb[16].mxu1 %vm706_vm0, %v1376_v47  ;;  %9761 = vmatmul.mubr.msk.f32.gmra.mrb[2].mxu0 %vm706_vm0, %v1385_v59  ;;  %v12414_v47 = vld [vmem:[#allocation2 + $0x48] sm:$0xff]  ;;  %v12468_v42 = vld [vmem:[#allocation2 + $0xb8] sm:$0x3]  ;;  %3854 = vst.msk [vmem:[#allocation2 + $0x58] sm:$0x3] %vm1000_vm1, %v15398_v33 }
 0x247   : > { %9712 = vmatprep.mubr.msk.f32.mxu1 %vm706_vm0, %v12295_v34  ;;  %9763 = vmatprep.mubr.msk.f32.mxu0 %vm706_vm0, %v1388_v62  ;;  %3559 = vst.msk [vmem:[#allocation2 + $0x48] sm:$0xff] %vm706_vm0, %v15361_v10 }
 0x248   : > { %10582 = vmatpush3.bf16.msra.mxu1 %v11971_v45  ;;  %v2136_v45 = vld [vmem:[#allocation11 + $0x80] sm:$0xff]  ;;  %3573 = vst.msk [vmem:[#allocation2 + $0xb8] sm:$0x3] %vm1000_vm1, %v15361_v10 }
 0x249   : > { %v10433_v6 = vpack.c.bf16 %v2137_v21, %v2136_v45  ;;  %10438 = vmatprep.subr.bf16.mxu1 %v10437_v24 }
 0x24a   : > { %9713 = vmatmul.mubr.msk.f32.gmra.mrb[18].mxu1 %vm706_vm0, %v12303_v53  ;;  %9764 = vmatmul.mubr.msk.f32.gmra.mrb[4].mxu0 %vm706_vm0, %v1391_v43 }
 0x24b   : > { %9715 = vmatprep.mubr.msk.f32.mxu1 %vm706_vm0, %v1385_v59  ;;  %9766 = vmatprep.mubr.msk.f32.mxu0 %vm706_vm0, %v1394_v5 }
 0x24e   : > { %9716 = vmatmul.mubr.msk.f32.gmra.mrb[20].mxu1 %vm706_vm0, %v1388_v62  ;;  %9767 = vmatmul.mubr.msk.f32.gmra.mrb[6].mxu0 %vm706_vm0, %v1771_v19  ;;  %v12484_v45 = vld [vmem:[#allocation2 + $0x48] sm:$0xff] }
 0x24f   : > { %9718 = vmatprep.mubr.msk.f32.mxu1 %vm706_vm0, %v1391_v43  ;;  %9773 = vmatprep.mubr.msk.f32.mxu0 %vm706_vm0, %v12191_v60  ;;  %v1892_v60 = vrot.slane %v12103_v12, 7  ;;  %v12373_v12 = vpop.f32.mrb[10].mxu1  ;;  %15519 = vst [vmem:[#allocation39_spill] sm:$0xff] %v12484_v45  ;;  %3852 = vst.msk [vmem:[#allocation2 + $0x48] sm:$0xff] %vm706_vm0, %v15398_v33  ;;  %v12586_v15 = vld [vmem:[#allocation2 + $0xb8] sm:$0x3] }
 0x250   : > { %15529 = vst [vmem:[#allocation49_spill] sm:$0xff] %v12586_v15  ;;  %3866 = vst.msk [vmem:[#allocation2 + $0xb8] sm:$0x3] %vm1000_vm1, %v15398_v33 }
 0x252   : > { %9719 = vmatmul.mubr.msk.f32.gmra.mrb[22].mxu1 %vm706_vm0, %v1394_v5  ;;  %9774 = vmatmul.mubr.msk.f32.vlgmr.msra.gmra.mrb[0].mxu0 %vm706_vm0, %v12211_v50  ;;  %v1893_v50 = vrot.slane %v12105_v13, 7 }
 0x253   : > { %10432 = vmatpush3.bf16.msra.mxu0 %v10429_v30  ;;  %9731 = vmatprep.mubr.msk.f32.mxu1 %vm706_vm0, %v12277_v1 }
 0x254   : > { %9776 = vmatprep.mubr.msk.f32.mxu0 %vm706_vm0, %v12220_v38  ;;  %10434 = vmatprep.subr.bf16.mxu0 %v10433_v6  ;;  %v1531_v38 = vsel %vm1090_vm2, %v1529_v57, %v1530_v49  ;;  %v1894_v7 = vsel %vm1090_vm2, %v1892_v60, %v1893_v50  ;;  %v12497_v49 = vld [vmem:[#allocation2 + $0xc0] sm:$0xff] }
 0x255   : > { %15520 = vst [vmem:[#allocation40_spill] sm:$0xff] %v12497_v49  ;;  %3574 = vst.msk [vmem:[#allocation2 + $0xc0] sm:$0xff] %vm706_vm0, %v15361_v10 }
 0x256   : > { %9732 = vmatmul.mubr.msk.f32.vlgmr.msra.gmra.mrb[20].mxu1 %vm706_vm0, %v1111_v44  ;;  %9777 = vmatmul.mubr.msk.f32.gmra.mrb[2].mxu0 %vm706_vm0, %v12277_v1 }
 0x257   : > { %9734 = vmatprep.mubr.msk.f32.mxu1 %vm706_vm0, %v1114_v52  ;;  %9779 = vmatprep.mubr.msk.f32.mxu0 %vm706_vm0, %v1111_v44  ;;  %v12400_v44 = vld [vmem:[#allocation2 + $0x20] sm:$0xff] }
 0x258   : > { %3554 = vst.msk [vmem:[#allocation2 + $0x20] sm:$0xff] %vm706_vm0, %v15361_v10  ;;  %10440 = vmatpush3.bf16.msra.mxu1 %v10437_v24  ;;  %v2367_v57 = vrot.slane %v12400_v44, 7 }
 0x25a   : > { %9735 = vmatmul.mubr.msk.f32.gmra.mrb[22].mxu1 %vm706_vm0, %v1531_v38  ;;  %9780 = vmatmul.mubr.msk.f32.gmra.mrb[4].mxu0 %vm706_vm0, %v1114_v52  ;;  %v12432_v52 = vld [vmem:[#allocation2 + $0x78] sm:$0xff] }
 0x25b   : > { %9782 = vmatprep.mubr.msk.f32.mxu0 %vm706_vm0, %v1531_v38  ;;  %9821 = vmatprep.mubr.msk.f32.mxu1 %vm706_vm0, %v12400_v44  ;;  %3565 = vst.msk [vmem:[#allocation2 + $0x78] sm:$0xff] %vm706_vm0, %v15361_v10 }
 0x25e   : > { %9783 = vmatmul.mubr.msk.f32.gmra.mrb[6].mxu0 %vm706_vm0, %v1894_v7 }
 0x25f   : > { %9789 = vmatprep.mubr.msk.f32.mxu0 %vm706_vm0, %v12152_v41  ;;  %v12377_v41 = vpop.f32.mrb[11].mxu1  ;;  %v12430_v30 = vld [vmem:[#allocation2 + $0x20] sm:$0xff] }
 0x260   : > { %3847 = vst.msk [vmem:[#allocation2 + $0x20] sm:$0xff] %vm706_vm0, %v15398_v33  ;;  %v15359_v51 = vrot.slane %v12430_v30, 1  ;;  %v15358_v58 = vrot.slane %v12430_v30, 2 }
 0x262   : > { %9790 = vmatmul.mubr.msk.f32.vlgmr.msra.gmra.mrb[0].mxu0 %vm706_vm0, %v12188_v29 }
 0x263   : > { %10436 = vmatpush3.bf16.msra.mxu0 %v10433_v6  ;;  %9792 = vmatprep.mubr.msk.f32.mxu0 %vm706_vm0, %v12180_v23  ;;  %v12381_v23 = vpop.f32.mrb[12].mxu1  ;;  %v12494_v6 = vld [vmem:[#allocation2 + $0xa0] sm:$0x3] }
 0x264   : > { %v12385_v29 = vpop.f32.mrb[13].mxu1  ;;  %3570 = vst.msk [vmem:[#allocation2 + $0xa0] sm:$0x3] %vm1000_vm1, %v15361_v10 }
 0x266   : > { %9793 = vmatmul.mubr.msk.f32.gmra.mrb[2].mxu0 %vm706_vm0, %v12217_v36 }
 0x267   : > { %9795 = vmatprep.mubr.msk.f32.mxu0 %vm706_vm0, %v12213_v35  ;;  %v12388_v35 = vpop.f32.mrb[14].mxu1  ;;  %v12499_v60 = vld [vmem:[#allocation2 + $0x20] sm:$0xff] }
 0x268   : > { %v12391_v36 = vpop.f32.mrb[15].mxu1  ;;  %4193 = vst.msk [vmem:[#allocation2 + $0x20] sm:$0xff] %vm706_vm0, %v15398_v33 }
 0x26a   : > { %9796 = vmatmul.mubr.msk.f32.gmra.mrb[4].mxu0 %vm706_vm0, %v12236_v55  ;;  %v2133_v55 = vrot.slane %v12119_v16, 1  ;;  %v12408_v16 = vld [vmem:[#allocation2 + $0x18] sm:$0xff] }
 0x26b   : > { %9798 = vmatprep.mubr.msk.f32.mxu0 %vm706_vm0, %v12234_v40  ;;  %v2132_v40 = vrot.slane %v12105_v13, 1  ;;  %3553 = vst.msk [vmem:[#allocation2 + $0x18] sm:$0xff] %vm706_vm0, %v15361_v10  ;;  %v2366_v50 = vrot.slane %v12408_v16, 7  ;;  %v12528_v16 = vld [vmem:[#allocation2 + $0x70] sm:$0x3] }
 0x26c   : > { %3857 = vst.msk [vmem:[#allocation2 + $0x70] sm:$0x3] %vm1000_vm1, %v15398_v33 }
 0x26d   : > { %v2134_v1 = vsel %vm1370_vm3, %v2132_v40, %v2133_v55  ;;  %v15357_v55 = vrot.slane %v12499_v60, 1  ;;  %v12518_v46 = vsel %vm1090_vm2, %v2366_v50, %v2367_v57  ;;  %v12550_v50 = vld [vmem:[#allocation2 + $0x48] sm:$0xff] }
 0x26e   : > { %9799 = vmatmul.mubr.msk.f32.gmra.mrb[6].mxu0 %vm706_vm0, %v12105_v13  ;;  %v12406_v13 = vld [vmem:[#allocation2 + $0x28] sm:$0x3]  ;;  %15522 = vst [vmem:[#allocation42_spill] sm:$0xff] %v12518_v46  ;;  %15524 = vst [vmem:[#allocation44_spill] sm:$0xff] %v12550_v50 }
 0x26f   : > { %9805 = vmatprep.mubr.msk.f32.mxu0 %vm706_vm0, %v12295_v34  ;;  %3555 = vst.msk [vmem:[#allocation2 + $0x28] sm:$0x3] %vm1000_vm1, %v15361_v10  ;;  %v12436_v34 = vld [vmem:[#allocation2 + $0x60] sm:$0xff]  ;;  %v12614_v50 = vld [vmem:[#allocation2 + $0xa8] sm:$0xff] }
 0x270   : > { %3562 = vst.msk [vmem:[#allocation2 + $0x60] sm:$0xff] %vm706_vm0, %v15361_v10  ;;  %4198 = vst.msk [vmem:[#allocation2 + $0x48] sm:$0xff] %vm706_vm0, %v15398_v33 }
 0x271   : > { %15536 = vst [vmem:[#allocation56_spill] sm:$0xff] %v12614_v50  ;;  %4210 = vst.msk [vmem:[#allocation2 + $0xa8] sm:$0xff] %vm706_vm0, %v15398_v33  ;;  %v12634_v50 = vld [vmem:[#allocation2 + $0xd8] sm:$0xff] }
 0x272   : > { %9806 = vmatmul.mubr.msk.f32.vlgmr.msra.gmra.mrb[0].mxu0 %vm706_vm0, %v12303_v53  ;;  %v3594_v53 = vld [vmem:[#allocation2 + $0x18] sm:$0xff]  ;;  %15540 = vst [vmem:[#allocation60_spill] sm:$0xff] %v12634_v50  ;;  %3870 = vst.msk [vmem:[#allocation2 + $0xd8] sm:$0xff] %vm706_vm0, %v15398_v33  ;;  %v12654_v50 = vld [vmem:[#allocation2 + $0xf0] sm:$0xff] }
 0x273   : > { %9808 = vmatprep.mubr.msk.f32.mxu0 %vm706_vm0, %v1385_v59  ;;  %3846 = vst.msk [vmem:[#allocation2 + $0x18] sm:$0xff] %vm706_vm0, %v15398_v33  ;;  %v12454_v59 = vld [vmem:[#allocation2 + $0x88] sm:$0x3]  ;;  %v3648_v61 = vmax.f32 %v3594_v53, %v15359_v51  ;;  %v12532_v53 = vld [vmem:[#allocation2 + $0x58] sm:$0x3]  ;;  %15543 = vst [vmem:[#allocation63_spill] sm:$0xff] %v12654_v50  ;;  %v4135_v50 = vlaneseq }
 0x274   : > { %3567 = vst.msk [vmem:[#allocation2 + $0x88] sm:$0x3] %vm1000_vm1, %v15361_v10  ;;  %4200 = vst.msk [vmem:[#allocation2 + $0x58] sm:$0x3] %vm1000_vm1, %v15398_v33  ;;  %v12578_v51 = vld [vmem:[#allocation2 + $0xa0] sm:$0x3] }
 0x275   : > { %v12478_v0 = vmax.f32 %v3648_v61, %v15358_v58  ;;  %v12534_v61 = vld [vmem:[#allocation2 + $0x78] sm:$0xff]  ;;  %v12574_v58 = vld [vmem:[#allocation2 + $0xd0] sm:$0x3]  ;;  %15527 = vst [vmem:[#allocation47_spill] sm:$0xff] %v12578_v51  ;;  %3863 = vst.msk [vmem:[#allocation2 + $0xa0] sm:$0x3] %vm1000_vm1, %v15398_v33 }
 0x276   : > { %9809 = vmatmul.mubr.msk.f32.gmra.mrb[2].mxu0 %vm706_vm0, %v1388_v62  ;;  %v12440_v56 = vld [vmem:[#allocation2 + $0x28] sm:$0x3]  ;;  %v12462_v62 = vld [vmem:[#allocation2 + $0x90] sm:$0xff]  ;;  %15523 = vst [vmem:[#allocation43_spill] sm:$0xff] %v12534_v61  ;;  %3858 = vst.msk [vmem:[#allocation2 + $0x78] sm:$0xff] %vm706_vm0, %v15398_v33  ;;  %v4136_v26 = vshrl.u32 %v4135_v50, 7 }
 0x277   : > { %9811 = vmatprep.mubr.msk.f32.mxu0 %vm706_vm0, %v1391_v43  ;;  %3848 = vst.msk [vmem:[#allocation2 + $0x28] sm:$0x3] %vm1000_vm1, %v15398_v33  ;;  %v12472_v43 = vld [vmem:[#allocation2 + $0x30] sm:$0xff]  ;;  %v12511_v7 = vld [vmem:[#allocation2 + $0x60] sm:$0xff]  ;;  %3576 = vst.msk [vmem:[#allocation2 + $0xd0] sm:$0x3] %vm1000_vm1, %v15361_v10 }
 0x278   : > { %3568 = vst.msk [vmem:[#allocation2 + $0x90] sm:$0xff] %vm706_vm0, %v15361_v10  ;;  %3849 = vst.msk [vmem:[#allocation2 + $0x30] sm:$0xff] %vm706_vm0, %v15398_v33  ;;  %v12622_v61 = vld [vmem:[#allocation2 + $0xe8] sm:$0x3]  ;;  %vm4137_vm5 = vcmp.eq.s32.totalorder %v4136_v26, 0  ;;  %vm4138_vm6 = vcmp.eq.s32.totalorder %v4136_v26, 7 }
 0x279   : > { %15521 = vst [vmem:[#allocation41_spill] sm:$0xff] %v12511_v7  ;;  %3855 = vst.msk [vmem:[#allocation2 + $0x60] sm:$0xff] %vm706_vm0, %v15398_v33 }
 0x27a   : > { %9812 = vmatmul.mubr.msk.f32.gmra.mrb[4].mxu0 %vm706_vm0, %v1394_v5  ;;  %v2390_v5 = vld [vmem:[#allocation12] sm:$0xff]  ;;  %v3887_v40 = vld [vmem:[#allocation2 + $0x18] sm:$0xff]  ;;  %15537 = vst [vmem:[#allocation57_spill] sm:$0xff] %v12622_v61  ;;  %3872 = vst.msk [vmem:[#allocation2 + $0xe8] sm:$0x3] %vm1000_vm1, %v15398_v33 }
 0x27b   : > { %9814 = vmatprep.mubr.msk.f32.mxu0 %vm706_vm0, %v1771_v19  ;;  %v2391_v19 = vld [vmem:[#allocation12 + $0x8] sm:$0xff]  ;;  %4192 = vst.msk [vmem:[#allocation2 + $0x18] sm:$0xff] %vm706_vm0, %v15398_v33  ;;  %v12524_v18 = vld [vmem:[#allocation2 + $0x88] sm:$0x3]  ;;  %v3941_v24 = vadd.f32 %v15357_v55, %v3887_v40  ;;  %3873 = vst.msk [vmem:[#allocation2 + $0xf0] sm:$0xff] %vm706_vm0, %v15398_v33 }
 0x27c   : > { %v12490_v21 = vpack.c.bf16 %v2391_v19, %v2390_v5  ;;  %3860 = vst.msk [vmem:[#allocation2 + $0x88] sm:$0x3] %vm1000_vm1, %v15398_v33  ;;  %v12540_v19 = vld [vmem:[#allocation2 + $0x40] sm:$0x3]  ;;  %v12650_v61 = vld [vmem:[#allocation2 + $0xd8] sm:$0xff]  ;;  %vm4139_vm7 = vmor %vm4137_vm5, %vm4138_vm6 }
 0x27d   : > { %4197 = vst.msk [vmem:[#allocation2 + $0x40] sm:$0x3] %vm1000_vm1, %v15398_v33  ;;  %v12566_v55 = vld [vmem:[#allocation2 + $0x78] sm:$0xff]  ;;  %v12592_v9 = vld [vmem:[#allocation2 + $0xa0] sm:$0x3]  ;;  %15542 = vst [vmem:[#allocation62_spill] sm:$0xff] %v12650_v61 }
 0x27e   : > { %9815 = vmatmul.mubr.msk.f32.gmra.mrb[6].mxu0 %vm706_vm0, %v2134_v1  ;;  %10442 = vmatprep.subr.bf16.mxu1 %v12490_v21  ;;  %v12507_v38 = vld [vmem:[#allocation2 + $0x28] sm:$0x3]  ;;  %v15356_v1 = vrot.slane %v12499_v60, 2  ;;  %15526 = vst [vmem:[#allocation46_spill] sm:$0xff] %v12566_v55  ;;  %4204 = vst.msk [vmem:[#allocation2 + $0x78] sm:$0xff] %vm706_vm0, %v15398_v33  ;;  %v12604_v55 = vld [vmem:[#allocation2 + $0xc0] sm:$0xff] }
 0x27f   : > { %4194 = vst.msk [vmem:[#allocation2 + $0x28] sm:$0x3] %vm1000_vm1, %v15398_v33  ;;  %v12538_v5 = vld [vmem:[#allocation2 + $0x30] sm:$0xff]  ;;  %15531 = vst [vmem:[#allocation51_spill] sm:$0xff] %v12592_v9 }
 0x280   : > { %v12544_v57 = vadd.f32 %v15356_v1, %v3941_v24  ;;  %4195 = vst.msk [vmem:[#allocation2 + $0x30] sm:$0xff] %vm706_vm0, %v15398_v33  ;;  %v12560_v24 = vld [vmem:[#allocation2 + $0x70] sm:$0x3]  ;;  %v12564_v1 = vld [vmem:[#allocation2 + $0x60] sm:$0xff]  ;;  %15534 = vst [vmem:[#allocation54_spill] sm:$0xff] %v12604_v55 }
 0x281   : > { %15525 = vst [vmem:[#allocation45_spill] sm:$0xff] %v12564_v1  ;;  %4203 = vst.msk [vmem:[#allocation2 + $0x70] sm:$0x3] %vm1000_vm1, %v15398_v33  ;;  %v12580_v17 = vld [vmem:[#allocation2 + $0x90] sm:$0xff]  ;;  %v12610_v1 = vld [vmem:[#allocation2 + $0xb8] sm:$0x3] }
 0x282   : > { %4201 = vst.msk [vmem:[#allocation2 + $0x60] sm:$0xff] %vm706_vm0, %v15398_v33  ;;  %15528 = vst [vmem:[#allocation48_spill] sm:$0xff] %v12580_v17  ;;  %v12602_v17 = vld [vmem:[#allocation2 + $0xd0] sm:$0x3] }
 0x283   : > { %v12558_v40 = vld [vmem:[#allocation2 + $0x88] sm:$0x3]  ;;  %3861 = vst.msk [vmem:[#allocation2 + $0x90] sm:$0xff] %vm706_vm0, %v15398_v33  ;;  %15533 = vst [vmem:[#allocation53_spill] sm:$0xff] %v12602_v17  ;;  %v8789_v17 = vld [vmem:[%s15548_s0] ss:$0 sm:$0xff] }
 0x284   : > { %4206 = vst.msk [vmem:[#allocation2 + $0x88] sm:$0x3] %vm1000_vm1, %v15398_v33  ;;  %4209 = vst.msk [vmem:[#allocation2 + $0xa0] sm:$0x3] %vm1000_vm1, %v15398_v33  ;;  %v12688_v15 = vadd.f32 %v12373_v12, %v8789_v17  ;;  %v12691_v9 = vadd.f32 %v8789_v17, %v12377_v41  ;;  %v12694_v51 = vadd.f32 %v12381_v23, %v8789_v17  ;;  %v12708_v12 = vld [vmem:[%s15557_s13] ss:$0 sm:$0xff] }
 0x285   : > { %3869 = vst.msk [vmem:[#allocation2 + $0xd0] sm:$0x3] %vm1000_vm1, %v15398_v33  ;;  %15535 = vst [vmem:[#allocation55_spill] sm:$0xff] %v12610_v1  ;;  %v12685_v1 = vadd.f32 %v8789_v17, %v12197_v31  ;;  %v12700_v11 = vadd.f32 %v12388_v35, %v8789_v17  ;;  %v3674_v23 = vrot.slane %v12440_v56, 2  ;;  %v15558_v56 = vrot.slane %v12430_v30, 1  ;;  %s11395_s0 = smov 48  }
 0x286   : > { %3867 = vst.msk [vmem:[#allocation2 + $0xc0] sm:$0xff] %vm706_vm0, %v15398_v33  ;;  %4216 = vst.msk [vmem:[#allocation2 + $0xd8] sm:$0xff] %vm706_vm0, %v15398_v33 }
 0x287   : > { %4212 = vst.msk [vmem:[#allocation2 + $0xb8] sm:$0x3] %vm1000_vm1, %v15398_v33  ;;  %15550 = vst [vmem:[#allocation69_spill] sm:$0xff] %v12685_v1 }
 0x288   : > { %15551 = vst [vmem:[#allocation70_spill] sm:$0xff] %v12688_v15  ;;  %15552 = vst [vmem:[#allocation71_spill] sm:$0xff] %v12691_v9 }
 0x289   : > { %15553 = vst [vmem:[#allocation72_spill] sm:$0xff] %v12694_v51  ;;  %15555 = vst [vmem:[#allocation74_spill] sm:$0xff] %v12700_v11 }
 0x28a   : > { %v12596_v10 = vld [vmem:[#allocation2 + $0x90] sm:$0xff] }
 0x28b   : > { %15532 = vst [vmem:[#allocation52_spill] sm:$0xff] %v12596_v10  ;;  %4207 = vst.msk [vmem:[#allocation2 + $0x90] sm:$0xff] %vm706_vm0, %v15398_v33 }
 0x28c   : > { %v12626_v45 = vld [vmem:[#allocation2 + $0xd0] sm:$0x3] }
 0x28d   : > { %15538 = vst [vmem:[#allocation58_spill] sm:$0xff] %v12626_v45  ;;  %v12628_v46 = vld [vmem:[#allocation2 + $0xc0] sm:$0xff]  ;;  %4215 = vst.msk [vmem:[#allocation2 + $0xd0] sm:$0x3] %vm1000_vm1, %v15398_v33  ;;  %v12656_v45 = vld [vmem:[#allocation2 + $0xf8] sm:$0xff] }
 0x28e   : > { %15539 = vst [vmem:[#allocation59_spill] sm:$0xff] %v12628_v46  ;;  %4213 = vst.msk [vmem:[#allocation2 + $0xc0] sm:$0xff] %vm706_vm0, %v15398_v33  ;;  %v12646_v46 = vld [vmem:[#allocation2 + $0xe8] sm:$0x3] }
 0x28f   : > { %15541 = vst [vmem:[#allocation61_spill] sm:$0xff] %v12646_v46  ;;  %4218 = vst.msk [vmem:[#allocation2 + $0xe8] sm:$0x3] %vm1000_vm1, %v15398_v33  ;;  %v12666_v46 = vld [vmem:[#allocation2 + $0xf0] sm:$0xff] }
 0x290   : > { %15544 = vst [vmem:[#allocation64_spill] sm:$0xff] %v12656_v45  ;;  %3874 = vst.msk [vmem:[#allocation2 + $0xf8] sm:$0xff] %vm706_vm0, %v15398_v33 }
 0x291   : > { %15545 = vst [vmem:[#allocation65_spill] sm:$0xff] %v12666_v46  ;;  %4219 = vst.msk [vmem:[#allocation2 + $0xf0] sm:$0xff] %vm706_vm0, %v15398_v33  ;;  %v12682_v46 = vadd.f32 %v12184_v27, %v8789_v17  ;;  %v12703_v27 = vadd.f32 %v8789_v17, %v12391_v36 }
 0x293   : > { %15549 = vst [vmem:[#allocation68_spill] sm:$0xff] %v12682_v46  ;;  %15556 = vst [vmem:[#allocation75_spill] sm:$0xff] %v12703_v27 }
 0x297   : > { %v12668_v61 = vld [vmem:[#allocation2 + $0xf8] sm:$0xff] }
 0x298   : > { %15546 = vst [vmem:[#allocation66_spill] sm:$0xff] %v12668_v61  ;;  %4220 = vst.msk [vmem:[#allocation2 + $0xf8] sm:$0xff] %vm706_vm0, %v15398_v33  ;;  %v12697_v33 = vadd.f32 %v8789_v17, %v12385_v29 }
 0x29a   : > { %15554 = vst [vmem:[#allocation73_spill] sm:$0xff] %v12697_v33  ;;  %v2645_v33 = vrot.slane %v12400_v44, 1  ;;  %v2808_v44 = vld [vmem:[#allocation12 + $0x38] sm:$0xff] }
 0x319   : > { %v9711_v14 = vpop.f32.mrb[16].mxu1 }
 0x31a   : > { %v1480_v10 = vpop.f32.mrb[17].mxu1 }
 0x31d   : > { %v12618_v7 = vpop.f32.mrb[18].mxu1 }
 0x31e   : > { %v12620_v55 = vpop.f32.mrb[19].mxu1 }
 0x329   : > { %v12638_v48 = vpop.f32.mrb[20].mxu1 }
 0x32a   : > { %v12640_v54 = vpop.f32.mrb[21].mxu1 }
 0x32d   : > { %v12642_v37 = vpop.f32.mrb[22].mxu1 }
 0x32e   : > { %v12644_v32 = vpop.f32.mrb[23].mxu1 }
 0x345   : > { %v9807_v31 = vpop.f32.mrb[0].mxu0 }
 0x346   : > { %v10583_v50 = vadd.f32 %v9807_v31, %v9711_v14  ;;  %v2206_v51 = vpop.f32.mrb[1].mxu0  ;;  %v12721_v14 = vmax.f32 %v12430_v30, %v15558_v56 }
 0x347   : > { %v10584_v11 = vadd.f32 %v2206_v51, %v1480_v10  ;;  %v15559_v51 = vrot.slane %v12430_v30, 2  ;;  %v3966_v30 = vrot.slane %v12507_v38, 2  ;;  %v11392_v38 = vmov 0.33333334  }
 0x348   : > { %v2261_v36 = vadd.f32 %v10583_v50, %v12708_v12  ;;  %v2670_v50 = vld [vmem:[#allocation12 + $0x20] sm:$0xff] }
 0x349   : > { %v2260_v31 = vadd.f32 %v10584_v11, %v12708_v12  ;;  %v9810_v29 = vpop.f32.mrb[2].mxu0  ;;  %v12728_v17 = vsel %vm3672_vm4, %v15559_v51, %v3674_v23 }
 0x34a   : > { %v2269_v27 = vmax.f32 %v2261_v36, 0.0  ;;  %v10585_v41 = vadd.f32 %v9810_v29, %v12618_v7  ;;  %v2216_v35 = vpop.f32.mrb[3].mxu0  ;;  %v2671_v36 = vld [vmem:[#allocation12 + $0x28] sm:$0xff] }
 0x34b   : > { %v2268_v56 = vmax.f32 %v2260_v31, 0.0  ;;  %v10586_v11 = vadd.f32 %v2216_v35, %v12620_v55  ;;  %v4140_v31 = vsel %vm4139_vm7, 0.5, %v11392_v38  ;;  %v15561_v35 = vrot.slane %v12499_v60, 2 }
 0x34c   : > { %2313 = vst.msk [vmem:[#allocation2 + $0x50] sm:$0xff] %vm706_vm0, %v2269_v27  ;;  %v2263_v23 = vadd.f32 %v10585_v41, %v12708_v12  ;;  %v4141_v27 = vmul.f32 0.5, %v4140_v31 }
 0x34d   : > { %2312 = vst.msk [vmem:[#allocation2 + $0x38] sm:$0xff] %vm706_vm0, %v2268_v56  ;;  %v2262_v26 = vadd.f32 %v10586_v11, %v12708_v12  ;;  %v9813_v55 = vpop.f32.mrb[4].mxu0  ;;  %v15560_v56 = vrot.slane %v12499_v60, 1  ;;  %v3967_v38 = vsel %vm3672_vm4, %v15561_v35, %v3966_v30  ;;  %v15596_v30 = vld [vmem:[#allocation37_spill] sm:$0xff] }
 0x34e   : > { %v2271_v41 = vmax.f32 %v2263_v23, 0.0  ;;  %v10587_v51 = vadd.f32 %v9813_v55, %v12638_v48  ;;  %v2226_v10 = vpop.f32.mrb[5].mxu0  ;;  %v2646_v55 = vrot.slane %v12406_v13, 1  ;;  %v4142_v13 = vmul.f32 0.33333334, %v4140_v31 }
 0x34f   : > { %v3942_v11 = vadd.f32 %v15560_v56, %v12499_v60  ;;  %v2270_v7 = vmax.f32 %v2262_v26, 0.0  ;;  %v10588_v29 = vadd.f32 %v2226_v10, %v12640_v54  ;;  %v12764_v10 = vpack.c.bf16 %v2671_v36, %v2670_v50  ;;  %v2807_v56 = vld [vmem:[#allocation12 + $0x30] sm:$0xff] }
 0x350   : > { %2315 = vst.msk [vmem:[#allocation2 + $0x80] sm:$0xff] %vm706_vm0, %v2271_v41  ;;  %v2265_v48 = vadd.f32 %v10587_v51, %v12708_v12  ;;  %v12783_v31 = vsel %vm1370_vm3, %v2645_v33, %v2646_v55  ;;  %v12799_v33 = vpack.c.bf16 %v2808_v44, %v2807_v56  ;;  %v3823_v56 = vrot.slane %v12658_v28, 2  ;;  %v15571_v28 = vld [vmem:[#allocation33_spill] sm:$0xff]  ;;  %v3047_v60 = vld [vmem:[#allocation12 + $0x50] sm:$0xff] }
 0x351   : > { %2314 = vst.msk [vmem:[#allocation2 + $0x68] sm:$0xff] %vm706_vm0, %v2270_v7  ;;  %v2264_v26 = vadd.f32 %v10588_v29, %v12708_v12  ;;  %v9816_v54 = vpop.f32.mrb[6].mxu0  ;;  %v12769_v23 = vadd.f32 %v3967_v38, %v3942_v11  ;;  %v12789_v11 = vrot.slane %v4141_v27, 1  ;;  %v15585_v44 = vrot.slane %v12414_v47, 7 }
 0x352   : > { %v2273_v35 = vmax.f32 %v2265_v48, 0.0  ;;  %v10589_v41 = vadd.f32 %v9816_v54, %v12642_v37  ;;  %v2236_v51 = vpop.f32.mrb[7].mxu0  ;;  %v15564_v54 = vmov -3.4028235e+38  }
 0x353   : > { %v2272_v49 = vmax.f32 %v2264_v26, 0.0  ;;  %v10590_v7 = vadd.f32 %v2236_v51, %v12644_v32  ;;  %v12772_v29 = vld [vmem:[#allocation2 + $0x50] sm:$0xff]  ;;  %v12787_v32 = vadd.f32 %v12544_v57, %v12538_v5  ;;  %v2926_v51 = vld [vmem:[#allocation12 + $0x48] sm:$0xff] }
 0x354   : > { %15562 = vst [vmem:[#allocation76_spill] sm:$0xff] %v12772_v29  ;;  %2317 = vst.msk [vmem:[#allocation2 + $0xb0] sm:$0xff] %vm706_vm0, %v2273_v35  ;;  %v2267_v48 = vadd.f32 %v10589_v41, %v12708_v12  ;;  %v12778_v37 = vld [vmem:[#allocation2 + $0x38] sm:$0xff]  ;;  %v2925_v26 = vld [vmem:[#allocation12 + $0x40] sm:$0xff] }
 0x355   : > { %15563 = vst [vmem:[#allocation77_spill] sm:$0xff] %v12778_v37  ;;  %3560 = vst.msk [vmem:[#allocation2 + $0x50] sm:$0xff] %vm706_vm0, %v15564_v54  ;;  %v2266_v38 = vadd.f32 %v10590_v7, %v12708_v12  ;;  %9822 = vmatmul.mubr.msk.f32.vlgmr.msra.gmra.mrb[24].mxu1 %vm706_vm0, %v12778_v37  ;;  %v15566_v7 = vld [vmem:[#allocation67_spill] sm:$0xff]  ;;  %v2370_v50 = vrot.slane %v12778_v37, 7 }
 0x356   : > { %2316 = vst.msk [vmem:[#allocation2 + $0x98] sm:$0xff] %vm706_vm0, %v2272_v49  ;;  %3557 = vst.msk [vmem:[#allocation2 + $0x38] sm:$0xff] %vm706_vm0, %v15564_v54  ;;  %v2275_v55 = vmax.f32 %v2267_v48, 0.0  ;;  %10444 = vmatpush3.bf16.msra.mxu1 %v12490_v21  ;;  %9824 = vmatprep.mubr.msk.f32.mxu1 %vm706_vm0, %v12772_v29  ;;  %v12808_v49 = vrot.slane %v4142_v13, 1  ;;  %v4115_v48 = vrot.slane %v15566_v7, 2  ;;  %v15580_v21 = vrot.slane %v12656_v45, 2 }
 0x357   : > { %3587 = vst.msk [vmem:[#allocation2 + $0x50] sm:$0xff] %vm706_vm0, %v12130_v20  ;;  %3586 = vst.msk [vmem:[#allocation2 + $0x38] sm:$0xff] %vm706_vm0, %v12132_v22  ;;  %v2274_v35 = vmax.f32 %v2266_v38, 0.0  ;;  %v12812_v41 = vld [vmem:[#allocation2 + $0x80] sm:$0xff]  ;;  %10446 = vmatprep.subr.bf16.mxu1 %v12764_v10  ;;  %v2373_v38 = vrot.slane %v12772_v29, 7  ;;  %v3048_v22 = vld [vmem:[#allocation12 + $0x58] sm:$0xff]  ;;  %v12842_v20 = vpack.c.bf16 %v2926_v51, %v2925_v26 }
 0x358   : > { %15565 = vst [vmem:[#allocation78_spill] sm:$0xff] %v12812_v41  ;;  %2319 = vst.msk [vmem:[#allocation2 + $0xe0] sm:$0xff] %vm706_vm0, %v2275_v55  ;;  %v12819_v13 = vld [vmem:[#allocation2 + $0x68] sm:$0xff]  ;;  %v2651_v55 = vrot.slane %v12772_v29, 1  ;;  %v12853_v57 = vsel %vm3672_vm4, %v15580_v21, %v3823_v56  ;;  %v15582_v26 = vrot.slane %v12668_v61, 2  ;;  %v2648_v56 = vrot.slane %v12778_v37, 1 }
 0x359   : > { %15567 = vst [vmem:[#allocation67_spill] sm:$0xff] %v12819_v13  ;;  %3566 = vst.msk [vmem:[#allocation2 + $0x80] sm:$0xff] %vm706_vm0, %v15564_v54  ;;  %9825 = vmatmul.mubr.msk.f32.gmra.mrb[26].mxu1 %vm706_vm0, %v12819_v13  ;;  %v12869_v29 = vsel %vm1090_vm2, %v15585_v44, %v2373_v38  ;;  %v2379_v47 = vrot.slane %v12812_v41, 7  ;;  %v15589_v44 = vrot.slane %v12416_v4, 1  ;;  %v2376_v45 = vrot.slane %v12819_v13, 7 }
 0x35a   : > { %2318 = vst.msk [vmem:[#allocation2 + $0xc8] sm:$0xff] %vm706_vm0, %v2274_v35  ;;  %3563 = vst.msk [vmem:[#allocation2 + $0x68] sm:$0xff] %vm706_vm0, %v15564_v54  ;;  %v15575_v35 = vld [vmem:[#allocation34_spill] sm:$0xff]  ;;  %9827 = vmatprep.mubr.msk.f32.mxu1 %vm706_vm0, %v12812_v41  ;;  %v12859_v51 = vsel %vm3672_vm4, %v15582_v26, %v4115_v48  ;;  %v15588_v26 = vld [vmem:[#allocation35_spill] sm:$0xff]  ;;  %v2654_v12 = vrot.slane %v12819_v13, 1 }
 0x35b   : > { %3589 = vst.msk [vmem:[#allocation2 + $0x80] sm:$0xff] %vm706_vm0, %v15571_v28  ;;  %3588 = vst.msk [vmem:[#allocation2 + $0x68] sm:$0xff] %vm706_vm0, %v15575_v35  ;;  %v12847_v7 = vld [vmem:[#allocation2 + $0xb0] sm:$0xff]  ;;  %v12874_v35 = vpack.c.bf16 %v3048_v22, %v3047_v60  ;;  %v12888_v38 = vsel %vm1370_vm3, %v2651_v55, %v15589_v44  ;;  %v15592_v44 = vmax.f32 %v12721_v14, %v12728_v17 }
 0x35c   : > { %15579 = vst [vmem:[#allocation79_spill] sm:$0xff] %v12847_v7  ;;  %15581 = vst [vmem:[#allocation80_spill] sm:$0xff] %v12853_v57  ;;  %v15590_v57 = vmov 0.0   ;;  %v2385_v61 = vrot.slane %v12847_v7, 7 }
 0x35d   : > { %15583 = vst [vmem:[#allocation81_spill] sm:$0xff] %v12859_v51  ;;  %v12861_v28 = vld [vmem:[#allocation2 + $0x98] sm:$0xff]  ;;  %3572 = vst.msk [vmem:[#allocation2 + $0xb0] sm:$0xff] %vm706_vm0, %v15564_v54  ;;  %v2657_v51 = vrot.slane %v12812_v41, 1  ;;  %v15595_v41 = vmax.f32 %v12478_v0, %v12472_v43  ;;  %v15599_v0 = vrot.slane %v12422_v8, 1  ;;  %v15603_v8 = vrot.slane %v12432_v52, 7 }
 0x35e   : > { %15584 = vst [vmem:[#allocation82_spill] sm:$0xff] %v12861_v28  ;;  %15586 = vst [vmem:[#allocation83_spill] sm:$0xff] %v12869_v29  ;;  %v12872_v21 = vld [vmem:[#allocation2 + $0x50] sm:$0xff]  ;;  %v12876_v48 = vld [vmem:[#allocation2 + $0x38] sm:$0xff]  ;;  %9828 = vmatmul.mubr.msk.f32.gmra.mrb[28].mxu1 %vm706_vm0, %v12861_v28  ;;  %v15606_v52 = vrot.slane %v12436_v34, 7  ;;  %v15611_v34 = vrot.slane %v12462_v62, 7 }
 0x35f   : > { %15587 = vst [vmem:[#allocation84_spill] sm:$0xff] %v12874_v35  ;;  %3569 = vst.msk [vmem:[#allocation2 + $0x98] sm:$0xff] %vm706_vm0, %v15564_v54  ;;  %v12891_v22 = vrot.slane %v12872_v21, 1  ;;  %v12894_v60 = vrot.slane %v12872_v21, 2  ;;  %9830 = vmatprep.mubr.msk.f32.mxu1 %vm706_vm0, %v12847_v7  ;;  %v12905_v4 = vrot.slane %v12876_v48, 1  ;;  %v12908_v55 = vrot.slane %v12876_v48, 2 }
 0x360   : > { %3591 = vst.msk [vmem:[#allocation2 + $0xb0] sm:$0xff] %vm706_vm0, %v15588_v26  ;;  %3853 = vst.msk [vmem:[#allocation2 + $0x50] sm:$0xff] %vm706_vm0, %v15590_v57  ;;  %v15591_v26 = vld [vmem:[#allocation36_spill] sm:$0xff]  ;;  %v3730_v37 = vmax.f32 %v15592_v44, %v12876_v48  ;;  %v2382_v44 = vrot.slane %v12861_v28, 7  ;;  %v2660_v35 = vrot.slane %v12861_v28, 1 }
 0x361   : > { %3850 = vst.msk [vmem:[#allocation2 + $0x38] sm:$0xff] %vm706_vm0, %v15590_v57  ;;  %3590 = vst.msk [vmem:[#allocation2 + $0x98] sm:$0xff] %vm706_vm0, %v15591_v26  ;;  %v12917_v26 = vld [vmem:[#allocation2 + $0xe0] sm:$0xff]  ;;  %v3653_v17 = vmax.f32 %v12872_v21, %v12891_v22  ;;  %v12928_v14 = vld [vmem:[#allocation2 + $0xc8] sm:$0xff]  ;;  %v3748_v13 = vmax.f32 %v15595_v41, %v12905_v4  ;;  %v15600_v41 = vrot.slane %v12474_v3, 2  ;;  %v12976_v3 = vsel %vm1090_vm2, %v15603_v8, %v2379_v47 }
 0x362   : > { %3880 = vst.msk [vmem:[#allocation2 + $0x50] sm:$0xff] %vm706_vm0, %v12682_v46  ;;  %15593 = vst [vmem:[#allocation85_spill] sm:$0xff] %v12917_v26  ;;  %v15594_v46 = vrot.slane %v12466_v2, 2  ;;  %v3749_v26 = vmax.f32 %v3730_v37, %v12905_v4  ;;  %v12942_v36 = vld [vmem:[#allocation2 + $0x80] sm:$0xff]  ;;  %9831 = vmatmul.mubr.msk.f32.gmra.mrb[30].mxu1 %vm706_vm0, %v12928_v14  ;;  %v15597_v2 = vrot.slane %v12418_v25, 7  ;;  %v12958_v37 = vsel %vm1370_vm3, %v2648_v56, %v15599_v0  ;;  %v12964_v27 = vld [vmem:[#allocation2 + $0x68] sm:$0xff] }
 0x363   : > { %3879 = vst.msk [vmem:[#allocation2 + $0x38] sm:$0xff] %vm706_vm0, %v12685_v1  ;;  %3578 = vst.msk [vmem:[#allocation2 + $0xe0] sm:$0xff] %vm706_vm0, %v15564_v54  ;;  %v15601_v25 = vld [vmem:[#allocation38_spill] sm:$0xff]  ;;  %v3651_v56 = vmax.f32 %v12876_v48, %v12905_v4  ;;  %v12993_v47 = vsel %vm1090_vm2, %v15606_v52, %v2376_v45  ;;  %v15608_v48 = vrot.slane %v12456_v63, 7  ;;  %v13013_v45 = vsel %vm1090_vm2, %v15611_v34, %v2382_v44  ;;  %v15613_v63 = vld [vmem:[#allocation39_spill] sm:$0xff] }
 0x364   : > { %v12935_v1 = vsel %vm3672_vm4, %v12894_v60, %v15594_v46  ;;  %3593 = vst.msk [vmem:[#allocation2 + $0xe0] sm:$0xff] %vm706_vm0, %v15596_v30  ;;  %3575 = vst.msk [vmem:[#allocation2 + $0xc8] sm:$0xff] %vm706_vm0, %v15564_v54  ;;  %v12953_v46 = vsel %vm1090_vm2, %v15597_v2, %v2370_v50  ;;  %v3678_v30 = vsel %vm3672_vm4, %v12908_v55, %v15600_v41  ;;  %v15602_v50 = vld [vmem:[#allocation42_spill] sm:$0xff]  ;;  %v15605_v2 = vrot.slane %v12454_v59, 1 }
 0x365   : > { %15598 = vst [vmem:[#allocation86_spill] sm:$0xff] %v12953_v46  ;;  %3859 = vst.msk [vmem:[#allocation2 + $0x80] sm:$0xff] %vm706_vm0, %v15590_v57  ;;  %9837 = vmatprep.mubr.msk.f32.mxu1 %vm706_vm0, %v15602_v50  ;;  %v2663_v41 = vrot.slane %v12847_v7, 1  ;;  %v12998_v50 = vsel %vm1090_vm2, %v15608_v48, %v2385_v61  ;;  %v15610_v59 = vrot.slane %v12442_v39, 1  ;;  %v13006_v8 = vmax.f32 %v3653_v17, %v12935_v1 }
 0x366   : > { %3592 = vst.msk [vmem:[#allocation2 + $0xc8] sm:$0xff] %vm706_vm0, %v15601_v25  ;;  %15604 = vst [vmem:[#allocation42_spill] sm:$0xff] %v12976_v3  ;;  %v12985_v0 = vsel %vm1370_vm3, %v2657_v51, %v15605_v2  ;;  %v3652_v61 = vmax.f32 %v15613_v63, %v12891_v22  ;;  %v3770_v2 = vmax.f32 %v3748_v13, %v12908_v55  ;;  %9838 = vmatmul.mubr.msk.f32.vlgmr.msra.gmra.mrb[24].mxu1 %vm706_vm0, %v12953_v46 }
 0x367   : > { %3856 = vst.msk [vmem:[#allocation2 + $0x68] sm:$0xff] %vm706_vm0, %v15590_v57  ;;  %3882 = vst.msk [vmem:[#allocation2 + $0x80] sm:$0xff] %vm706_vm0, %v12688_v15  ;;  %v13003_v51 = vsel %vm1370_vm3, %v2654_v12, %v15610_v59  ;;  %v3771_v39 = vmax.f32 %v3749_v26, %v3678_v30  ;;  %v13018_v52 = vld [vmem:[#allocation2 + $0xb0] sm:$0xff]  ;;  %v2388_v12 = vrot.slane %v12928_v14, 7  ;;  %v13026_v62 = vrot.slane %v12964_v27, 1  ;;  %10448 = vmatpush3.bf16.msra.mxu1 %v12764_v10  ;;  %v15618_v10 = vld [vmem:[#allocation72_spill] sm:$0xff] }
 0x368   : > { %15607 = vst [vmem:[#allocation87_spill] sm:$0xff] %v12993_v47  ;;  %15609 = vst [vmem:[#allocation88_spill] sm:$0xff] %v12998_v50  ;;  %v15615_v48 = vrot.slane %v12494_v6, 1  ;;  %v13035_v26 = vld [vmem:[#allocation2 + $0x98] sm:$0xff]  ;;  %9840 = vmatprep.mubr.msk.f32.mxu1 %vm706_vm0, %v12869_v29  ;;  %v3716_v6 = vmax.f32 %v3651_v56, %v3678_v30  ;;  %10450 = vmatprep.subr.bf16.mxu1 %v12799_v33  ;;  %v15619_v56 = vld [vmem:[#allocation73_spill] sm:$0xff]  ;;  %v13076_v15 = vrot.slane %v12942_v36, 1 }
 0x369   : > { %3881 = vst.msk [vmem:[#allocation2 + $0x68] sm:$0xff] %vm706_vm0, %v12691_v9  ;;  %15612 = vst [vmem:[#allocation89_spill] sm:$0xff] %v13013_v45  ;;  %v13023_v17 = vld [vmem:[#allocation2 + $0x50] sm:$0xff]  ;;  %v15621_v54 = vrot.slane %v12540_v19, 2  ;;  %v3717_v7 = vmax.f32 %v3652_v61, %v12894_v60  ;;  %v15624_v19 = vld [vmem:[#allocation40_spill] sm:$0xff] }
 0x36a   : > { %15614 = vst [vmem:[#allocation39_spill] sm:$0xff] %v13018_v52  ;;  %v13033_v13 = vsel %vm1370_vm3, %v2660_v35, %v15615_v48  ;;  %15616 = vst [vmem:[#allocation90_spill] sm:$0xff] %v13035_v26  ;;  %v3891_v59 = vld [vmem:[#allocation2 + $0x38] sm:$0xff]  ;;  %v13043_v34 = vrot.slane %v13023_v17, 1  ;;  %v13046_v44 = vrot.slane %v13023_v17, 2  ;;  %v15617_v35 = vrot.slane %v12468_v42, 1  ;;  %9841 = vmatmul.mubr.msk.f32.gmra.mrb[26].mxu1 %vm706_vm0, %v12993_v47 }
 0x36b   : > { %3865 = vst.msk [vmem:[#allocation2 + $0xb0] sm:$0xff] %vm706_vm0, %v15590_v57  ;;  %4199 = vst.msk [vmem:[#allocation2 + $0x50] sm:$0xff] %vm706_vm0, %v15590_v57  ;;  %v13060_v25 = vrot.slane %v3891_v59, 1  ;;  %v13062_v9 = vrot.slane %v3891_v59, 2  ;;  %v4022_v30 = vadd.f32 %v12769_v23, %v3891_v59  ;;  %v3734_v42 = vmax.f32 %v13006_v8, %v12964_v27  ;;  %v13078_v23 = vld [vmem:[#allocation2 + $0xe0] sm:$0xff]  ;;  %9843 = vmatprep.mubr.msk.f32.mxu1 %vm706_vm0, %v12976_v3  ;;  %v15628_v52 = vld [vmem:[#allocation75_spill] sm:$0xff] }
 0x36c   : > { %v13053_v48 = vsel %vm1370_vm3, %v2663_v41, %v15617_v35  ;;  %3862 = vst.msk [vmem:[#allocation2 + $0x98] sm:$0xff] %vm706_vm0, %v15590_v57  ;;  %3884 = vst.msk [vmem:[#allocation2 + $0xb0] sm:$0xff] %vm706_vm0, %v15618_v10  ;;  %v3786_v41 = vmax.f32 %v3770_v2, %v15613_v63  ;;  %v3787_v35 = vmax.f32 %v3771_v39, %v12872_v21  ;;  %v15622_v39 = vrot.slane %v12532_v53, 2 }
 0x36d   : > { %4196 = vst.msk [vmem:[#allocation2 + $0x38] sm:$0xff] %vm706_vm0, %v15590_v57  ;;  %3883 = vst.msk [vmem:[#allocation2 + $0x98] sm:$0xff] %vm706_vm0, %v15619_v56  ;;  %v3946_v10 = vadd.f32 %v13043_v34, %v13023_v17  ;;  %v3944_v8 = vadd.f32 %v13060_v25, %v3891_v59  ;;  %v3970_v2 = vsel %vm3672_vm4, %v13062_v9, %v15621_v54  ;;  %v15625_v54 = vrot.slane %v15624_v19, 7  ;;  %v15627_v19 = vld [vmem:[#allocation74_spill] sm:$0xff] }
 0x36e   : > { %15620 = vst [vmem:[#allocation91_spill] sm:$0xff] %v13078_v23  ;;  %v13091_v56 = vsel %vm3672_vm4, %v13046_v44, %v15622_v39  ;;  %v13094_v28 = vld [vmem:[#allocation2 + $0x80] sm:$0xff]  ;;  %v13096_v23 = vld [vmem:[#allocation2 + $0xc8] sm:$0xff]  ;;  %3871 = vst.msk [vmem:[#allocation2 + $0xe0] sm:$0xff] %vm706_vm0, %v15590_v57  ;;  %v4040_v59 = vadd.f32 %v12787_v32, %v13060_v25  ;;  %v4041_v61 = vadd.f32 %v4022_v30, %v13060_v25  ;;  %v13126_v30 = vrot.slane %v12942_v36, 2 }
 0x36f   : > { %15623 = vst [vmem:[#allocation92_spill] sm:$0xff] %v13096_v23  ;;  %v13105_v53 = vsel %vm1090_vm2, %v15625_v54, %v2388_v12  ;;  %v13113_v23 = vrot.slane %v12964_v27, 2  ;;  %4205 = vst.msk [vmem:[#allocation2 + $0x80] sm:$0xff] %vm706_vm0, %v15590_v57  ;;  %v4008_v12 = vadd.f32 %v3970_v2, %v3944_v8  ;;  %v4010_v54 = vadd.f32 %v13091_v56, %v3946_v10  ;;  %v15629_v8 = vld [vmem:[#allocation43_spill] sm:$0xff]  ;;  %v15630_v10 = vld [vmem:[#allocation41_spill] sm:$0xff] }
 0x370   : > { %15626 = vst [vmem:[#allocation40_spill] sm:$0xff] %v13105_v53  ;;  %v13110_v39 = vld [vmem:[#allocation2 + $0x68] sm:$0xff]  ;;  %3868 = vst.msk [vmem:[#allocation2 + $0xc8] sm:$0xff] %vm706_vm0, %v15590_v57  ;;  %v3732_v32 = vmax.f32 %v3716_v6, %v12872_v21  ;;  %v3805_v3 = vmax.f32 %v3786_v41, %v12891_v22  ;;  %v4062_v47 = vadd.f32 %v4040_v59, %v13062_v9  ;;  %9844 = vmatmul.mubr.msk.f32.gmra.mrb[28].mxu1 %vm706_vm0, %v13013_v45  ;;  %v15632_v41 = vld [vmem:[#allocation44_spill] sm:$0xff] }
 0x371   : > { %3886 = vst.msk [vmem:[#allocation2 + $0xe0] sm:$0xff] %vm706_vm0, %v15627_v19  ;;  %4202 = vst.msk [vmem:[#allocation2 + $0x68] sm:$0xff] %vm706_vm0, %v15590_v57  ;;  %v4063_v29 = vadd.f32 %v4041_v61, %v3970_v2  ;;  %v3806_v21 = vmax.f32 %v3787_v35, %v12891_v22  ;;  %v13138_v6 = vrot.slane %v13110_v39, 1  ;;  %v3733_v26 = vmax.f32 %v3717_v7, %v15630_v10 }
 0x372   : > { %3885 = vst.msk [vmem:[#allocation2 + $0xc8] sm:$0xff] %vm706_vm0, %v15628_v52  ;;  %v3753_v52 = vmax.f32 %v3734_v42, %v13026_v62  ;;  %9846 = vmatprep.mubr.msk.f32.mxu1 %vm706_vm0, %v12998_v50  ;;  %v3945_v2 = vadd.f32 %v13043_v34, %v15632_v41  ;;  %v4078_v59 = vadd.f32 %v4062_v47, %v15632_v41  ;;  %v13151_v35 = vrot.slane %v13110_v39, 2 }
 0x373   : > { %v13142_v46 = vld [vmem:[#allocation2 + $0xb0] sm:$0xff]  ;;  %v4079_v61 = vadd.f32 %v4063_v29, %v13023_v17  ;;  %v4024_v7 = vadd.f32 %v4008_v12, %v13023_v17  ;;  %v13159_v42 = vmax.f32 %v3732_v32, %v12891_v22  ;;  %v15633_v45 = vrot.slane %v12528_v16, 2 }
 0x374   : > { %15631 = vst [vmem:[#allocation43_spill] sm:$0xff] %v13142_v46  ;;  %v13153_v19 = vld [vmem:[#allocation2 + $0x98] sm:$0xff]  ;;  %4211 = vst.msk [vmem:[#allocation2 + $0xb0] sm:$0xff] %vm706_vm0, %v15590_v57  ;;  %v4026_v46 = vadd.f32 %v4010_v54, %v13110_v39  ;;  %v4097_v29 = vadd.f32 %v4078_v59, %v13043_v34  ;;  %v3752_v12 = vmax.f32 %v3733_v26, %v13026_v62  ;;  %9847 = vmatmul.mubr.msk.f32.gmra.mrb[30].mxu1 %vm706_vm0, %v13105_v53 }
 0x375   : > { %4208 = vst.msk [vmem:[#allocation2 + $0x98] sm:$0xff] %vm706_vm0, %v15590_v57  ;;  %v4098_v50 = vadd.f32 %v4079_v61, %v13043_v34  ;;  %v13172_v17 = vsel %vm3672_vm4, %v13113_v23, %v15633_v45  ;;  %v3827_v54 = vmax.f32 %v3805_v3, %v12894_v60  ;;  %v3828_v32 = vmax.f32 %v3806_v21, %v12935_v1 }
 0x376   : > { %v3775_v47 = vmax.f32 %v3753_v52, %v13172_v17  ;;  %v3948_v59 = vadd.f32 %v13138_v6, %v13110_v39  ;;  %9853 = vmatprep.mubr.msk.f32.mxu1 %vm706_vm0, %v12783_v31  ;;  %v4119_v16 = vadd.f32 %v4097_v29, %v13046_v44  ;;  %v15635_v26 = vrot.slane %v12560_v24, 2 }
 0x377   : > { %v4120_v45 = vadd.f32 %v4098_v50, %v13091_v56  ;;  %v4009_v52 = vadd.f32 %v13046_v44, %v3945_v2  ;;  %v3943_v31 = vadd.f32 %v13060_v25, %v12538_v5  ;;  %v4043_v29 = vadd.f32 %v4024_v7, %v13043_v34 }
 0x378   : > { %v13182_v61 = vld [vmem:[#allocation2 + $0xe0] sm:$0xff]  ;;  %v13192_v3 = vsel %vm3672_vm4, %v13151_v35, %v15635_v26  ;;  %v13203_v50 = vrot.slane %v13094_v28, 1  ;;  %v4045_v24 = vadd.f32 %v4026_v46, %v13138_v6  ;;  %v4149_v2 = vmul.f32 %v12789_v11, %v4119_v16  ;;  %9854 = vmatmul.mubr.msk.f32.vlgmr.msra.gmra.mrb[24].mxu1 %vm706_vm0, %v12958_v37 }
 0x379   : > { %15634 = vst [vmem:[#allocation41_spill] sm:$0xff] %v13182_v61  ;;  %v13195_v21 = vld [vmem:[#allocation2 + $0xc8] sm:$0xff]  ;;  %4217 = vst.msk [vmem:[#allocation2 + $0xe0] sm:$0xff] %vm706_vm0, %v15590_v57  ;;  %v4150_v26 = vmul.f32 %v12789_v11, %v4120_v45  ;;  %v3774_v61 = vmax.f32 %v3752_v12, %v13113_v23  ;;  %v3773_v5 = vmax.f32 %v13159_v42, %v12935_v1  ;;  %10452 = vmatpush3.bf16.msra.mxu1 %v12799_v33 }
 0x37a   : > { %15636 = vst [vmem:[#allocation44_spill] sm:$0xff] %v13195_v21  ;;  %4214 = vst.msk [vmem:[#allocation2 + $0xc8] sm:$0xff] %vm706_vm0, %v15590_v57  ;;  %v15637_v21 = vld [vmem:[#allocation45_spill] sm:$0xff]  ;;  %v3791_v25 = vmax.f32 %v3775_v47, %v12942_v36  ;;  %v4012_v46 = vadd.f32 %v13192_v3, %v3948_v59  ;;  %v4067_v7 = vadd.f32 %v4045_v24, %v13192_v3  ;;  %9856 = vmatprep.mubr.msk.f32.mxu1 %vm706_vm0, %v12888_v38 }
 0x37b   : > { %v4025_v53 = vadd.f32 %v4009_v52, %v15637_v21  ;;  %v13222_v12 = vadd.f32 %v4149_v2, %v3827_v54  ;;  %v13224_v16 = vadd.f32 %v4150_v26, %v3828_v32  ;;  %v13227_v45 = vrot.slane %v13094_v28, 2  ;;  %10454 = vmatprep.subr.bf16.mxu1 %v12842_v20 }
 0x37c   : > { %v15639_v42 = vrot.slane %v12524_v18, 2  ;;  %v3950_v33 = vadd.f32 %v13203_v50, %v13094_v28  ;;  %v4083_v59 = vadd.f32 %v4067_v7, %v13094_v28  ;;  %v3655_v54 = vmax.f32 %v12964_v27, %v13026_v62  ;;  %9857 = vmatmul.mubr.msk.f32.gmra.mrb[26].mxu1 %vm706_vm0, %v13003_v51 }
 0x37d   : > { %15638 = vst [vmem:[#allocation45_spill] sm:$0xff] %v13222_v12  ;;  %v4044_v1 = vadd.f32 %v4025_v53, %v13138_v6  ;;  %v4065_v32 = vadd.f32 %v4043_v29, %v13091_v56  ;;  %v8430_v53 = vrot.slane %v13222_v12, 7  ;;  %v8431_v18 = vrot.slane %v13224_v16, 7  ;;  %9859 = vmatprep.mubr.msk.f32.mxu1 %vm706_vm0, %v12985_v0 }
 0x37e   : > { %v13234_v47 = vsel %vm3672_vm4, %v13126_v30, %v15639_v42  ;;  %v3790_v52 = vmax.f32 %v3774_v61, %v15629_v8  ;;  %v3810_v24 = vmax.f32 %v3791_v25, %v13076_v15  ;;  %v4102_v26 = vadd.f32 %v4083_v59, %v13203_v50  ;;  %v15642_v59 = vld [vmem:[#allocation46_spill] sm:$0xff] }
 0x37f   : > { %v4066_v2 = vadd.f32 %v4044_v1, %v13151_v35  ;;  %v3720_v7 = vmax.f32 %v3655_v54, %v13172_v17  ;;  %v8432_v42 = vsel %vm1090_vm2, %v8430_v53, %v8431_v18  ;;  %v15640_v56 = vrot.slane %v12558_v40, 2 }
 0x380   : > { %v4028_v29 = vadd.f32 %v4012_v46, %v13094_v28  ;;  %v15641_v25 = vmax.f32 %v12472_v43, %v12905_v4  ;;  %8454 = vrot.lane.b32.xlu0 %v8432_v42, %s11393_s10  ;;  %v2666_v40 = vrot.slane %v12928_v14, 1  ;;  %v3809_v12 = vmax.f32 %v3790_v52, %v13076_v15  ;;  %9860 = vmatmul.mubr.msk.f32.gmra.mrb[28].mxu1 %vm706_vm0, %v13033_v13 }
 0x381   : > { %v3979_v61 = vsel %vm3672_vm4, %v13227_v45, %v15640_v56  ;;  %v4082_v54 = vadd.f32 %v4066_v2, %v15642_v59  ;;  %v3736_v18 = vmax.f32 %v3720_v7, %v12942_v36  ;;  %v4007_v28 = vadd.f32 %v13062_v9, %v3943_v31  ;;  %9862 = vmatprep.mubr.msk.f32.mxu1 %vm706_vm0, %v13053_v48 }
 0x382   : > { %v3715_v1 = vmax.f32 %v15641_v25, %v12908_v55  ;;  %v4124_v53 = vadd.f32 %v4102_v26, %v3979_v61  ;;  %v4081_v46 = vadd.f32 %v4065_v32, %v13110_v39  ;;  %v3832_v43 = vmax.f32 %v3810_v24, %v13234_v47 }
 0x383   : > { %v4101_v4 = vadd.f32 %v4082_v54, %v13203_v50  ;;  %v3789_v2 = vmax.f32 %v3773_v5, %v12964_v27  ;;  %v4023_v39 = vadd.f32 %v4007_v28, %v15632_v41  ;;  %v4047_v32 = vadd.f32 %v4028_v29, %v13203_v50  ;;  %v15645_v54 = vld [vmem:[#allocation86_spill] sm:$0xff] }
 0x384   : > { %v3731_v56 = vmax.f32 %v3715_v1, %v15613_v63  ;;  %v4154_v55 = vmul.f32 %v12808_v49, %v4124_v53  ;;  %v3755_v63 = vmax.f32 %v3736_v18, %v13076_v15  ;;  %v4100_v31 = vadd.f32 %v4081_v46, %v13138_v6 }
 0x385   : > { %v4123_v52 = vadd.f32 %v4101_v4, %v13227_v45  ;;  %v15643_v26 = vrot.slane %v12574_v58, 1  ;;  %v4042_v7 = vadd.f32 %v4023_v39, %v13043_v34  ;;  %v3654_v41 = vmax.f32 %v15630_v10, %v13026_v62 }
 0x386   : > { %v3750_v9 = vmax.f32 %v3731_v56, %v12891_v22  ;;  %v13286_v24 = vadd.f32 %v4154_v55, %v3832_v43  ;;  %v4122_v22 = vadd.f32 %v4100_v31, %v13192_v3  ;;  %v15644_v42 = vmax.f32 %v12942_v36, %v13076_v15  ;;  %v15646_v43 = vld [vmem:[#allocation90_spill] sm:$0xff] }
 0x387   : > { %v13291_v27 = vsel %vm1370_vm3, %v2666_v40, %v15643_v26  ;;  %v3831_v25 = vmax.f32 %v3809_v12, %v13126_v30  ;;  %v4153_v58 = vmul.f32 %v12808_v49, %v4123_v52  ;;  %v3808_v1 = vmax.f32 %v3789_v2, %v13026_v62  ;;  %v15647_v2 = vld [vmem:[#allocation83_spill] sm:$0xff] }
 0x388   : > { %v3772_v5 = vmax.f32 %v3750_v9, %v12894_v60  ;;  %v3722_v29 = vmax.f32 %v15644_v42, %v13234_v47  ;;  %9863 = vmatmul.mubr.msk.f32.gmra.mrb[30].mxu1 %vm706_vm0, %v13291_v27  ;;  %v3777_v60 = vmax.f32 %v3755_v63, %v13234_v47  ;;  %v4064_v3 = vadd.f32 %v4042_v7, %v13046_v44  ;;  %v15650_v7 = vld [vmem:[#allocation47_spill] sm:$0xff] }
 0x389   : > { %9869 = vmatprep.mubr.msk.f32.mxu1 %vm706_vm0, %v15645_v54  ;;  %v3719_v36 = vmax.f32 %v3654_v41, %v13113_v23  ;;  %v13315_v12 = vadd.f32 %v13203_v50, %v15642_v59  ;;  %v13317_v53 = vadd.f32 %v4153_v58, %v3831_v25  ;;  %v8437_v18 = vrot.slane %v13286_v24, 7  ;;  %v15652_v58 = vld [vmem:[#allocation42_spill] sm:$0xff] }
 0x38a   : > { %v3788_v34 = vmax.f32 %v3772_v5, %v15630_v10  ;;  %v4152_v40 = vmul.f32 %v12808_v49, %v4122_v22  ;;  %v4014_v47 = vadd.f32 %v3979_v61, %v3950_v33  ;;  %v4069_v56 = vadd.f32 %v4047_v32, %v3979_v61 }
 0x38b   : > { %v4080_v10 = vadd.f32 %v4064_v3, %v15637_v21  ;;  %v3735_v44 = vmax.f32 %v3719_v36, %v15629_v8  ;;  %v8436_v28 = vrot.slane %v13317_v53, 7  ;;  %v3830_v46 = vmax.f32 %v3808_v1, %v13172_v17  ;;  %v15648_v17 = vld [vmem:[#allocation87_spill] sm:$0xff] }
 0x38c   : > { %v13326_v4 = vrot.slane %v15646_v43, 2  ;;  %v3947_v55 = vadd.f32 %v13138_v6, %v15637_v21  ;;  %9870 = vmatmul.mubr.msk.f32.vlgmr.msra.gmra.mrb[24].mxu1 %vm706_vm0, %v15647_v2  ;;  %v3807_v33 = vmax.f32 %v3788_v34, %v13026_v62  ;;  %v13335_v63 = vrot.slane %v15646_v43, 1  ;;  %v15653_v34 = vld [vmem:[#allocation89_spill] sm:$0xff] }
 0x38d   : > { %v4099_v61 = vadd.f32 %v4080_v10, %v13138_v6  ;;  %v3793_v9 = vmax.f32 %v3777_v60, %v15646_v43  ;;  %10456 = vmatpush3.bf16.msra.mxu1 %v12842_v20  ;;  %9872 = vmatprep.mubr.msk.f32.mxu1 %vm706_vm0, %v15648_v17  ;;  %v8438_v39 = vsel %vm1090_vm2, %v8436_v28, %v8437_v18  ;;  %v13346_v62 = vrot.slane %v13153_v19, 1  ;;  %v15649_v6 = vld [vmem:[#allocation84_spill] sm:$0xff] }
 0x38e   : > { %v13342_v21 = vadd.f32 %v4152_v40, %v3830_v46  ;;  %v3754_v31 = vmax.f32 %v3735_v44, %v13076_v15  ;;  %10458 = vmatprep.subr.bf16.mxu1 %v15649_v6  ;;  %8458 = vrot.lane.b32.xlu1 %v8438_v39, %s11393_s10  ;;  %v3738_v32 = vmax.f32 %v3722_v29, %v15646_v43  ;;  %v13353_v52 = vrot.slane %v13153_v19, 2  ;;  %v15654_v40 = vld [vmem:[#allocation51_spill] sm:$0xff]  ;;  %v15656_v44 = vld [vmem:[#allocation48_spill] sm:$0xff] }
 0x38f   : > { %v4121_v20 = vadd.f32 %v4099_v61, %v13151_v35  ;;  %v4011_v26 = vadd.f32 %v13151_v35, %v3947_v55  ;;  %v4030_v5 = vadd.f32 %v4014_v47, %v13153_v19  ;;  %v15651_v22 = vrot.slane %v15650_v7, 2  ;;  %v15657_v55 = vld [vmem:[#allocation39_spill] sm:$0xff]  ;;  %v15659_v39 = vld [vmem:[#allocation52_spill] sm:$0xff] }
 0x390   : > { %v3776_v42 = vmax.f32 %v3754_v31, %v13126_v30  ;;  %v4085_v25 = vadd.f32 %v4069_v56, %v13153_v19  ;;  %9873 = vmatmul.mubr.msk.f32.gmra.mrb[26].mxu1 %vm706_vm0, %v15652_v58  ;;  %v3829_v29 = vmax.f32 %v3807_v33, %v13113_v23  ;;  %v3812_v35 = vmax.f32 %v3793_v9, %v13335_v63 }
 0x391   : > { %v3690_v41 = vsel %vm3672_vm4, %v13326_v4, %v15651_v22  ;;  %v4151_v1 = vmul.f32 %v12808_v49, %v4121_v20  ;;  %v4027_v60 = vadd.f32 %v4011_v26, %v15642_v59  ;;  %9875 = vmatprep.mubr.msk.f32.mxu1 %vm706_vm0, %v15653_v34  ;;  %v8434_v3 = vrot.slane %v13342_v21, 7 }
 0x392   : > { %v3952_v54 = vadd.f32 %v13346_v62, %v13153_v19  ;;  %v4104_v36 = vadd.f32 %v4085_v25, %v13346_v62  ;;  %v3659_v18 = vmax.f32 %v15646_v43, %v13335_v63  ;;  %v15655_v47 = vrot.slane %v15654_v40, 2  ;;  %v15658_v43 = vld [vmem:[#allocation88_spill] sm:$0xff] }
 0x393   : > { %v13377_v23 = vadd.f32 %v4151_v1, %v3829_v29  ;;  %v4046_v56 = vadd.f32 %v4027_v60, %v13203_v50  ;;  %v3757_v10 = vmax.f32 %v3738_v32, %v13335_v63  ;;  %v3792_v28 = vmax.f32 %v3776_v42, %v15656_v44  ;;  %v15660_v32 = vld [vmem:[#allocation40_spill] sm:$0xff] }
 0x394   : > { %v3982_v59 = vsel %vm3672_vm4, %v13353_v52, %v15655_v47  ;;  %v4049_v19 = vadd.f32 %v4030_v5, %v13346_v62  ;;  %v13388_v33 = vrot.slane %v15657_v55, 1  ;;  %9876 = vmatmul.mubr.msk.f32.gmra.mrb[28].mxu1 %vm706_vm0, %v15658_v43  ;;  %v3834_v9 = vmax.f32 %v3812_v35, %v3690_v41  ;;  %v15664_v47 = vld [vmem:[#allocation43_spill] sm:$0xff] }
 0x395   : > { %v4126_v46 = vadd.f32 %v4104_v36, %v3982_v59  ;;  %v8433_v61 = vrot.slane %v13377_v23, 7  ;;  %v13395_v31 = vadd.f32 %v13346_v62, %v15659_v39  ;;  %v4068_v50 = vadd.f32 %v4046_v56, %v13227_v45  ;;  %9878 = vmatprep.mubr.msk.f32.mxu1 %vm706_vm0, %v15660_v32  ;;  %v15662_v36 = vld [vmem:[#allocation49_spill] sm:$0xff] }
 0x396   : > { %v4016_v20 = vadd.f32 %v3982_v59, %v3952_v54  ;;  %v3724_v5 = vmax.f32 %v3659_v18, %v3690_v41  ;;  %v3779_v7 = vmax.f32 %v3757_v10, %v3690_v41  ;;  %v3661_v25 = vmax.f32 %v15657_v55, %v13388_v33 }
 0x397   : > { %v4156_v26 = vmul.f32 %v12808_v49, %v4126_v46  ;;  %v8435_v22 = vsel %vm1090_vm2, %v8433_v61, %v8434_v3  ;;  %v4084_v42 = vadd.f32 %v4068_v50, %v15659_v39  ;;  %v13406_v29 = vrot.slane %v15657_v55, 2 }
 0x398   : > { %8456 = vrot.lane.b32.xlu0 %v8435_v22, %s11393_s10  ;;  %v3811_v1 = vmax.f32 %v3792_v28, %v13335_v63  ;;  %v4071_v35 = vadd.f32 %v4049_v19, %v3982_v59  ;;  %v15661_v60 = vmax.f32 %v15629_v8, %v13076_v15  ;;  %v3795_v3 = vmax.f32 %v3779_v7, %v15657_v55  ;;  %v15665_v22 = vld [vmem:[#allocation50_spill] sm:$0xff] }
 0x399   : > { %v4103_v54 = vadd.f32 %v4084_v42, %v13346_v62  ;;  %v15663_v18 = vrot.slane %v15662_v36, 2  ;;  %v13421_v56 = vrot.slane %v15664_v47, 1  ;;  %v4013_v59 = vadd.f32 %v13227_v45, %v13315_v12 }
 0x39a   : > { %v3721_v41 = vmax.f32 %v15661_v60, %v13126_v30  ;;  %v3658_v10 = vmax.f32 %v15656_v44, %v13335_v63  ;;  %v13431_v8 = vrot.slane %v15664_v47, 2  ;;  %v4032_v28 = vadd.f32 %v4016_v20, %v15664_v47 }
 0x39b   : > { %v3693_v40 = vsel %vm3672_vm4, %v13406_v29, %v15663_v18  ;;  %v4125_v19 = vadd.f32 %v4103_v54, %v13353_v52  ;;  %v13435_v46 = vadd.f32 %v4156_v26, %v3834_v9  ;;  %v3740_v61 = vmax.f32 %v3724_v5, %v15657_v55  ;;  %v15666_v26 = vld [vmem:[#allocation55_spill] sm:$0xff] }
 0x39c   : > { %v13427_v15 = vmax.f32 %v3661_v25, %v3693_v40  ;;  %v3737_v30 = vmax.f32 %v3721_v41, %v15656_v44  ;;  %v3833_v45 = vmax.f32 %v3811_v1, %v13326_v4  ;;  %v3814_v50 = vmax.f32 %v3795_v3, %v13388_v33 }
 0x39d   : > { %v4029_v7 = vadd.f32 %v4013_v59, %v15659_v39  ;;  %v4155_v44 = vmul.f32 %v12808_v49, %v4125_v19  ;;  %v3660_v42 = vmax.f32 %v15665_v22, %v13388_v33  ;;  %v3954_v20 = vadd.f32 %v13421_v56, %v15664_v47  ;;  %v15668_v39 = vld [vmem:[#allocation92_spill] sm:$0xff] }
 0x39e   : > { %v3756_v12 = vmax.f32 %v3737_v30, %v13335_v63  ;;  %v4087_v9 = vadd.f32 %v4071_v35, %v15664_v47  ;;  %v15667_v5 = vrot.slane %v15666_v26, 2  ;;  %v3742_v1 = vmax.f32 %v13427_v15, %v15668_v39 }
 0x39f   : > { %v4048_v25 = vadd.f32 %v4029_v7, %v13346_v62  ;;  %v13456_v60 = vadd.f32 %v4155_v44, %v3833_v45  ;;  %v8440_v41 = vrot.slane %v13435_v46, 7  ;;  %v3759_v35 = vmax.f32 %v3740_v61, %v13388_v33  ;;  %v15669_v45 = vld [vmem:[#allocation56_spill] sm:$0xff] }
 0x3a0   : > { %v3778_v55 = vmax.f32 %v3756_v12, %v13326_v4  ;;  %v3985_v63 = vsel %vm3672_vm4, %v13431_v8, %v15667_v5  ;;  %v4106_v3 = vadd.f32 %v4087_v9, %v13421_v56  ;;  %v3836_v36 = vmax.f32 %v3814_v50, %v3693_v40  ;;  %v15670_v9 = vld [vmem:[#allocation44_spill] sm:$0xff] }
 0x3a1   : > { %v4051_v18 = vadd.f32 %v4032_v28, %v13421_v56  ;;  %v4070_v47 = vadd.f32 %v4048_v25, %v13353_v52  ;;  %v8439_v62 = vrot.slane %v13456_v60, 7  ;;  %v4018_v59 = vadd.f32 %v3985_v63, %v3954_v20 }
 0x3a2   : > { %v3794_v54 = vmax.f32 %v3778_v55, %v15665_v22  ;;  %v4128_v30 = vadd.f32 %v4106_v3, %v3985_v63  ;;  %v3781_v15 = vmax.f32 %v3759_v35, %v3693_v40  ;;  %v13468_v7 = vrot.slane %v15668_v39, 2  ;;  %v15671_v35 = vld [vmem:[#allocation53_spill] sm:$0xff] }
 0x3a3   : > { %v4086_v12 = vadd.f32 %v4070_v47, %v15669_v45  ;;  %v3723_v61 = vmax.f32 %v3658_v10, %v13326_v4  ;;  %v8441_v50 = vsel %vm1090_vm2, %v8439_v62, %v8440_v41  ;;  %v13475_v55 = vrot.slane %v15670_v9, 1 }
 0x3a4   : > { %v3813_v19 = vmax.f32 %v3794_v54, %v13388_v33  ;;  %v4158_v28 = vmul.f32 %v12808_v49, %v4128_v30  ;;  %v3797_v44 = vmax.f32 %v3781_v15, %v15668_v39  ;;  %8460 = vrot.lane.b32.xlu1 %v8441_v50, %s11393_s10  ;;  %v3953_v40 = vadd.f32 %v13421_v56, %v15669_v45 }
 0x3a5   : > { %v4105_v20 = vadd.f32 %v4086_v12, %v13421_v56  ;;  %v3739_v26 = vmax.f32 %v3723_v61, %v15665_v22  ;;  %v13483_v4 = vrot.slane %v15670_v9, 2  ;;  %v4073_v10 = vadd.f32 %v4051_v18, %v3985_v63  ;;  %v15673_v18 = vld [vmem:[#allocation59_spill] sm:$0xff]  ;;  %v15674_v61 = vld [vmem:[#allocation58_spill] sm:$0xff] }
 0x3a6   : > { %v13485_v5 = vadd.f32 %v4158_v28, %v3836_v36  ;;  %v4034_v25 = vadd.f32 %v4018_v59, %v15670_v9  ;;  %v13489_v41 = vrot.slane %v15668_v39, 1  ;;  %v15672_v54 = vrot.slane %v15671_v35, 2 }
 0x3a7   : > { %v4127_v3 = vadd.f32 %v4105_v20, %v13431_v8  ;;  %v3758_v22 = vmax.f32 %v3739_v26, %v13388_v33  ;;  %v4015_v62 = vadd.f32 %v13353_v52, %v13395_v31  ;;  %v3835_v63 = vmax.f32 %v3813_v19, %v13406_v29  ;;  %v15676_v26 = vld [vmem:[#allocation54_spill] sm:$0xff] }
 0x3a8   : > { %v3696_v47 = vsel %vm3672_vm4, %v13468_v7, %v15672_v54  ;;  %v3816_v36 = vmax.f32 %v3797_v44, %v13489_v41  ;;  %v3955_v59 = vadd.f32 %v13475_v55, %v15673_v18  ;;  %v3956_v30 = vadd.f32 %v13475_v55, %v15670_v9 }
 0x3a9   : > { %v4157_v15 = vmul.f32 %v12808_v49, %v4127_v3  ;;  %v3780_v12 = vmax.f32 %v3758_v22, %v13406_v29  ;;  %v15675_v50 = vrot.slane %v15674_v61, 2  ;;  %v4031_v52 = vadd.f32 %v4015_v62, %v15669_v45 }
 0x3aa   : > { %v8443_v31 = vrot.slane %v13485_v5, 7  ;;  %v4053_v19 = vadd.f32 %v4034_v25, %v13475_v55  ;;  %v4089_v28 = vadd.f32 %v4073_v10, %v15670_v9  ;;  %v3761_v44 = vmax.f32 %v3742_v1, %v13489_v41 }
 0x3ab   : > { %v3988_v33 = vsel %vm3672_vm4, %v13483_v4, %v15675_v50  ;;  %v13516_v20 = vadd.f32 %v4157_v15, %v3835_v63  ;;  %v3796_v3 = vmax.f32 %v3780_v12, %v15676_v26  ;;  %v4050_v35 = vadd.f32 %v4031_v52, %v13421_v56 }
 0x3ac   : > { %v3663_v54 = vmax.f32 %v15668_v39, %v13489_v41  ;;  %v3838_v22 = vmax.f32 %v3816_v36, %v3696_v47  ;;  %v4108_v45 = vadd.f32 %v4089_v28, %v13475_v55  ;;  %v3783_v62 = vmax.f32 %v3761_v44, %v3696_v47 }
 0x3ad   : > { %v3725_v61 = vmax.f32 %v3660_v42, %v13406_v29  ;;  %v8442_v25 = vrot.slane %v13516_v20, 7  ;;  %v4020_v9 = vadd.f32 %v3988_v33, %v3956_v30  ;;  %v4072_v1 = vadd.f32 %v4050_v35, %v13431_v8  ;;  %v15677_v29 = vld [vmem:[#allocation91_spill] sm:$0xff] }
 0x3ae   : > { %v3662_v10 = vmax.f32 %v15676_v26, %v13489_v41  ;;  %v3815_v63 = vmax.f32 %v3796_v3, %v13489_v41  ;;  %v4075_v56 = vadd.f32 %v4053_v19, %v3988_v33  ;;  %v4130_v15 = vadd.f32 %v4108_v45, %v3988_v33 }
 0x3af   : > { %v3741_v39 = vmax.f32 %v3725_v61, %v15676_v26  ;;  %v8444_v36 = vsel %vm1090_vm2, %v8442_v25, %v8443_v31  ;;  %v4088_v12 = vadd.f32 %v4072_v1, %v15673_v18  ;;  %v3728_v50 = vmax.f32 %v3663_v54, %v3696_v47  ;;  %v15678_v47 = vld [vmem:[#allocation41_spill] sm:$0xff] }
 0x3b0   : > { %v13533_v42 = vrot.slane %v15677_v29, 2  ;;  %8462 = vrot.lane.b32.xlu0 %v8444_v36, %s11393_s10  ;;  %v4160_v30 = vmul.f32 %v12808_v49, %v4130_v15  ;;  %v3799_v28 = vmax.f32 %v3783_v62, %v15677_v29  ;;  %v4017_v33 = vadd.f32 %v13431_v8, %v3953_v40  ;;  %v15679_v62 = vld [vmem:[#allocation62_spill] sm:$0xff]  ;;  %v15680_v25 = vld [vmem:[#allocation57_spill] sm:$0xff]  ;;  %v15682_v15 = vld [vmem:[#allocation60_spill] sm:$0xff] }
 0x3b1   : > { %v3760_v52 = vmax.f32 %v3741_v39, %v13489_v41  ;;  %v4107_v19 = vadd.f32 %v4088_v12, %v13475_v55  ;;  %v3746_v31 = vrot.slane %v15677_v29, 1  ;;  %v4019_v44 = vadd.f32 %v13483_v4, %v3955_v59 }
 0x3b2   : > { %v4036_v26 = vadd.f32 %v4020_v9, %v15678_v47  ;;  %v3837_v3 = vmax.f32 %v3815_v63, %v13468_v7  ;;  %v13545_v35 = vadd.f32 %v4160_v30, %v3838_v22  ;;  %v4033_v41 = vadd.f32 %v4017_v33, %v15673_v18  ;;  %v15683_v30 = vld [vmem:[#allocation61_spill] sm:$0xff] }
 0x3b3   : > { %v3782_v54 = vmax.f32 %v3760_v52, %v13468_v7  ;;  %v4129_v45 = vadd.f32 %v4107_v19, %v13483_v4  ;;  %v4035_v8 = vadd.f32 %v4019_v44, %v15679_v62  ;;  %v4038_v40 = vrot.slane %v15678_v47, 1 }
 0x3b4   : > { %v4057_v61 = vrot.slane %v15678_v47, 2  ;;  %v8446_v59 = vrot.slane %v13545_v35, 7  ;;  %v15681_v9 = vrot.slane %v15680_v25, 2  ;;  %v3818_v1 = vmax.f32 %v3799_v28, %v3746_v31 }
 0x3b5   : > { %v4052_v63 = vadd.f32 %v4033_v41, %v13475_v55  ;;  %v4159_v18 = vmul.f32 %v12808_v49, %v4129_v45  ;;  %v3798_v39 = vmax.f32 %v3782_v54, %v15682_v15  ;;  %v4055_v36 = vadd.f32 %v4038_v40, %v4036_v26 }
 0x3b6   : > { %v3767_v22 = vsel %vm3672_vm4, %v13533_v42, %v15681_v9  ;;  %v4091_v12 = vadd.f32 %v4075_v56, %v15678_v47  ;;  %v15684_v52 = vrot.slane %v15683_v30, 2  ;;  %v3727_v44 = vmax.f32 %v3662_v10, %v13468_v7 }
 0x3b7   : > { %v4074_v19 = vadd.f32 %v4052_v63, %v13483_v4  ;;  %v3744_v25 = vmax.f32 %v3728_v50, %v15677_v29  ;;  %v13568_v28 = vadd.f32 %v4159_v18, %v3837_v3  ;;  %v4054_v45 = vadd.f32 %v4038_v40, %v4035_v8  ;;  %v15685_v50 = vld [vmem:[#allocation66_spill] sm:$0xff] }
 0x3b8   : > { %v4059_v33 = vsel %vm3672_vm4, %v4057_v61, %v15684_v52  ;;  %v4110_v41 = vadd.f32 %v4091_v12, %v4038_v40  ;;  %v3840_v9 = vmax.f32 %v3818_v1, %v3767_v22  ;;  %v3743_v56 = vmax.f32 %v3727_v44, %v15682_v15  ;;  %v15686_v1 = vld [vmem:[#allocation65_spill] sm:$0xff]  ;;  %v15688_v12 = vld [vmem:[#allocation64_spill] sm:$0xff] }
 0x3b9   : > { %v4077_v55 = vadd.f32 %v4059_v33, %v4055_v36  ;;  %v4090_v26 = vadd.f32 %v4074_v19, %v15679_v62  ;;  %v3763_v47 = vmax.f32 %v3744_v25, %v3746_v31  ;;  %v8445_v54 = vrot.slane %v13568_v28, 7  ;;  %v15687_v62 = vld [vmem:[#allocation85_spill] sm:$0xff]  ;;  %v3171_v19 = vld [vmem:[#allocation12 + $0x68] sm:$0xff] }
 0x3ba   : > { %v3817_v30 = vmax.f32 %v3798_v39, %v3746_v31  ;;  %v4132_v52 = vadd.f32 %v4110_v41, %v4059_v33  ;;  %v4076_v4 = vadd.f32 %v4057_v61, %v4054_v45  ;;  %v3762_v10 = vmax.f32 %v3743_v56, %v3746_v31  ;;  %v15691_v41 = vld [vmem:[#allocation27_spill] sm:$0xff] }
 0x3bb   : > { %v4109_v63 = vadd.f32 %v4090_v26, %v4038_v40  ;;  %v3785_v7 = vmax.f32 %v3763_v47, %v3767_v22  ;;  %v4093_v29 = vadd.f32 %v4077_v55, %v15685_v50  ;;  %v8447_v3 = vsel %vm1090_vm2, %v8445_v54, %v8446_v59  ;;  %v3170_v22 = vld [vmem:[#allocation12 + $0x60] sm:$0xff]  ;;  %v15693_v56 = vld [vmem:[#allocation63_spill] sm:$0xff] }
 0x3bc   : > { %v4162_v8 = vmul.f32 %v12808_v49, %v4132_v52  ;;  %v4092_v18 = vadd.f32 %v4076_v4, %v15686_v1  ;;  %v2804_v36 = vrot.slane %v15687_v62, 7  ;;  %8464 = vrot.lane.b32.xlu1 %v8447_v3, %s11393_s10  ;;  %v3784_v39 = vmax.f32 %v3762_v10, %v13533_v42  ;;  %v15695_v4 = vld [vmem:[#allocation81_spill] sm:$0xff] }
 0x3bd   : > { %v4131_v15 = vadd.f32 %v4109_v63, %v4057_v61  ;;  %v3801_v33 = vmax.f32 %v3785_v7, %v15688_v12  ;;  %v15689_v40 = vrot.slane %v15685_v50, 1  ;;  %v3839_v59 = vmax.f32 %v3817_v30, %v13533_v42  ;;  %v15697_v7 = vld [vmem:[#allocation77_spill] sm:$0xff] }
 0x3be   : > { %v13584_v44 = vadd.f32 %v4162_v8, %v3840_v9  ;;  %v15692_v45 = vrot.slane %v15691_v41, 7  ;;  %v3800_v47 = vmax.f32 %v3784_v39, %v15693_v56  ;;  %v15694_v54 = vrot.slane %v15688_v12, 1  ;;  %v15699_v8 = vld [vmem:[#allocation80_spill] sm:$0xff] }
 0x3bf   : > { %v4112_v31 = vadd.f32 %v15689_v40, %v4093_v29  ;;  %v15690_v25 = vmov %v15689_v40  ;;  %v4161_v26 = vmul.f32 %v12808_v49, %v4131_v15  ;;  %v15696_v9 = vrot.slane %v15685_v50, 2  ;;  %v15701_v40 = vld [vmem:[#allocation76_spill] sm:$0xff] }
 0x3c0   : > { %v4111_v55 = vadd.f32 %v15690_v25, %v4092_v18  ;;  %v13591_v61 = vsel %vm1090_vm2, %v15692_v45, %v2804_v36  ;;  %v3820_v52 = vmax.f32 %v3801_v33, %v15694_v54  ;;  %v8449_v42 = vrot.slane %v13584_v44, 7  ;;  %v15704_v25 = vld [vmem:[#allocation82_spill] sm:$0xff]  ;;  %v3288_v41 = vld [vmem:[#allocation12 + $0x70] sm:$0xff]  ;;  %v3289_v45 = vld [vmem:[#allocation12 + $0x78] sm:$0xff] }
 0x3c1   : > { %v4134_v63 = vadd.f32 %v15695_v4, %v4112_v31  ;;  %9879 = vmatmul.mubr.msk.f32.gmra.mrb[30].mxu1 %vm706_vm0, %v13591_v61  ;;  %v10461_v10 = vpack.c.bf16 %v3171_v19, %v3170_v22  ;;  %v13605_v49 = vadd.f32 %v4161_v26, %v3839_v59  ;;  %v15698_v29 = vmov %v15694_v54  ;;  %v15702_v31 = vld [vmem:[#allocation67_spill] sm:$0xff]  ;;  %v15703_v59 = vld [vmem:[#allocation78_spill] sm:$0xff] }
 0x3c2   : > { %v4133_v30 = vadd.f32 %v15696_v9, %v4111_v55  ;;  %9885 = vmatprep.mubr.msk.f32.mxu1 %vm706_vm0, %v15697_v7  ;;  %v3819_v3 = vmax.f32 %v3800_v47, %v15698_v29  ;;  %v3842_v1 = vmax.f32 %v3820_v52, %v15699_v8  ;;  %v15700_v50 = vrot.slane %v15688_v12, 2  ;;  %v15705_v55 = vld [vmem:[#allocation79_spill] sm:$0xff]  ;;  %v15706_v47 = vld [vmem:[#allocation26_spill] sm:$0xff] }
 0x3c3   : > { %v4164_v18 = vmul.f32 %v12789_v11, %v4134_v63  ;;  %v8448_v15 = vrot.slane %v13605_v49, 7  ;;  %v10465_v26 = vpack.c.bf16 %v3289_v45, %v3288_v41  ;;  %v3043_v56 = vrot.slane %v15687_v62, 1  ;;  %v3410_v52 = vld [vmem:[#allocation12 + $0x80] sm:$0xff]  ;;  %v3411_v4 = vld [vmem:[#allocation12 + $0x88] sm:$0xff]  ;;  %v13771_v45 = vld [vmem:[#allocation2 + $0xa8] sm:$0xff] }
 0x3c4   : > { %v4163_v36 = vmul.f32 %v12789_v11, %v4133_v30  ;;  %v3841_v39 = vmax.f32 %v3819_v3, %v15700_v50  ;;  %v3044_v54 = vrot.slane %v15706_v47, 1  ;;  %v10469_v63 = vpack.c.bf16 %v3411_v4, %v3410_v52  ;;  %v15708_v30 = vld [vmem:[#allocation29_spill] sm:$0xff]  ;;  %v5641_v29 = vld [vmem:[#allocation15 + $0x8] sm:$0xff]  ;;  %5537 = vst.msk [vmem:[#allocation2 + $0xa8] sm:$0xff] %vm706_vm0, %v15590_v57 }
 0x3c5   : > { %v13615_v33 = vadd.f32 %v4164_v18, %v3842_v1  ;;  %9886 = vmatmul.mubr.msk.f32.vlgmr.msra.gmra.mrb[24].mxu1 %vm706_vm0, %v15701_v40  ;;  %v8450_v22 = vsel %vm1090_vm2, %v8448_v15, %v8449_v42  ;;  %v15707_v42 = vld [vmem:[#allocation28_spill] sm:$0xff]  ;;  %v3167_v7 = vrot.slane %v15708_v30, 7  ;;  %v4311_v18 = vld [vmem:[#allocation14 + $0x8] sm:$0xff] }
 0x3c6   : > { %10460 = vmatpush3.bf16.msra.mxu1 %v15649_v6  ;;  %9888 = vmatprep.mubr.msk.f32.mxu1 %vm706_vm0, %v15702_v31  ;;  %v13623_v19 = vadd.f32 %v4163_v36, %v3841_v39  ;;  %v3166_v9 = vrot.slane %v15707_v42, 7  ;;  %v4310_v1 = vld [vmem:[#allocation14] sm:$0xff]  ;;  %v4236_v39 = vld [vmem:[#allocation2 + $0x18] sm:$0xff] }
 0x3c7   : > { %v8452_v11 = vrot.slane %v13615_v33, 7  ;;  %10462 = vmatprep.subr.bf16.mxu1 %v10461_v10  ;;  %8466 = vrot.lane.b32.xlu0 %v8450_v22, %s11393_s10  ;;  %v4233_v36 = vld [vmem:[#allocation2] sm:$0xff]  ;;  %v10477_v15 = vpack.c.bf16 %v4311_v18, %v4310_v1  ;;  %v4289_v22 = vrot.slane %v4236_v39, 6  ;;  %5519 = vst.msk [vmem:[#allocation2 + $0x18] sm:$0xff] %vm706_vm0, %v15590_v57  ;;  %v13885_v39 = vld [vmem:[#allocation2 + $0xd8] sm:$0xff] }
 0x3c8   : > { %v8451_v12 = vrot.slane %v13623_v19, 7  ;;  %v4286_v50 = vrot.slane %v4233_v36, 6  ;;  %5516 = vst.msk [vmem:[#allocation2] sm:$0xff] %vm706_vm0, %v15590_v57  ;;  %15717 = vst [vmem:[#allocation47_spill] sm:$0xff] %v13885_v39 }
 0x3c9   : > { %9889 = vmatmul.mubr.msk.f32.gmra.mrb[26].mxu1 %vm706_vm0, %v15703_v59  ;;  %6800 = vst.msk [vmem:[#allocation2] sm:$0xff] %vm706_vm0, %v15590_v57  ;;  %5543 = vst.msk [vmem:[#allocation2 + $0xd8] sm:$0xff] %vm706_vm0, %v15590_v57 }
 0x3ca   : > { %9891 = vmatprep.mubr.msk.f32.mxu1 %vm706_vm0, %v15704_v25  ;;  %v8453_v6 = vsel %vm1090_vm2, %v8451_v12, %v8452_v11  ;;  %v13749_v12 = vld [vmem:[#allocation2 + $0x60] sm:$0xff] }
 0x3cb   : > { %8468 = vrot.lane.b32.xlu1 %v8453_v6, %s11393_s10  ;;  %5528 = vst.msk [vmem:[#allocation2 + $0x60] sm:$0xff] %vm706_vm0, %v15590_v57  ;;  %s15786_s10 = sld [smem:[#allocation107_spill]] }
 0x3cd   : > { %9892 = vmatmul.mubr.msk.f32.gmra.mrb[28].mxu1 %vm706_vm0, %v15705_v55 }
 0x3ce   : > { %9894 = vmatprep.mubr.msk.f32.mxu1 %vm706_vm0, %v12928_v14 }
 0x3d1   : > { %9895 = vmatmul.mubr.msk.f32.gmra.mrb[30].mxu1 %vm706_vm0, %v15687_v62  ;;  %s15278_s15 = scalar_lea.hbm %s15786_s10, %s9170_s6 }
 0x3d2   : > { %9901 = vmatprep.mubr.msk.f32.mxu1 %vm706_vm0, %v12958_v37  ;;  %v3045_v37 = vsel %vm1370_vm3, %v3043_v56, %v3044_v54  ;;  %v4590_v54 = vld [vmem:[#allocation14 + $0x20] sm:$0xff] }
 0x3d5   : > { %9902 = vmatmul.mubr.msk.f32.vlgmr.msra.gmra.mrb[24].mxu1 %vm706_vm0, %v12888_v38 }
 0x3d6   : > { %10464 = vmatpush3.bf16.msra.mxu1 %v10461_v10  ;;  %9904 = vmatprep.mubr.msk.f32.mxu1 %vm706_vm0, %v13003_v51  ;;  %v5640_v10 = vld [vmem:[#allocation15] sm:$0xff] }
 0x3d7   : > { %10466 = vmatprep.subr.bf16.mxu1 %v10465_v26  ;;  %v13727_v8 = vpack.c.bf16 %v5641_v29, %v5640_v10 }
 0x3d9   : > { %9905 = vmatmul.mubr.msk.f32.gmra.mrb[26].mxu1 %vm706_vm0, %v12985_v0 }
 0x3da   : > { %9907 = vmatprep.mubr.msk.f32.mxu1 %vm706_vm0, %v13033_v13 }
 0x3dd   : > { %9908 = vmatmul.mubr.msk.f32.gmra.mrb[28].mxu1 %vm706_vm0, %v13053_v48 }
 0x3de   : > { %9910 = vmatprep.mubr.msk.f32.mxu1 %vm706_vm0, %v13291_v27 }
 0x3e1   : > { %9911 = vmatmul.mubr.msk.f32.gmra.mrb[30].mxu1 %vm706_vm0, %v3045_v37 }
 0x3e2   : > { %9917 = vmatprep.mubr.msk.f32.mxu1 %vm706_vm0, %v15647_v2  ;;  %v3168_v2 = vsel %vm1090_vm2, %v3166_v9, %v3167_v7  ;;  %v4235_v9 = vld [vmem:[#allocation2 + $0x10] sm:$0x3]  ;;  %v13793_v7 = vld [vmem:[#allocation2 + $0x28] sm:$0x3] }
 0x3e3   : > { %5518 = vst.msk [vmem:[#allocation2 + $0x10] sm:$0x3] %vm1000_vm1, %v15590_v57  ;;  %5521 = vst.msk [vmem:[#allocation2 + $0x28] sm:$0x3] %vm1000_vm1, %v15590_v57 }
 0x3e4   : > { %6802 = vst.msk [vmem:[#allocation2 + $0x10] sm:$0x3] %vm1000_vm1, %v15590_v57 }
 0x3e5   : > { %9918 = vmatmul.mubr.msk.f32.vlgmr.msra.gmra.mrb[24].mxu1 %vm706_vm0, %v15648_v17  ;;  %v15709_v17 = vld [vmem:[#allocation30_spill] sm:$0xff] }
 0x3e6   : > { %10468 = vmatpush3.bf16.msra.mxu1 %v10465_v26  ;;  %9920 = vmatprep.mubr.msk.f32.mxu1 %vm706_vm0, %v15652_v58  ;;  %v3407_v58 = vrot.slane %v15709_v17, 1  ;;  %v5570_v26 = vld [vmem:[#allocation2 + $0x18] sm:$0xff]  ;;  %v13807_v17 = vld [vmem:[#allocation2 + $0x40] sm:$0x3] }
 0x3e7   : > { %10470 = vmatprep.subr.bf16.mxu1 %v10469_v63  ;;  %v5616_v56 = vrot.slane %v5570_v26, 7  ;;  %6803 = vst.msk [vmem:[#allocation2 + $0x18] sm:$0xff] %vm706_vm0, %v15590_v57  ;;  %v13897_v26 = vld [vmem:[#allocation2 + $0xd8] sm:$0xff] }
 0x3e8   : > { %5524 = vst.msk [vmem:[#allocation2 + $0x40] sm:$0x3] %vm1000_vm1, %v15590_v57  ;;  %15720 = vst [vmem:[#allocation51_spill] sm:$0xff] %v13897_v26 }
 0x3e9   : > { %9921 = vmatmul.mubr.msk.f32.gmra.mrb[26].mxu1 %vm706_vm0, %v15653_v34  ;;  %6827 = vst.msk [vmem:[#allocation2 + $0xd8] sm:$0xff] %vm706_vm0, %v15590_v57 }
 0x3ea   : > { %9923 = vmatprep.mubr.msk.f32.mxu1 %vm706_vm0, %v15658_v43  ;;  %v4314_v43 = vld [vmem:[#allocation14 + $0x18] sm:$0xff] }
 0x3ed   : > { %9924 = vmatmul.mubr.msk.f32.gmra.mrb[28].mxu1 %vm706_vm0, %v15660_v32 }
 0x3ee   : > { %9926 = vmatprep.mubr.msk.f32.mxu1 %vm706_vm0, %v13591_v61  ;;  %v13720_v61 = vld [vmem:[#allocation2 + $0x20] sm:$0xff] }
 0x3ef   : > { %v4290_v3 = vrot.slane %v13720_v61, 6  ;;  %5520 = vst.msk [vmem:[#allocation2 + $0x20] sm:$0xff] %vm706_vm0, %v15590_v57  ;;  %v13853_v10 = vld [vmem:[#allocation2 + $0x40] sm:$0x3] }
 0x3f0   : > { %6808 = vst.msk [vmem:[#allocation2 + $0x40] sm:$0x3] %vm1000_vm1, %v15590_v57 }
 0x3f1   : > { %9927 = vmatmul.mubr.msk.f32.gmra.mrb[30].mxu1 %vm706_vm0, %v3168_v2 }
 0x3f2   : > { %9933 = vmatprep.mubr.msk.f32.mxu1 %vm706_vm0, %v15701_v40  ;;  %v13731_v40 = vld [vmem:[#allocation2 + $0x30] sm:$0xff] }
 0x3f3   : > { %5522 = vst.msk [vmem:[#allocation2 + $0x30] sm:$0xff] %vm706_vm0, %v15590_v57 }
 0x3f5   : > { %9934 = vmatmul.mubr.msk.f32.vlgmr.msra.gmra.mrb[24].mxu1 %vm706_vm0, %v15702_v31  ;;  %v13733_v31 = vld [vmem:[#allocation2 + $0x48] sm:$0xff] }
 0x3f6   : > { %10472 = vmatpush3.bf16.msra.mxu1 %v10469_v63  ;;  %9936 = vmatprep.mubr.msk.f32.mxu1 %vm706_vm0, %v15703_v59  ;;  %5525 = vst.msk [vmem:[#allocation2 + $0x48] sm:$0xff] %vm706_vm0, %v15590_v57  ;;  %v13752_v59 = vsel %vm4285_vm8, %v4289_v22, %v4290_v3  ;;  %v13760_v6 = vld [vmem:[#allocation2 + $0x20] sm:$0xff]  ;;  %v13889_v22 = vld [vmem:[#allocation2 + $0xe8] sm:$0x3] }
 0x3f7   : > { %v5617_v41 = vrot.slane %v13760_v6, 7  ;;  %6804 = vst.msk [vmem:[#allocation2 + $0x20] sm:$0xff] %vm706_vm0, %v15590_v57  ;;  %15718 = vst [vmem:[#allocation42_spill] sm:$0xff] %v13889_v22 }
 0x3f8   : > { %5545 = vst.msk [vmem:[#allocation2 + $0xe8] sm:$0x3] %vm1000_vm1, %v15590_v57 }
 0x3f9   : > { %9937 = vmatmul.mubr.msk.f32.gmra.mrb[26].mxu1 %vm706_vm0, %v15704_v25  ;;  %v13756_v25 = vld [vmem:[#allocation2 + $0x78] sm:$0xff]  ;;  %v13781_v4 = vsel %vm1090_vm2, %v5616_v56, %v5617_v41 }
 0x3fa   : > { %9939 = vmatprep.mubr.msk.f32.mxu1 %vm706_vm0, %v15705_v55  ;;  %5531 = vst.msk [vmem:[#allocation2 + $0x78] sm:$0xff] %vm706_vm0, %v15590_v57  ;;  %v13762_v55 = vld [vmem:[#allocation2 + $0x90] sm:$0xff] }
 0x3fb   : > { %5534 = vst.msk [vmem:[#allocation2 + $0x90] sm:$0xff] %vm706_vm0, %v15590_v57  ;;  %v13778_v52 = vld [vmem:[#allocation2 + $0x30] sm:$0xff] }
 0x3fc   : > { %6806 = vst.msk [vmem:[#allocation2 + $0x30] sm:$0xff] %vm706_vm0, %v15590_v57 }
 0x3fd   : > { %9940 = vmatmul.mubr.msk.f32.gmra.mrb[28].mxu1 %vm706_vm0, %v12928_v14  ;;  %v3406_v14 = vrot.slane %v15708_v30, 1  ;;  %v13787_v42 = vld [vmem:[#allocation2 + $0x48] sm:$0xff] }
 0x3fe   : > { %9942 = vmatprep.mubr.msk.f32.mxu1 %vm706_vm0, %v15687_v62  ;;  %6809 = vst.msk [vmem:[#allocation2 + $0x48] sm:$0xff] %vm706_vm0, %v15590_v57 }
 0x3ff   : > { %v13899_v56 = vld [vmem:[#allocation2 + $0xe8] sm:$0x3] }
 0x400   : > { %15721 = vst [vmem:[#allocation48_spill] sm:$0xff] %v13899_v56  ;;  %6829 = vst.msk [vmem:[#allocation2 + $0xe8] sm:$0x3] %vm1000_vm1, %v15590_v57 }
 0x401   : > { %9943 = vmatmul.mubr.msk.f32.gmra.mrb[30].mxu1 %vm706_vm0, %v15708_v30  ;;  %v4566_v30 = vrot.slane %v4235_v9, 2  ;;  %v13915_v9 = vld [vmem:[#allocation2 + $0x110] sm:$0xff] }
 0x402   : > { %9949 = vmatprep.mubr.msk.f32.mxu1 %vm706_vm0, %v12888_v38  ;;  %v3408_v38 = vsel %vm1370_vm3, %v3406_v14, %v3407_v58  ;;  %v13805_v14 = vld [vmem:[#allocation2 + $0x60] sm:$0xff]  ;;  %v13813_v58 = vld [vmem:[#allocation2 + $0x78] sm:$0xff]  ;;  %15725 = vst [vmem:[#allocation40_spill] sm:$0xff] %v13915_v9  ;;  %5550 = vst.msk [vmem:[#allocation2 + $0x110] sm:$0xff] %vm706_vm0, %v15590_v57 }
 0x403   : > { %6812 = vst.msk [vmem:[#allocation2 + $0x60] sm:$0xff] %vm706_vm0, %v15590_v57  ;;  %6815 = vst.msk [vmem:[#allocation2 + $0x78] sm:$0xff] %vm706_vm0, %v15590_v57 }
 0x404   : > { %6834 = vst.msk [vmem:[#allocation2 + $0x110] sm:$0xff] %vm706_vm0, %v15590_v57 }
 0x405   : > { %9950 = vmatmul.mubr.msk.f32.vlgmr.msra.gmra.mrb[24].mxu1 %vm706_vm0, %v13003_v51  ;;  %v5644_v51 = vld [vmem:[#allocation15 + $0x18] sm:$0xff] }
 0x406   : > { %9952 = vmatprep.mubr.msk.f32.mxu1 %vm706_vm0, %v12985_v0  ;;  %v5643_v0 = vld [vmem:[#allocation15 + $0x10] sm:$0xff] }
 0x407   : > { %v10509_v34 = vpack.c.bf16 %v5644_v51, %v5643_v0  ;;  %v13821_v0 = vld [vmem:[#allocation2 + $0x90] sm:$0xff] }
 0x408   : > { %v13823_v51 = vld [vmem:[#allocation2 + $0x70] sm:$0x3]  ;;  %6818 = vst.msk [vmem:[#allocation2 + $0x90] sm:$0xff] %vm706_vm0, %v15590_v57 }
 0x409   : > { %9953 = vmatmul.mubr.msk.f32.gmra.mrb[26].mxu1 %vm706_vm0, %v13033_v13  ;;  %v4313_v13 = vld [vmem:[#allocation14 + $0x10] sm:$0xff]  ;;  %10510 = vmatprep.subr.bf16.mxu1 %v10509_v34  ;;  %5530 = vst.msk [vmem:[#allocation2 + $0x70] sm:$0x3] %vm1000_vm1, %v15590_v57 }
 0x40a   : > { %9955 = vmatprep.mubr.msk.f32.mxu1 %vm706_vm0, %v13053_v48  ;;  %v10473_v32 = vpack.c.bf16 %v4314_v43, %v4313_v13  ;;  %10512 = vmatpush3.bf16.msra.mxu1 %v10509_v34  ;;  %v13709_v48 = vld [vmem:[#allocation2 + $0x8] sm:$0xff]  ;;  %v13837_v43 = vld [vmem:[#allocation2 + $0xc0] sm:$0xff] }
 0x40b   : > { %9965 = vmatprep.mubr.msk.f32.mxu0 %vm706_vm0, %v13709_v48  ;;  %5517 = vst.msk [vmem:[#allocation2 + $0x8] sm:$0xff] %vm706_vm0, %v15590_v57  ;;  %v4287_v62 = vrot.slane %v13709_v48, 6  ;;  %10514 = vmatprep.subr.bf16.mxu1 %v13727_v8  ;;  %v4565_v47 = vrot.slane %v13709_v48, 2  ;;  %v13829_v34 = vld [vmem:[#allocation2 + $0xa8] sm:$0xff]  ;;  %15711 = vst [vmem:[#allocation46_spill] sm:$0xff] %v13837_v43 }
 0x40c   : > { %10474 = vmatprep.subr.bf16.mxu0 %v10473_v32  ;;  %6801 = vst.msk [vmem:[#allocation2 + $0x8] sm:$0xff] %vm706_vm0, %v15590_v57  ;;  %v13831_v13 = vld [vmem:[#allocation2 + $0x88] sm:$0x3]  ;;  %6821 = vst.msk [vmem:[#allocation2 + $0xa8] sm:$0xff] %vm706_vm0, %v15590_v57 }
 0x40d   : > { %9956 = vmatmul.mubr.msk.f32.gmra.mrb[28].mxu1 %vm706_vm0, %v13291_v27  ;;  %10476 = vmatpush3.bf16.msra.mxu0 %v10473_v32  ;;  %v15710_v27 = vmov -3.4028235e+38   ;;  %v13745_v11 = vsel %vm4285_vm8, %v4286_v50, %v4287_v62  ;;  %v13801_v2 = vsel %vm3672_vm4, %v4565_v47, %v4566_v30  ;;  %5533 = vst.msk [vmem:[#allocation2 + $0x88] sm:$0x3] %vm1000_vm1, %v15590_v57  ;;  %v13839_v32 = vld [vmem:[#allocation2 + $0xa0] sm:$0x3] }
 0x40e   : > { %9958 = vmatprep.mubr.msk.f32.mxu1 %vm706_vm0, %v3045_v37  ;;  %8067 = vst.msk [vmem:[#allocation2 + $0x8] sm:$0xff] %vm706_vm0, %v15710_v27  ;;  %10478 = vmatprep.subr.bf16.mxu0 %v10477_v15  ;;  %8066 = vst.msk [vmem:[#allocation2] sm:$0xff] %vm706_vm0, %v15710_v27  ;;  %v4591_v37 = vld [vmem:[#allocation14 + $0x28] sm:$0xff]  ;;  %v13849_v62 = vld [vmem:[#allocation2 + $0xb8] sm:$0x3] }
 0x40f   : > { %v13783_v63 = vpack.c.bf16 %v4591_v37, %v4590_v54  ;;  %8068 = vst.msk [vmem:[#allocation2 + $0x10] sm:$0x3] %vm1000_vm1, %v15710_v27  ;;  %5536 = vst.msk [vmem:[#allocation2 + $0xa0] sm:$0x3] %vm1000_vm1, %v15590_v57  ;;  %v13845_v48 = vld [vmem:[#allocation2 + $0x28] sm:$0x3] }
 0x410   : > { %9966 = vmatmul.mubr.msk.f32.vlgmr.msra.gmra.mrb[8].mxu0 %vm706_vm0, %v13720_v61  ;;  %5540 = vst.msk [vmem:[#allocation2 + $0xc0] sm:$0xff] %vm706_vm0, %v15590_v57  ;;  %v13863_v1 = vld [vmem:[#allocation2 + $0x70] sm:$0x3]  ;;  %v13907_v54 = vld [vmem:[#allocation2 + $0xf8] sm:$0xff]  ;;  %v13913_v37 = vld [vmem:[#allocation2 + $0x108] sm:$0xff] }
 0x411   : > { %9959 = vmatmul.mubr.msk.f32.gmra.mrb[30].mxu1 %vm706_vm0, %v3408_v38  ;;  %10480 = vmatpush3.bf16.msra.mxu0 %v10477_v15  ;;  %v13815_v38 = vld [vmem:[#allocation2 + $0x58] sm:$0x3]  ;;  %6805 = vst.msk [vmem:[#allocation2 + $0x28] sm:$0x3] %vm1000_vm1, %v15590_v57  ;;  %5539 = vst.msk [vmem:[#allocation2 + $0xb8] sm:$0x3] %vm1000_vm1, %v15590_v57 }
 0x412   : > { %10109 = vmatprep.mubr.msk.f32.mxu1 %vm706_vm0, %v13760_v6  ;;  %10482 = vmatprep.subr.bf16.mxu0 %v13783_v63  ;;  %5527 = vst.msk [vmem:[#allocation2 + $0x58] sm:$0x3] %vm1000_vm1, %v15590_v57  ;;  %15712 = vst [vmem:[#allocation86_spill] sm:$0xff] %v13863_v1  ;;  %v13881_v50 = vld [vmem:[#allocation2 + $0xd0] sm:$0x3] }
 0x413   : > { %6814 = vst.msk [vmem:[#allocation2 + $0x70] sm:$0x3] %vm1000_vm1, %v15590_v57  ;;  %15716 = vst [vmem:[#allocation84_spill] sm:$0xff] %v13881_v50  ;;  %v13905_v47 = vld [vmem:[#allocation2 + $0xf0] sm:$0xff]  ;;  %v8943_v30 = vld [vmem:[%s15726_s18] ss:$0 sm:$0xff] }
 0x414   : > { %v13869_v18 = vld [vmem:[#allocation2 + $0x88] sm:$0x3]  ;;  %5542 = vst.msk [vmem:[#allocation2 + $0xd0] sm:$0x3] %vm1000_vm1, %v15590_v57  ;;  %15722 = vst [vmem:[#allocation39_spill] sm:$0xff] %v13905_v47  ;;  %v15727_v47 = vld [vmem:[#allocation68_spill] sm:$0xff] }
 0x415   : > { %15713 = vst [vmem:[#allocation90_spill] sm:$0xff] %v13869_v18  ;;  %6817 = vst.msk [vmem:[#allocation2 + $0x88] sm:$0x3] %vm1000_vm1, %v15590_v57  ;;  %v15729_v50 = vld [vmem:[#allocation69_spill] sm:$0xff]  ;;  %s11291_s18 = scalar_lea.vmem %s15268_s9, 1024 }
 0x416   : > { %v13873_v36 = vld [vmem:[#allocation2 + $0xa0] sm:$0x3]  ;;  %15723 = vst [vmem:[#allocation88_spill] sm:$0xff] %v13907_v54  ;;  %5546 = vst.msk [vmem:[#allocation2 + $0xf0] sm:$0xff] %vm706_vm0, %v15590_v57  ;;  %p11292_p6 = scmp.ne.s32.totalorder %s15268_s9, %s11291_s18 }
 0x417   : > { %v13861_v3 = vld [vmem:[#allocation2 + $0xc0] sm:$0xff]  ;;  %15714 = vst [vmem:[#allocation83_spill] sm:$0xff] %v13873_v36  ;;  %6820 = vst.msk [vmem:[#allocation2 + $0xa0] sm:$0x3] %vm1000_vm1, %v15590_v57 }
 0x418   : > { %6824 = vst.msk [vmem:[#allocation2 + $0xc0] sm:$0xff] %vm706_vm0, %v15590_v57  ;;  %v13877_v15 = vld [vmem:[#allocation2 + $0xb8] sm:$0x3]  ;;  %5547 = vst.msk [vmem:[#allocation2 + $0xf8] sm:$0xff] %vm706_vm0, %v15590_v57  ;;  %p11293_p5 = pnand %p11292_p6, %p15787_p10 }
 0x419   : > { %v13857_v29 = vld [vmem:[#allocation2 + $0x58] sm:$0x3]  ;;  %15715 = vst [vmem:[#allocation87_spill] sm:$0xff] %v13877_v15  ;;  %6823 = vst.msk [vmem:[#allocation2 + $0xb8] sm:$0x3] %vm1000_vm1, %v15590_v57 }
 0x41a   : > { %6811 = vst.msk [vmem:[#allocation2 + $0x58] sm:$0x3] %vm1000_vm1, %v15590_v57  ;;  %15724 = vst [vmem:[#allocation52_spill] sm:$0xff] %v13913_v37  ;;  %p11294_p9 = pneg %p11293_p5 }
 0x41b   : > { %v13893_v41 = vld [vmem:[#allocation2 + $0xd0] sm:$0x3]  ;;  %5549 = vst.msk [vmem:[#allocation2 + $0x108] sm:$0xff] %vm706_vm0, %v15590_v57  ;;  %8100 = vst.msk [vmem:[#allocation2 + $0x110] sm:$0xff] %vm706_vm0, %v15710_v27 }
 0x41c   : > { %15719 = vst [vmem:[#allocation89_spill] sm:$0xff] %v13893_v41  ;;  %6826 = vst.msk [vmem:[#allocation2 + $0xd0] sm:$0x3] %vm1000_vm1, %v15590_v57 }
 0x41d   : > { %6833 = vst.msk [vmem:[#allocation2 + $0x108] sm:$0xff] %vm706_vm0, %v15590_v57  ;;  %v13939_v36 = vld [vmem:[#allocation2 + $0xf0] sm:$0xff] }
 0x41e   : > { %8099 = vst.msk [vmem:[#allocation2 + $0x108] sm:$0xff] %vm706_vm0, %v15710_v27  ;;  %15731 = vst [vmem:[#allocation50_spill] sm:$0xff] %v13939_v36  ;;  %v15737_v36 = vld [vmem:[#allocation72_spill] sm:$0xff] }
 0x41f   : > { %v13941_v18 = vld [vmem:[#allocation2 + $0xf8] sm:$0xff]  ;;  %6830 = vst.msk [vmem:[#allocation2 + $0xf0] sm:$0xff] %vm706_vm0, %v15590_v57 }
 0x420   : > { %15732 = vst [vmem:[#allocation55_spill] sm:$0xff] %v13941_v18  ;;  %6831 = vst.msk [vmem:[#allocation2 + $0xf8] sm:$0xff] %vm706_vm0, %v15590_v57 }
 0x4d8   : > { %v9951_v9 = vpop.f32.mrb[24].mxu1 }
 0x4d9   : > { %v3535_v37 = vadd.f32 %v9951_v9, %v8943_v30  ;;  %v3480_v56 = vpop.f32.mrb[25].mxu1 }
 0x4da   : > { %v3534_v54 = vadd.f32 %v8943_v30, %v3480_v56  ;;  %v15733_v56 = vld [vmem:[#allocation70_spill] sm:$0xff] }
 0x4db   : > { %v13933_v22 = vadd.f32 %v3535_v37, %v15727_v47 }
 0x4dc   : > { %v13936_v26 = vadd.f32 %v3534_v54, %v15729_v50  ;;  %v9954_v39 = vpop.f32.mrb[26].mxu1 }
 0x4dd   : > { %15728 = vst [vmem:[#allocation49_spill] sm:$0xff] %v13933_v22  ;;  %v4182_v43 = vmax.f32 %v13933_v22, 0.0  ;;  %v3537_v41 = vadd.f32 %v9954_v39, %v8943_v30  ;;  %v3490_v15 = vpop.f32.mrb[27].mxu1  ;;  %v15735_v39 = vld [vmem:[#allocation71_spill] sm:$0xff] }
 0x4de   : > { %15730 = vst [vmem:[#allocation43_spill] sm:$0xff] %v13936_v26  ;;  %v4181_v1 = vmax.f32 %v13936_v26, 0.0  ;;  %v3536_v9 = vadd.f32 %v8943_v30, %v3490_v15 }
 0x4df   : > { %4226 = vst.msk [vmem:[#allocation2 + $0x50] sm:$0xff] %vm706_vm0, %v4182_v43  ;;  %v13950_v54 = vadd.f32 %v3537_v41, %v15733_v56  ;;  %v15739_v41 = vld [vmem:[#allocation73_spill] sm:$0xff] }
 0x4e0   : > { %4225 = vst.msk [vmem:[#allocation2 + $0x38] sm:$0xff] %vm706_vm0, %v4181_v1  ;;  %v13954_v37 = vadd.f32 %v3536_v9, %v15735_v39  ;;  %v9957_v22 = vpop.f32.mrb[28].mxu1 }
 0x4e1   : > { %15734 = vst [vmem:[#allocation92_spill] sm:$0xff] %v13950_v54  ;;  %v4184_v26 = vmax.f32 %v13950_v54, 0.0  ;;  %v3539_v15 = vadd.f32 %v9957_v22, %v8943_v30  ;;  %v3500_v50 = vpop.f32.mrb[29].mxu1  ;;  %v5503_v22 = vmax.f32 %v13342_v21, 0.0  ;;  %v15743_v21 = vld [vmem:[#allocation75_spill] sm:$0xff] }
 0x4e2   : > { %15736 = vst [vmem:[#allocation56_spill] sm:$0xff] %v13954_v37  ;;  %v4183_v47 = vmax.f32 %v13954_v37, 0.0  ;;  %v3538_v18 = vadd.f32 %v8943_v30, %v3500_v50  ;;  %v5502_v50 = vmax.f32 %v13377_v23, 0.0 }
 0x4e3   : > { %4228 = vst.msk [vmem:[#allocation2 + $0x80] sm:$0xff] %vm706_vm0, %v4184_v26  ;;  %v13960_v43 = vadd.f32 %v3539_v15, %v15737_v36 }
 0x4e4   : > { %4227 = vst.msk [vmem:[#allocation2 + $0x68] sm:$0xff] %vm706_vm0, %v4183_v47  ;;  %v13964_v1 = vadd.f32 %v3538_v18, %v15739_v41  ;;  %v9960_v9 = vpop.f32.mrb[30].mxu1  ;;  %v5501_v47 = vmax.f32 %v13224_v16, 0.0  ;;  %v15740_v18 = vld [vmem:[#allocation45_spill] sm:$0xff] }
 0x4e5   : > { %15738 = vst [vmem:[#allocation44_spill] sm:$0xff] %v13960_v43  ;;  %v4186_v39 = vmax.f32 %v13960_v43, 0.0  ;;  %v3541_v56 = vadd.f32 %v9960_v9, %v8943_v30  ;;  %v3510_v54 = vpop.f32.mrb[31].mxu1  ;;  %v5500_v41 = vmax.f32 %v15740_v18, 0.0  ;;  %v15741_v43 = vld [vmem:[#allocation74_spill] sm:$0xff]  ;;  %v5509_v18 = vmax.f32 %v13485_v5, 0.0 }
 0x4e6   : > { %v4185_v26 = vmax.f32 %v13964_v1, 0.0  ;;  %v3540_v15 = vadd.f32 %v8943_v30, %v3510_v54  ;;  %v13970_v37 = vld [vmem:[#allocation2 + $0x50] sm:$0xff]  ;;  %v5507_v30 = vmax.f32 %v13435_v46, 0.0  ;;  %v5511_v46 = vmax.f32 %v13545_v35, 0.0 }
 0x4e7   : > { %4230 = vst.msk [vmem:[#allocation2 + $0xb0] sm:$0xff] %vm706_vm0, %v4186_v39  ;;  %v13976_v9 = vadd.f32 %v3541_v56, %v15741_v43  ;;  %v13978_v36 = vld [vmem:[#allocation2 + $0x38] sm:$0xff]  ;;  %5526 = vst.msk [vmem:[#allocation2 + $0x50] sm:$0xff] %vm706_vm0, %v15590_v57  ;;  %v5506_v56 = vmax.f32 %v13456_v60, 0.0  ;;  %v5510_v60 = vmax.f32 %v13568_v28, 0.0 }
 0x4e8   : > { %4229 = vst.msk [vmem:[#allocation2 + $0x98] sm:$0xff] %vm706_vm0, %v4185_v26  ;;  %v13984_v23 = vadd.f32 %v3540_v15, %v15743_v21  ;;  %9968 = vmatprep.mubr.msk.f32.mxu0 %vm706_vm0, %v13978_v36  ;;  %5523 = vst.msk [vmem:[#allocation2 + $0x38] sm:$0xff] %vm706_vm0, %v15590_v57  ;;  %v14024_v15 = vld [vmem:[#allocation2 + $0x100] sm:$0x3]  ;;  %v4293_v28 = vrot.slane %v13978_v36, 6 }
 0x4e9   : > { %15742 = vst [vmem:[#allocation53_spill] sm:$0xff] %v13976_v9  ;;  %5556 = vst.msk [vmem:[#allocation2 + $0x49] sm:$0x80] %vm5552_vm9, %v5502_v50  ;;  %v4188_v16 = vmax.f32 %v13976_v9, 0.0  ;;  %9969 = vmatmul.mubr.msk.f32.gmra.mrb[10].mxu0 %vm706_vm0, %v13970_v37  ;;  %v5505_v50 = vmax.f32 %v13286_v24, 0.0  ;;  %v5920_v24 = vld [vmem:[#allocation15 + $0x20] sm:$0xff] }
 0x4ea   : > { %15744 = vst [vmem:[#allocation59_spill] sm:$0xff] %v13984_v23  ;;  %5557 = vst.msk [vmem:[#allocation2 + $0x51] sm:$0x7f] %vm5554_vm10, %v5503_v22  ;;  %v4187_v54 = vmax.f32 %v13984_v23, 0.0  ;;  %v14000_v39 = vld [vmem:[#allocation2 + $0x80] sm:$0xff]  ;;  %v5504_v22 = vmax.f32 %v13317_v53, 0.0 }
 0x4eb   : > { %5553 = vst.msk [vmem:[#allocation2 + $0x31] sm:$0x80] %vm5552_vm9, %v5500_v41  ;;  %v14005_v41 = vld [vmem:[#allocation2 + $0x68] sm:$0xff]  ;;  %v5921_v53 = vld [vmem:[#allocation15 + $0x28] sm:$0xff]  ;;  %v4569_v23 = vrot.slane %v13793_v7, 2  ;;  %v5625_v9 = vrot.slane %v13805_v14, 7 }
 0x4ec   : > { %5555 = vst.msk [vmem:[#allocation2 + $0x39] sm:$0x7f] %vm5554_vm10, %v5501_v47  ;;  %9971 = vmatprep.mubr.msk.f32.mxu0 %vm706_vm0, %v14005_v41  ;;  %v14026_v47 = vld [vmem:[#allocation2 + $0x118] sm:$0x3]  ;;  %v4571_v7 = vrot.slane %v13978_v36, 2  ;;  %v5628_v14 = vrot.slane %v13813_v58, 7 }
 0x4ed   : > { %4232 = vst.msk [vmem:[#allocation2 + $0xe0] sm:$0xff] %vm706_vm0, %v4188_v16  ;;  %5532 = vst.msk [vmem:[#allocation2 + $0x80] sm:$0xff] %vm706_vm0, %v15590_v57  ;;  %9972 = vmatmul.mubr.msk.f32.gmra.mrb[12].mxu0 %vm706_vm0, %v14000_v39  ;;  %v5508_v16 = vmax.f32 %v13516_v20, 0.0  ;;  %v4292_v20 = vrot.slane %v13731_v40, 6  ;;  %v5513_v40 = vmax.f32 %v13584_v44, 0.0  ;;  %v4295_v44 = vrot.slane %v13733_v31, 6 }
 0x4ee   : > { %4231 = vst.msk [vmem:[#allocation2 + $0xc8] sm:$0xff] %vm706_vm0, %v4187_v54  ;;  %5529 = vst.msk [vmem:[#allocation2 + $0x68] sm:$0xff] %vm706_vm0, %v15590_v57  ;;  %v14022_v26 = vld [vmem:[#allocation2 + $0xb0] sm:$0xff]  ;;  %v4298_v31 = vrot.slane %v13749_v12, 6  ;;  %v4301_v12 = vrot.slane %v13756_v25, 6  ;;  %v4578_v58 = vrot.slane %v13823_v51, 2 }
 0x4ef   : > { %5560 = vst.msk [vmem:[#allocation2 + $0x79] sm:$0x80] %vm5552_vm9, %v5506_v56  ;;  %5558 = vst.msk [vmem:[#allocation2 + $0x61] sm:$0x80] %vm5552_vm9, %v5504_v22  ;;  %v14030_v35 = vld [vmem:[#allocation2 + $0x98] sm:$0xff]  ;;  %v14036_v56 = vpack.c.bf16 %v5921_v53, %v5920_v24  ;;  %v4732_v54 = vld [vmem:[#allocation14 + $0x30] sm:$0xff] }
 0x4f0   : > { %5561 = vst.msk [vmem:[#allocation2 + $0x81] sm:$0x7f] %vm5554_vm10, %v5507_v30  ;;  %5559 = vst.msk [vmem:[#allocation2 + $0x69] sm:$0x7f] %vm5554_vm10, %v5505_v50  ;;  %9974 = vmatprep.mubr.msk.f32.mxu0 %vm706_vm0, %v14030_v35  ;;  %v4733_v50 = vld [vmem:[#allocation14 + $0x38] sm:$0xff]  ;;  %v5515_v22 = vmax.f32 %v13615_v33, 0.0 }
 0x4f1   : > { %5538 = vst.msk [vmem:[#allocation2 + $0xb0] sm:$0xff] %vm706_vm0, %v15590_v57  ;;  %v14034_v30 = vld [vmem:[#allocation2 + $0x50] sm:$0xff]  ;;  %5535 = vst.msk [vmem:[#allocation2 + $0x98] sm:$0xff] %vm706_vm0, %v15590_v57  ;;  %9975 = vmatmul.mubr.msk.f32.gmra.mrb[14].mxu0 %vm706_vm0, %v14022_v26  ;;  %v5514_v24 = vmax.f32 %v13623_v19, 0.0  ;;  %v14092_v19 = vpack.c.bf16 %v4733_v50, %v4732_v54  ;;  %v4305_v25 = vrot.slane %v14030_v35, 6 }
 0x4f2   : > { %5548 = vst.msk [vmem:[#allocation2 + $0x100] sm:$0x3] %vm1000_vm1, %v15590_v57  ;;  %5551 = vst.msk [vmem:[#allocation2 + $0x118] sm:$0x3] %vm1000_vm1, %v15590_v57  ;;  %9981 = vmatprep.mubr.msk.f32.mxu0 %vm706_vm0, %v13745_v11  ;;  %v4299_v11 = vrot.slane %v14005_v41, 6 }
 0x4f3   : > { %5564 = vst.msk [vmem:[#allocation2 + $0xa9] sm:$0x80] %vm5552_vm9, %v5510_v60  ;;  %v14048_v5 = vld [vmem:[#allocation2 + $0x38] sm:$0xff]  ;;  %5562 = vst.msk [vmem:[#allocation2 + $0x91] sm:$0x80] %vm5552_vm9, %v5508_v16 }
 0x4f4   : > { %5565 = vst.msk [vmem:[#allocation2 + $0xb1] sm:$0x7f] %vm5554_vm10, %v5511_v46  ;;  %5563 = vst.msk [vmem:[#allocation2 + $0x99] sm:$0x7f] %vm5554_vm10, %v5509_v18  ;;  %10110 = vmatmul.mubr.msk.f32.vlgmr.msra.gmra.mrb[32].mxu1 %vm706_vm0, %v14048_v5  ;;  %v14071_v53 = vld [vmem:[#allocation2 + $0xe0] sm:$0xff]  ;;  %v5512_v46 = vmax.f32 %v13605_v49, 0.0 }
 0x4f5   : > { %6810 = vst.msk [vmem:[#allocation2 + $0x50] sm:$0xff] %vm706_vm0, %v15590_v57  ;;  %6807 = vst.msk [vmem:[#allocation2 + $0x38] sm:$0xff] %vm706_vm0, %v15590_v57  ;;  %10516 = vmatpush3.bf16.msra.mxu1 %v13727_v8  ;;  %10112 = vmatprep.mubr.msk.f32.mxu1 %vm706_vm0, %v14034_v30  ;;  %v14075_v60 = vld [vmem:[#allocation2 + $0xc8] sm:$0xff]  ;;  %v4296_v49 = vrot.slane %v13970_v37, 6  ;;  %v14105_v8 = vsel %vm4285_vm8, %v4292_v20, %v4293_v28  ;;  %v4302_v20 = vrot.slane %v14000_v39, 6  ;;  %v4304_v28 = vrot.slane %v13762_v55, 6 }
 0x4f6   : > { %6835 = vst.msk [vmem:[#allocation2 + $0x118] sm:$0x3] %vm1000_vm1, %v15590_v57  ;;  %10518 = vmatprep.subr.bf16.mxu1 %v14036_v56  ;;  %9982 = vmatmul.mubr.msk.f32.vlgmr.msra.gmra.mrb[8].mxu0 %vm706_vm0, %v13752_v59 }
 0x4f7   : > { %8101 = vst.msk [vmem:[#allocation2 + $0x118] sm:$0x3] %vm1000_vm1, %v15710_v27  ;;  %v14079_v18 = vld [vmem:[#allocation2 + $0x80] sm:$0xff]  ;;  %v14086_v33 = vld [vmem:[#allocation2 + $0x68] sm:$0xff]  ;;  %9984 = vmatprep.mubr.msk.f32.mxu0 %vm706_vm0, %v14105_v8  ;;  %10484 = vmatpush3.bf16.msra.mxu0 %v13783_v63  ;;  %v14117_v16 = vsel %vm4285_vm8, %v4295_v44, %v4296_v49  ;;  %v14133_v63 = vsel %vm4285_vm8, %v4298_v31, %v4299_v11  ;;  %v5619_v44 = vrot.slane %v13778_v52, 7  ;;  %v5620_v49 = vrot.slane %v14048_v5, 7 }
 0x4f8   : > { %5544 = vst.msk [vmem:[#allocation2 + $0xe0] sm:$0xff] %vm706_vm0, %v15590_v57  ;;  %5541 = vst.msk [vmem:[#allocation2 + $0xc8] sm:$0xff] %vm706_vm0, %v15590_v57  ;;  %10113 = vmatmul.mubr.msk.f32.gmra.mrb[34].mxu1 %vm706_vm0, %v14086_v33  ;;  %10486 = vmatprep.subr.bf16.mxu0 %v14092_v19  ;;  %v6057_v31 = vld [vmem:[#allocation15 + $0x30] sm:$0xff]  ;;  %v6058_v11 = vld [vmem:[#allocation15 + $0x38] sm:$0xff]  ;;  %v5622_v52 = vrot.slane %v13787_v42, 7 }
 0x4f9   : > { %6816 = vst.msk [vmem:[#allocation2 + $0x80] sm:$0xff] %vm706_vm0, %v15590_v57  ;;  %6813 = vst.msk [vmem:[#allocation2 + $0x68] sm:$0xff] %vm706_vm0, %v15590_v57  ;;  %10115 = vmatprep.mubr.msk.f32.mxu1 %vm706_vm0, %v14079_v18  ;;  %v14141_v50 = vld [vmem:[#allocation2 + $0x100] sm:$0x3]  ;;  %v14182_v42 = vsel %vm1090_vm2, %v5619_v44, %v5620_v49  ;;  %v4853_v44 = vld [vmem:[#allocation14 + $0x48] sm:$0xff]  ;;  %v4575_v49 = vrot.slane %v13815_v38, 2 }
 0x4fa   : > { %5568 = vst.msk [vmem:[#allocation2 + $0xd9] sm:$0x80] %vm5552_vm9, %v5514_v24  ;;  %5566 = vst.msk [vmem:[#allocation2 + $0xc1] sm:$0x80] %vm5552_vm9, %v5512_v46  ;;  %9985 = vmatmul.mubr.msk.f32.gmra.mrb[10].mxu0 %vm706_vm0, %v14117_v16  ;;  %v4308_v46 = vrot.slane %v14022_v26, 6 }
 0x4fb   : > { %5569 = vst.msk [vmem:[#allocation2 + $0xe1] sm:$0x7f] %vm5554_vm10, %v5515_v22  ;;  %5567 = vst.msk [vmem:[#allocation2 + $0xc9] sm:$0x7f] %vm5554_vm10, %v5513_v40  ;;  %v14113_v59 = vld [vmem:[#allocation2 + $0xb0] sm:$0xff]  ;;  %v14119_v54 = vld [vmem:[#allocation2 + $0x98] sm:$0xff]  ;;  %9987 = vmatprep.mubr.msk.f32.mxu0 %vm706_vm0, %v14133_v63  ;;  %v14149_v40 = vsel %vm4285_vm8, %v4301_v12, %v4302_v20 }
 0x4fc   : > { %6822 = vst.msk [vmem:[#allocation2 + $0xb0] sm:$0xff] %vm706_vm0, %v15590_v57  ;;  %10116 = vmatmul.mubr.msk.f32.gmra.mrb[36].mxu1 %vm706_vm0, %v14119_v54  ;;  %6819 = vst.msk [vmem:[#allocation2 + $0x98] sm:$0xff] %vm706_vm0, %v15590_v57  ;;  %v4307_v22 = vrot.slane %v13771_v45, 6  ;;  %v14165_v45 = vsel %vm4285_vm8, %v4304_v28, %v4305_v25  ;;  %v5623_v12 = vrot.slane %v14034_v30, 7  ;;  %v4568_v20 = vrot.slane %v13720_v61, 2 }
 0x4fd   : > { %10118 = vmatprep.mubr.msk.f32.mxu1 %vm706_vm0, %v14113_v59  ;;  %6832 = vst.msk [vmem:[#allocation2 + $0x100] sm:$0x3] %vm1000_vm1, %v15590_v57  ;;  %v5626_v61 = vrot.slane %v14086_v33, 7  ;;  %v4572_v25 = vrot.slane %v13807_v17, 2  ;;  %v5635_v51 = vrot.slane %v14113_v59, 7 }
 0x4fe   : > { %9988 = vmatmul.mubr.msk.f32.gmra.mrb[12].mxu0 %vm706_vm0, %v14149_v40  ;;  %v14179_v28 = vsel %vm4285_vm8, %v4307_v22, %v4308_v46  ;;  %v5629_v22 = vrot.slane %v14079_v18, 7  ;;  %v4852_v46 = vld [vmem:[#allocation14 + $0x40] sm:$0xff]  ;;  %v4570_v17 = vsel %vm3672_vm4, %v4568_v20, %v4569_v23  ;;  %v5632_v23 = vrot.slane %v14119_v54, 7 }
 0x4ff   : > { %9990 = vmatprep.mubr.msk.f32.mxu0 %vm706_vm0, %v14165_v45  ;;  %v5637_v20 = vrot.slane %v13861_v3, 7  ;;  %v4584_v3 = vrot.slane %v13839_v32, 2  ;;  %v4586_v32 = vrot.slane %v14022_v26, 2 }
 0x500   : > { %v14221_v38 = vsel %vm1090_vm2, %v5628_v14, %v5629_v22  ;;  %v4580_v14 = vrot.slane %v14000_v39, 2 }
 0x502   : > { %v14144_v24 = vld [vmem:[#allocation2 + $0xe0] sm:$0xff]  ;;  %v14151_v55 = vld [vmem:[#allocation2 + $0xc8] sm:$0xff]  ;;  %9991 = vmatmul.mubr.msk.f32.gmra.mrb[14].mxu0 %vm706_vm0, %v14179_v28 }
 0x503   : > { %6828 = vst.msk [vmem:[#allocation2 + $0xe0] sm:$0xff] %vm706_vm0, %v15590_v57  ;;  %10119 = vmatmul.mubr.msk.f32.gmra.mrb[38].mxu1 %vm706_vm0, %v14151_v55  ;;  %6825 = vst.msk [vmem:[#allocation2 + $0xc8] sm:$0xff] %vm706_vm0, %v15590_v57  ;;  %v14176_v57 = vpack.c.bf16 %v6058_v11, %v6057_v31  ;;  %9997 = vmatprep.mubr.msk.f32.mxu0 %vm706_vm0, %v13801_v2  ;;  %v5631_v31 = vrot.slane %v13821_v0, 7  ;;  %v5634_v11 = vrot.slane %v13829_v34, 7  ;;  %v4577_v0 = vrot.slane %v14005_v41, 2 }
 0x504   : > { %10125 = vmatprep.mubr.msk.f32.mxu1 %vm706_vm0, %v13781_v4  ;;  %v14191_v4 = vsel %vm1090_vm2, %v5622_v52, %v5623_v12  ;;  %v4574_v52 = vrot.slane %v13970_v37, 2  ;;  %v14212_v12 = vpack.c.bf16 %v4853_v44, %v4852_v46  ;;  %v14218_v2 = vsel %vm3672_vm4, %v4571_v7, %v4572_v25 }
 0x505   : > { %v5895_v34 = vrot.slane %v13760_v6, 1  ;;  %v14238_v7 = vsel %vm1090_vm2, %v5631_v31, %v5632_v23  ;;  %v5638_v22 = vrot.slane %v14151_v55, 7  ;;  %v14248_v6 = vsel %vm3672_vm4, %v4577_v0, %v4578_v58  ;;  %v6175_v58 = vld [vmem:[#allocation15 + $0x40] sm:$0xff] }
 0x506   : > { %9998 = vmatmul.mubr.msk.f32.vlgmr.msra.gmra.mrb[8].mxu0 %vm706_vm0, %v4570_v17  ;;  %v14235_v25 = vsel %vm3672_vm4, %v4574_v52, %v4575_v49  ;;  %v4587_v46 = vrot.slane %v13849_v62, 2  ;;  %v5899_v44 = vrot.slane %v13853_v10, 1  ;;  %v5898_v31 = vrot.slane %v14048_v5, 1 }
 0x507   : > { %10126 = vmatmul.mubr.msk.f32.vlgmr.msra.gmra.mrb[32].mxu1 %vm706_vm0, %v14182_v42  ;;  %10000 = vmatprep.mubr.msk.f32.mxu0 %vm706_vm0, %v14218_v2  ;;  %v14266_v49 = vsel %vm1090_vm2, %v5637_v20, %v5638_v22  ;;  %v5901_v10 = vrot.slane %v14034_v30, 1  ;;  %v5902_v52 = vrot.slane %v13857_v29, 1  ;;  %v15746_v29 = vld [vmem:[#allocation90_spill] sm:$0xff] }
 0x508   : > { %10520 = vmatpush3.bf16.msra.mxu1 %v14036_v56  ;;  %10128 = vmatprep.mubr.msk.f32.mxu1 %vm706_vm0, %v14191_v4  ;;  %v14208_v56 = vsel %vm1090_vm2, %v5625_v9, %v5626_v61  ;;  %v4581_v9 = vrot.slane %v13831_v13, 2  ;;  %v5896_v61 = vrot.slane %v13845_v48, 1  ;;  %v14251_v13 = vsel %vm1090_vm2, %v5634_v11, %v5635_v51  ;;  %v6176_v11 = vld [vmem:[#allocation15 + $0x48] sm:$0xff]  ;;  %v4980_v22 = vld [vmem:[#allocation14 + $0x50] sm:$0xff] }
 0x509   : > { %10522 = vmatprep.subr.bf16.mxu1 %v14176_v57  ;;  %10488 = vmatpush3.bf16.msra.mxu0 %v14092_v19  ;;  %v4583_v48 = vrot.slane %v14030_v35, 2  ;;  %v10525_v23 = vpack.c.bf16 %v6176_v11, %v6175_v58  ;;  %v14283_v0 = vsel %vm3672_vm4, %v4586_v32, %v4587_v46  ;;  %v14286_v51 = vsel %vm1370_vm3, %v5898_v31, %v5899_v44  ;;  %v15747_v44 = vld [vmem:[#allocation83_spill] sm:$0xff] }
 0x50a   : > { %10490 = vmatprep.subr.bf16.mxu0 %v14212_v12  ;;  %10001 = vmatmul.mubr.msk.f32.gmra.mrb[10].mxu0 %vm706_vm0, %v14235_v25  ;;  %v5897_v19 = vsel %vm1370_vm3, %v5895_v34, %v5896_v61  ;;  %v14263_v17 = vsel %vm3672_vm4, %v4580_v14, %v4581_v9  ;;  %v5904_v34 = vrot.slane %v14086_v33, 1  ;;  %v15745_v9 = vld [vmem:[#allocation86_spill] sm:$0xff]  ;;  %v5907_v61 = vrot.slane %v14079_v18, 1  ;;  %v15748_v58 = vld [vmem:[#allocation87_spill] sm:$0xff] }
 0x50b   : > { %10129 = vmatmul.mubr.msk.f32.gmra.mrb[34].mxu1 %vm706_vm0, %v14208_v56  ;;  %10003 = vmatprep.mubr.msk.f32.mxu0 %vm706_vm0, %v14248_v6  ;;  %v14275_v62 = vsel %vm3672_vm4, %v4583_v48, %v4584_v3  ;;  %v5905_v20 = vrot.slane %v15745_v9, 1  ;;  %v5908_v14 = vrot.slane %v15746_v29, 1  ;;  %v4981_v48 = vld [vmem:[#allocation14 + $0x58] sm:$0xff]  ;;  %v14300_v3 = vsel %vm1370_vm3, %v5901_v10, %v5902_v52  ;;  %v15749_v52 = vld [vmem:[#allocation89_spill] sm:$0xff] }
 0x50c   : > { %10131 = vmatprep.mubr.msk.f32.mxu1 %vm706_vm0, %v14221_v38  ;;  %v5910_v46 = vrot.slane %v14119_v54, 1  ;;  %v5911_v32 = vrot.slane %v15747_v44, 1  ;;  %v10493_v31 = vpack.c.bf16 %v4981_v48, %v4980_v22  ;;  %v5914_v11 = vrot.slane %v15748_v58, 1  ;;  %v6298_v44 = vld [vmem:[#allocation15 + $0x58] sm:$0xff] }
 0x50d   : > { %v5916_v10 = vrot.slane %v14151_v55, 1  ;;  %v4729_v48 = vrot.slane %v14071_v53, 6 }
 0x50e   : > { %10004 = vmatmul.mubr.msk.f32.gmra.mrb[12].mxu0 %vm706_vm0, %v14263_v17 }
 0x50f   : > { %10132 = vmatmul.mubr.msk.f32.gmra.mrb[36].mxu1 %vm706_vm0, %v14238_v7  ;;  %10006 = vmatprep.mubr.msk.f32.mxu0 %vm706_vm0, %v14275_v62 }
 0x510   : > { %10134 = vmatprep.mubr.msk.f32.mxu1 %vm706_vm0, %v14251_v13 }
 0x512   : > { %10007 = vmatmul.mubr.msk.f32.gmra.mrb[14].mxu0 %vm706_vm0, %v14283_v0 }
 0x513   : > { %10135 = vmatmul.mubr.msk.f32.gmra.mrb[38].mxu1 %vm706_vm0, %v14266_v49  ;;  %10013 = vmatprep.mubr.msk.f32.mxu0 %vm706_vm0, %v14105_v8  ;;  %v14314_v8 = vsel %vm1370_vm3, %v5907_v61, %v5908_v14  ;;  %v15751_v14 = vld [vmem:[#allocation47_spill] sm:$0xff] }
 0x514   : > { %10141 = vmatprep.mubr.msk.f32.mxu1 %vm706_vm0, %v5897_v19  ;;  %v14305_v19 = vsel %vm1370_vm3, %v5904_v34, %v5905_v20  ;;  %v5917_v34 = vrot.slane %v15749_v52, 1  ;;  %v15750_v20 = vld [vmem:[#allocation46_spill] sm:$0xff]  ;;  %v4728_v22 = vrot.slane %v15751_v14, 6  ;;  %v6054_v52 = vrot.slane %v14144_v24, 7 }
 0x515   : > { %v4725_v61 = vrot.slane %v15750_v20, 6 }
 0x516   : > { %10014 = vmatmul.mubr.msk.f32.vlgmr.msra.gmra.mrb[8].mxu0 %vm706_vm0, %v14117_v16  ;;  %v14324_v16 = vsel %vm1370_vm3, %v5910_v46, %v5911_v32  ;;  %v14342_v29 = vsel %vm1370_vm3, %v5916_v10, %v5917_v34  ;;  %v6297_v46 = vld [vmem:[#allocation15 + $0x50] sm:$0xff]  ;;  %v14358_v58 = vsel %vm4285_vm8, %v4728_v22, %v4729_v48  ;;  %v5111_v10 = vld [vmem:[#allocation14 + $0x68] sm:$0xff]  ;;  %v6421_v34 = vld [vmem:[#allocation15 + $0x68] sm:$0xff]  ;;  %v4976_v22 = vrot.slane %v14071_v53, 2 }
 0x517   : > { %10142 = vmatmul.mubr.msk.f32.vlgmr.msra.gmra.mrb[32].mxu1 %vm706_vm0, %v14286_v51  ;;  %10016 = vmatprep.mubr.msk.f32.mxu0 %vm706_vm0, %v14133_v63  ;;  %v15754_v48 = vld [vmem:[#allocation42_spill] sm:$0xff] }
 0x518   : > { %10524 = vmatpush3.bf16.msra.mxu1 %v14176_v57  ;;  %10144 = vmatprep.mubr.msk.f32.mxu1 %vm706_vm0, %v14300_v3  ;;  %v5913_v57 = vrot.slane %v14113_v59, 1 }
 0x519   : > { %10526 = vmatprep.subr.bf16.mxu1 %v10525_v23  ;;  %10492 = vmatpush3.bf16.msra.mxu0 %v14212_v12  ;;  %v4726_v12 = vrot.slane %v14075_v60, 6 }
 0x51a   : > { %10494 = vmatprep.subr.bf16.mxu0 %v10493_v31  ;;  %10017 = vmatmul.mubr.msk.f32.gmra.mrb[10].mxu0 %vm706_vm0, %v14149_v40  ;;  %v14333_v9 = vsel %vm1370_vm3, %v5913_v57, %v5914_v11  ;;  %v10529_v57 = vpack.c.bf16 %v6298_v44, %v6297_v46  ;;  %v5110_v11 = vld [vmem:[#allocation14 + $0x60] sm:$0xff]  ;;  %v4977_v46 = vrot.slane %v15754_v48, 2  ;;  %v6661_v48 = vld [vmem:[#allocation15 + $0x88] sm:$0xff] }
 0x51b   : > { %10145 = vmatmul.mubr.msk.f32.gmra.mrb[34].mxu1 %vm706_vm0, %v14305_v19  ;;  %10019 = vmatprep.mubr.msk.f32.mxu0 %vm706_vm0, %v14165_v45  ;;  %v14351_v32 = vsel %vm4285_vm8, %v4725_v61, %v4726_v12  ;;  %v5230_v61 = vld [vmem:[#allocation14 + $0x70] sm:$0xff]  ;;  %v5231_v12 = vld [vmem:[#allocation14 + $0x78] sm:$0xff]  ;;  %v6538_v44 = vld [vmem:[#allocation15 + $0x70] sm:$0xff] }
 0x51c   : > { %10147 = vmatprep.mubr.msk.f32.mxu1 %vm706_vm0, %v14314_v8  ;;  %v10501_v14 = vpack.c.bf16 %v5231_v12, %v5230_v61  ;;  %v15757_v61 = vld [vmem:[#allocation48_spill] sm:$0xff] }
 0x51d   : > { %v6294_v12 = vrot.slane %v15757_v61, 1  ;;  %v9016_v61 = vld [vmem:[%s15762_s12] ss:$0 sm:$0xff]  ;;  %s11297_s12 = scalar_lea.vmem %s11296_s2, 2048 }
 0x51e   : > { %10020 = vmatmul.mubr.msk.f32.gmra.mrb[12].mxu0 %vm706_vm0, %v14179_v28  ;;  %p11299_p8 = scmp.lt.s32.totalorder %s11297_s12, %s11291_s18 }
 0x51f   : > { %10148 = vmatmul.mubr.msk.f32.gmra.mrb[36].mxu1 %vm706_vm0, %v14324_v16  ;;  %10022 = vmatprep.mubr.msk.f32.mxu0 %vm706_vm0, %v14351_v32 }
 0x520   : > { %10150 = vmatprep.mubr.msk.f32.mxu1 %vm706_vm0, %v14333_v9  ;;  %p11300_p11 = por %p11299_p8, %p11298_p4 }
 0x522   : > { %10023 = vmatmul.mubr.msk.f32.gmra.mrb[14].mxu0 %vm706_vm0, %v14358_v58  ;;  %p11301_p3 = pnand %p11300_p11, %p11294_p9 }
 0x523   : > { %10151 = vmatmul.mubr.msk.f32.gmra.mrb[38].mxu1 %vm706_vm0, %v14342_v29  ;;  %10029 = vmatprep.mubr.msk.f32.mxu0 %vm706_vm0, %v13978_v36 }
 0x524   : > { %10157 = vmatprep.mubr.msk.f32.mxu1 %vm706_vm0, %v14182_v42  ;;  %v10497_v42 = vpack.c.bf16 %v5111_v10, %v5110_v11 }
 0x526   : > { %10030 = vmatmul.mubr.msk.f32.vlgmr.msra.gmra.mrb[8].mxu0 %vm706_vm0, %v13970_v37 }
 0x527   : > { %10158 = vmatmul.mubr.msk.f32.vlgmr.msra.gmra.mrb[32].mxu1 %vm706_vm0, %v14191_v4  ;;  %10032 = vmatprep.mubr.msk.f32.mxu0 %vm706_vm0, %v14005_v41 }
 0x528   : > { %10528 = vmatpush3.bf16.msra.mxu1 %v10525_v23  ;;  %10160 = vmatprep.mubr.msk.f32.mxu1 %vm706_vm0, %v14208_v56  ;;  %v15752_v23 = vld [vmem:[#allocation51_spill] sm:$0xff] }
 0x529   : > { %10530 = vmatprep.subr.bf16.mxu1 %v10529_v57  ;;  %10496 = vmatpush3.bf16.msra.mxu0 %v10493_v31  ;;  %v6053_v36 = vrot.slane %v15752_v23, 7  ;;  %v6420_v31 = vld [vmem:[#allocation15 + $0x60] sm:$0xff]  ;;  %v5358_v23 = vld [vmem:[#allocation14 + $0x80] sm:$0xff] }
 0x52a   : > { %10498 = vmatprep.subr.bf16.mxu0 %v10497_v42  ;;  %10033 = vmatmul.mubr.msk.f32.gmra.mrb[10].mxu0 %vm706_vm0, %v14000_v39  ;;  %v10533_v20 = vpack.c.bf16 %v6421_v34, %v6420_v31 }
 0x52b   : > { %10161 = vmatmul.mubr.msk.f32.gmra.mrb[34].mxu1 %vm706_vm0, %v14221_v38  ;;  %10035 = vmatprep.mubr.msk.f32.mxu0 %vm706_vm0, %v14030_v35  ;;  %v14387_v37 = vsel %vm1090_vm2, %v6053_v36, %v6054_v52  ;;  %v5359_v36 = vld [vmem:[#allocation14 + $0x88] sm:$0xff]  ;;  %v15755_v52 = vld [vmem:[#allocation39_spill] sm:$0xff] }
 0x52c   : > { %10163 = vmatprep.mubr.msk.f32.mxu1 %vm706_vm0, %v14238_v7  ;;  %v5103_v31 = vrot.slane %v15755_v52, 6  ;;  %v14636_v52 = vld [vmem:[#allocation2 + $0xd8] sm:$0xff] }
 0x52d   : > { %8093 = vst.msk [vmem:[#allocation2 + $0xd8] sm:$0xff] %vm706_vm0, %v15710_v27 }
 0x52e   : > { %10036 = vmatmul.mubr.msk.f32.gmra.mrb[12].mxu0 %vm706_vm0, %v14022_v26 }
 0x52f   : > { %10164 = vmatmul.mubr.msk.f32.gmra.mrb[36].mxu1 %vm706_vm0, %v14251_v13  ;;  %10038 = vmatprep.mubr.msk.f32.mxu0 %vm706_vm0, %v14075_v60 }
 0x530   : > { %10166 = vmatprep.mubr.msk.f32.mxu1 %vm706_vm0, %v14266_v49 }
 0x532   : > { %10039 = vmatmul.mubr.msk.f32.gmra.mrb[14].mxu0 %vm706_vm0, %v14071_v53 }
 0x533   : > { %10167 = vmatmul.mubr.msk.f32.gmra.mrb[38].mxu1 %vm706_vm0, %v14387_v37  ;;  %10045 = vmatprep.mubr.msk.f32.mxu0 %vm706_vm0, %v14218_v2  ;;  %v15753_v2 = vld [vmem:[#allocation84_spill] sm:$0xff] }
 0x534   : > { %10173 = vmatprep.mubr.msk.f32.mxu1 %vm706_vm0, %v14048_v5  ;;  %v4973_v5 = vrot.slane %v14075_v60, 2 }
 0x536   : > { %10046 = vmatmul.mubr.msk.f32.vlgmr.msra.gmra.mrb[8].mxu0 %vm706_vm0, %v14235_v25  ;;  %v4974_v25 = vrot.slane %v15753_v2, 2 }
 0x537   : > { %10174 = vmatmul.mubr.msk.f32.vlgmr.msra.gmra.mrb[32].mxu1 %vm706_vm0, %v14034_v30  ;;  %10048 = vmatprep.mubr.msk.f32.mxu0 %vm706_vm0, %v14248_v6 }
 0x538   : > { %10532 = vmatpush3.bf16.msra.mxu1 %v10529_v57  ;;  %10176 = vmatprep.mubr.msk.f32.mxu1 %vm706_vm0, %v14086_v33  ;;  %v6539_v57 = vld [vmem:[#allocation15 + $0x78] sm:$0xff]  ;;  %v14430_v11 = vsel %vm3672_vm4, %v4973_v5, %v4974_v25 }
 0x539   : > { %10534 = vmatprep.subr.bf16.mxu1 %v10533_v20  ;;  %10500 = vmatpush3.bf16.msra.mxu0 %v10497_v42  ;;  %v10537_v10 = vpack.c.bf16 %v6539_v57, %v6538_v44  ;;  %v14437_v42 = vsel %vm3672_vm4, %v4976_v22, %v4977_v46  ;;  %v6660_v22 = vld [vmem:[#allocation15 + $0x80] sm:$0xff]  ;;  %v14605_v44 = vld [vmem:[#allocation2 + $0x40] sm:$0x3] }
 0x53a   : > { %10502 = vmatprep.subr.bf16.mxu0 %v10501_v14  ;;  %10049 = vmatmul.mubr.msk.f32.gmra.mrb[10].mxu0 %vm706_vm0, %v14263_v17  ;;  %8074 = vst.msk [vmem:[#allocation2 + $0x40] sm:$0x3] %vm1000_vm1, %v15710_v27 }
 0x53b   : > { %10177 = vmatmul.mubr.msk.f32.gmra.mrb[34].mxu1 %vm706_vm0, %v14079_v18  ;;  %10051 = vmatprep.mubr.msk.f32.mxu0 %vm706_vm0, %v14275_v62 }
 0x53c   : > { %10179 = vmatprep.mubr.msk.f32.mxu1 %vm706_vm0, %v14119_v54 }
 0x53e   : > { %10052 = vmatmul.mubr.msk.f32.gmra.mrb[12].mxu0 %vm706_vm0, %v14283_v0 }
 0x53f   : > { %10180 = vmatmul.mubr.msk.f32.gmra.mrb[36].mxu1 %vm706_vm0, %v14113_v59  ;;  %10054 = vmatprep.mubr.msk.f32.mxu0 %vm706_vm0, %v14430_v11 }
 0x540   : > { %10182 = vmatprep.mubr.msk.f32.mxu1 %vm706_vm0, %v14151_v55 }
 0x542   : > { %10055 = vmatmul.mubr.msk.f32.gmra.mrb[14].mxu0 %vm706_vm0, %v14437_v42 }
 0x543   : > { %10183 = vmatmul.mubr.msk.f32.gmra.mrb[38].mxu1 %vm706_vm0, %v14144_v24  ;;  %10061 = vmatprep.mubr.msk.f32.mxu0 %vm706_vm0, %v14133_v63  ;;  %v15756_v63 = vld [vmem:[#allocation88_spill] sm:$0xff] }
 0x544   : > { %10189 = vmatprep.mubr.msk.f32.mxu1 %vm706_vm0, %v14286_v51  ;;  %v10505_v51 = vpack.c.bf16 %v5359_v36, %v5358_v23  ;;  %v5104_v34 = vrot.slane %v15756_v63, 6  ;;  %v14624_v23 = vld [vmem:[#allocation2 + $0xa0] sm:$0x3]  ;;  %v14628_v36 = vld [vmem:[#allocation2 + $0xb8] sm:$0x3] }
 0x545   : > { %8086 = vst.msk [vmem:[#allocation2 + $0xa0] sm:$0x3] %vm1000_vm1, %v15710_v27  ;;  %8089 = vst.msk [vmem:[#allocation2 + $0xb8] sm:$0x3] %vm1000_vm1, %v15710_v27 }
 0x546   : > { %10062 = vmatmul.mubr.msk.f32.vlgmr.msra.gmra.mrb[8].mxu0 %vm706_vm0, %v14149_v40  ;;  %v15758_v40 = vld [vmem:[#allocation52_spill] sm:$0xff]  ;;  %v5105_v2 = vsel %vm4285_vm8, %v5103_v31, %v5104_v34  ;;  %v14640_v31 = vld [vmem:[#allocation2 + $0xe8] sm:$0x3]  ;;  %v14646_v34 = vld [vmem:[#allocation2 + $0xf8] sm:$0xff] }
 0x547   : > { %10190 = vmatmul.mubr.msk.f32.vlgmr.msra.gmra.mrb[32].mxu1 %vm706_vm0, %v14300_v3  ;;  %10064 = vmatprep.mubr.msk.f32.mxu0 %vm706_vm0, %v14165_v45  ;;  %v5106_v45 = vrot.slane %v15758_v40, 6  ;;  %8095 = vst.msk [vmem:[#allocation2 + $0xe8] sm:$0x3] %vm1000_vm1, %v15710_v27 }
 0x548   : > { %10536 = vmatpush3.bf16.msra.mxu1 %v10533_v20  ;;  %10192 = vmatprep.mubr.msk.f32.mxu1 %vm706_vm0, %v14305_v19  ;;  %v6293_v20 = vrot.slane %v14144_v24, 1  ;;  %8097 = vst.msk [vmem:[#allocation2 + $0xf8] sm:$0xff] %vm706_vm0, %v15710_v27 }
 0x549   : > { %10538 = vmatprep.subr.bf16.mxu1 %v10537_v10  ;;  %10504 = vmatpush3.bf16.msra.mxu0 %v10501_v14  ;;  %v15759_v14 = vld [vmem:[#allocation40_spill] sm:$0xff] }
 0x54a   : > { %10506 = vmatprep.subr.bf16.mxu0 %v10505_v51  ;;  %10065 = vmatmul.mubr.msk.f32.gmra.mrb[10].mxu0 %vm706_vm0, %v14179_v28  ;;  %v5107_v5 = vrot.slane %v15759_v14, 6  ;;  %v6295_v25 = vsel %vm1370_vm3, %v6293_v20, %v6294_v12  ;;  %v14652_v20 = vld [vmem:[#allocation2 + $0x100] sm:$0x3] }
 0x54b   : > { %10193 = vmatmul.mubr.msk.f32.gmra.mrb[34].mxu1 %vm706_vm0, %v14314_v8  ;;  %10067 = vmatprep.mubr.msk.f32.mxu0 %vm706_vm0, %v14351_v32  ;;  %v10541_v32 = vpack.c.bf16 %v6661_v48, %v6660_v22  ;;  %8098 = vst.msk [vmem:[#allocation2 + $0x100] sm:$0x3] %vm1000_vm1, %v15710_v27 }
 0x54c   : > { %10195 = vmatprep.mubr.msk.f32.mxu1 %vm706_vm0, %v14324_v16  ;;  %v5108_v28 = vsel %vm4285_vm8, %v5106_v45, %v5107_v5  ;;  %v15763_v5 = vld [vmem:[#allocation31_spill] sm:$0xff] }
 0x54e   : > { %10068 = vmatmul.mubr.msk.f32.gmra.mrb[12].mxu0 %vm706_vm0, %v14358_v58  ;;  %v15761_v58 = vld [vmem:[#allocation55_spill] sm:$0xff] }
 0x54f   : > { %10196 = vmatmul.mubr.msk.f32.gmra.mrb[36].mxu1 %vm706_vm0, %v14333_v9  ;;  %10070 = vmatprep.mubr.msk.f32.mxu0 %vm706_vm0, %v5105_v2 }
 0x550   : > { %10198 = vmatprep.mubr.msk.f32.mxu1 %vm706_vm0, %v14342_v29 }
 0x552   : > { %10071 = vmatmul.mubr.msk.f32.gmra.mrb[14].mxu0 %vm706_vm0, %v5108_v28 }
 0x553   : > { %10199 = vmatmul.mubr.msk.f32.gmra.mrb[38].mxu1 %vm706_vm0, %v6295_v25  ;;  %10077 = vmatprep.mubr.msk.f32.mxu0 %vm706_vm0, %v14005_v41  ;;  %v6417_v41 = vrot.slane %v15761_v58, 7 }
 0x554   : > { %10205 = vmatprep.mubr.msk.f32.mxu1 %vm706_vm0, %v14191_v4  ;;  %v15760_v4 = vld [vmem:[#allocation50_spill] sm:$0xff] }
 0x556   : > { %10078 = vmatmul.mubr.msk.f32.vlgmr.msra.gmra.mrb[8].mxu0 %vm706_vm0, %v14000_v39 }
 0x557   : > { %10206 = vmatmul.mubr.msk.f32.vlgmr.msra.gmra.mrb[32].mxu1 %vm706_vm0, %v14208_v56  ;;  %10080 = vmatprep.mubr.msk.f32.mxu0 %vm706_vm0, %v14030_v35  ;;  %v6416_v56 = vrot.slane %v15760_v4, 7  ;;  %v5352_v35 = vrot.slane %v14024_v15, 2 }
 0x558   : > { %10540 = vmatpush3.bf16.msra.mxu1 %v10537_v10  ;;  %10208 = vmatprep.mubr.msk.f32.mxu1 %vm706_vm0, %v14221_v38  ;;  %v6914_v38 = vld [vmem:[#allocation17] sm:$0xff]  ;;  %v14614_v10 = vld [vmem:[#allocation2 + $0x70] sm:$0x3] }
 0x559   : > { %10542 = vmatprep.subr.bf16.mxu1 %v10541_v32  ;;  %10508 = vmatpush3.bf16.msra.mxu0 %v10505_v51  ;;  %v6418_v39 = vsel %vm1090_vm2, %v6416_v56, %v6417_v41  ;;  %8080 = vst.msk [vmem:[#allocation2 + $0x70] sm:$0x3] %vm1000_vm1, %v15710_v27  ;;  %v14632_v51 = vld [vmem:[#allocation2 + $0xd0] sm:$0x3]  ;;  %v15765_v56 = vld [vmem:[#allocation33_spill] sm:$0xff] }
 0x55a   : > { %10081 = vmatmul.mubr.msk.f32.gmra.mrb[10].mxu0 %vm706_vm0, %v14022_v26  ;;  %v5351_v26 = vrot.slane %v15756_v63, 2  ;;  %8092 = vst.msk [vmem:[#allocation2 + $0xd0] sm:$0x3] %vm1000_vm1, %v15710_v27  ;;  %v15766_v41 = vld [vmem:[#allocation34_spill] sm:$0xff] }
 0x55b   : > { %10209 = vmatmul.mubr.msk.f32.gmra.mrb[34].mxu1 %vm706_vm0, %v14238_v7  ;;  %10083 = vmatprep.mubr.msk.f32.mxu0 %vm706_vm0, %v14075_v60  ;;  %v6915_v7 = vld [vmem:[#allocation17 + $0x8] sm:$0xff] }
 0x55c   : > { %10211 = vmatprep.mubr.msk.f32.mxu1 %vm706_vm0, %v14251_v13  ;;  %v5353_v60 = vsel %vm3672_vm4, %v5351_v26, %v5352_v35  ;;  %v6844_v13 = vld [vmem:[#allocation2 + $0x18] sm:$0xff] }
 0x55d   : > { %8069 = vst.msk [vmem:[#allocation2 + $0x18] sm:$0xff] %vm706_vm0, %v15710_v27 }
 0x55e   : > { %10084 = vmatmul.mubr.msk.f32.gmra.mrb[12].mxu0 %vm706_vm0, %v14071_v53  ;;  %v5355_v53 = vrot.slane %v14026_v47, 2  ;;  %v6656_v47 = vrot.slane %v15761_v58, 1 }
 0x55f   : > { %10212 = vmatmul.mubr.msk.f32.gmra.mrb[36].mxu1 %vm706_vm0, %v14266_v49  ;;  %10086 = vmatprep.mubr.msk.f32.mxu0 %vm706_vm0, %v15756_v63  ;;  %v14572_v49 = vld [vmem:[#allocation2 + $0x30] sm:$0xff] }
 0x560   : > { %10214 = vmatprep.mubr.msk.f32.mxu1 %vm706_vm0, %v14387_v37  ;;  %8072 = vst.msk [vmem:[#allocation2 + $0x30] sm:$0xff] %vm706_vm0, %v15710_v27  ;;  %v6846_v37 = vld [vmem:[#allocation2 + $0x28] sm:$0x3]  ;;  %v14644_v63 = vld [vmem:[#allocation2 + $0xf0] sm:$0xff] }
 0x561   : > { %v7170_v46 = vrot.slane %v6846_v37, 1  ;;  %8071 = vst.msk [vmem:[#allocation2 + $0x28] sm:$0x3] %vm1000_vm1, %v15710_v27 }
 0x562   : > { %10087 = vmatmul.mubr.msk.f32.gmra.mrb[14].mxu0 %vm706_vm0, %v15759_v14  ;;  %8096 = vst.msk [vmem:[#allocation2 + $0xf0] sm:$0xff] %vm706_vm0, %v15710_v27 }
 0x563   : > { %10215 = vmatmul.mubr.msk.f32.gmra.mrb[38].mxu1 %vm706_vm0, %v6418_v39  ;;  %10093 = vmatprep.mubr.msk.f32.mxu0 %vm706_vm0, %v14248_v6 }
 0x564   : > { %10221 = vmatprep.mubr.msk.f32.mxu1 %vm706_vm0, %v14034_v30  ;;  %v5354_v30 = vrot.slane %v15759_v14, 2 }
 0x566   : > { %10094 = vmatmul.mubr.msk.f32.vlgmr.msra.gmra.mrb[8].mxu0 %vm706_vm0, %v14263_v17  ;;  %v5356_v15 = vsel %vm3672_vm4, %v5354_v30, %v5355_v53  ;;  %v6890_v17 = vrot.slane %v6844_v13, 7 }
 0x567   : > { %10222 = vmatmul.mubr.msk.f32.vlgmr.msra.gmra.mrb[32].mxu1 %vm706_vm0, %v14086_v33  ;;  %10096 = vmatprep.mubr.msk.f32.mxu0 %vm706_vm0, %v14275_v62 }
 0x568   : > { %10544 = vmatpush3.bf16.msra.mxu1 %v10541_v32  ;;  %10224 = vmatprep.mubr.msk.f32.mxu1 %vm706_vm0, %v14079_v18  ;;  %v6657_v18 = vrot.slane %v14141_v50, 1  ;;  %v14567_v50 = vpack.c.bf16 %v6915_v7, %v6914_v38 }
 0x56a   : > { %10097 = vmatmul.mubr.msk.f32.gmra.mrb[10].mxu0 %vm706_vm0, %v14283_v0  ;;  %v6658_v33 = vsel %vm1370_vm3, %v6656_v47, %v6657_v18  ;;  %v14579_v0 = vld [vmem:[#allocation2 + $0x48] sm:$0xff]  ;;  %v15769_v18 = vld [vmem:[#allocation36_spill] sm:$0xff] }
 0x56b   : > { %10225 = vmatmul.mubr.msk.f32.gmra.mrb[34].mxu1 %vm706_vm0, %v14119_v54  ;;  %10099 = vmatprep.mubr.msk.f32.mxu0 %vm706_vm0, %v14430_v11  ;;  %v6918_v54 = vld [vmem:[#allocation17 + $0x18] sm:$0xff]  ;;  %8075 = vst.msk [vmem:[#allocation2 + $0x48] sm:$0xff] %vm706_vm0, %v15710_v27 }
 0x56c   : > { %10227 = vmatprep.mubr.msk.f32.mxu1 %vm706_vm0, %v14113_v59  ;;  %v6917_v59 = vld [vmem:[#allocation17 + $0x10] sm:$0xff]  ;;  %v14612_v11 = vld [vmem:[#allocation2 + $0x58] sm:$0x3] }
 0x56d   : > { %8077 = vst.msk [vmem:[#allocation2 + $0x58] sm:$0x3] %vm1000_vm1, %v15710_v27 }
 0x56e   : > { %10100 = vmatmul.mubr.msk.f32.gmra.mrb[12].mxu0 %vm706_vm0, %v14437_v42  ;;  %v14620_v42 = vld [vmem:[#allocation2 + $0x88] sm:$0x3] }
 0x56f   : > { %10228 = vmatmul.mubr.msk.f32.gmra.mrb[36].mxu1 %vm706_vm0, %v14151_v55  ;;  %10102 = vmatprep.mubr.msk.f32.mxu0 %vm706_vm0, %v5353_v60  ;;  %v6845_v55 = vld [vmem:[#allocation2 + $0x20] sm:$0xff]  ;;  %8083 = vst.msk [vmem:[#allocation2 + $0x88] sm:$0x3] %vm1000_vm1, %v15710_v27 }
 0x570   : > { %10230 = vmatprep.mubr.msk.f32.mxu1 %vm706_vm0, %v14144_v24  ;;  %v10545_v24 = vpack.c.bf16 %v6918_v54, %v6917_v59  ;;  %8070 = vst.msk [vmem:[#allocation2 + $0x20] sm:$0xff] %vm706_vm0, %v15710_v27  ;;  %v6891_v6 = vrot.slane %v6845_v55, 7  ;;  %v9089_v60 = vld [vmem:[%s15767_s20] ss:$0 sm:$0xff] }
 0x572   : > { %10103 = vmatmul.mubr.msk.f32.gmra.mrb[14].mxu0 %vm706_vm0, %v5356_v15  ;;  %10546 = vmatprep.subr.bf16.mxu0 %v10545_v24  ;;  %v14577_v62 = vsel %vm1090_vm2, %v6890_v17, %v6891_v6  ;;  %v15768_v15 = vld [vmem:[#allocation35_spill] sm:$0xff]  ;;  %v15770_v17 = vld [vmem:[#allocation37_spill] sm:$0xff] }
 0x573   : > { %10231 = vmatmul.mubr.msk.f32.gmra.mrb[38].mxu1 %vm706_vm0, %v15761_v58  ;;  %10548 = vmatpush3.bf16.msra.mxu0 %v10545_v24 }
 0x574   : > { %10237 = vmatprep.mubr.msk.f32.mxu1 %vm706_vm0, %v14300_v3  ;;  %10253 = vmatprep.mubr.msk.f32.mxu0 %vm706_vm0, %v6845_v55  ;;  %v14581_v3 = vld [vmem:[#allocation2 + $0x60] sm:$0xff] }
 0x575   : > { %10550 = vmatprep.subr.bf16.mxu0 %v14567_v50  ;;  %8078 = vst.msk [vmem:[#allocation2 + $0x60] sm:$0xff] %vm706_vm0, %v15710_v27 }
 0x577   : > { %10238 = vmatmul.mubr.msk.f32.vlgmr.msra.gmra.mrb[32].mxu1 %vm706_vm0, %v14305_v19  ;;  %v14587_v19 = vld [vmem:[#allocation2 + $0x78] sm:$0xff] }
 0x578   : > { %10240 = vmatprep.mubr.msk.f32.mxu1 %vm706_vm0, %v14314_v8  ;;  %8081 = vst.msk [vmem:[#allocation2 + $0x78] sm:$0xff] %vm706_vm0, %v15710_v27  ;;  %v14591_v8 = vld [vmem:[#allocation2 + $0x90] sm:$0xff] }
 0x579   : > { %8084 = vst.msk [vmem:[#allocation2 + $0x90] sm:$0xff] %vm706_vm0, %v15710_v27 }
 0x57b   : > { %10241 = vmatmul.mubr.msk.f32.gmra.mrb[34].mxu1 %vm706_vm0, %v14324_v16  ;;  %v14595_v16 = vld [vmem:[#allocation2 + $0xa8] sm:$0xff] }
 0x57c   : > { %10243 = vmatprep.mubr.msk.f32.mxu1 %vm706_vm0, %v14333_v9  ;;  %8087 = vst.msk [vmem:[#allocation2 + $0xa8] sm:$0xff] %vm706_vm0, %v15710_v27  ;;  %v14599_v9 = vld [vmem:[#allocation2 + $0xc0] sm:$0xff] }
 0x57d   : > { %8090 = vst.msk [vmem:[#allocation2 + $0xc0] sm:$0xff] %vm706_vm0, %v15710_v27 }
 0x57f   : > { %10244 = vmatmul.mubr.msk.f32.gmra.mrb[36].mxu1 %vm706_vm0, %v14342_v29  ;;  %v7169_v29 = vrot.slane %v6845_v55, 1 }
 0x580   : > { %10246 = vmatprep.mubr.msk.f32.mxu1 %vm706_vm0, %v6295_v25  ;;  %v15764_v25 = vld [vmem:[#allocation32_spill] sm:$0xff] }
 0x581   : > { %v14610_v57 = vsel %vm1370_vm3, %v7169_v29, %v7170_v46 }
 0x583   : > { %10247 = vmatmul.mubr.msk.f32.gmra.mrb[38].mxu1 %vm706_vm0, %v6658_v33 }
 0x639   : > { %v10095_v12 = vpop.f32.mrb[8].mxu0 }
 0x63a   : > { %v5485_v40 = vadd.f32 %v10095_v12, %v9016_v61  ;;  %v5430_v45 = vpop.f32.mrb[9].mxu0  ;;  %v15771_v12 = vld [vmem:[#allocation38_spill] sm:$0xff] }
 0x63b   : > { %v5484_v14 = vadd.f32 %v9016_v61, %v5430_v45 }
 0x63c   : > { %v5493_v2 = vadd.f32 %v5485_v40, %v15763_v5 }
 0x63d   : > { %v5492_v22 = vadd.f32 %v5484_v14, %v15764_v25  ;;  %v10098_v48 = vpop.f32.mrb[10].mxu0 }
 0x63e   : > { %v5487_v28 = vadd.f32 %v10098_v48, %v9016_v61  ;;  %8488 = vrot.lane.b32.xlu1 %v5493_v2, %s11394_s28  ;;  %v5440_v32 = vpop.f32.mrb[11].mxu0 }
 0x63f   : > { %v5486_v4 = vadd.f32 %v9016_v61, %v5440_v32  ;;  %8486 = vrot.lane.b32.xlu0 %v5492_v22, %s11394_s28  ;;  %v7194_v32 = vld [vmem:[#allocation17 + $0x20] sm:$0xff] }
 0x640   : > { %v5495_v58 = vadd.f32 %v5487_v28, %v15765_v56 }
 0x641   : > { %v5494_v39 = vadd.f32 %v5486_v4, %v15766_v41  ;;  %v10101_v26 = vpop.f32.mrb[12].mxu0  ;;  %v7195_v4 = vld [vmem:[#allocation17 + $0x28] sm:$0xff] }
 0x642   : > { %v5489_v35 = vadd.f32 %v10101_v26, %v9016_v61  ;;  %8492 = vrot.lane.b32.xlu1 %v5495_v58, %s11394_s28  ;;  %v5450_v30 = vpop.f32.mrb[13].mxu0 }
 0x643   : > { %v5488_v53 = vadd.f32 %v9016_v61, %v5450_v30  ;;  %8490 = vrot.lane.b32.xlu0 %v5494_v39, %s11394_s28 }
 0x644   : > { %v5497_v47 = vadd.f32 %v5489_v35, %v15768_v15  ;;  %v10553_v35 = vpack.c.bf16 %v7195_v4, %v7194_v32 }
 0x645   : > { %v5496_v33 = vadd.f32 %v5488_v53, %v15769_v18  ;;  %v10104_v59 = vpop.f32.mrb[14].mxu0  ;;  %v15772_v18 = vld [vmem:[#allocation68_spill] sm:$0xff] }
 0x646   : > { %v5491_v24 = vadd.f32 %v10104_v59, %v9016_v61  ;;  %8496 = vrot.lane.b32.xlu1 %v5497_v47, %s11394_s28  ;;  %v5460_v7 = vpop.f32.mrb[15].mxu0  ;;  %v15773_v59 = vld [vmem:[#allocation69_spill] sm:$0xff] }
 0x647   : > { %v5490_v13 = vadd.f32 %v9016_v61, %v5460_v7  ;;  %8494 = vrot.lane.b32.xlu0 %v5496_v33, %s11394_s28 }
 0x648   : > { %v5499_v29 = vadd.f32 %v5491_v24, %v15770_v17 }
 0x649   : > { %v5498_v40 = vadd.f32 %v5490_v13, %v15771_v12  ;;  %v15777_v13 = vld [vmem:[#allocation73_spill] sm:$0xff]  ;;  %v7331_v12 = vld [vmem:[#allocation17 + $0x30] sm:$0xff] }
 0x64a   : > { %v10239_v54 = vpop.f32.mrb[32].mxu1  ;;  %8500 = vrot.lane.b32.xlu1 %v5499_v29, %s11394_s28 }
 0x64b   : > { %v6785_v55 = vadd.f32 %v10239_v54, %v9089_v60  ;;  %v6730_v38 = vpop.f32.mrb[33].mxu1  ;;  %8498 = vrot.lane.b32.xlu0 %v5498_v40, %s11394_s28  ;;  %v7332_v40 = vld [vmem:[#allocation17 + $0x38] sm:$0xff] }
 0x64c   : > { %v6784_v6 = vadd.f32 %v9089_v60, %v6730_v38 }
 0x64d   : > { %v6793_v37 = vmax.f32 %v6785_v55, 0.0  ;;  %v15775_v55 = vld [vmem:[#allocation71_spill] sm:$0xff] }
 0x64e   : > { %v6792_v46 = vmax.f32 %v6784_v6, 0.0  ;;  %v10242_v45 = vpop.f32.mrb[34].mxu1  ;;  %v15776_v6 = vld [vmem:[#allocation72_spill] sm:$0xff] }
 0x64f   : > { %6837 = vst.msk [vmem:[#allocation2 + $0x50] sm:$0xff] %vm706_vm0, %v6793_v37  ;;  %v6787_v14 = vadd.f32 %v10242_v45, %v9089_v60  ;;  %v6740_v5 = vpop.f32.mrb[35].mxu1  ;;  %v6893_v37 = vrot.slane %v14572_v49, 7  ;;  %v6896_v45 = vrot.slane %v14579_v0, 7  ;;  %v10557_v49 = vpack.c.bf16 %v7332_v40, %v7331_v12 }
 0x650   : > { %6836 = vst.msk [vmem:[#allocation2 + $0x38] sm:$0xff] %vm706_vm0, %v6792_v46  ;;  %v6786_v2 = vadd.f32 %v9089_v60, %v6740_v5 }
 0x651   : > { %v6795_v61 = vmax.f32 %v6787_v14, 0.0 }
 0x652   : > { %v6794_v25 = vmax.f32 %v6786_v2, 0.0  ;;  %v10245_v22 = vpop.f32.mrb[36].mxu1  ;;  %v6899_v2 = vrot.slane %v14581_v3, 7 }
 0x653   : > { %6839 = vst.msk [vmem:[#allocation2 + $0x80] sm:$0xff] %vm706_vm0, %v6795_v61  ;;  %v6789_v48 = vadd.f32 %v10245_v22, %v9089_v60  ;;  %v6750_v28 = vpop.f32.mrb[37].mxu1 }
 0x654   : > { %6838 = vst.msk [vmem:[#allocation2 + $0x68] sm:$0xff] %vm706_vm0, %v6794_v25  ;;  %v6788_v56 = vadd.f32 %v9089_v60, %v6750_v28 }
 0x655   : > { %v6797_v58 = vmax.f32 %v6789_v48, 0.0 }
 0x656   : > { %v6796_v41 = vmax.f32 %v6788_v56, 0.0  ;;  %v10248_v39 = vpop.f32.mrb[38].mxu1  ;;  %v14682_v26 = vld [vmem:[#allocation2 + $0x50] sm:$0xff]  ;;  %v7173_v56 = vrot.slane %v14605_v44, 1 }
 0x657   : > { %6841 = vst.msk [vmem:[#allocation2 + $0xb0] sm:$0xff] %vm706_vm0, %v6797_v58  ;;  %v6791_v30 = vadd.f32 %v10248_v39, %v9089_v60  ;;  %v6760_v53 = vpop.f32.mrb[39].mxu1  ;;  %v14685_v15 = vld [vmem:[#allocation2 + $0x38] sm:$0xff]  ;;  %8076 = vst.msk [vmem:[#allocation2 + $0x50] sm:$0xff] %vm706_vm0, %v15710_v27  ;;  %v6897_v14 = vrot.slane %v14682_v26, 7  ;;  %v7449_v58 = vld [vmem:[#allocation17 + $0x40] sm:$0xff] }
 0x658   : > { %6840 = vst.msk [vmem:[#allocation2 + $0x98] sm:$0xff] %vm706_vm0, %v6796_v41  ;;  %v6790_v47 = vadd.f32 %v9089_v60, %v6760_v53  ;;  %10254 = vmatmul.mubr.msk.f32.vlgmr.msra.gmra.mrb[16].mxu0 %vm706_vm0, %v14685_v15  ;;  %8073 = vst.msk [vmem:[#allocation2 + $0x38] sm:$0xff] %vm706_vm0, %v15710_v27  ;;  %v6894_v46 = vrot.slane %v14685_v15, 7  ;;  %v7172_v4 = vrot.slane %v14685_v15, 1  ;;  %v7175_v41 = vrot.slane %v14682_v26, 1 }
 0x659   : > { %8103 = vst.msk [vmem:[#allocation2 + $0x50] sm:$0xff] %vm706_vm0, %v15772_v18  ;;  %v6799_v33 = vmax.f32 %v6791_v30, 0.0  ;;  %8102 = vst.msk [vmem:[#allocation2 + $0x38] sm:$0xff] %vm706_vm0, %v15773_v59  ;;  %10552 = vmatpush3.bf16.msra.mxu0 %v14567_v50  ;;  %10256 = vmatprep.mubr.msk.f32.mxu0 %vm706_vm0, %v14682_v26  ;;  %v15774_v50 = vld [vmem:[#allocation70_spill] sm:$0xff]  ;;  %v14760_v0 = vsel %vm1090_vm2, %v6896_v45, %v6897_v14  ;;  %v7176_v39 = vrot.slane %v14612_v11, 1  ;;  %v7694_v45 = vld [vmem:[#allocation17 + $0x60] sm:$0xff] }
 0x65a   : > { %v6798_v54 = vmax.f32 %v6790_v47, 0.0  ;;  %v14701_v60 = vld [vmem:[#allocation2 + $0x80] sm:$0xff]  ;;  %10554 = vmatprep.subr.bf16.mxu0 %v10553_v35  ;;  %v6895_v5 = vsel %vm1090_vm2, %v6893_v37, %v6894_v46  ;;  %v7174_v30 = vsel %vm1370_vm3, %v7172_v4, %v7173_v56  ;;  %v7179_v47 = vrot.slane %v14614_v10, 1  ;;  %v7572_v37 = vld [vmem:[#allocation17 + $0x58] sm:$0xff]  ;;  %v7695_v14 = vld [vmem:[#allocation17 + $0x68] sm:$0xff] }
 0x65b   : > { %6843 = vst.msk [vmem:[#allocation2 + $0xe0] sm:$0xff] %vm706_vm0, %v6799_v33  ;;  %v14704_v24 = vld [vmem:[#allocation2 + $0x68] sm:$0xff]  ;;  %8082 = vst.msk [vmem:[#allocation2 + $0x80] sm:$0xff] %vm706_vm0, %v15710_v27  ;;  %v6903_v61 = vrot.slane %v14701_v60, 7  ;;  %v14808_v44 = vsel %vm1370_vm3, %v7175_v41, %v7176_v39  ;;  %v7181_v18 = vrot.slane %v14701_v60, 1  ;;  %v7182_v33 = vrot.slane %v14620_v42, 1 }
 0x65c   : > { %6842 = vst.msk [vmem:[#allocation2 + $0xc8] sm:$0xff] %vm706_vm0, %v6798_v54  ;;  %10257 = vmatmul.mubr.msk.f32.gmra.mrb[18].mxu0 %vm706_vm0, %v14704_v24  ;;  %8079 = vst.msk [vmem:[#allocation2 + $0x68] sm:$0xff] %vm706_vm0, %v15710_v27  ;;  %v7178_v53 = vrot.slane %v14704_v24, 1  ;;  %v7185_v10 = vrot.slane %v14624_v23, 1  ;;  %v7188_v54 = vrot.slane %v14628_v36, 1  ;;  %v7191_v23 = vrot.slane %v14632_v51, 1 }
 0x65d   : > { %8105 = vst.msk [vmem:[#allocation2 + $0x80] sm:$0xff] %vm706_vm0, %v15774_v50  ;;  %8104 = vst.msk [vmem:[#allocation2 + $0x68] sm:$0xff] %vm706_vm0, %v15775_v55  ;;  %10259 = vmatprep.mubr.msk.f32.mxu0 %vm706_vm0, %v14701_v60  ;;  %v14822_v59 = vsel %vm1370_vm3, %v7181_v18, %v7182_v33  ;;  %v7327_v46 = vrot.slane %v14636_v52, 7  ;;  %v7812_v52 = vld [vmem:[#allocation17 + $0x70] sm:$0xff] }
 0x65e   : > { %v14719_v38 = vld [vmem:[#allocation2 + $0xb0] sm:$0xff] }
 0x65f   : > { %v14721_v7 = vld [vmem:[#allocation2 + $0x98] sm:$0xff]  ;;  %8088 = vst.msk [vmem:[#allocation2 + $0xb0] sm:$0xff] %vm706_vm0, %v15710_v27  ;;  %v6909_v22 = vrot.slane %v14719_v38, 7  ;;  %v7187_v42 = vrot.slane %v14719_v38, 1  ;;  %v8113_v56 = vld [vmem:[#allocation2 + $0x30] sm:$0xff] }
 0x660   : > { %10260 = vmatmul.mubr.msk.f32.gmra.mrb[20].mxu0 %vm706_vm0, %v14721_v7  ;;  %8085 = vst.msk [vmem:[#allocation2 + $0x98] sm:$0xff] %vm706_vm0, %v15710_v27  ;;  %8107 = vst.msk [vmem:[#allocation2 + $0xb0] sm:$0xff] %vm706_vm0, %v15776_v6  ;;  %v6906_v3 = vrot.slane %v14721_v7, 7  ;;  %v7184_v11 = vrot.slane %v14721_v7, 1  ;;  %v8121_v39 = vld [vmem:[#allocation2 + $0x70] sm:$0x3] }
 0x661   : > { %8106 = vst.msk [vmem:[#allocation2 + $0x98] sm:$0xff] %vm706_vm0, %v15777_v13  ;;  %10262 = vmatprep.mubr.msk.f32.mxu0 %vm706_vm0, %v14719_v38  ;;  %v14836_v6 = vsel %vm1370_vm3, %v7187_v42, %v7188_v54  ;;  %v7571_v13 = vld [vmem:[#allocation17 + $0x50] sm:$0xff]  ;;  %v14971_v42 = vld [vmem:[#allocation2 + $0xb8] sm:$0x3]  ;;  %v14973_v54 = vld [vmem:[#allocation2 + $0x60] sm:$0xff] }
 0x662   : > { %v14735_v17 = vld [vmem:[#allocation2 + $0xe0] sm:$0xff]  ;;  %v14829_v50 = vsel %vm1370_vm3, %v7184_v11, %v7185_v10  ;;  %v10565_v51 = vpack.c.bf16 %v7572_v37, %v7571_v13  ;;  %v8198_v10 = vrot.slane %v8121_v39, 2 }
 0x663   : > { %v14737_v29 = vld [vmem:[#allocation2 + $0xc8] sm:$0xff]  ;;  %8094 = vst.msk [vmem:[#allocation2 + $0xe0] sm:$0xff] %vm706_vm0, %v15710_v27  ;;  %v7328_v12 = vrot.slane %v14735_v17, 7 }
 0x664   : > { %10263 = vmatmul.mubr.msk.f32.gmra.mrb[22].mxu0 %vm706_vm0, %v14737_v29  ;;  %8091 = vst.msk [vmem:[#allocation2 + $0xc8] sm:$0xff] %vm706_vm0, %v15710_v27  ;;  %8109 = vst.msk [vmem:[#allocation2 + $0xe0] sm:$0xff] %vm706_vm0, %v15741_v43  ;;  %v6900_v27 = vrot.slane %v14704_v24, 7  ;;  %v6902_v43 = vrot.slane %v14587_v19, 7  ;;  %v6908_v19 = vrot.slane %v14595_v16, 7  ;;  %v6912_v28 = vrot.slane %v14737_v29, 7 }
 0x665   : > { %8108 = vst.msk [vmem:[#allocation2 + $0xc8] sm:$0xff] %vm706_vm0, %v15743_v21  ;;  %10269 = vmatprep.mubr.msk.f32.mxu0 %vm706_vm0, %v14577_v62  ;;  %v6905_v62 = vrot.slane %v14591_v8, 7  ;;  %v6911_v8 = vrot.slane %v14599_v9, 7  ;;  %v7450_v9 = vld [vmem:[#allocation17 + $0x48] sm:$0xff]  ;;  %v7190_v55 = vrot.slane %v14737_v29, 1  ;;  %v7329_v40 = vsel %vm1090_vm2, %v7327_v46, %v7328_v12  ;;  %v14985_v46 = vld [vmem:[#allocation2 + $0x80] sm:$0xff] }
 0x666   : > { %v14767_v21 = vsel %vm1090_vm2, %v6899_v2, %v6900_v27  ;;  %v14774_v25 = vsel %vm1090_vm2, %v6902_v43, %v6903_v61  ;;  %v14788_v32 = vsel %vm1090_vm2, %v6908_v19, %v6909_v22  ;;  %v7567_v2 = vrot.slane %v14735_v17, 1  ;;  %v7934_v61 = vld [vmem:[#allocation17 + $0x80] sm:$0xff]  ;;  %v14957_v41 = vld [vmem:[#allocation2 + $0x68] sm:$0xff] }
 0x667   : > { %v14781_v48 = vsel %vm1090_vm2, %v6905_v62, %v6906_v3  ;;  %v14793_v16 = vsel %vm1090_vm2, %v6911_v8, %v6912_v28  ;;  %v14841_v36 = vsel %vm1370_vm3, %v7190_v55, %v7191_v23  ;;  %v7568_v27 = vrot.slane %v14640_v31, 1  ;;  %v7935_v62 = vld [vmem:[#allocation17 + $0x88] sm:$0xff] }
 0x668   : > { %10270 = vmatmul.mubr.msk.f32.vlgmr.msra.gmra.mrb[16].mxu0 %vm706_vm0, %v6895_v5  ;;  %v10577_v3 = vpack.c.bf16 %v7935_v62, %v7934_v61  ;;  %v7690_v31 = vrot.slane %v14644_v63, 7  ;;  %v7691_v19 = vrot.slane %v14646_v34, 7  ;;  %v7930_v63 = vrot.slane %v14646_v34, 1  ;;  %v14987_v12 = vld [vmem:[#allocation2 + $0x98] sm:$0xff] }
 0x669   : > { %10556 = vmatpush3.bf16.msra.mxu0 %v10553_v35  ;;  %10272 = vmatprep.mubr.msk.f32.mxu0 %vm706_vm0, %v14760_v0  ;;  %v10561_v35 = vpack.c.bf16 %v7450_v9, %v7449_v58  ;;  %v7569_v43 = vsel %vm1370_vm3, %v7567_v2, %v7568_v27  ;;  %v14955_v9 = vld [vmem:[#allocation2 + $0x48] sm:$0xff]  ;;  %v14978_v55 = vrot.slane %v14957_v41, 2 }
 0x66a   : > { %10558 = vmatprep.subr.bf16.mxu0 %v10557_v49  ;;  %v14997_v2 = vld [vmem:[#allocation2 + $0xe8] sm:$0x3] }
 0x66b   : > { %v15001_v27 = vsel %vm3672_vm4, %v14978_v55, %v8198_v10 }
 0x66c   : > { %10273 = vmatmul.mubr.msk.f32.gmra.mrb[18].mxu0 %vm706_vm0, %v14767_v21 }
 0x66d   : > { %10275 = vmatprep.mubr.msk.f32.mxu0 %vm706_vm0, %v14774_v25 }
 0x670   : > { %10276 = vmatmul.mubr.msk.f32.gmra.mrb[20].mxu0 %vm706_vm0, %v14781_v48 }
 0x671   : > { %10278 = vmatprep.mubr.msk.f32.mxu0 %vm706_vm0, %v14788_v32 }
 0x674   : > { %10279 = vmatmul.mubr.msk.f32.gmra.mrb[22].mxu0 %vm706_vm0, %v14793_v16 }
 0x675   : > { %10285 = vmatprep.mubr.msk.f32.mxu0 %vm706_vm0, %v14610_v57  ;;  %v14815_v57 = vsel %vm1370_vm3, %v7178_v53, %v7179_v47 }
 0x678   : > { %10286 = vmatmul.mubr.msk.f32.vlgmr.msra.gmra.mrb[16].mxu0 %vm706_vm0, %v7174_v30 }
 0x679   : > { %10560 = vmatpush3.bf16.msra.mxu0 %v10557_v49  ;;  %10288 = vmatprep.mubr.msk.f32.mxu0 %vm706_vm0, %v14808_v44  ;;  %v10569_v49 = vpack.c.bf16 %v7695_v14, %v7694_v45  ;;  %v8207_v45 = vrot.slane %v14971_v42, 2 }
 0x67a   : > { %10562 = vmatprep.subr.bf16.mxu0 %v10561_v35 }
 0x67c   : > { %10289 = vmatmul.mubr.msk.f32.gmra.mrb[18].mxu0 %vm706_vm0, %v14815_v57 }
 0x67d   : > { %10291 = vmatprep.mubr.msk.f32.mxu0 %vm706_vm0, %v14822_v59 }
 0x680   : > { %10292 = vmatmul.mubr.msk.f32.gmra.mrb[20].mxu0 %vm706_vm0, %v14829_v50 }
 0x681   : > { %10294 = vmatprep.mubr.msk.f32.mxu0 %vm706_vm0, %v14836_v6 }
 0x684   : > { %10295 = vmatmul.mubr.msk.f32.gmra.mrb[22].mxu0 %vm706_vm0, %v14841_v36 }
 0x685   : > { %10301 = vmatprep.mubr.msk.f32.mxu0 %vm706_vm0, %v6895_v5 }
 0x688   : > { %10302 = vmatmul.mubr.msk.f32.vlgmr.msra.gmra.mrb[16].mxu0 %vm706_vm0, %v14760_v0 }
 0x689   : > { %10564 = vmatpush3.bf16.msra.mxu0 %v10561_v35  ;;  %10304 = vmatprep.mubr.msk.f32.mxu0 %vm706_vm0, %v14767_v21 }
 0x68a   : > { %10566 = vmatprep.subr.bf16.mxu0 %v10565_v51 }
 0x68c   : > { %10305 = vmatmul.mubr.msk.f32.gmra.mrb[18].mxu0 %vm706_vm0, %v14774_v25 }
 0x68d   : > { %10307 = vmatprep.mubr.msk.f32.mxu0 %vm706_vm0, %v14781_v48 }
 0x690   : > { %10308 = vmatmul.mubr.msk.f32.gmra.mrb[20].mxu0 %vm706_vm0, %v14788_v32 }
 0x691   : > { %10310 = vmatprep.mubr.msk.f32.mxu0 %vm706_vm0, %v14793_v16 }
 0x694   : > { %10311 = vmatmul.mubr.msk.f32.gmra.mrb[22].mxu0 %vm706_vm0, %v7329_v40 }
 0x695   : > { %10317 = vmatprep.mubr.msk.f32.mxu0 %vm706_vm0, %v14685_v15  ;;  %v7813_v15 = vld [vmem:[#allocation17 + $0x78] sm:$0xff] }
 0x696   : > { %v10573_v5 = vpack.c.bf16 %v7813_v15, %v7812_v52 }
 0x698   : > { %10318 = vmatmul.mubr.msk.f32.vlgmr.msra.gmra.mrb[16].mxu0 %vm706_vm0, %v14682_v26 }
 0x699   : > { %10568 = vmatpush3.bf16.msra.mxu0 %v10565_v51  ;;  %10320 = vmatprep.mubr.msk.f32.mxu0 %vm706_vm0, %v14704_v24 }
 0x69a   : > { %10570 = vmatprep.subr.bf16.mxu0 %v10569_v49 }
 0x69c   : > { %10321 = vmatmul.mubr.msk.f32.gmra.mrb[18].mxu0 %vm706_vm0, %v14701_v60 }
 0x69d   : > { %10323 = vmatprep.mubr.msk.f32.mxu0 %vm706_vm0, %v14721_v7 }
 0x6a0   : > { %10324 = vmatmul.mubr.msk.f32.gmra.mrb[20].mxu0 %vm706_vm0, %v14719_v38 }
 0x6a1   : > { %10326 = vmatprep.mubr.msk.f32.mxu0 %vm706_vm0, %v14737_v29 }
 0x6a4   : > { %10327 = vmatmul.mubr.msk.f32.gmra.mrb[22].mxu0 %vm706_vm0, %v14735_v17 }
 0x6a5   : > { %10333 = vmatprep.mubr.msk.f32.mxu0 %vm706_vm0, %v7174_v30 }
 0x6a8   : > { %10334 = vmatmul.mubr.msk.f32.vlgmr.msra.gmra.mrb[16].mxu0 %vm706_vm0, %v14808_v44 }
 0x6a9   : > { %10572 = vmatpush3.bf16.msra.mxu0 %v10569_v49  ;;  %10336 = vmatprep.mubr.msk.f32.mxu0 %vm706_vm0, %v14815_v57 }
 0x6aa   : > { %10574 = vmatprep.subr.bf16.mxu0 %v10573_v5 }
 0x6ac   : > { %10337 = vmatmul.mubr.msk.f32.gmra.mrb[18].mxu0 %vm706_vm0, %v14822_v59 }
 0x6ad   : > { %10339 = vmatprep.mubr.msk.f32.mxu0 %vm706_vm0, %v14829_v50 }
 0x6b0   : > { %10340 = vmatmul.mubr.msk.f32.gmra.mrb[20].mxu0 %vm706_vm0, %v14836_v6 }
 0x6b1   : > { %10342 = vmatprep.mubr.msk.f32.mxu0 %vm706_vm0, %v14841_v36 }
 0x6b4   : > { %10343 = vmatmul.mubr.msk.f32.gmra.mrb[22].mxu0 %vm706_vm0, %v7569_v43 }
 0x6b5   : > { %10349 = vmatprep.mubr.msk.f32.mxu0 %vm706_vm0, %v14760_v0  ;;  %v7692_v0 = vsel %vm1090_vm2, %v7690_v31, %v7691_v19  ;;  %v15008_v31 = vld [vmem:[#allocation2 + $0x100] sm:$0x3]  ;;  %v15011_v19 = vrot.slane %v14985_v46, 1 }
 0x6b8   : > { %10350 = vmatmul.mubr.msk.f32.vlgmr.msra.gmra.mrb[16].mxu0 %vm706_vm0, %v14767_v21  ;;  %v8115_v21 = vld [vmem:[#allocation2 + $0x40] sm:$0x3] }
 0x6b9   : > { %10576 = vmatpush3.bf16.msra.mxu0 %v10573_v5  ;;  %10352 = vmatprep.mubr.msk.f32.mxu0 %vm706_vm0, %v14774_v25  ;;  %v8192_v28 = vrot.slane %v8115_v21, 2  ;;  %v8133_v5 = vld [vmem:[#allocation2 + $0xd0] sm:$0x3] }
 0x6ba   : > { %10578 = vmatprep.subr.bf16.mxu0 %v10577_v3  ;;  %v15027_v21 = vld [vmem:[#allocation2 + $0x90] sm:$0xff] }
 0x6bc   : > { %10353 = vmatmul.mubr.msk.f32.gmra.mrb[18].mxu0 %vm706_vm0, %v14781_v48 }
 0x6bd   : > { %10355 = vmatprep.mubr.msk.f32.mxu0 %vm706_vm0, %v14788_v32 }
 0x6c0   : > { %10356 = vmatmul.mubr.msk.f32.gmra.mrb[20].mxu0 %vm706_vm0, %v14793_v16  ;;  %v8118_v16 = vld [vmem:[#allocation2 + $0x58] sm:$0x3] }
 0x6c1   : > { %10358 = vmatprep.mubr.msk.f32.mxu0 %vm706_vm0, %v7329_v40  ;;  %v8195_v18 = vrot.slane %v8118_v16, 2 }
 0x6c4   : > { %10359 = vmatmul.mubr.msk.f32.gmra.mrb[22].mxu0 %vm706_vm0, %v7692_v0 }
 0x6c5   : > { %10365 = vmatprep.mubr.msk.f32.mxu0 %vm706_vm0, %v14682_v26  ;;  %v7931_v26 = vrot.slane %v14652_v20, 1 }
 0x6c8   : > { %10366 = vmatmul.mubr.msk.f32.vlgmr.msra.gmra.mrb[16].mxu0 %vm706_vm0, %v14704_v24  ;;  %v8111_v24 = vld [vmem:[#allocation2 + $0x20] sm:$0xff] }
 0x6c9   : > { %10580 = vmatpush3.bf16.msra.mxu0 %v10577_v3  ;;  %10368 = vmatprep.mubr.msk.f32.mxu0 %vm706_vm0, %v14701_v60  ;;  %v7932_v60 = vsel %vm1370_vm3, %v7930_v63, %v7931_v26  ;;  %v8188_v25 = vrot.slane %v8111_v24, 2  ;;  %v15006_v3 = vld [vmem:[#allocation2 + $0xf8] sm:$0xff]  ;;  %v15016_v26 = vrot.slane %v14987_v12, 1 }
 0x6cc   : > { %10369 = vmatmul.mubr.msk.f32.gmra.mrb[18].mxu0 %vm706_vm0, %v14721_v7  ;;  %v8148_v7 = vrot.slane %v8111_v24, 1 }
 0x6cd   : > { %10371 = vmatprep.mubr.msk.f32.mxu0 %vm706_vm0, %v14719_v38  ;;  %v8112_v38 = vld [vmem:[#allocation2 + $0x28] sm:$0x3] }
 0x6ce   : > { %v8189_v22 = vrot.slane %v8112_v38, 2  ;;  %v8165_v32 = vmax.f32 %v8111_v24, %v8148_v7  ;;  %v15022_v24 = vrot.slane %v14987_v12, 2  ;;  %v8210_v38 = vrot.slane %v8133_v5, 2 }
 0x6d0   : > { %10372 = vmatmul.mubr.msk.f32.gmra.mrb[20].mxu0 %vm706_vm0, %v14737_v29  ;;  %v8110_v29 = vld [vmem:[#allocation2 + $0x18] sm:$0xff]  ;;  %v8190_v4 = vsel %vm3672_vm4, %v8188_v25, %v8189_v22  ;;  %v8337_v22 = vrot.slane %v15006_v3, 2 }
 0x6d1   : > { %10374 = vmatprep.mubr.msk.f32.mxu0 %vm706_vm0, %v14735_v17  ;;  %v8114_v17 = vld [vmem:[#allocation2 + $0x38] sm:$0xff]  ;;  %v8164_v48 = vmax.f32 %v8110_v29, %v8148_v7  ;;  %v8229_v33 = vmax.f32 %v8165_v32, %v8190_v4  ;;  %v8281_v7 = vrot.slane %v14997_v2, 2 }
 0x6d2   : > { %v14947_v20 = vrot.slane %v8114_v17, 1  ;;  %v14949_v8 = vrot.slane %v8114_v17, 2  ;;  %v15038_v4 = vld [vmem:[#allocation2 + $0x78] sm:$0xff] }
 0x6d3   : > { %v8228_v53 = vmax.f32 %v8164_v48, %v8188_v25  ;;  %v8245_v51 = vmax.f32 %v8229_v33, %v8114_v17  ;;  %v15029_v25 = vld [vmem:[#allocation2 + $0xc8] sm:$0xff] }
 0x6d4   : > { %10375 = vmatmul.mubr.msk.f32.gmra.mrb[22].mxu0 %vm706_vm0, %v14646_v34  ;;  %v14945_v34 = vld [vmem:[#allocation2 + $0x50] sm:$0xff]  ;;  %v8166_v35 = vmax.f32 %v8113_v56, %v14947_v20  ;;  %v8167_v30 = vmax.f32 %v8114_v17, %v14947_v20  ;;  %v8193_v47 = vsel %vm3672_vm4, %v14949_v8, %v8192_v28 }
 0x6d5   : > { %10381 = vmatprep.mubr.msk.f32.mxu0 %vm706_vm0, %v14808_v44  ;;  %v14953_v58 = vrot.slane %v14945_v34, 1  ;;  %v14964_v44 = vrot.slane %v14945_v34, 2  ;;  %v8244_v37 = vmax.f32 %v8228_v53, %v8113_v56  ;;  %v8264_v63 = vmax.f32 %v8245_v51, %v14947_v20  ;;  %v15040_v56 = vld [vmem:[#allocation2 + $0xb0] sm:$0xff]  ;;  %v15074_v51 = vld [vmem:[#allocation2 + $0xa8] sm:$0xff] }
 0x6d6   : > { %v8230_v23 = vmax.f32 %v8166_v35, %v14949_v8  ;;  %v8175_v53 = vmax.f32 %v14987_v12, %v15016_v26  ;;  %v15062_v10 = vrot.slane %v15040_v56, 1 }
 0x6d7   : > { %v8168_v11 = vmax.f32 %v14955_v9, %v14953_v58  ;;  %v14983_v13 = vsel %vm3672_vm4, %v14964_v44, %v8195_v18  ;;  %v8263_v0 = vmax.f32 %v8244_v37, %v14947_v20  ;;  %v8338_v20 = vrot.slane %v15008_v31, 2 }
 0x6d8   : > { %10382 = vmatmul.mubr.msk.f32.vlgmr.msra.gmra.mrb[16].mxu0 %vm706_vm0, %v14815_v57  ;;  %v14967_v57 = vrot.slane %v14957_v41, 1  ;;  %v8246_v61 = vmax.f32 %v8230_v23, %v14955_v9  ;;  %v8286_v35 = vmax.f32 %v8264_v63, %v8193_v47  ;;  %v8174_v18 = vmax.f32 %v15027_v21, %v15016_v26 }
 0x6d9   : > { %10384 = vmatprep.mubr.msk.f32.mxu0 %vm706_vm0, %v14822_v59  ;;  %v8124_v59 = vld [vmem:[#allocation2 + $0x88] sm:$0x3]  ;;  %v14995_v52 = vmax.f32 %v8168_v11, %v14964_v44  ;;  %v8285_v39 = vmax.f32 %v8263_v0, %v14949_v8  ;;  %v15058_v8 = vrot.slane %v15029_v25, 1  ;;  %v15069_v23 = vrot.slane %v15029_v25, 2 }
 0x6da   : > { %v8201_v40 = vrot.slane %v8124_v59, 2  ;;  %v8170_v14 = vmax.f32 %v14973_v54, %v14967_v57  ;;  %v8171_v49 = vmax.f32 %v14957_v41, %v14967_v57  ;;  %v8265_v32 = vmax.f32 %v8246_v61, %v14953_v58 }
 0x6db   : > { %v8248_v48 = vmax.f32 %v14995_v52, %v14973_v54  ;;  %v8172_v59 = vmax.f32 %v15038_v4, %v15011_v19  ;;  %v8302_v5 = vmax.f32 %v8286_v35, %v14945_v34  ;;  %v8176_v63 = vmax.f32 %v15074_v51, %v15062_v10 }
 0x6dc   : > { %10385 = vmatmul.mubr.msk.f32.gmra.mrb[18].mxu0 %vm706_vm0, %v14829_v50  ;;  %v8169_v50 = vmax.f32 %v14945_v34, %v14953_v58  ;;  %v8234_v17 = vmax.f32 %v8170_v14, %v14978_v55  ;;  %v8235_v29 = vmax.f32 %v8171_v49, %v15001_v27  ;;  %v8301_v49 = vmax.f32 %v8285_v39, %v14955_v9 }
 0x6dd   : > { %10387 = vmatprep.mubr.msk.f32.mxu0 %vm706_vm0, %v14836_v6  ;;  %v8231_v6 = vmax.f32 %v8167_v30, %v8193_v47  ;;  %v8173_v30 = vmax.f32 %v14985_v46, %v15011_v19  ;;  %v8177_v9 = vmax.f32 %v15040_v56, %v15062_v10 }
 0x6de   : > { %v8251_v47 = vmax.f32 %v8235_v29, %v14985_v46  ;;  %v8250_v37 = vmax.f32 %v8234_v17, %v15038_v4  ;;  %v15096_v17 = vsel %vm3672_vm4, %v15069_v23, %v8210_v38  ;;  %v8267_v38 = vmax.f32 %v8248_v48, %v14967_v57 }
 0x6df   : > { %v8247_v62 = vmax.f32 %v8231_v6, %v14945_v34 }
 0x6e0   : > { %10388 = vmatmul.mubr.msk.f32.gmra.mrb[20].mxu0 %vm706_vm0, %v14841_v36  ;;  %v8127_v36 = vld [vmem:[#allocation2 + $0xa0] sm:$0x3]  ;;  %v8269_v29 = vmax.f32 %v8250_v37, %v15011_v19 }
 0x6e1   : > { %10390 = vmatprep.mubr.msk.f32.mxu0 %vm706_vm0, %v7569_v43  ;;  %v8204_v15 = vrot.slane %v8127_v36, 2  ;;  %v8233_v43 = vmax.f32 %v8169_v50, %v14983_v13  ;;  %v8266_v16 = vmax.f32 %v8247_v62, %v14953_v58  ;;  %v15066_v50 = vld [vmem:[#allocation2 + $0xc0] sm:$0xff]  ;;  %v8287_v36 = vmax.f32 %v8265_v32, %v14964_v44 }
 0x6e2   : > { %v8178_v61 = vmax.f32 %v15066_v50, %v15058_v8  ;;  %v8179_v62 = vmax.f32 %v15029_v25, %v15058_v8 }
 0x6e3   : > { %v8249_v28 = vmax.f32 %v8233_v43, %v14957_v41  ;;  %v15055_v11 = vsel %vm3672_vm4, %v15022_v24, %v8204_v15  ;;  %v8288_v14 = vmax.f32 %v8266_v16, %v14983_v13  ;;  %v8238_v43 = vmax.f32 %v8174_v18, %v15022_v24 }
 0x6e4   : > { %10391 = vmatmul.mubr.msk.f32.gmra.mrb[22].mxu0 %vm706_vm0, %v7932_v60  ;;  %v15019_v60 = vrot.slane %v14985_v46, 2  ;;  %v8239_v15 = vmax.f32 %v8175_v53, %v15055_v11  ;;  %v8303_v34 = vmax.f32 %v8287_v36, %v14973_v54  ;;  %v8320_v54 = vmax.f32 %v8301_v49, %v14953_v58 }
 0x6e5   : > { %v8268_v6 = vmax.f32 %v8249_v28, %v14967_v57  ;;  %v8270_v28 = vmax.f32 %v8251_v47, %v15011_v19  ;;  %v8304_v16 = vmax.f32 %v8288_v14, %v14957_v41  ;;  %v8243_v53 = vmax.f32 %v8179_v62, %v15096_v17 }
 0x6e6   : > { %v15051_v33 = vsel %vm3672_vm4, %v15019_v60, %v8201_v40  ;;  %v15077_v40 = vrot.slane %v15040_v56, 2  ;;  %v8236_v0 = vmax.f32 %v8172_v59, %v15019_v60  ;;  %v8255_v35 = vmax.f32 %v8239_v15, %v15040_v56  ;;  %v15119_v59 = vld [vmem:[#allocation2 + $0xd8] sm:$0xff]  ;;  %v8135_v15 = vld [vmem:[#allocation2 + $0xe0] sm:$0xff] }
 0x6e7   : > { %v8237_v52 = vmax.f32 %v8173_v30, %v15051_v33  ;;  %v8242_v30 = vmax.f32 %v8178_v61, %v15069_v23  ;;  %v8254_v42 = vmax.f32 %v8238_v43, %v15074_v51  ;;  %v8321_v18 = vmax.f32 %v8302_v5, %v14953_v58 }
 0x6e8   : > { %v15105_v32 = vsel %vm3672_vm4, %v15077_v40, %v8207_v45  ;;  %v8252_v45 = vmax.f32 %v8236_v0, %v15027_v21  ;;  %v8240_v41 = vmax.f32 %v8176_v63, %v15077_v40  ;;  %v8290_v48 = vmax.f32 %v8268_v6, %v15001_v27 }
 0x6e9   : > { %v8253_v39 = vmax.f32 %v8237_v52, %v14987_v12  ;;  %v8241_v47 = vmax.f32 %v8177_v9, %v15105_v32  ;;  %v8322_v36 = vmax.f32 %v8303_v34, %v14967_v57  ;;  %v8291_v37 = vmax.f32 %v8269_v29, %v15019_v60 }
 0x6ea   : > { %v8292_v14 = vmax.f32 %v8270_v28, %v15051_v33  ;;  %v8323_v49 = vmax.f32 %v8304_v16, %v14967_v57  ;;  %v8289_v52 = vmax.f32 %v8267_v38, %v14978_v55  ;;  %v8274_v5 = vmax.f32 %v8255_v35, %v15062_v10 }
 0x6eb   : > { %v8272_v58 = vmax.f32 %v8253_v39, %v15016_v26  ;;  %v8342_v43 = vmax.f32 %v8320_v54, %v14964_v44  ;;  %v8259_v61 = vmax.f32 %v8243_v53, %v8135_v15  ;;  %v8273_v6 = vmax.f32 %v8254_v42, %v15062_v10 }
 0x6ec   : > { %v8258_v62 = vmax.f32 %v8242_v30, %v15119_v59  ;;  %v8343_v0 = vmax.f32 %v8321_v18, %v14983_v13  ;;  %v8256_v63 = vmax.f32 %v8240_v41, %v15066_v50  ;;  %v8257_v57 = vmax.f32 %v8241_v47, %v15029_v25 }
 0x6ed   : > { %v8271_v9 = vmax.f32 %v8252_v45, %v15016_v26  ;;  %v8307_v34 = vmax.f32 %v8291_v37, %v15027_v21  ;;  %v8308_v29 = vmax.f32 %v8292_v14, %v14987_v12  ;;  %v8306_v28 = vmax.f32 %v8290_v48, %v14985_v46 }
 0x6ee   : > { %v15139_v44 = vrot.slane %v8135_v15, 1  ;;  %v8294_v16 = vmax.f32 %v8272_v58, %v15055_v11  ;;  %v8305_v39 = vmax.f32 %v8289_v52, %v15038_v4  ;;  %v8296_v13 = vmax.f32 %v8274_v5, %v15105_v32  ;;  %v8137_v58 = vld [vmem:[#allocation2 + $0xf0] sm:$0xff] }
 0x6ef   : > { %v15144_v35 = vrot.slane %v8135_v15, 2  ;;  %v8344_v38 = vmax.f32 %v8322_v36, %v14978_v55  ;;  %v8295_v54 = vmax.f32 %v8273_v6, %v15077_v40  ;;  %v8345_v46 = vmax.f32 %v8323_v49, %v15001_v27 }
 0x6f0   : > { %v8277_v21 = vmax.f32 %v8258_v62, %v15139_v44  ;;  %v8278_v12 = vmax.f32 %v8259_v61, %v15139_v44  ;;  %v8276_v30 = vmax.f32 %v8257_v57, %v15058_v8  ;;  %v8293_v53 = vmax.f32 %v8271_v9, %v15022_v24 }
 0x6f1   : > { %v8275_v4 = vmax.f32 %v8256_v63, %v15058_v8  ;;  %v8374_v42 = vrot.slane %v8342_v43, 7  ;;  %v8326_v18 = vmax.f32 %v8307_v34, %v15016_v26  ;;  %v8327_v45 = vmax.f32 %v8308_v29, %v15016_v26 }
 0x6f2   : > { %v8325_v55 = vmax.f32 %v8306_v28, %v15011_v19  ;;  %v8324_v41 = vmax.f32 %v8305_v39, %v15011_v19  ;;  %v8312_v47 = vmax.f32 %v8296_v13, %v15029_v25  ;;  %v8310_v48 = vmax.f32 %v8294_v16, %v15040_v56 }
 0x6f3   : > { %v15164_v27 = vsel %vm3672_vm4, %v15144_v35, %v8281_v7  ;;  %v8375_v36 = vrot.slane %v8343_v0, 7  ;;  %v8311_v37 = vmax.f32 %v8295_v54, %v15066_v50  ;;  %v8299_v14 = vmax.f32 %v8277_v21, %v15144_v35 }
 0x6f4   : > { %v8300_v26 = vmax.f32 %v8278_v12, %v15164_v27  ;;  %v8377_v49 = vrot.slane %v8344_v38, 7  ;;  %v8298_v19 = vmax.f32 %v8276_v30, %v15096_v17  ;;  %v8309_v25 = vmax.f32 %v8293_v53, %v15074_v51  ;;  %v15182_v51 = vld [vmem:[%s15778_s30] ss:$0 sm:$0xff] }
 0x6f5   : > { %v8297_v56 = vmax.f32 %v8275_v4, %v15069_v23  ;;  %v8378_v2 = vrot.slane %v8345_v46, 7  ;;  %v8348_v52 = vmax.f32 %v8326_v18, %v15022_v24  ;;  %v8349_v7 = vmax.f32 %v8327_v45, %v15055_v11 }
 0x6f6   : > { %v8347_v5 = vmax.f32 %v8325_v55, %v15051_v33  ;;  %v8346_v50 = vmax.f32 %v8324_v41, %v15019_v60  ;;  %v8331_v43 = vmax.f32 %v8312_v47, %v15058_v8  ;;  %v8329_v61 = vmax.f32 %v8310_v48, %v15062_v10 }
 0x6f7   : > { %v8318_v6 = vrot.slane %v15006_v3, 1  ;;  %v8330_v62 = vmax.f32 %v8311_v37, %v15058_v8  ;;  %v8315_v24 = vmax.f32 %v8299_v14, %v8137_v58  ;;  %v8316_v11 = vmax.f32 %v8300_v26, %v15006_v3 }
 0x6f8   : > { %v8339_v60 = vsel %vm3672_vm4, %v8337_v22, %v8338_v20  ;;  %v8376_v33 = vsel %vm1090_vm2, %v8374_v42, %v8375_v36  ;;  %v8328_v0 = vmax.f32 %v8309_v25, %v15062_v10  ;;  %v8313_v63 = vmax.f32 %v8297_v56, %v15119_v59 }
 0x6f9   : > { %v8314_v57 = vmax.f32 %v8298_v19, %v8135_v15  ;;  %v8379_v34 = vsel %vm1090_vm2, %v8377_v49, %v8378_v2  ;;  %v8383_v8 = vrot.slane %v8348_v52, 7  ;;  %v8384_v29 = vrot.slane %v8349_v7, 7 }
 0x6fa   : > { %v8381_v28 = vrot.slane %v8347_v5, 7  ;;  %v8380_v39 = vrot.slane %v8346_v50, 7  ;;  %v8353_v13 = vmax.f32 %v8331_v43, %v15096_v17  ;;  %v8351_v20 = vmax.f32 %v8329_v61, %v15105_v32 }
 0x6fb   : > { %v8352_v10 = vmax.f32 %v8330_v62, %v15069_v23  ;;  %v8334_v59 = vmax.f32 %v8315_v24, %v8318_v6  ;;  %v8335_v15 = vmax.f32 %v8316_v11, %v8318_v6  ;;  %v8350_v21 = vmax.f32 %v8328_v0, %v15077_v40  ;;  %v8459_v24 = vpop.permute.xlu1 %8458  ;;  %v8455_v11 = vpop.permute.xlu0 %8454 }
 0x6fc   : > { %v8332_v12 = vmax.f32 %v8313_v63, %v15139_v44  ;;  %v8333_v46 = vmax.f32 %v8314_v57, %v15139_v44  ;;  %v8385_v4 = vsel %vm1090_vm2, %v8383_v8, %v8384_v29  ;;  %v8382_v23 = vsel %vm1090_vm2, %v8380_v39, %v8381_v28 }
 0x6fd   : > { %v8390_v42 = vrot.slane %v8353_v13, 7  ;;  %v8387_v18 = vrot.slane %v8351_v20, 7  ;;  %v8389_v45 = vrot.slane %v8352_v10, 7  ;;  %v8356_v44 = vmax.f32 %v8334_v59, %v8337_v22  ;;  %v15779_v13 = vld [vmem:[#allocation49_spill] sm:$0xff]  ;;  %v15780_v10 = vld [vmem:[#allocation43_spill] sm:$0xff] }
 0x6fe   : > { %v8357_v55 = vmax.f32 %v8335_v15, %v8339_v60  ;;  %v8386_v47 = vrot.slane %v8350_v21, 7  ;;  %v8354_v48 = vmax.f32 %v8332_v12, %v15144_v35  ;;  %v8355_v36 = vmax.f32 %v8333_v46, %v15164_v27 }
 0x6ff   : > { %v8391_v19 = vsel %vm1090_vm2, %v8389_v45, %v8390_v42  ;;  %v8395_v3 = vrot.slane %v8356_v44, 7  ;;  %v8461_v60 = vpop.permute.xlu1 %8460  ;;  %v8542_v59 = vsel %vm706_vm0, %v15780_v10, %v8455_v11  ;;  %v15783_v44 = vld [vmem:[#allocation44_spill] sm:$0xff] }
 0x700   : > { %v8396_v22 = vrot.slane %v8357_v55, 7  ;;  %v8388_v35 = vsel %vm1090_vm2, %v8386_v47, %v8387_v18  ;;  %v8392_v56 = vrot.slane %v8354_v48, 7  ;;  %v8393_v27 = vrot.slane %v8355_v36, 7 }
 0x702   : > { %v8397_v50 = vsel %vm1090_vm2, %v8395_v3, %v8396_v22  ;;  %v8394_v6 = vsel %vm1090_vm2, %v8392_v56, %v8393_v27 }
 0x703   : > { %v8465_v0 = vpop.permute.xlu1 %8464 }
 0x704   : > { %v8547_v55 = vsel %vm706_vm0, %v15783_v44, %v8465_v0 }
 0x707   : > { %v8469_v57 = vpop.permute.xlu1 %8468 }
 0x7ab   : > { %v10383_v9 = vpop.f32.mrb[16].mxu0 }
 0x7ac   : > { %v8059_v16 = vadd.f32 %v10383_v9, %v15182_v51  ;;  %v8004_v31 = vpop.f32.mrb[17].mxu0 }
 0x7ad   : > { %v8058_v38 = vadd.f32 %v15182_v51, %v8004_v31 }
 0x7ae   : > { %v8407_v54 = vadd.f32 %v8379_v34, %v8059_v16  ;;  %v8489_v34 = vpop.permute.xlu1 %8488 }
 0x7af   : > { %v8406_v30 = vadd.f32 %v8376_v33, %v8058_v38  ;;  %v10386_v53 = vpop.f32.mrb[18].mxu0  ;;  %v8457_v33 = vpop.permute.xlu0 %8456 }
 0x7b0   : > { %v8061_v17 = vadd.f32 %v10386_v53, %v15182_v51  ;;  %8520 = vrot.lane.b32.xlu1 %v8407_v54, %s11395_s0  ;;  %v8014_v32 = vpop.f32.mrb[19].mxu0  ;;  %v8543_v20 = vsel %vm706_vm0, %v15779_v13, %v8457_v33 }
 0x7b1   : > { %v8060_v40 = vadd.f32 %v15182_v51, %v8014_v32  ;;  %8518 = vrot.lane.b32.xlu0 %v8406_v30, %s11395_s0  ;;  %v8552_v38 = vsel %vm8550_vm11, %v8543_v20, %v8489_v34  ;;  %v15781_v30 = vld [vmem:[#allocation92_spill] sm:$0xff] }
 0x7b2   : > { %v8409_v41 = vadd.f32 %v8385_v4, %v8061_v17  ;;  %v8493_v8 = vpop.permute.xlu1 %8492  ;;  %v8545_v53 = vsel %vm706_vm0, %v15781_v30, %v8461_v60  ;;  %v15782_v17 = vld [vmem:[#allocation56_spill] sm:$0xff] }
 0x7b3   : > { %v8408_v37 = vadd.f32 %v8382_v23, %v8060_v40  ;;  %v10389_v14 = vpop.f32.mrb[20].mxu0  ;;  %v8463_v63 = vpop.permute.xlu0 %8462  ;;  %v8554_v4 = vsel %vm8550_vm11, %v8545_v53, %v8493_v8  ;;  %v8544_v32 = vsel %vm706_vm0, %v15782_v17, %v8459_v24 }
 0x7b4   : > { %v8063_v26 = vadd.f32 %v10389_v14, %v15182_v51  ;;  %8524 = vrot.lane.b32.xlu1 %v8409_v41, %s11395_s0  ;;  %v8024_v49 = vpop.f32.mrb[21].mxu0  ;;  %v8546_v47 = vsel %vm706_vm0, %v13964_v1, %v8463_v63 }
 0x7b5   : > { %v8062_v25 = vadd.f32 %v15182_v51, %v8024_v49  ;;  %8522 = vrot.lane.b32.xlu0 %v8408_v37, %s11395_s0  ;;  %v15784_v49 = vld [vmem:[#allocation53_spill] sm:$0xff] }
 0x7b6   : > { %v8411_v58 = vadd.f32 %v8391_v19, %v8063_v26  ;;  %v8497_v28 = vpop.permute.xlu1 %8496  ;;  %v8549_v19 = vsel %vm706_vm0, %v15784_v49, %v8469_v57 }
 0x7b7   : > { %v8410_v2 = vadd.f32 %v8388_v35, %v8062_v25  ;;  %v10392_v52 = vpop.f32.mrb[22].mxu0  ;;  %v8467_v9 = vpop.permute.xlu0 %8466  ;;  %v8556_v41 = vsel %vm8550_vm11, %v8547_v55, %v8497_v28  ;;  %v15785_v25 = vld [vmem:[#allocation59_spill] sm:$0xff] }
 0x7b8   : > { %v8065_v7 = vadd.f32 %v10392_v52, %v15182_v51  ;;  %8528 = vrot.lane.b32.xlu1 %v8411_v58, %s11395_s0  ;;  %v8034_v5 = vpop.f32.mrb[23].mxu0  ;;  %v8548_v3 = vsel %vm706_vm0, %v15785_v25, %v8467_v9 }
 0x7b9   : > { %v8064_v43 = vadd.f32 %v15182_v51, %v8034_v5  ;;  %8526 = vrot.lane.b32.xlu0 %v8410_v2, %s11395_s0 }
 0x7ba   : > { %v8413_v61 = vadd.f32 %v8397_v50, %v8065_v7  ;;  %v8501_v31 = vpop.permute.xlu1 %8500 }
 0x7bb   : > { %v8412_v62 = vadd.f32 %v8394_v6, %v8064_v43  ;;  %v8487_v51 = vpop.permute.xlu0 %8486  ;;  %v8558_v1 = vsel %vm8550_vm11, %v8549_v19, %v8501_v31 }
 0x7bc   : > { %8532 = vrot.lane.b32.xlu1 %v8413_v61, %s11395_s0  ;;  %v8551_v54 = vsel %vm8550_vm11, %v8542_v59, %v8487_v51 }
 0x7bd   : > { %8530 = vrot.lane.b32.xlu0 %v8412_v62, %s11395_s0 }
 0x7bf   : > { %v8491_v29 = vpop.permute.xlu0 %8490 }
 0x7c0   : > { %v8553_v42 = vsel %vm8550_vm11, %v8544_v32, %v8491_v29 }
 0x7c3   : > { %v8495_v16 = vpop.permute.xlu0 %8494 }
 0x7c4   : > { %v8555_v36 = vsel %vm8550_vm11, %v8546_v47, %v8495_v16 }
 0x7c7   : > { %v8499_v39 = vpop.permute.xlu0 %8498 }
 0x7c8   : > { %v8557_v58 = vsel %vm8550_vm11, %v8548_v3, %v8499_v39 }
 0x822   : > { %v8521_v15 = vpop.permute.xlu1 %8520 }
 0x823   : > { %v8561_v21 = vsel %vm8559_vm12, %v8552_v38, %v8521_v15  ;;  %v8519_v12 = vpop.permute.xlu0 %8518 }
 0x824   : > { %8570 = vst.msk [vmem:[%s15235_s16 + $0x8] sm:$0xff] %vm8568_vm13, %v8561_v21  ;;  %v8560_v46 = vsel %vm8559_vm12, %v8551_v54, %v8519_v12 }
 0x825   : > { %8569 = vst.msk [vmem:[%s15235_s16] sm:$0xff] %vm8568_vm13, %v8560_v46 }
 0x826   : > { %v8525_v23 = vpop.permute.xlu1 %8524 }
 0x827   : > { %v8563_v18 = vsel %vm8559_vm12, %v8554_v4, %v8525_v23  ;;  %v8523_v40 = vpop.permute.xlu0 %8522 }
 0x828   : > { %8572 = vst.msk [vmem:[%s15235_s16 + $0x18] sm:$0xff] %vm8568_vm13, %v8563_v18  ;;  %v8562_v45 = vsel %vm8559_vm12, %v8553_v42, %v8523_v40 }
 0x829   : > { %8571 = vst.msk [vmem:[%s15235_s16 + $0x10] sm:$0xff] %vm8568_vm13, %v8562_v45 }
 0x82a   : > { %v8529_v48 = vpop.permute.xlu1 %8528 }
 0x82b   : > { %v8565_v37 = vsel %vm8559_vm12, %v8556_v41, %v8529_v48  ;;  %v8527_v14 = vpop.permute.xlu0 %8526 }
 0x82c   : > { %8574 = vst.msk [vmem:[%s15235_s16 + $0x28] sm:$0xff] %vm8568_vm13, %v8565_v37  ;;  %v8564_v26 = vsel %vm8559_vm12, %v8555_v36, %v8527_v14 }
 0x82d   : > { %8573 = vst.msk [vmem:[%s15235_s16 + $0x20] sm:$0xff] %vm8568_vm13, %v8564_v26 }
 0x82e   : > { %v8533_v22 = vpop.permute.xlu1 %8532 }
 0x82f   : > { %v8567_v35 = vsel %vm8559_vm12, %v8558_v1, %v8533_v22  ;;  %v8531_v56 = vpop.permute.xlu0 %8530 }
 0x830   : > { %8576 = vst.msk [vmem:[%s15235_s16 + $0x38] sm:$0xff] %vm8568_vm13, %v8567_v35  ;;  %v8566_v27 = vsel %vm8559_vm12, %v8557_v58, %v8531_v56 }
 0x831   : > { %8575 = vst.msk [vmem:[%s15235_s16 + $0x30] sm:$0xff] %vm8568_vm13, %v8566_v27 }
 0x832   : > { %11304 = shalt.err (!%p11301_p3)
}
 0x833   : > { %s11305_s28 = scalar_lea.hbm %s15278_s15, 1024  ;;  %s11309_s20 = scalar_lea.hbm %s15786_s10, 2048 }
 0x834   : > { %p11306_p12 = scmp.ne.s32.totalorder %s15278_s15, %s11305_s28  ;;  %p11310_p0 = scmp.lt.u32.totalorder %s15278_s15, %s15786_s10 }
 0x835   : > { %p11311_p7 = scmp.lt.u32.totalorder %s11309_s20, %s11305_s28  ;;  %p11313_p6 = scmp.lt.u32.totalorder %s11305_s28, %s15278_s15 }
 0x836   : > { %p11307_p1 = pnand %p11306_p12, %p15787_p10 }
 0x837   : > { %p11312_p2 = por %p11311_p7, %p11310_p0 }
 0x838   : > { %p11308_p13 = pneg %p11307_p1 }
 0x839   : > { %p11314_p5 = por %p11313_p6, %p11312_p2 }
 0x83b   : > { %p11315_p9 = pnand %p11314_p5, %p11308_p13 }
 0x83d   : > { %11318 = shalt.err (!%p11315_p9)
}
 0x83e   : > { %s11397_s30 = smov 128   ;;  %s11398_s0 = smov 8  }
 0x83f   : > { %10935 = dma.vmem_to_hbm [thread:$0]  (%p15787_p10), %s15268_s9, 1024, %s15278_s15, %s8578_s19, %s11397_s30, %s11397_s30, %s11398_s0  }
 0x840 PF: > { %s8606_s16 = sand.u32 1, %s11365_s21   ;;  %p15788_p4 = scmp.ne.s32.totalorder %s15492_s17, 0 }
 0x841   : > { %p15789_p8 = scmp.ge.s32.totalorder %s11377_s24, 2  ;;  %s8607_s6 = scalar_lea.sflag [#allocation5], %s8606_s16 }
 0x843   : > { %p10967_p11 = pnand %p15789_p8, %p15788_p4 }
 0x845   : > { %11360 = dma.done.wait (!%p10967_p11), %s8607_s6, 1024  }
 0x846   : > { %11362 = vsyncadd (!%p10967_p11), %s8607_s6, 4294966272  ;;  %p35_p3 = scmp.ge.s32.totalorder %s11699_s29, 4   ;;  %s15790_s21 = smov %s11369_s22 }
 0x847   : > { %s15791_s22 = smov %s11373_s23  ;;  %s15792_s23 = smov %s11711_s7 }
 0x848   : > { %s15793_s24 = smov %s11699_s29  ;;  %37 = sbr.rel (!%p35_p3) target bundleno = 26 (0x1a), region = 211 }
 0x84f   :  { %8612 = vsyncpa [#allocation4], 1 }
 0x850   :  { %8614 = vsyncpa [#allocation4 + $0x1], 1 }
 0x851   :  { %8615 = vsyncpa [#allocation7], 1 }
 0x852   :  { %8617 = vsyncpa [#allocation7 + $0x1], 1 }
 0x853   :  { %8618 = vsyncpa [#allocation10], 1 }
 0x854   :  { %8619 = vsyncpa [#allocation13], 1 }
 0x855   :  { %8620 = vsyncpa [#allocation16], 1 }
 0x856   :  { %8621 = vsyncpa [#allocation5], 1 }
 0x857   :  { %8623 = vsyncpa [#allocation5 + $0x1], 1 }

</bundles_post_ra>
